<compile_context>
chip_gen: v5e
topology: v5e:2x2
jax: 0.10.0
libtpu: 0.0.40
codegen_flags: <defaults>
</compile_context>

<pallas_src>
import jax
import jax.numpy as jnp
from jax import lax
from jax.experimental import pallas as pl
from jax.experimental.pallas import tpu as pltpu

# ---- problem sizes (fixed by the module: 19x19 input -> 3x3 features) ----
N = 2
H_IN = 19
W_IN = 19
C_IN = 64 * 2          # 128 input channels
C_MID = 64
HIDDEN = 8
EPS = 1e-5

H_PAD = 20             # padded input height
W_PAD = 24             # padded input width (multiple of 8 -> aligned row strides)
H1 = H_IN - 2          # 17 conv1 output spatial
P1 = H1 // 2           # 8  pool1 output spatial
H2 = P1 - 2            # 6  conv2 output spatial
P2 = H2 // 2           # 3  pool2 output spatial

R0 = 1024              # conv1 matmul rows (N*H_PAD*W_PAD = 960, padded to 1024)
R1 = N * H_PAD * W_PAD # 960  conv1 combine rows
RP = N * P1 * P1       # 128  pool1 rows, order (n, ph, pw)
R2 = 112               # conv2 combine rows (covers all valid n*64 + ph*8 + pw)
RT1 = 2 * RP           # 256  pool1 shift-max scratch rows
RW2 = 104              # pool2 shift-max scratch rows


def _relation_kernel(x_ref, w1_ref, b1_ref, g1_ref, be1_ref, m1_ref,
                     w2_ref, b2_ref, g2_ref, be2_ref, m2_ref,
                     fc1w_ref, fc1b_ref, fc2w_ref, fc2b_ref,
                     out_ref,
                     t1_scr, wm2_scr):
    f32 = jnp.float32
    bf16 = jnp.bfloat16

    # ---------- layer 1: Conv2d(128, 64, 3) = one bf16 matmul + 3 aligned kh taps ----------
    y1 = jnp.dot(x_ref[...], w1_ref[...], preferred_element_type=f32)          # (1024, 192)
    conv1 = (y1[0:R1, 0:C_MID] + y1[W_PAD:W_PAD + R1, C_MID:2 * C_MID]) \
            + y1[2 * W_PAD:2 * W_PAD + R1, 2 * C_MID:3 * C_MID]
    conv1 = conv1 + b1_ref[...]                                                # (960, 64)

    # BatchNorm2d (training batch stats over the 2*17*17 valid rows), folded to scale/shift, ReLU.
    s1 = conv1 * m1_ref[...]                                                   # mask pre-scaled 1/578
    mean1 = jnp.sum(s1, axis=0, keepdims=True)                                 # (1, 64)
    var1 = jnp.sum(s1 * conv1, axis=0, keepdims=True) - mean1 * mean1
    scale1 = g1_ref[...] * lax.rsqrt(var1 + EPS)
    shift1 = be1_ref[...] - mean1 * scale1
    r1 = jnp.maximum(conv1 * scale1 + shift1, 0.0)                             # (960, 64)

    # ---------- MaxPool2d(2) #1: aligned shift-maxes into a 256-row scratch ----------
    # group g = (n, ph); base rows are multiples of 8.  Scratch row g*16 + w holds
    # max(r1[2ph, w..w+1], r1[2ph+1, w..w+1]); its EVEN rows are exactly pool1[(n,ph,pw)].
    for g in range(N * P1):
        base = (g // P1) * (H_PAD * W_PAD) + (g % P1) * (2 * W_PAD)
        hm = jnp.maximum(r1[base:base + 2 * P1, :],
                         r1[base + W_PAD:base + W_PAD + 2 * P1, :])            # (16, 64)
        hs = jnp.concatenate([hm[1:, :], hm[:1, :]], axis=0)                   # shift-by-1 (wrap unused)
        t1_scr[g * 2 * P1:(g + 1) * 2 * P1, :] = jnp.maximum(hm, hs)
    p0 = t1_scr[pl.ds(0, RP, stride=2), :]                                     # (128, 64) = pool1
    p1 = jnp.concatenate([p0[1:, :], p0[:1, :]], axis=0)                       # pool1 shifted by 1 in pw
    p2 = jnp.concatenate([p0[2:, :], p0[:2, :]], axis=0)                       # pool1 shifted by 2 in pw

    # ---------- layer 2: Conv2d(64, 64, 3) = 3 bf16 kw-matmuls + 3 aligned kh taps ----------
    y2 = (jnp.dot(p0.astype(bf16), w2_ref[0], preferred_element_type=f32)
          + jnp.dot(p1.astype(bf16), w2_ref[1], preferred_element_type=f32)
          + jnp.dot(p2.astype(bf16), w2_ref[2], preferred_element_type=f32))   # (128, 192)
    conv2 = (y2[0:R2, 0:C_MID] + y2[P1:P1 + R2, C_MID:2 * C_MID]) \
            + y2[2 * P1:2 * P1 + R2, 2 * C_MID:3 * C_MID]
    conv2 = conv2 + b2_ref[...]                                                # (112, 64)

    s2 = conv2 * m2_ref[...]                                                   # mask pre-scaled 1/72
    mean2 = jnp.sum(s2, axis=0, keepdims=True)
    var2 = jnp.sum(s2 * conv2, axis=0, keepdims=True) - mean2 * mean2
    scale2 = g2_ref[...] * lax.rsqrt(var2 + EPS)
    shift2 = be2_ref[...] - mean2 * scale2
    r2 = jnp.maximum(conv2 * scale2 + shift2, 0.0)                             # (112, 64)

    # ---------- MaxPool2d(2) #2: shift-max along pw (rotate 1) and ph (aligned shift 8) ----------
    # Scratch row n*64 + 16*qh + 2*qw then holds pool2[n, qh, qw, :].
    wshift = jnp.concatenate([r2[1:, :], r2[:1, :]], axis=0)
    tw = jnp.maximum(r2, wshift)                                               # (112, 64)
    wm2_scr[...] = jnp.maximum(tw[0:RW2, :], tw[P1:P1 + RW2, :])               # (104, 64)

    # ---------- classifier: z1 = sum_pos pool2_pos(2,64) @ fc1w_pos(64,8); ReLU; fc2; sigmoid ----------
    z1 = jnp.zeros((N, HIDDEN), f32) + fc1b_ref[...]
    for qh in range(P2):
        for qw in range(P2):
            j = 2 * P1 * qh + 2 * qw
            blk = wm2_scr[pl.ds(j, N, stride=P1 * P1), :]                      # rows {j, j+64} -> (2, 64)
            z1 = z1 + jnp.dot(blk, fc1w_ref[qh * P2 + qw],
                              preferred_element_type=f32)
    z1 = jnp.maximum(z1, 0.0)
    z2 = jnp.sum(z1 * fc2w_ref[...], axis=-1, keepdims=True) + fc2b_ref[...]   # (2, 1)
    out_ref[...] = 1.0 / (1.0 + jnp.exp(-z2))


def relation_network_forward(x_nchw, params):
    """Glue: NCHW -> padded channels-last layout with kw im2col pre-applied, wide bf16 weights."""
    f32 = jnp.float32
    bf16 = jnp.bfloat16

    x = jnp.transpose(x_nchw, (0, 2, 3, 1)).astype(f32)                        # NHWC (2,19,19,128)
    x = jnp.pad(x, ((0, 0), (0, H_PAD - H_IN), (0, W_PAD - W_IN), (0, 0)))     # (2,20,24,128)
    x_kw = jnp.concatenate(
        [x,
         jnp.pad(x[:, :, 1:, :], ((0, 0), (0, 0), (0, 1), (0, 0))),
         jnp.pad(x[:, :, 2:, :], ((0, 0), (0, 0), (0, 2), (0, 0)))], axis=-1)  # (2,20,24,384)
    x_flat = jnp.pad(x_kw.reshape(R1, 3 * C_IN), ((0, R0 - R1), (0, 0))).astype(bf16)

    # conv weights HWIO -> (kw*Cin, kh*Cout) wide blocks; MXU operands in bf16 (f32 accumulate).
    w1w = jnp.transpose(params["w1"], (1, 2, 0, 3)).reshape(3 * C_IN, 3 * C_MID).astype(bf16)
    w2w = jnp.transpose(params["w2"], (1, 2, 0, 3)).reshape(3, C_MID, 3 * C_MID).astype(bf16)
    b1 = params["b1"].reshape(1, C_MID).astype(f32)
    b2 = params["b2"].reshape(1, C_MID).astype(f32)
    g1 = params["g1"].reshape(1, C_MID).astype(f32)
    be1 = params["be1"].reshape(1, C_MID).astype(f32)
    g2 = params["g2"].reshape(1, C_MID).astype(f32)
    be2 = params["be2"].reshape(1, C_MID).astype(f32)

    # torch fc1 weight (HIDDEN, C*3*3), column c*9 + qh*3 + qw  ->  9 stacked (64, HIDDEN) blocks.
    fc1w = params["fc1_w"].reshape(HIDDEN, C_MID, P2 * P2).transpose(2, 1, 0).astype(f32)  # (9,64,8)
    fc1b = params["fc1_b"].reshape(1, HIDDEN).astype(f32)
    fc2w = params["fc2_w"].reshape(1, HIDDEN).astype(f32)
    fc2b = params["fc2_b"].reshape(1, 1).astype(f32)

    # validity masks, pre-scaled by 1/count, for training-mode BatchNorm statistics.
    idx1 = jnp.arange(R1)
    q1 = idx1 % (H_PAD * W_PAD)
    valid1 = ((q1 // W_PAD) < H1) & ((q1 % W_PAD) < H1)
    mask1 = (valid1.astype(f32) / float(N * H1 * H1)).reshape(-1, 1)           # (960, 1)

    idx2 = jnp.arange(R2)
    q2 = idx2 % (P1 * P1)
    valid2 = ((q2 // P1) < H2) & ((q2 % P1) < H2)
    mask2 = (valid2.astype(f32) / float(N * H2 * H2)).reshape(-1, 1)           # (112, 1)

    vmem = pl.BlockSpec(memory_space=pltpu.MemorySpace.VMEM)
    return pl.pallas_call(
        _relation_kernel,
        out_shape=jax.ShapeDtypeStruct((N, 1), jnp.float32),
        in_specs=[vmem] * 15,
        out_specs=vmem,
        scratch_shapes=[
            pltpu.VMEM((RT1, C_MID), jnp.float32),   # pool1 shift-max scratch (256 rows)
            pltpu.VMEM((RW2, C_MID), jnp.float32),   # pool2 shift-max scratch (104 rows)
        ],
        compiler_params=pltpu.CompilerParams(vmem_limit_bytes=32 * 1024 * 1024),
    )(x_flat, w1w, b1, g1, be1, mask1, w2w, b2, g2, be2, mask2, fc1w, fc1b, fc2w, fc2b)


def reference_forward(x_nchw, params):
    """Plain-JAX reference matching the PyTorch forward (training-mode BN)."""
    hi = lax.Precision.HIGHEST
    x = jnp.transpose(x_nchw, (0, 2, 3, 1))

    def block(y, w, b, g, be):
        y = lax.conv_general_dilated(y, w, (1, 1), "VALID",
                                     dimension_numbers=("NHWC", "HWIO", "NHWC"),
                                     precision=hi) + b
        m = jnp.mean(y, axis=(0, 1, 2), keepdims=True)
        v = jnp.mean((y - m) ** 2, axis=(0, 1, 2), keepdims=True)
        y = g * (y - m) * lax.rsqrt(v + EPS) + be
        y = jnp.maximum(y, 0.0)
        n, hh, ww, c = y.shape
        y = y[:, :(hh // 2) * 2, :(ww // 2) * 2, :]
        return y.reshape(n, hh // 2, 2, ww // 2, 2, c).max(axis=(2, 4))

    y = block(x, params["w1"], params["b1"], params["g1"], params["be1"])
    y = block(y, params["w2"], params["b2"], params["g2"], params["be2"])
    feat = jnp.transpose(y, (0, 3, 1, 2)).reshape(y.shape[0], -1)              # torch NCHW flatten order
    z = jnp.maximum(jnp.dot(feat, params["fc1_w"].T, precision=hi) + params["fc1_b"], 0.0)
    z = jnp.dot(z, params["fc2_w"].T, precision=hi) + params["fc2_b"]
    return jax.nn.sigmoid(z)


if __name__ == "__main__":
    key = jax.random.PRNGKey(0)
    ks = jax.random.split(key, 14)
    normal = jax.random.normal
    params = {
        "w1":   0.05 * normal(ks[0], (3, 3, C_IN, C_MID), jnp.float32),        # conv1 weight (HWIO)
        "b1":   0.05 * normal(ks[1], (C_MID,), jnp.float32),
        "g1":   1.0 + 0.1 * normal(ks[2], (C_MID,), jnp.float32),              # BN1 gamma
        "be1":  0.1 * normal(ks[3], (C_MID,), jnp.float32),                    # BN1 beta
        "w2":   0.05 * normal(ks[4], (3, 3, C_MID, C_MID), jnp.float32),       # conv2 weight (HWIO)
        "b2":   0.05 * normal(ks[5], (C_MID,), jnp.float32),
        "g2":   1.0 + 0.1 * normal(ks[6], (C_MID,), jnp.float32),
        "be2":  0.1 * normal(ks[7], (C_MID,), jnp.float32),
        "fc1_w": 0.05 * normal(ks[8], (HIDDEN, C_MID * 3 * 3), jnp.float32),   # torch Linear layout
        "fc1_b": 0.05 * normal(ks[9], (HIDDEN,), jnp.float32),
        "fc2_w": 0.05 * normal(ks[10], (1, HIDDEN), jnp.float32),
        "fc2_b": 0.05 * normal(ks[11], (1,), jnp.float32),
    }
    x = normal(ks[12], (N, C_IN, H_IN, W_IN), jnp.float32)                     # NCHW, like PyTorch

    fwd = jax.jit(relation_network_forward)
    out = jax.block_until_ready(fwd(x, params))
    assert out.shape == (N, 1)

    ref = reference_forward(x, params)
    if not jnp.allclose(out, ref, atol=1e-2, rtol=1e-2):
        raise RuntimeError(
            f"kernel/reference mismatch, max|diff|={float(jnp.max(jnp.abs(out - ref)))}")
    print("KERNEL_OK")
</pallas_src>

<mosaic_0001>
module attributes {stable_mosaic.version = 11 : i64} {
  func.func @_relation_kernel(%arg0: memref<1024x384xbf16, #tpu.memory_space<vmem>>, %arg1: memref<384x192xbf16, #tpu.memory_space<vmem>>, %arg2: memref<1x64xf32, #tpu.memory_space<vmem>>, %arg3: memref<1x64xf32, #tpu.memory_space<vmem>>, %arg4: memref<1x64xf32, #tpu.memory_space<vmem>>, %arg5: memref<960x1xf32, #tpu.memory_space<vmem>>, %arg6: memref<3x64x192xbf16, #tpu.memory_space<vmem>>, %arg7: memref<1x64xf32, #tpu.memory_space<vmem>>, %arg8: memref<1x64xf32, #tpu.memory_space<vmem>>, %arg9: memref<1x64xf32, #tpu.memory_space<vmem>>, %arg10: memref<112x1xf32, #tpu.memory_space<vmem>>, %arg11: memref<9x64x8xf32, #tpu.memory_space<vmem>>, %arg12: memref<1x8xf32, #tpu.memory_space<vmem>>, %arg13: memref<1x8xf32, #tpu.memory_space<vmem>>, %arg14: memref<1x1xf32, #tpu.memory_space<vmem>>, %arg15: memref<2x1xf32, #tpu.memory_space<vmem>>, %arg16: memref<256x64xf32, #tpu.memory_space<vmem>>, %arg17: memref<104x64xf32, #tpu.memory_space<vmem>>) attributes {dimension_semantics = [], scalar_prefetch = 0 : i64, scratch_operands = 2 : i64, tpu.core_type = #tpu.core_type<tc>} {
    %c0 = arith.constant 0 : index
    %c0_0 = arith.constant 0 : index
    %0 = vector.load %arg0[%c0, %c0_0] : memref<1024x384xbf16, #tpu.memory_space<vmem>>, vector<1024x384xbf16>
    %c0_1 = arith.constant 0 : index
    %c0_2 = arith.constant 0 : index
    %1 = vector.load %arg1[%c0_1, %c0_2] : memref<384x192xbf16, #tpu.memory_space<vmem>>, vector<384x192xbf16>
    %cst = arith.constant dense<0.000000e+00> : vector<1024x192xf32>
    %2 = tpu.matmul %0, %1, %cst {dimension_numbers = #tpu.dot_dimension_numbers<[1], [0], [0], [1], [0, 0, 1, 1], [], []>} : vector<1024x384xbf16>, vector<384x192xbf16>, vector<1024x192xf32> -> vector<1024x192xf32>
    %3 = vector.extract_strided_slice %2 {offsets = [0, 0], sizes = [960, 64], strides = [1, 1]} : vector<1024x192xf32> to vector<960x64xf32>
    %4 = vector.extract_strided_slice %2 {offsets = [24, 64], sizes = [960, 64], strides = [1, 1]} : vector<1024x192xf32> to vector<960x64xf32>
    %5 = arith.addf %3, %4 : vector<960x64xf32>
    %6 = vector.extract_strided_slice %2 {offsets = [48, 128], sizes = [960, 64], strides = [1, 1]} : vector<1024x192xf32> to vector<960x64xf32>
    %7 = arith.addf %5, %6 : vector<960x64xf32>
    %c0_3 = arith.constant 0 : index
    %c0_4 = arith.constant 0 : index
    %8 = vector.load %arg2[%c0_3, %c0_4] : memref<1x64xf32, #tpu.memory_space<vmem>>, vector<1x64xf32>
    %9 = vector.broadcast %8 : vector<1x64xf32> to vector<960x64xf32>
    %10 = arith.addf %7, %9 : vector<960x64xf32>
    %c0_5 = arith.constant 0 : index
    %c0_6 = arith.constant 0 : index
    %11 = vector.load %arg5[%c0_5, %c0_6] : memref<960x1xf32, #tpu.memory_space<vmem>>, vector<960x1xf32>
    %12 = vector.broadcast %11 : vector<960x1xf32> to vector<960x64xf32>
    %13 = arith.mulf %10, %12 : vector<960x64xf32>
    %cst_7 = arith.constant dense<0.000000e+00> : vector<64xf32>
    %14 = vector.multi_reduction <add>, %13, %cst_7 [0] : vector<960x64xf32> to vector<64xf32>
    %15 = vector.shape_cast %14 : vector<64xf32> to vector<1x64xf32>
    %16 = arith.mulf %13, %10 : vector<960x64xf32>
    %cst_8 = arith.constant dense<0.000000e+00> : vector<64xf32>
    %17 = vector.multi_reduction <add>, %16, %cst_8 [0] : vector<960x64xf32> to vector<64xf32>
    %18 = vector.shape_cast %17 : vector<64xf32> to vector<1x64xf32>
    %19 = arith.mulf %15, %15 : vector<1x64xf32>
    %20 = arith.subf %18, %19 : vector<1x64xf32>
    %c0_9 = arith.constant 0 : index
    %c0_10 = arith.constant 0 : index
    %21 = vector.load %arg3[%c0_9, %c0_10] : memref<1x64xf32, #tpu.memory_space<vmem>>, vector<1x64xf32>
    %cst_11 = arith.constant 9.99999974E-6 : f32
    %22 = vector.broadcast %cst_11 : f32 to vector<1x64xf32>
    %23 = arith.addf %20, %22 : vector<1x64xf32>
    %24 = math.rsqrt %23 : vector<1x64xf32>
    %25 = arith.mulf %21, %24 : vector<1x64xf32>
    %c0_12 = arith.constant 0 : index
    %c0_13 = arith.constant 0 : index
    %26 = vector.load %arg4[%c0_12, %c0_13] : memref<1x64xf32, #tpu.memory_space<vmem>>, vector<1x64xf32>
    %27 = arith.mulf %15, %25 : vector<1x64xf32>
    %28 = arith.subf %26, %27 : vector<1x64xf32>
    %29 = vector.broadcast %25 : vector<1x64xf32> to vector<960x64xf32>
    %30 = arith.mulf %10, %29 : vector<960x64xf32>
    %31 = vector.broadcast %28 : vector<1x64xf32> to vector<960x64xf32>
    %32 = arith.addf %30, %31 : vector<960x64xf32>
    %cst_14 = arith.constant 0.000000e+00 : f32
    %33 = vector.broadcast %cst_14 : f32 to vector<960x64xf32>
    %34 = arith.maximumf %32, %33 : vector<960x64xf32>
    %35 = vector.extract_strided_slice %34 {offsets = [0, 0], sizes = [16, 64], strides = [1, 1]} : vector<960x64xf32> to vector<16x64xf32>
    %36 = vector.extract_strided_slice %34 {offsets = [24, 0], sizes = [16, 64], strides = [1, 1]} : vector<960x64xf32> to vector<16x64xf32>
    %37 = arith.maximumf %35, %36 : vector<16x64xf32>
    %38 = vector.extract_strided_slice %37 {offsets = [1, 0], sizes = [15, 64], strides = [1, 1]} : vector<16x64xf32> to vector<15x64xf32>
    %39 = vector.extract_strided_slice %37 {offsets = [0, 0], sizes = [1, 64], strides = [1, 1]} : vector<16x64xf32> to vector<1x64xf32>
    %40 = tpu.concatenate %38, %39 in 0 : vector<15x64xf32>, vector<1x64xf32> -> vector<16x64xf32>
    %41 = arith.maximumf %37, %40 : vector<16x64xf32>
    %c0_15 = arith.constant 0 : index
    %c0_16 = arith.constant 0 : index
    %42 = vector.load %arg16[%c0_15, %c0_16] : memref<256x64xf32, #tpu.memory_space<vmem>>, vector<16x64xf32>
    tpu.vector_store %arg16[%c0_15, %c0_16], %41 {strides = array<i32>} : memref<256x64xf32, #tpu.memory_space<vmem>>, vector<16x64xf32>,
    %43 = vector.extract_strided_slice %34 {offsets = [48, 0], sizes = [16, 64], strides = [1, 1]} : vector<960x64xf32> to vector<16x64xf32>
    %44 = vector.extract_strided_slice %34 {offsets = [72, 0], sizes = [16, 64], strides = [1, 1]} : vector<960x64xf32> to vector<16x64xf32>
    %45 = arith.maximumf %43, %44 : vector<16x64xf32>
    %46 = vector.extract_strided_slice %45 {offsets = [1, 0], sizes = [15, 64], strides = [1, 1]} : vector<16x64xf32> to vector<15x64xf32>
    %47 = vector.extract_strided_slice %45 {offsets = [0, 0], sizes = [1, 64], strides = [1, 1]} : vector<16x64xf32> to vector<1x64xf32>
    %48 = tpu.concatenate %46, %47 in 0 : vector<15x64xf32>, vector<1x64xf32> -> vector<16x64xf32>
    %49 = arith.maximumf %45, %48 : vector<16x64xf32>
    %c16 = arith.constant 16 : index
    %c0_17 = arith.constant 0 : index
    %50 = vector.load %arg16[%c16, %c0_17] : memref<256x64xf32, #tpu.memory_space<vmem>>, vector<16x64xf32>
    tpu.vector_store %arg16[%c16, %c0_17], %49 {strides = array<i32>} : memref<256x64xf32, #tpu.memory_space<vmem>>, vector<16x64xf32>,
    %51 = vector.extract_strided_slice %34 {offsets = [96, 0], sizes = [16, 64], strides = [1, 1]} : vector<960x64xf32> to vector<16x64xf32>
    %52 = vector.extract_strided_slice %34 {offsets = [120, 0], sizes = [16, 64], strides = [1, 1]} : vector<960x64xf32> to vector<16x64xf32>
    %53 = arith.maximumf %51, %52 : vector<16x64xf32>
    %54 = vector.extract_strided_slice %53 {offsets = [1, 0], sizes = [15, 64], strides = [1, 1]} : vector<16x64xf32> to vector<15x64xf32>
    %55 = vector.extract_strided_slice %53 {offsets = [0, 0], sizes = [1, 64], strides = [1, 1]} : vector<16x64xf32> to vector<1x64xf32>
    %56 = tpu.concatenate %54, %55 in 0 : vector<15x64xf32>, vector<1x64xf32> -> vector<16x64xf32>
    %57 = arith.maximumf %53, %56 : vector<16x64xf32>
    %c32 = arith.constant 32 : index
    %c0_18 = arith.constant 0 : index
    %58 = vector.load %arg16[%c32, %c0_18] : memref<256x64xf32, #tpu.memory_space<vmem>>, vector<16x64xf32>
    tpu.vector_store %arg16[%c32, %c0_18], %57 {strides = array<i32>} : memref<256x64xf32, #tpu.memory_space<vmem>>, vector<16x64xf32>,
    %59 = vector.extract_strided_slice %34 {offsets = [144, 0], sizes = [16, 64], strides = [1, 1]} : vector<960x64xf32> to vector<16x64xf32>
    %60 = vector.extract_strided_slice %34 {offsets = [168, 0], sizes = [16, 64], strides = [1, 1]} : vector<960x64xf32> to vector<16x64xf32>
    %61 = arith.maximumf %59, %60 : vector<16x64xf32>
    %62 = vector.extract_strided_slice %61 {offsets = [1, 0], sizes = [15, 64], strides = [1, 1]} : vector<16x64xf32> to vector<15x64xf32>
    %63 = vector.extract_strided_slice %61 {offsets = [0, 0], sizes = [1, 64], strides = [1, 1]} : vector<16x64xf32> to vector<1x64xf32>
    %64 = tpu.concatenate %62, %63 in 0 : vector<15x64xf32>, vector<1x64xf32> -> vector<16x64xf32>
    %65 = arith.maximumf %61, %64 : vector<16x64xf32>
    %c48 = arith.constant 48 : index
    %c0_19 = arith.constant 0 : index
    %66 = vector.load %arg16[%c48, %c0_19] : memref<256x64xf32, #tpu.memory_space<vmem>>, vector<16x64xf32>
    tpu.vector_store %arg16[%c48, %c0_19], %65 {strides = array<i32>} : memref<256x64xf32, #tpu.memory_space<vmem>>, vector<16x64xf32>,
    %67 = vector.extract_strided_slice %34 {offsets = [192, 0], sizes = [16, 64], strides = [1, 1]} : vector<960x64xf32> to vector<16x64xf32>
    %68 = vector.extract_strided_slice %34 {offsets = [216, 0], sizes = [16, 64], strides = [1, 1]} : vector<960x64xf32> to vector<16x64xf32>
    %69 = arith.maximumf %67, %68 : vector<16x64xf32>
    %70 = vector.extract_strided_slice %69 {offsets = [1, 0], sizes = [15, 64], strides = [1, 1]} : vector<16x64xf32> to vector<15x64xf32>
    %71 = vector.extract_strided_slice %69 {offsets = [0, 0], sizes = [1, 64], strides = [1, 1]} : vector<16x64xf32> to vector<1x64xf32>
    %72 = tpu.concatenate %70, %71 in 0 : vector<15x64xf32>, vector<1x64xf32> -> vector<16x64xf32>
    %73 = arith.maximumf %69, %72 : vector<16x64xf32>
    %c64 = arith.constant 64 : index
    %c0_20 = arith.constant 0 : index
    %74 = vector.load %arg16[%c64, %c0_20] : memref<256x64xf32, #tpu.memory_space<vmem>>, vector<16x64xf32>
    tpu.vector_store %arg16[%c64, %c0_20], %73 {strides = array<i32>} : memref<256x64xf32, #tpu.memory_space<vmem>>, vector<16x64xf32>,
    %75 = vector.extract_strided_slice %34 {offsets = [240, 0], sizes = [16, 64], strides = [1, 1]} : vector<960x64xf32> to vector<16x64xf32>
    %76 = vector.extract_strided_slice %34 {offsets = [264, 0], sizes = [16, 64], strides = [1, 1]} : vector<960x64xf32> to vector<16x64xf32>
    %77 = arith.maximumf %75, %76 : vector<16x64xf32>
    %78 = vector.extract_strided_slice %77 {offsets = [1, 0], sizes = [15, 64], strides = [1, 1]} : vector<16x64xf32> to vector<15x64xf32>
    %79 = vector.extract_strided_slice %77 {offsets = [0, 0], sizes = [1, 64], strides = [1, 1]} : vector<16x64xf32> to vector<1x64xf32>
    %80 = tpu.concatenate %78, %79 in 0 : vector<15x64xf32>, vector<1x64xf32> -> vector<16x64xf32>
    %81 = arith.maximumf %77, %80 : vector<16x64xf32>
    %c80 = arith.constant 80 : index
    %c0_21 = arith.constant 0 : index
    %82 = vector.load %arg16[%c80, %c0_21] : memref<256x64xf32, #tpu.memory_space<vmem>>, vector<16x64xf32>
    tpu.vector_store %arg16[%c80, %c0_21], %81 {strides = array<i32>} : memref<256x64xf32, #tpu.memory_space<vmem>>, vector<16x64xf32>,
    %83 = vector.extract_strided_slice %34 {offsets = [288, 0], sizes = [16, 64], strides = [1, 1]} : vector<960x64xf32> to vector<16x64xf32>
    %84 = vector.extract_strided_slice %34 {offsets = [312, 0], sizes = [16, 64], strides = [1, 1]} : vector<960x64xf32> to vector<16x64xf32>
    %85 = arith.maximumf %83, %84 : vector<16x64xf32>
    %86 = vector.extract_strided_slice %85 {offsets = [1, 0], sizes = [15, 64], strides = [1, 1]} : vector<16x64xf32> to vector<15x64xf32>
    %87 = vector.extract_strided_slice %85 {offsets = [0, 0], sizes = [1, 64], strides = [1, 1]} : vector<16x64xf32> to vector<1x64xf32>
    %88 = tpu.concatenate %86, %87 in 0 : vector<15x64xf32>, vector<1x64xf32> -> vector<16x64xf32>
    %89 = arith.maximumf %85, %88 : vector<16x64xf32>
    %c96 = arith.constant 96 : index
    %c0_22 = arith.constant 0 : index
    %90 = vector.load %arg16[%c96, %c0_22] : memref<256x64xf32, #tpu.memory_space<vmem>>, vector<16x64xf32>
    tpu.vector_store %arg16[%c96, %c0_22], %89 {strides = array<i32>} : memref<256x64xf32, #tpu.memory_space<vmem>>, vector<16x64xf32>,
    %91 = vector.extract_strided_slice %34 {offsets = [336, 0], sizes = [16, 64], strides = [1, 1]} : vector<960x64xf32> to vector<16x64xf32>
    %92 = vector.extract_strided_slice %34 {offsets = [360, 0], sizes = [16, 64], strides = [1, 1]} : vector<960x64xf32> to vector<16x64xf32>
    %93 = arith.maximumf %91, %92 : vector<16x64xf32>
    %94 = vector.extract_strided_slice %93 {offsets = [1, 0], sizes = [15, 64], strides = [1, 1]} : vector<16x64xf32> to vector<15x64xf32>
    %95 = vector.extract_strided_slice %93 {offsets = [0, 0], sizes = [1, 64], strides = [1, 1]} : vector<16x64xf32> to vector<1x64xf32>
    %96 = tpu.concatenate %94, %95 in 0 : vector<15x64xf32>, vector<1x64xf32> -> vector<16x64xf32>
    %97 = arith.maximumf %93, %96 : vector<16x64xf32>
    %c112 = arith.constant 112 : index
    %c0_23 = arith.constant 0 : index
    %98 = vector.load %arg16[%c112, %c0_23] : memref<256x64xf32, #tpu.memory_space<vmem>>, vector<16x64xf32>
    tpu.vector_store %arg16[%c112, %c0_23], %97 {strides = array<i32>} : memref<256x64xf32, #tpu.memory_space<vmem>>, vector<16x64xf32>,
    %99 = vector.extract_strided_slice %34 {offsets = [480, 0], sizes = [16, 64], strides = [1, 1]} : vector<960x64xf32> to vector<16x64xf32>
    %100 = vector.extract_strided_slice %34 {offsets = [504, 0], sizes = [16, 64], strides = [1, 1]} : vector<960x64xf32> to vector<16x64xf32>
    %101 = arith.maximumf %99, %100 : vector<16x64xf32>
    %102 = vector.extract_strided_slice %101 {offsets = [1, 0], sizes = [15, 64], strides = [1, 1]} : vector<16x64xf32> to vector<15x64xf32>
    %103 = vector.extract_strided_slice %101 {offsets = [0, 0], sizes = [1, 64], strides = [1, 1]} : vector<16x64xf32> to vector<1x64xf32>
    %104 = tpu.concatenate %102, %103 in 0 : vector<15x64xf32>, vector<1x64xf32> -> vector<16x64xf32>
    %105 = arith.maximumf %101, %104 : vector<16x64xf32>
    %c128 = arith.constant 128 : index
    %c0_24 = arith.constant 0 : index
    %106 = vector.load %arg16[%c128, %c0_24] : memref<256x64xf32, #tpu.memory_space<vmem>>, vector<16x64xf32>
    tpu.vector_store %arg16[%c128, %c0_24], %105 {strides = array<i32>} : memref<256x64xf32, #tpu.memory_space<vmem>>, vector<16x64xf32>,
    %107 = vector.extract_strided_slice %34 {offsets = [528, 0], sizes = [16, 64], strides = [1, 1]} : vector<960x64xf32> to vector<16x64xf32>
    %108 = vector.extract_strided_slice %34 {offsets = [552, 0], sizes = [16, 64], strides = [1, 1]} : vector<960x64xf32> to vector<16x64xf32>
    %109 = arith.maximumf %107, %108 : vector<16x64xf32>
    %110 = vector.extract_strided_slice %109 {offsets = [1, 0], sizes = [15, 64], strides = [1, 1]} : vector<16x64xf32> to vector<15x64xf32>
    %111 = vector.extract_strided_slice %109 {offsets = [0, 0], sizes = [1, 64], strides = [1, 1]} : vector<16x64xf32> to vector<1x64xf32>
    %112 = tpu.concatenate %110, %111 in 0 : vector<15x64xf32>, vector<1x64xf32> -> vector<16x64xf32>
    %113 = arith.maximumf %109, %112 : vector<16x64xf32>
    %c144 = arith.constant 144 : index
    %c0_25 = arith.constant 0 : index
    %114 = vector.load %arg16[%c144, %c0_25] : memref<256x64xf32, #tpu.memory_space<vmem>>, vector<16x64xf32>
    tpu.vector_store %arg16[%c144, %c0_25], %113 {strides = array<i32>} : memref<256x64xf32, #tpu.memory_space<vmem>>, vector<16x64xf32>,
    %115 = vector.extract_strided_slice %34 {offsets = [576, 0], sizes = [16, 64], strides = [1, 1]} : vector<960x64xf32> to vector<16x64xf32>
    %116 = vector.extract_strided_slice %34 {offsets = [600, 0], sizes = [16, 64], strides = [1, 1]} : vector<960x64xf32> to vector<16x64xf32>
    %117 = arith.maximumf %115, %116 : vector<16x64xf32>
    %118 = vector.extract_strided_slice %117 {offsets = [1, 0], sizes = [15, 64], strides = [1, 1]} : vector<16x64xf32> to vector<15x64xf32>
    %119 = vector.extract_strided_slice %117 {offsets = [0, 0], sizes = [1, 64], strides = [1, 1]} : vector<16x64xf32> to vector<1x64xf32>
    %120 = tpu.concatenate %118, %119 in 0 : vector<15x64xf32>, vector<1x64xf32> -> vector<16x64xf32>
    %121 = arith.maximumf %117, %120 : vector<16x64xf32>
    %c160 = arith.constant 160 : index
    %c0_26 = arith.constant 0 : index
    %122 = vector.load %arg16[%c160, %c0_26] : memref<256x64xf32, #tpu.memory_space<vmem>>, vector<16x64xf32>
    tpu.vector_store %arg16[%c160, %c0_26], %121 {strides = array<i32>} : memref<256x64xf32, #tpu.memory_space<vmem>>, vector<16x64xf32>,
    %123 = vector.extract_strided_slice %34 {offsets = [624, 0], sizes = [16, 64], strides = [1, 1]} : vector<960x64xf32> to vector<16x64xf32>
    %124 = vector.extract_strided_slice %34 {offsets = [648, 0], sizes = [16, 64], strides = [1, 1]} : vector<960x64xf32> to vector<16x64xf32>
    %125 = arith.maximumf %123, %124 : vector<16x64xf32>
    %126 = vector.extract_strided_slice %125 {offsets = [1, 0], sizes = [15, 64], strides = [1, 1]} : vector<16x64xf32> to vector<15x64xf32>
    %127 = vector.extract_strided_slice %125 {offsets = [0, 0], sizes = [1, 64], strides = [1, 1]} : vector<16x64xf32> to vector<1x64xf32>
    %128 = tpu.concatenate %126, %127 in 0 : vector<15x64xf32>, vector<1x64xf32> -> vector<16x64xf32>
    %129 = arith.maximumf %125, %128 : vector<16x64xf32>
    %c176 = arith.constant 176 : index
    %c0_27 = arith.constant 0 : index
    %130 = vector.load %arg16[%c176, %c0_27] : memref<256x64xf32, #tpu.memory_space<vmem>>, vector<16x64xf32>
    tpu.vector_store %arg16[%c176, %c0_27], %129 {strides = array<i32>} : memref<256x64xf32, #tpu.memory_space<vmem>>, vector<16x64xf32>,
    %131 = vector.extract_strided_slice %34 {offsets = [672, 0], sizes = [16, 64], strides = [1, 1]} : vector<960x64xf32> to vector<16x64xf32>
    %132 = vector.extract_strided_slice %34 {offsets = [696, 0], sizes = [16, 64], strides = [1, 1]} : vector<960x64xf32> to vector<16x64xf32>
    %133 = arith.maximumf %131, %132 : vector<16x64xf32>
    %134 = vector.extract_strided_slice %133 {offsets = [1, 0], sizes = [15, 64], strides = [1, 1]} : vector<16x64xf32> to vector<15x64xf32>
    %135 = vector.extract_strided_slice %133 {offsets = [0, 0], sizes = [1, 64], strides = [1, 1]} : vector<16x64xf32> to vector<1x64xf32>
    %136 = tpu.concatenate %134, %135 in 0 : vector<15x64xf32>, vector<1x64xf32> -> vector<16x64xf32>
    %137 = arith.maximumf %133, %136 : vector<16x64xf32>
    %c192 = arith.constant 192 : index
    %c0_28 = arith.constant 0 : index
    %138 = vector.load %arg16[%c192, %c0_28] : memref<256x64xf32, #tpu.memory_space<vmem>>, vector<16x64xf32>
    tpu.vector_store %arg16[%c192, %c0_28], %137 {strides = array<i32>} : memref<256x64xf32, #tpu.memory_space<vmem>>, vector<16x64xf32>,
    %139 = vector.extract_strided_slice %34 {offsets = [720, 0], sizes = [16, 64], strides = [1, 1]} : vector<960x64xf32> to vector<16x64xf32>
    %140 = vector.extract_strided_slice %34 {offsets = [744, 0], sizes = [16, 64], strides = [1, 1]} : vector<960x64xf32> to vector<16x64xf32>
    %141 = arith.maximumf %139, %140 : vector<16x64xf32>
    %142 = vector.extract_strided_slice %141 {offsets = [1, 0], sizes = [15, 64], strides = [1, 1]} : vector<16x64xf32> to vector<15x64xf32>
    %143 = vector.extract_strided_slice %141 {offsets = [0, 0], sizes = [1, 64], strides = [1, 1]} : vector<16x64xf32> to vector<1x64xf32>
    %144 = tpu.concatenate %142, %143 in 0 : vector<15x64xf32>, vector<1x64xf32> -> vector<16x64xf32>
    %145 = arith.maximumf %141, %144 : vector<16x64xf32>
    %c208 = arith.constant 208 : index
    %c0_29 = arith.constant 0 : index
    %146 = vector.load %arg16[%c208, %c0_29] : memref<256x64xf32, #tpu.memory_space<vmem>>, vector<16x64xf32>
    tpu.vector_store %arg16[%c208, %c0_29], %145 {strides = array<i32>} : memref<256x64xf32, #tpu.memory_space<vmem>>, vector<16x64xf32>,
    %147 = vector.extract_strided_slice %34 {offsets = [768, 0], sizes = [16, 64], strides = [1, 1]} : vector<960x64xf32> to vector<16x64xf32>
    %148 = vector.extract_strided_slice %34 {offsets = [792, 0], sizes = [16, 64], strides = [1, 1]} : vector<960x64xf32> to vector<16x64xf32>
    %149 = arith.maximumf %147, %148 : vector<16x64xf32>
    %150 = vector.extract_strided_slice %149 {offsets = [1, 0], sizes = [15, 64], strides = [1, 1]} : vector<16x64xf32> to vector<15x64xf32>
    %151 = vector.extract_strided_slice %149 {offsets = [0, 0], sizes = [1, 64], strides = [1, 1]} : vector<16x64xf32> to vector<1x64xf32>
    %152 = tpu.concatenate %150, %151 in 0 : vector<15x64xf32>, vector<1x64xf32> -> vector<16x64xf32>
    %153 = arith.maximumf %149, %152 : vector<16x64xf32>
    %c224 = arith.constant 224 : index
    %c0_30 = arith.constant 0 : index
    %154 = vector.load %arg16[%c224, %c0_30] : memref<256x64xf32, #tpu.memory_space<vmem>>, vector<16x64xf32>
    tpu.vector_store %arg16[%c224, %c0_30], %153 {strides = array<i32>} : memref<256x64xf32, #tpu.memory_space<vmem>>, vector<16x64xf32>,
    %155 = vector.extract_strided_slice %34 {offsets = [816, 0], sizes = [16, 64], strides = [1, 1]} : vector<960x64xf32> to vector<16x64xf32>
    %156 = vector.extract_strided_slice %34 {offsets = [840, 0], sizes = [16, 64], strides = [1, 1]} : vector<960x64xf32> to vector<16x64xf32>
    %157 = arith.maximumf %155, %156 : vector<16x64xf32>
    %158 = vector.extract_strided_slice %157 {offsets = [1, 0], sizes = [15, 64], strides = [1, 1]} : vector<16x64xf32> to vector<15x64xf32>
    %159 = vector.extract_strided_slice %157 {offsets = [0, 0], sizes = [1, 64], strides = [1, 1]} : vector<16x64xf32> to vector<1x64xf32>
    %160 = tpu.concatenate %158, %159 in 0 : vector<15x64xf32>, vector<1x64xf32> -> vector<16x64xf32>
    %161 = arith.maximumf %157, %160 : vector<16x64xf32>
    %c240 = arith.constant 240 : index
    %c0_31 = arith.constant 0 : index
    %162 = vector.load %arg16[%c240, %c0_31] : memref<256x64xf32, #tpu.memory_space<vmem>>, vector<16x64xf32>
    tpu.vector_store %arg16[%c240, %c0_31], %161 {strides = array<i32>} : memref<256x64xf32, #tpu.memory_space<vmem>>, vector<16x64xf32>,
    %c0_32 = arith.constant 0 : index
    %c0_33 = arith.constant 0 : index
    %163 = tpu.strided_load %arg16[%c0_32, %c0_33] {strides = array<i32: 2, 1>} : memref<256x64xf32, #tpu.memory_space<vmem>>, vector<128x64xf32>
    %164 = vector.extract_strided_slice %163 {offsets = [1, 0], sizes = [127, 64], strides = [1, 1]} : vector<128x64xf32> to vector<127x64xf32>
    %165 = vector.extract_strided_slice %163 {offsets = [0, 0], sizes = [1, 64], strides = [1, 1]} : vector<128x64xf32> to vector<1x64xf32>
    %166 = tpu.concatenate %164, %165 in 0 : vector<127x64xf32>, vector<1x64xf32> -> vector<128x64xf32>
    %167 = vector.extract_strided_slice %163 {offsets = [2, 0], sizes = [126, 64], strides = [1, 1]} : vector<128x64xf32> to vector<126x64xf32>
    %168 = vector.extract_strided_slice %163 {offsets = [0, 0], sizes = [2, 64], strides = [1, 1]} : vector<128x64xf32> to vector<2x64xf32>
    %169 = tpu.concatenate %167, %168 in 0 : vector<126x64xf32>, vector<2x64xf32> -> vector<128x64xf32>
    %170 = arith.truncf %163 : vector<128x64xf32> to vector<128x64xbf16>
    %c0_34 = arith.constant 0 : index
    %c0_35 = arith.constant 0 : index
    %c0_36 = arith.constant 0 : index
    %171 = vector.load %arg6[%c0_34, %c0_35, %c0_36] : memref<3x64x192xbf16, #tpu.memory_space<vmem>>, vector<1x64x192xbf16>
    %172 = vector.shape_cast %171 : vector<1x64x192xbf16> to vector<64x192xbf16>
    %cst_37 = arith.constant dense<0.000000e+00> : vector<128x192xf32>
    %173 = tpu.matmul %170, %172, %cst_37 {dimension_numbers = #tpu.dot_dimension_numbers<[1], [0], [0], [1], [0, 0, 1, 1], [], []>} : vector<128x64xbf16>, vector<64x192xbf16>, vector<128x192xf32> -> vector<128x192xf32>
    %174 = arith.truncf %166 : vector<128x64xf32> to vector<128x64xbf16>
    %c1 = arith.constant 1 : index
    %c0_38 = arith.constant 0 : index
    %c0_39 = arith.constant 0 : index
    %175 = vector.load %arg6[%c1, %c0_38, %c0_39] : memref<3x64x192xbf16, #tpu.memory_space<vmem>>, vector<1x64x192xbf16>
    %176 = vector.shape_cast %175 : vector<1x64x192xbf16> to vector<64x192xbf16>
    %cst_40 = arith.constant dense<0.000000e+00> : vector<128x192xf32>
    %177 = tpu.matmul %174, %176, %cst_40 {dimension_numbers = #tpu.dot_dimension_numbers<[1], [0], [0], [1], [0, 0, 1, 1], [], []>} : vector<128x64xbf16>, vector<64x192xbf16>, vector<128x192xf32> -> vector<128x192xf32>
    %178 = arith.addf %173, %177 : vector<128x192xf32>
    %179 = arith.truncf %169 : vector<128x64xf32> to vector<128x64xbf16>
    %c2 = arith.constant 2 : index
    %c0_41 = arith.constant 0 : index
    %c0_42 = arith.constant 0 : index
    %180 = vector.load %arg6[%c2, %c0_41, %c0_42] : memref<3x64x192xbf16, #tpu.memory_space<vmem>>, vector<1x64x192xbf16>
    %181 = vector.shape_cast %180 : vector<1x64x192xbf16> to vector<64x192xbf16>
    %cst_43 = arith.constant dense<0.000000e+00> : vector<128x192xf32>
    %182 = tpu.matmul %179, %181, %cst_43 {dimension_numbers = #tpu.dot_dimension_numbers<[1], [0], [0], [1], [0, 0, 1, 1], [], []>} : vector<128x64xbf16>, vector<64x192xbf16>, vector<128x192xf32> -> vector<128x192xf32>
    %183 = arith.addf %178, %182 : vector<128x192xf32>
    %184 = vector.extract_strided_slice %183 {offsets = [0, 0], sizes = [112, 64], strides = [1, 1]} : vector<128x192xf32> to vector<112x64xf32>
    %185 = vector.extract_strided_slice %183 {offsets = [8, 64], sizes = [112, 64], strides = [1, 1]} : vector<128x192xf32> to vector<112x64xf32>
    %186 = arith.addf %184, %185 : vector<112x64xf32>
    %187 = vector.extract_strided_slice %183 {offsets = [16, 128], sizes = [112, 64], strides = [1, 1]} : vector<128x192xf32> to vector<112x64xf32>
    %188 = arith.addf %186, %187 : vector<112x64xf32>
    %c0_44 = arith.constant 0 : index
    %c0_45 = arith.constant 0 : index
    %189 = vector.load %arg7[%c0_44, %c0_45] : memref<1x64xf32, #tpu.memory_space<vmem>>, vector<1x64xf32>
    %190 = vector.broadcast %189 : vector<1x64xf32> to vector<112x64xf32>
    %191 = arith.addf %188, %190 : vector<112x64xf32>
    %c0_46 = arith.constant 0 : index
    %c0_47 = arith.constant 0 : index
    %192 = vector.load %arg10[%c0_46, %c0_47] : memref<112x1xf32, #tpu.memory_space<vmem>>, vector<112x1xf32>
    %193 = vector.broadcast %192 : vector<112x1xf32> to vector<112x64xf32>
    %194 = arith.mulf %191, %193 : vector<112x64xf32>
    %cst_48 = arith.constant dense<0.000000e+00> : vector<64xf32>
    %195 = vector.multi_reduction <add>, %194, %cst_48 [0] : vector<112x64xf32> to vector<64xf32>
    %196 = vector.shape_cast %195 : vector<64xf32> to vector<1x64xf32>
    %197 = arith.mulf %194, %191 : vector<112x64xf32>
    %cst_49 = arith.constant dense<0.000000e+00> : vector<64xf32>
    %198 = vector.multi_reduction <add>, %197, %cst_49 [0] : vector<112x64xf32> to vector<64xf32>
    %199 = vector.shape_cast %198 : vector<64xf32> to vector<1x64xf32>
    %200 = arith.mulf %196, %196 : vector<1x64xf32>
    %201 = arith.subf %199, %200 : vector<1x64xf32>
    %c0_50 = arith.constant 0 : index
    %c0_51 = arith.constant 0 : index
    %202 = vector.load %arg8[%c0_50, %c0_51] : memref<1x64xf32, #tpu.memory_space<vmem>>, vector<1x64xf32>
    %cst_52 = arith.constant 9.99999974E-6 : f32
    %203 = vector.broadcast %cst_52 : f32 to vector<1x64xf32>
    %204 = arith.addf %201, %203 : vector<1x64xf32>
    %205 = math.rsqrt %204 : vector<1x64xf32>
    %206 = arith.mulf %202, %205 : vector<1x64xf32>
    %c0_53 = arith.constant 0 : index
    %c0_54 = arith.constant 0 : index
    %207 = vector.load %arg9[%c0_53, %c0_54] : memref<1x64xf32, #tpu.memory_space<vmem>>, vector<1x64xf32>
    %208 = arith.mulf %196, %206 : vector<1x64xf32>
    %209 = arith.subf %207, %208 : vector<1x64xf32>
    %210 = vector.broadcast %206 : vector<1x64xf32> to vector<112x64xf32>
    %211 = arith.mulf %191, %210 : vector<112x64xf32>
    %212 = vector.broadcast %209 : vector<1x64xf32> to vector<112x64xf32>
    %213 = arith.addf %211, %212 : vector<112x64xf32>
    %cst_55 = arith.constant 0.000000e+00 : f32
    %214 = vector.broadcast %cst_55 : f32 to vector<112x64xf32>
    %215 = arith.maximumf %213, %214 : vector<112x64xf32>
    %216 = vector.extract_strided_slice %215 {offsets = [1, 0], sizes = [111, 64], strides = [1, 1]} : vector<112x64xf32> to vector<111x64xf32>
    %217 = vector.extract_strided_slice %215 {offsets = [0, 0], sizes = [1, 64], strides = [1, 1]} : vector<112x64xf32> to vector<1x64xf32>
    %218 = tpu.concatenate %216, %217 in 0 : vector<111x64xf32>, vector<1x64xf32> -> vector<112x64xf32>
    %219 = arith.maximumf %215, %218 : vector<112x64xf32>
    %220 = vector.extract_strided_slice %219 {offsets = [0, 0], sizes = [104, 64], strides = [1, 1]} : vector<112x64xf32> to vector<104x64xf32>
    %221 = vector.extract_strided_slice %219 {offsets = [8, 0], sizes = [104, 64], strides = [1, 1]} : vector<112x64xf32> to vector<104x64xf32>
    %222 = arith.maximumf %220, %221 : vector<104x64xf32>
    %c0_56 = arith.constant 0 : index
    %c0_57 = arith.constant 0 : index
    %223 = vector.load %arg17[%c0_56, %c0_57] : memref<104x64xf32, #tpu.memory_space<vmem>>, vector<104x64xf32>
    tpu.vector_store %arg17[%c0_56, %c0_57], %222 {strides = array<i32>} : memref<104x64xf32, #tpu.memory_space<vmem>>, vector<104x64xf32>,
    %cst_58 = arith.constant 0.000000e+00 : f32
    %224 = vector.broadcast %cst_58 : f32 to vector<2x8xf32>
    %c0_59 = arith.constant 0 : index
    %c0_60 = arith.constant 0 : index
    %225 = vector.load %arg12[%c0_59, %c0_60] : memref<1x8xf32, #tpu.memory_space<vmem>>, vector<1x8xf32>
    %226 = vector.broadcast %225 : vector<1x8xf32> to vector<2x8xf32>
    %227 = arith.addf %224, %226 : vector<2x8xf32>
    %c0_61 = arith.constant 0 : index
    %c0_62 = arith.constant 0 : index
    %228 = tpu.strided_load %arg17[%c0_61, %c0_62] {strides = array<i32: 64, 1>} : memref<104x64xf32, #tpu.memory_space<vmem>>, vector<2x64xf32>
    %c0_63 = arith.constant 0 : index
    %c0_64 = arith.constant 0 : index
    %c0_65 = arith.constant 0 : index
    %229 = vector.load %arg11[%c0_63, %c0_64, %c0_65] : memref<9x64x8xf32, #tpu.memory_space<vmem>>, vector<1x64x8xf32>
    %230 = vector.shape_cast %229 : vector<1x64x8xf32> to vector<64x8xf32>
    %cst_66 = arith.constant dense<0.000000e+00> : vector<2x8xf32>
    %231 = tpu.matmul %228, %230, %cst_66 {dimension_numbers = #tpu.dot_dimension_numbers<[1], [0], [0], [1], [0, 0, 1, 1], [], []>} : vector<2x64xf32>, vector<64x8xf32>, vector<2x8xf32> -> vector<2x8xf32>
    %232 = arith.addf %227, %231 : vector<2x8xf32>
    %c2_67 = arith.constant 2 : index
    %c0_68 = arith.constant 0 : index
    %233 = tpu.strided_load %arg17[%c2_67, %c0_68] {strides = array<i32: 64, 1>} : memref<104x64xf32, #tpu.memory_space<vmem>>, vector<2x64xf32>
    %c1_69 = arith.constant 1 : index
    %c0_70 = arith.constant 0 : index
    %c0_71 = arith.constant 0 : index
    %234 = vector.load %arg11[%c1_69, %c0_70, %c0_71] : memref<9x64x8xf32, #tpu.memory_space<vmem>>, vector<1x64x8xf32>
    %235 = vector.shape_cast %234 : vector<1x64x8xf32> to vector<64x8xf32>
    %cst_72 = arith.constant dense<0.000000e+00> : vector<2x8xf32>
    %236 = tpu.matmul %233, %235, %cst_72 {dimension_numbers = #tpu.dot_dimension_numbers<[1], [0], [0], [1], [0, 0, 1, 1], [], []>} : vector<2x64xf32>, vector<64x8xf32>, vector<2x8xf32> -> vector<2x8xf32>
    %237 = arith.addf %232, %236 : vector<2x8xf32>
    %c4 = arith.constant 4 : index
    %c0_73 = arith.constant 0 : index
    %238 = tpu.strided_load %arg17[%c4, %c0_73] {strides = array<i32: 64, 1>} : memref<104x64xf32, #tpu.memory_space<vmem>>, vector<2x64xf32>
    %c2_74 = arith.constant 2 : index
    %c0_75 = arith.constant 0 : index
    %c0_76 = arith.constant 0 : index
    %239 = vector.load %arg11[%c2_74, %c0_75, %c0_76] : memref<9x64x8xf32, #tpu.memory_space<vmem>>, vector<1x64x8xf32>
    %240 = vector.shape_cast %239 : vector<1x64x8xf32> to vector<64x8xf32>
    %cst_77 = arith.constant dense<0.000000e+00> : vector<2x8xf32>
    %241 = tpu.matmul %238, %240, %cst_77 {dimension_numbers = #tpu.dot_dimension_numbers<[1], [0], [0], [1], [0, 0, 1, 1], [], []>} : vector<2x64xf32>, vector<64x8xf32>, vector<2x8xf32> -> vector<2x8xf32>
    %242 = arith.addf %237, %241 : vector<2x8xf32>
    %c16_78 = arith.constant 16 : index
    %c0_79 = arith.constant 0 : index
    %243 = tpu.strided_load %arg17[%c16_78, %c0_79] {strides = array<i32: 64, 1>} : memref<104x64xf32, #tpu.memory_space<vmem>>, vector<2x64xf32>
    %c3 = arith.constant 3 : index
    %c0_80 = arith.constant 0 : index
    %c0_81 = arith.constant 0 : index
    %244 = vector.load %arg11[%c3, %c0_80, %c0_81] : memref<9x64x8xf32, #tpu.memory_space<vmem>>, vector<1x64x8xf32>
    %245 = vector.shape_cast %244 : vector<1x64x8xf32> to vector<64x8xf32>
    %cst_82 = arith.constant dense<0.000000e+00> : vector<2x8xf32>
    %246 = tpu.matmul %243, %245, %cst_82 {dimension_numbers = #tpu.dot_dimension_numbers<[1], [0], [0], [1], [0, 0, 1, 1], [], []>} : vector<2x64xf32>, vector<64x8xf32>, vector<2x8xf32> -> vector<2x8xf32>
    %247 = arith.addf %242, %246 : vector<2x8xf32>
    %c18 = arith.constant 18 : index
    %c0_83 = arith.constant 0 : index
    %248 = tpu.strided_load %arg17[%c18, %c0_83] {strides = array<i32: 64, 1>} : memref<104x64xf32, #tpu.memory_space<vmem>>, vector<2x64xf32>
    %c4_84 = arith.constant 4 : index
    %c0_85 = arith.constant 0 : index
    %c0_86 = arith.constant 0 : index
    %249 = vector.load %arg11[%c4_84, %c0_85, %c0_86] : memref<9x64x8xf32, #tpu.memory_space<vmem>>, vector<1x64x8xf32>
    %250 = vector.shape_cast %249 : vector<1x64x8xf32> to vector<64x8xf32>
    %cst_87 = arith.constant dense<0.000000e+00> : vector<2x8xf32>
    %251 = tpu.matmul %248, %250, %cst_87 {dimension_numbers = #tpu.dot_dimension_numbers<[1], [0], [0], [1], [0, 0, 1, 1], [], []>} : vector<2x64xf32>, vector<64x8xf32>, vector<2x8xf32> -> vector<2x8xf32>
    %252 = arith.addf %247, %251 : vector<2x8xf32>
    %c20 = arith.constant 20 : index
    %c0_88 = arith.constant 0 : index
    %253 = tpu.strided_load %arg17[%c20, %c0_88] {strides = array<i32: 64, 1>} : memref<104x64xf32, #tpu.memory_space<vmem>>, vector<2x64xf32>
    %c5 = arith.constant 5 : index
    %c0_89 = arith.constant 0 : index
    %c0_90 = arith.constant 0 : index
    %254 = vector.load %arg11[%c5, %c0_89, %c0_90] : memref<9x64x8xf32, #tpu.memory_space<vmem>>, vector<1x64x8xf32>
    %255 = vector.shape_cast %254 : vector<1x64x8xf32> to vector<64x8xf32>
    %cst_91 = arith.constant dense<0.000000e+00> : vector<2x8xf32>
    %256 = tpu.matmul %253, %255, %cst_91 {dimension_numbers = #tpu.dot_dimension_numbers<[1], [0], [0], [1], [0, 0, 1, 1], [], []>} : vector<2x64xf32>, vector<64x8xf32>, vector<2x8xf32> -> vector<2x8xf32>
    %257 = arith.addf %252, %256 : vector<2x8xf32>
    %c32_92 = arith.constant 32 : index
    %c0_93 = arith.constant 0 : index
    %258 = tpu.strided_load %arg17[%c32_92, %c0_93] {strides = array<i32: 64, 1>} : memref<104x64xf32, #tpu.memory_space<vmem>>, vector<2x64xf32>
    %c6 = arith.constant 6 : index
    %c0_94 = arith.constant 0 : index
    %c0_95 = arith.constant 0 : index
    %259 = vector.load %arg11[%c6, %c0_94, %c0_95] : memref<9x64x8xf32, #tpu.memory_space<vmem>>, vector<1x64x8xf32>
    %260 = vector.shape_cast %259 : vector<1x64x8xf32> to vector<64x8xf32>
    %cst_96 = arith.constant dense<0.000000e+00> : vector<2x8xf32>
    %261 = tpu.matmul %258, %260, %cst_96 {dimension_numbers = #tpu.dot_dimension_numbers<[1], [0], [0], [1], [0, 0, 1, 1], [], []>} : vector<2x64xf32>, vector<64x8xf32>, vector<2x8xf32> -> vector<2x8xf32>
    %262 = arith.addf %257, %261 : vector<2x8xf32>
    %c34 = arith.constant 34 : index
    %c0_97 = arith.constant 0 : index
    %263 = tpu.strided_load %arg17[%c34, %c0_97] {strides = array<i32: 64, 1>} : memref<104x64xf32, #tpu.memory_space<vmem>>, vector<2x64xf32>
    %c7 = arith.constant 7 : index
    %c0_98 = arith.constant 0 : index
    %c0_99 = arith.constant 0 : index
    %264 = vector.load %arg11[%c7, %c0_98, %c0_99] : memref<9x64x8xf32, #tpu.memory_space<vmem>>, vector<1x64x8xf32>
    %265 = vector.shape_cast %264 : vector<1x64x8xf32> to vector<64x8xf32>
    %cst_100 = arith.constant dense<0.000000e+00> : vector<2x8xf32>
    %266 = tpu.matmul %263, %265, %cst_100 {dimension_numbers = #tpu.dot_dimension_numbers<[1], [0], [0], [1], [0, 0, 1, 1], [], []>} : vector<2x64xf32>, vector<64x8xf32>, vector<2x8xf32> -> vector<2x8xf32>
    %267 = arith.addf %262, %266 : vector<2x8xf32>
    %c36 = arith.constant 36 : index
    %c0_101 = arith.constant 0 : index
    %268 = tpu.strided_load %arg17[%c36, %c0_101] {strides = array<i32: 64, 1>} : memref<104x64xf32, #tpu.memory_space<vmem>>, vector<2x64xf32>
    %c8 = arith.constant 8 : index
    %c0_102 = arith.constant 0 : index
    %c0_103 = arith.constant 0 : index
    %269 = vector.load %arg11[%c8, %c0_102, %c0_103] : memref<9x64x8xf32, #tpu.memory_space<vmem>>, vector<1x64x8xf32>
    %270 = vector.shape_cast %269 : vector<1x64x8xf32> to vector<64x8xf32>
    %cst_104 = arith.constant dense<0.000000e+00> : vector<2x8xf32>
    %271 = tpu.matmul %268, %270, %cst_104 {dimension_numbers = #tpu.dot_dimension_numbers<[1], [0], [0], [1], [0, 0, 1, 1], [], []>} : vector<2x64xf32>, vector<64x8xf32>, vector<2x8xf32> -> vector<2x8xf32>
    %272 = arith.addf %267, %271 : vector<2x8xf32>
    %cst_105 = arith.constant 0.000000e+00 : f32
    %273 = vector.broadcast %cst_105 : f32 to vector<2x8xf32>
    %274 = arith.maximumf %272, %273 : vector<2x8xf32>
    %c0_106 = arith.constant 0 : index
    %c0_107 = arith.constant 0 : index
    %275 = vector.load %arg13[%c0_106, %c0_107] : memref<1x8xf32, #tpu.memory_space<vmem>>, vector<1x8xf32>
    %276 = vector.broadcast %275 : vector<1x8xf32> to vector<2x8xf32>
    %277 = arith.mulf %274, %276 : vector<2x8xf32>
    %cst_108 = arith.constant dense<0.000000e+00> : vector<2xf32>
    %278 = vector.multi_reduction <add>, %277, %cst_108 [1] : vector<2x8xf32> to vector<2xf32>
    %279 = vector.shape_cast %278 : vector<2xf32> to vector<2x1xf32>
    %c0_109 = arith.constant 0 : index
    %c0_110 = arith.constant 0 : index
    %280 = vector.load %arg14[%c0_109, %c0_110] : memref<1x1xf32, #tpu.memory_space<vmem>>, vector<1x1xf32>
    %281 = vector.broadcast %280 : vector<1x1xf32> to vector<2x1xf32>
    %282 = arith.addf %279, %281 : vector<2x1xf32>
    %cst_111 = arith.constant 0.000000e+00 : f32
    %283 = vector.broadcast %cst_111 : f32 to vector<2x1xf32>
    %284 = arith.subf %283, %282 : vector<2x1xf32>
    %285 = math.exp %284 : vector<2x1xf32>
    %cst_112 = arith.constant 1.000000e+00 : f32
    %286 = vector.broadcast %cst_112 : f32 to vector<2x1xf32>
    %287 = arith.addf %286, %285 : vector<2x1xf32>
    %cst_113 = arith.constant 1.000000e+00 : f32
    %288 = vector.broadcast %cst_113 : f32 to vector<2x1xf32>
    %289 = arith.divf %288, %287 : vector<2x1xf32>
    %c0_114 = arith.constant 0 : index
    %c0_115 = arith.constant 0 : index
    %290 = vector.load %arg15[%c0_114, %c0_115] : memref<2x1xf32, #tpu.memory_space<vmem>>, vector<2x1xf32>
    tpu.vector_store %arg15[%c0_114, %c0_115], %289 {strides = array<i32>} : memref<2x1xf32, #tpu.memory_space<vmem>>, vector<2x1xf32>,
    return
  }
}

</mosaic_0001>

<bundles_post_ra>
// kernel: relation_network_forward.1
= control target key start
LH: loop header
LB: loop body
LE: loop exit
PB: predicated region body
PF: predicated region fallthrough
CT: control target
= control target key end

     0   :  { %s9325_s19 = smov 64   ;;  %vm5240_vm0 = vcmask 523264   ;;  %vm6071_vm4 = vcmask 1046528   ;;  %vm6404_vm5 = vcmask 1045504   ;;  %vm7795_vm9 = vcmask 58368   ;;  %s16214_s1 = inlined_call_operand.vmem [shape: bf16[384,192], index: 1, kind: input, shape index: {}]   ;;  %s16215_s0 = inlined_call_operand.vmem [shape: bf16[1024,384], index: 0, kind: input, shape index: {}]   ;;  %s16216_s5 = inlined_call_operand.vmem [shape: f32[960,1], index: 5, kind: input, shape index: {}]   ;;  %s16217_s2 = inlined_call_operand.vmem [shape: f32[1,64], index: 2, kind: input, shape index: {}]   ;;  %s16218_s6 = inlined_call_operand.vmem [shape: bf16[3,64,192], index: 6, kind: input, shape index: {}]   ;;  %s16219_s10 = inlined_call_operand.vmem [shape: f32[112,1], index: 10, kind: input, shape index: {}]   ;;  %s16220_s3 = inlined_call_operand.vmem [shape: f32[1,64], index: 3, kind: input, shape index: {}]   ;;  %s16221_s4 = inlined_call_operand.vmem [shape: f32[1,64], index: 4, kind: input, shape index: {}]   ;;  %s16222_s7 = inlined_call_operand.vmem [shape: f32[1,64], index: 7, kind: input, shape index: {}]   ;;  %s16223_s11 = inlined_call_operand.vmem [shape: f32[9,64,8], index: 11, kind: input, shape index: {}]   ;;  %s16224_s12 = inlined_call_operand.vmem [shape: f32[1,8], index: 12, kind: input, shape index: {}]   ;;  %s16225_s8 = inlined_call_operand.vmem [shape: f32[1,64], index: 8, kind: input, shape index: {}]   ;;  %s16226_s9 = inlined_call_operand.vmem [shape: f32[1,64], index: 9, kind: input, shape index: {}]   ;;  %s16227_s13 = inlined_call_operand.vmem [shape: f32[1,8], index: 13, kind: input, shape index: {}]   ;;  %s16228_s14 = inlined_call_operand.<no memory space> [shape: f32[1,1], index: 14, kind: input, shape index: {}]   ;;  %s16229_s15 = inlined_call_operand.vmem [shape: f32[2,1], index: 15, kind: output, shape index: {}]  }
   0x1   :  { %v8655_v0 = vld [vmem:[%s16214_s1 + $0x70] sm:$0xf]  ;;  %v9229_v1 = vld [vmem:[%s16214_s1 + $0x74] sm:$0xf0]  ;;  %v8647_v5 = vld [vmem:[%s16214_s1 + $0x60] sm:$0xf] }
   0x2   :  { %v8719_v2 = vld [vmem:[%s16214_s1 + $0xf0] sm:$0xf]  ;;  %v8656_v3 = vor.u32 %v9229_v1, %v8655_v0  ;;  %v9245_v4 = vld [vmem:[%s16214_s1 + $0xf4] sm:$0xf0]  ;;  %v9227_v6 = vld [vmem:[%s16214_s1 + $0x64] sm:$0xf0] }
   0x3   :  { %v8720_v7 = vor.u32 %v9245_v4, %v8719_v2  ;;  %v8711_v8 = vld [vmem:[%s16214_s1 + $0xe0] sm:$0xf]  ;;  %v9243_v9 = vld [vmem:[%s16214_s1 + $0xe4] sm:$0xf0]  ;;  %v8648_v10 = vor.u32 %v9227_v6, %v8647_v5  ;;  %v8639_v12 = vld [vmem:[%s16214_s1 + $0x50] sm:$0xf] }
   0x4   :  { %1621 = vmatpush.bf16.msra.mxu0 %v8656_v3  ;;  %9286 = vmatpush.bf16.msra.mxu3 %v8656_v3  ;;  %v8712_v11 = vor.u32 %v9243_v9, %v8711_v8  ;;  %v9225_v13 = vld [vmem:[%s16214_s1 + $0x54] sm:$0xf0]  ;;  %v8703_v14 = vld [vmem:[%s16214_s1 + $0xd0] sm:$0xf]  ;;  %v8631_v18 = vld [vmem:[%s16214_s1 + $0x40] sm:$0xf] }
   0x5   :  { %1945 = vmatpush.bf16.msra.mxu1 %v8720_v7  ;;  %9294 = vmatpush.bf16.msra.mxu2 %v8720_v7  ;;  %v9241_v15 = vld [vmem:[%s16214_s1 + $0xd4] sm:$0xf0]  ;;  %v8640_v16 = vor.u32 %v9225_v13, %v8639_v12  ;;  %v9223_v19 = vld [vmem:[%s16214_s1 + $0x44] sm:$0xf0]  ;;  %v8695_v20 = vld [vmem:[%s16214_s1 + $0xc0] sm:$0xf] }
   0x6   :  { %v8704_v17 = vor.u32 %v9241_v15, %v8703_v14  ;;  %v9239_v21 = vld [vmem:[%s16214_s1 + $0xc4] sm:$0xf0]  ;;  %v8632_v22 = vor.u32 %v9223_v19, %v8631_v18  ;;  %v8623_v24 = vld [vmem:[%s16214_s1 + $0x30] sm:$0xf]  ;;  %v9221_v25 = vld [vmem:[%s16214_s1 + $0x34] sm:$0xf0] }
   0x7   :  { %v8696_v23 = vor.u32 %v9239_v21, %v8695_v20  ;;  %v8687_v26 = vld [vmem:[%s16214_s1 + $0xb0] sm:$0xf]  ;;  %v9237_v27 = vld [vmem:[%s16214_s1 + $0xb4] sm:$0xf0]  ;;  %v8624_v28 = vor.u32 %v9221_v25, %v8623_v24  ;;  %v8615_v30 = vld [vmem:[%s16214_s1 + $0x20] sm:$0xf] }
   0x8   :  { %1622 = vmatpush.bf16.msra.mxu0 %v8648_v10  ;;  %9287 = vmatpush.bf16.msra.mxu3 %v8648_v10  ;;  %v8688_v29 = vor.u32 %v9237_v27, %v8687_v26  ;;  %v9219_v31 = vld [vmem:[%s16214_s1 + $0x24] sm:$0xf0]  ;;  %v8679_v32 = vld [vmem:[%s16214_s1 + $0xa0] sm:$0xf]  ;;  %v8607_v36 = vld [vmem:[%s16214_s1 + $0x10] sm:$0xf] }
   0x9   :  { %1946 = vmatpush.bf16.msra.mxu1 %v8712_v11  ;;  %9295 = vmatpush.bf16.msra.mxu2 %v8712_v11  ;;  %v9235_v33 = vld [vmem:[%s16214_s1 + $0xa4] sm:$0xf0]  ;;  %v8616_v34 = vor.u32 %v9219_v31, %v8615_v30  ;;  %v9217_v37 = vld [vmem:[%s16214_s1 + $0x14] sm:$0xf0]  ;;  %v8671_v38 = vld [vmem:[%s16214_s1 + $0x90] sm:$0xf] }
   0xa   :  { %v8680_v35 = vor.u32 %v9235_v33, %v8679_v32  ;;  %v9233_v39 = vld [vmem:[%s16214_s1 + $0x94] sm:$0xf0]  ;;  %v8608_v40 = vor.u32 %v9217_v37, %v8607_v36  ;;  %v8599_v42 = vld [vmem:[%s16214_s1] sm:$0xf]  ;;  %v9215_v43 = vld [vmem:[%s16214_s1 + $0x4] sm:$0xf0] }
   0xb   :  { %v8672_v41 = vor.u32 %v9233_v39, %v8671_v38  ;;  %v8663_v44 = vld [vmem:[%s16214_s1 + $0x80] sm:$0xf]  ;;  %v9231_v45 = vld [vmem:[%s16214_s1 + $0x84] sm:$0xf0]  ;;  %v9244_v46 = vld [vmem:[%s16214_s1 + $0xf4] sm:$0xf]  ;;  %v8600_v50 = vor.u32 %v9215_v43, %v8599_v42 }
   0xc   :  { %1623 = vmatpush.bf16.msra.mxu0 %v8640_v16  ;;  %9288 = vmatpush.bf16.msra.mxu3 %v8640_v16  ;;  %v8721_v47 = vld [vmem:[%s16214_s1 + $0xf8] sm:$0xf0]  ;;  %v9260_v48 = vld [vmem:[%s16214_s1 + $0x174] sm:$0xf]  ;;  %v7831_v51 = vld [vmem:[%s16215_s0] sm:$0xf]  ;;  %v8664_v54 = vor.u32 %v9231_v45, %v8663_v44 }
   0xd   :  { %1947 = vmatpush.bf16.msra.mxu1 %v8704_v17  ;;  %9296 = vmatpush.bf16.msra.mxu2 %v8704_v17  ;;  %v8785_v49 = vld [vmem:[%s16214_s1 + $0x178] sm:$0xf0]  ;;  %v9023_v52 = vld [vmem:[%s16215_s0 + $0x8] sm:$0xf0]  ;;  %v9022_v53 = vld [vmem:[%s16215_s0 + $0x4] sm:$0xf]  ;;  %v8724_v58 = vor.u32 %v9244_v46, %v8721_v47 }
   0xe   :  { %v7833_v55 = vld [vmem:[%s16215_s0 + $0xc] sm:$0xf0]  ;;  %v9160_v56 = vld [vmem:[%s16215_s0 + $0x454] sm:$0xf]  ;;  %v8385_v57 = vld [vmem:[%s16215_s0 + $0x45c] sm:$0xf0]  ;;  %v8788_v59 = vor.u32 %v9260_v48, %v8785_v49  ;;  %v9532_v60 = vor.u32 %v9023_v52, %v7831_v51 }
   0xf   :  { %v9534_v61 = vor.u32 %v9022_v53, %v7833_v55  ;;  %v9536_v62 = vor.u32 %v9160_v56, %v8385_v57  ;;  %v7843_v63 = vld [vmem:[%s16215_s0 + $0x18] sm:$0xf]  ;;  %v9026_v0 = vld [vmem:[%s16215_s0 + $0x20] sm:$0xf0]  ;;  %v9025_v1 = vld [vmem:[%s16215_s0 + $0x1c] sm:$0xf] }
  0x10   :  { %1624 = vmatpush.bf16.msra.mxu0 %v8632_v22  ;;  %9289 = vmatpush.bf16.msra.mxu3 %v8632_v22  ;;  %v7845_v2 = vld [vmem:[%s16215_s0 + $0x24] sm:$0xf0]  ;;  %v9163_v3 = vld [vmem:[%s16215_s0 + $0x46c] sm:$0xf]  ;;  %v8397_v4 = vld [vmem:[%s16215_s0 + $0x474] sm:$0xf0]  ;;  %v9559_v5 = vor.u32 %v9026_v0, %v7843_v63 }
  0x11   :  { %1948 = vmatpush.bf16.msra.mxu1 %v8696_v23  ;;  %9297 = vmatpush.bf16.msra.mxu2 %v8696_v23  ;;  %16530 = vst [vmem:[#allocation5_spill] sm:$0xff] %v9536_v62  ;;  %v9561_v6 = vor.u32 %v9025_v1, %v7845_v2  ;;  %v9563_v7 = vor.u32 %v9163_v3, %v8397_v4  ;;  %v7855_v8 = vld [vmem:[%s16215_s0 + $0x30] sm:$0xf]  ;;  %v9029_v9 = vld [vmem:[%s16215_s0 + $0x38] sm:$0xf0]  ;;  %v4401_v63 = vld [vmem:[%s16216_s5 + $0x8] sm:$0xff] }
  0x12   :  { %v9028_v10 = vld [vmem:[%s16215_s0 + $0x34] sm:$0xf]  ;;  %v7857_v11 = vld [vmem:[%s16215_s0 + $0x3c] sm:$0xf0]  ;;  %v9166_v12 = vld [vmem:[%s16215_s0 + $0x484] sm:$0xf]  ;;  %v9586_v14 = vor.u32 %v9029_v9, %v7855_v8 }
  0x13   :  { %16531 = vst [vmem:[#allocation6_spill] sm:$0xff] %v9563_v7  ;;  %v8409_v13 = vld [vmem:[%s16215_s0 + $0x48c] sm:$0xf0]  ;;  %v9588_v15 = vor.u32 %v9028_v10, %v7857_v11  ;;  %v7867_v17 = vld [vmem:[%s16215_s0 + $0x48] sm:$0xf]  ;;  %vm7823_vm12 = vcmask 1024  }
  0x14   :  { %1625 = vmatpush.bf16.msra.mxu0 %v8624_v28  ;;  %9290 = vmatpush.bf16.msra.mxu3 %v8624_v28  ;;  %v9590_v16 = vor.u32 %v9166_v12, %v8409_v13  ;;  %v9032_v18 = vld [vmem:[%s16215_s0 + $0x50] sm:$0xf0]  ;;  %v9031_v19 = vld [vmem:[%s16215_s0 + $0x4c] sm:$0xf]  ;;  %v7869_v20 = vld [vmem:[%s16215_s0 + $0x54] sm:$0xf0] }
  0x15   :  { %1949 = vmatpush.bf16.msra.mxu1 %v8688_v29  ;;  %9298 = vmatpush.bf16.msra.mxu2 %v8688_v29  ;;  %16532 = vst [vmem:[#allocation7_spill] sm:$0xff] %v9588_v15  ;;  %v9169_v21 = vld [vmem:[%s16215_s0 + $0x49c] sm:$0xf]  ;;  %v8421_v22 = vld [vmem:[%s16215_s0 + $0x4a4] sm:$0xf0]  ;;  %v9613_v23 = vor.u32 %v9032_v18, %v7867_v17  ;;  %v9615_v24 = vor.u32 %v9031_v19, %v7869_v20  ;;  %v4408_v13 = vld [vmem:[%s16216_s5 + $0x40] sm:$0xff] }
  0x16   :  { %16533 = vst [vmem:[#allocation8_spill] sm:$0xff] %v9590_v16  ;;  %v9617_v25 = vor.u32 %v9169_v21, %v8421_v22  ;;  %v7879_v26 = vld [vmem:[%s16215_s0 + $0x60] sm:$0xf]  ;;  %v9035_v27 = vld [vmem:[%s16215_s0 + $0x68] sm:$0xf0] }
  0x17   :  { %16534 = vst [vmem:[#allocation9_spill] sm:$0xff] %v9615_v24  ;;  %v9034_v28 = vld [vmem:[%s16215_s0 + $0x64] sm:$0xf]  ;;  %v7881_v29 = vld [vmem:[%s16215_s0 + $0x6c] sm:$0xf0]  ;;  %v9640_v32 = vor.u32 %v9035_v27, %v7879_v26  ;;  %v4405_v12 = vld [vmem:[%s16216_s5 + $0x28] sm:$0xff] }
  0x18   :  { %1626 = vmatpush.bf16.msra.mxu0 %v8616_v34  ;;  %9291 = vmatpush.bf16.msra.mxu3 %v8616_v34  ;;  %16535 = vst [vmem:[#allocation10_spill] sm:$0xff] %v9617_v25  ;;  %v9172_v30 = vld [vmem:[%s16215_s0 + $0x4b4] sm:$0xf]  ;;  %v8433_v31 = vld [vmem:[%s16215_s0 + $0x4bc] sm:$0xf0]  ;;  %v9642_v33 = vor.u32 %v9034_v28, %v7881_v29 }
  0x19   :  { %1950 = vmatpush.bf16.msra.mxu1 %v8680_v35  ;;  %9299 = vmatpush.bf16.msra.mxu2 %v8680_v35  ;;  %v9644_v34 = vor.u32 %v9172_v30, %v8433_v31  ;;  %v9242_v35 = vld [vmem:[%s16214_s1 + $0xe4] sm:$0xf]  ;;  %v8713_v36 = vld [vmem:[%s16214_s1 + $0xe8] sm:$0xf0]  ;;  %v9037_v43 = vld [vmem:[%s16215_s0 + $0x7c] sm:$0xf] }
  0x1a   :  { %16536 = vst [vmem:[#allocation11_spill] sm:$0xff] %v9642_v33  ;;  %v9258_v37 = vld [vmem:[%s16214_s1 + $0x164] sm:$0xf]  ;;  %v8716_v38 = vor.u32 %v9242_v35, %v8713_v36  ;;  %v8777_v39 = vld [vmem:[%s16214_s1 + $0x168] sm:$0xf0]  ;;  %v4411_v35 = vld [vmem:[%s16216_s5 + $0x58] sm:$0xff] }
  0x1b   :  { %16537 = vst [vmem:[#allocation12_spill] sm:$0xff] %v9644_v34  ;;  %v9038_v42 = vld [vmem:[%s16215_s0 + $0x80] sm:$0xf0]  ;;  %v7893_v44 = vld [vmem:[%s16215_s0 + $0x84] sm:$0xf0] }
  0x1c   :  { %1627 = vmatpush.bf16.msra.mxu0 %v8608_v40  ;;  %9292 = vmatpush.bf16.msra.mxu3 %v8608_v40  ;;  %v8780_v40 = vor.u32 %v9258_v37, %v8777_v39  ;;  %v9175_v45 = vld [vmem:[%s16215_s0 + $0x4cc] sm:$0xf]  ;;  %v8445_v46 = vld [vmem:[%s16215_s0 + $0x4d4] sm:$0xf0]  ;;  %v9681_v48 = vor.u32 %v9037_v43, %v7893_v44  ;;  %v9041_v51 = vld [vmem:[%s16215_s0 + $0x98] sm:$0xf0] }
  0x1d   :  { %1951 = vmatpush.bf16.msra.mxu1 %v8672_v41  ;;  %9300 = vmatpush.bf16.msra.mxu2 %v8672_v41  ;;  %v7891_v41 = vld [vmem:[%s16215_s0 + $0x78] sm:$0xf]  ;;  %v9683_v49 = vor.u32 %v9175_v45, %v8445_v46  ;;  %v9040_v52 = vld [vmem:[%s16215_s0 + $0x94] sm:$0xf]  ;;  %v7905_v53 = vld [vmem:[%s16215_s0 + $0x9c] sm:$0xf0] }
  0x1e   :  { %v9679_v47 = vor.u32 %v9038_v42, %v7891_v41  ;;  %16539 = vst [vmem:[#allocation14_spill] sm:$0xff] %v9681_v48  ;;  %v8457_v55 = vld [vmem:[%s16215_s0 + $0x4ec] sm:$0xf0]  ;;  %v9708_v57 = vor.u32 %v9040_v52, %v7905_v53  ;;  %v7915_v0 = vld [vmem:[%s16215_s0 + $0xa8] sm:$0xf]  ;;  %v4404_v31 = vld [vmem:[%s16216_s5 + $0x20] sm:$0xff] }
  0x1f   :  { %16540 = vst [vmem:[#allocation15_spill] sm:$0xff] %v9683_v49  ;;  %v9044_v1 = vld [vmem:[%s16215_s0 + $0xb0] sm:$0xf0]  ;;  %v9043_v2 = vld [vmem:[%s16215_s0 + $0xac] sm:$0xf]  ;;  %v4400_v36 = vld [vmem:[%s16216_s5] sm:$0xff] }
  0x20   :  { %1628 = vmatpush.bf16.msra.mxu0 %v8600_v50  ;;  %9293 = vmatpush.bf16.msra.mxu3 %v8600_v50  ;;  %16538 = vst [vmem:[#allocation13_spill] sm:$0xff] %v9679_v47  ;;  %v7903_v50 = vld [vmem:[%s16215_s0 + $0x90] sm:$0xf]  ;;  %v7917_v3 = vld [vmem:[%s16215_s0 + $0xb4] sm:$0xf0]  ;;  %v9736_v9 = vor.u32 %v9044_v1, %v7915_v0 }
  0x21   :  { %1952 = vmatpush.bf16.msra.mxu1 %v8664_v54  ;;  %9301 = vmatpush.bf16.msra.mxu2 %v8664_v54  ;;  %v9178_v54 = vld [vmem:[%s16215_s0 + $0x4e4] sm:$0xf]  ;;  %v9706_v56 = vor.u32 %v9041_v51, %v7903_v50  ;;  %16542 = vst [vmem:[#allocation17_spill] sm:$0xff] %v9708_v57  ;;  %v9181_v4 = vld [vmem:[%s16215_s0 + $0x4fc] sm:$0xf]  ;;  %v9738_v10 = vor.u32 %v9043_v2, %v7917_v3  ;;  %v4414_v42 = vld [vmem:[%s16216_s5 + $0x70] sm:$0xff] }
  0x22   :  { %v8469_v8 = vld [vmem:[%s16215_s0 + $0x504] sm:$0xf0]  ;;  %16544 = vst [vmem:[#allocation19_spill] sm:$0xff] %v9736_v9  ;;  %v7927_v17 = vld [vmem:[%s16215_s0 + $0xc0] sm:$0xf]  ;;  %v4407_v41 = vld [vmem:[%s16216_s5 + $0x38] sm:$0xff] }
  0x23   :  { %1629 = vmatmul.bf16.vlgmr.msra.gmra.mxu0 %v9532_v60  ;;  %16541 = vst [vmem:[#allocation16_spill] sm:$0xff] %v9706_v56  ;;  %v9740_v11 = vor.u32 %v9181_v4, %v8469_v8  ;;  %v9047_v18 = vld [vmem:[%s16215_s0 + $0xc8] sm:$0xf0]  ;;  %v9046_v19 = vld [vmem:[%s16215_s0 + $0xc4] sm:$0xf]  ;;  %v4402_v43 = vld [vmem:[%s16216_s5 + $0x10] sm:$0xff] }
  0x24   :  { %2914 = vmatpush.bf16.msrb.mxu0 %v8724_v58  ;;  %1953 = vmatmul.bf16.vlgmr.msra.gmra.mxu1 %v9534_v61  ;;  %v9710_v58 = vor.u32 %v9178_v54, %v8457_v55  ;;  %16545 = vst [vmem:[#allocation20_spill] sm:$0xff] %v9738_v10  ;;  %v7929_v20 = vld [vmem:[%s16215_s0 + $0xcc] sm:$0xf0]  ;;  %v9184_v21 = vld [vmem:[%s16215_s0 + $0x514] sm:$0xf]  ;;  %v9769_v26 = vor.u32 %v9047_v18, %v7927_v17  ;;  %v4417_v3 = vld [vmem:[%s16216_s5 + $0x88] sm:$0xff] }
  0x25   :  { %3235 = vmatpush.bf16.msrb.mxu1 %v8788_v59  ;;  %2183 = vmatmul.bf16.vlgmr.msra.gmra.mxu2 %v9536_v62  ;;  %v9324_v59 = vmov 0   ;;  %16546 = vst [vmem:[#allocation21_spill] sm:$0xff] %v9740_v11  ;;  %v8481_v22 = vld [vmem:[%s16215_s0 + $0x51c] sm:$0xf0]  ;;  %v9771_v28 = vor.u32 %v9046_v19, %v7929_v20  ;;  %v7939_v45 = vld [vmem:[%s16215_s0 + $0xd8] sm:$0xf] }
  0x26   :  { %16543 = vst [vmem:[#allocation18_spill] sm:$0xff] %v9710_v58  ;;  %9305 = vset.pattern.permute.xlu0 %v9324_v59  ;;  %9306 = vset.pattern.permute.xlu1 %v9324_v59  ;;  %v9773_v29 = vor.u32 %v9184_v21, %v8481_v22  ;;  %v9050_v46 = vld [vmem:[%s16215_s0 + $0xe0] sm:$0xf0]  ;;  %v9049_v50 = vld [vmem:[%s16215_s0 + $0xdc] sm:$0xf]  ;;  %v4410_v2 = vld [vmem:[%s16216_s5 + $0x50] sm:$0xff] }
  0x27   :  { %9304 = vset.pattern.permute.xlu2 %v9324_v59  ;;  %4527 = vperm.xlu0 %9305, %v4401_v63   ;;  %16547 = vst [vmem:[#allocation22_spill] sm:$0xff] %v9769_v26  ;;  %v7941_v51 = vld [vmem:[%s16215_s0 + $0xe4] sm:$0xf0]  ;;  %v9187_v52 = vld [vmem:[%s16215_s0 + $0x52c] sm:$0xf]  ;;  %v9822_v55 = vor.u32 %v9050_v46, %v7939_v45  ;;  %v4403_v4 = vld [vmem:[%s16216_s5 + $0x18] sm:$0xff] }
  0x28   :  { %2915 = vmatpush.bf16.msrb.mxu0 %v8716_v38  ;;  %16548 = vst [vmem:[#allocation23_spill] sm:$0xff] %v9771_v28  ;;  %4542 = vperm.xlu1 %9306, %v4404_v31   ;;  %v8493_v53 = vld [vmem:[%s16215_s0 + $0x534] sm:$0xf0]  ;;  %v9824_v63 = vor.u32 %v9049_v50, %v7941_v51  ;;  %v4413_v18 = vld [vmem:[%s16216_s5 + $0x68] sm:$0xff]  ;;  %v4420_v19 = vld [vmem:[%s16216_s5 + $0xa0] sm:$0xff] }
  0x29   :  { %3236 = vmatpush.bf16.msrb.mxu1 %v8780_v40  ;;  %16549 = vst [vmem:[#allocation24_spill] sm:$0xff] %v9773_v29  ;;  %4522 = vperm.xlu2 %9304, %v4400_v36   ;;  %v9826_v0 = vor.u32 %v9187_v52, %v8493_v53  ;;  %v4406_v20 = vld [vmem:[%s16216_s5 + $0x30] sm:$0xff]  ;;  %v7953_v31 = vld [vmem:[%s16215_s0 + $0xfc] sm:$0xf0]  ;;  %v4423_v50 = vld [vmem:[%s16216_s5 + $0xb8] sm:$0xff] }
  0x2a   :  { %16552 = vst [vmem:[#allocation27_spill] sm:$0xff] %v9822_v55  ;;  %v7951_v22 = vld [vmem:[%s16215_s0 + $0xf0] sm:$0xf]  ;;  %v4416_v46 = vld [vmem:[%s16216_s5 + $0x80] sm:$0xff]  ;;  %v4409_v51 = vld [vmem:[%s16216_s5 + $0x48] sm:$0xff] }
  0x2b   :  { %16553 = vst [vmem:[#allocation28_spill] sm:$0xff] %v9824_v63  ;;  %v8505_v36 = vld [vmem:[%s16215_s0 + $0x54c] sm:$0xf0] }
  0x2c   :  { %16554 = vst [vmem:[#allocation29_spill] sm:$0xff] %v9826_v0 }
  0x2f   :  { %4547 = vperm.xlu0 %9305, %v4405_v12  }
  0x30   :  { %4557 = vperm.xlu1 %9306, %v4407_v41  }
  0x31   :  { %4532 = vperm.xlu2 %9304, %v4402_v43  }
  0x33   :  { %1634 = vmatmul.bf16.gmra.mxu0 %v9559_v5 }
  0x34   :  { %1958 = vmatmul.bf16.gmra.mxu1 %v9561_v6 }
  0x35   :  { %2188 = vmatmul.bf16.gmra.mxu2 %v9563_v7 }
  0x37   :  { %4562 = vperm.xlu0 %9305, %v4408_v13  }
  0x38   :  { %4572 = vperm.xlu1 %9306, %v4410_v2   ;;  %v4419_v2 = vld [vmem:[%s16216_s5 + $0x98] sm:$0xff] }
  0x39   :  { %4537 = vperm.xlu2 %9304, %v4403_v4   ;;  %v4412_v4 = vld [vmem:[%s16216_s5 + $0x60] sm:$0xff] }
  0x3f   :  { %4577 = vperm.xlu0 %9305, %v4411_v35   ;;  %v9190_v35 = vld [vmem:[%s16215_s0 + $0x544] sm:$0xf] }
  0x40   :  { %4587 = vperm.xlu1 %9306, %v4413_v18   ;;  %v9879_v43 = vor.u32 %v9190_v35, %v8505_v36  ;;  %v8705_v18 = vld [vmem:[%s16214_s1 + $0xd8] sm:$0xf0]  ;;  %v7965_v36 = vld [vmem:[%s16215_s0 + $0x114] sm:$0xf0] }
  0x41   :  { %4552 = vperm.xlu2 %9304, %v4406_v20  }
  0x42   :  { %16559 = vst [vmem:[#allocation34_spill] sm:$0xff] %v9879_v43 }
  0x43   :  { %1639 = vmatmul.bf16.gmra.mxu0 %v9586_v14 }
  0x44   :  { %1963 = vmatmul.bf16.gmra.mxu1 %v9588_v15 }
  0x45   :  { %2193 = vmatmul.bf16.gmra.mxu2 %v9590_v16 }
  0x47   :  { %4592 = vperm.xlu0 %9305, %v4414_v42  }
  0x48   :  { %4602 = vperm.xlu1 %9306, %v4416_v46  }
  0x49   :  { %4567 = vperm.xlu2 %9304, %v4409_v51  }
  0x4f   :  { %4607 = vperm.xlu0 %9305, %v4417_v3   ;;  %v4426_v3 = vld [vmem:[%s16216_s5 + $0xd0] sm:$0xff] }
  0x50   :  { %4617 = vperm.xlu1 %9306, %v4419_v2  }
  0x51   :  { %4582 = vperm.xlu2 %9304, %v4412_v4   ;;  %v4429_v4 = vld [vmem:[%s16216_s5 + $0xe8] sm:$0xff] }
  0x53   :  { %1644 = vmatmul.bf16.gmra.mxu0 %v9613_v23 }
  0x54   :  { %1968 = vmatmul.bf16.gmra.mxu1 %v9615_v24 }
  0x55   :  { %2198 = vmatmul.bf16.gmra.mxu2 %v9617_v25 }
  0x57   :  { %4622 = vperm.xlu0 %9305, %v4420_v19   ;;  %v9256_v19 = vld [vmem:[%s16214_s1 + $0x154] sm:$0xf] }
  0x5f   :  { %4637 = vperm.xlu0 %9305, %v4423_v50  }
  0x63   :  { %1649 = vmatmul.bf16.gmra.mxu0 %v9640_v32 }
  0x64   :  { %1973 = vmatmul.bf16.gmra.mxu1 %v9642_v33 }
  0x65   :  { %2203 = vmatmul.bf16.gmra.mxu2 %v9644_v34  ;;  %v4427_v34 = vld [vmem:[%s16216_s5 + $0xd8] sm:$0xff] }
  0x67   :  { %4652 = vperm.xlu0 %9305, %v4426_v3   ;;  %v4422_v3 = vld [vmem:[%s16216_s5 + $0xb0] sm:$0xff] }
  0x68   :  { %4632 = vperm.xlu1 %9306, %v4422_v3   ;;  %v8529_v3 = vld [vmem:[%s16215_s0 + $0x57c] sm:$0xf0] }
  0x6f   :  { %4667 = vperm.xlu0 %9305, %v4429_v4  }
  0x73   :  { %1654 = vmatmul.bf16.gmra.mxu0 %v9679_v47 }
  0x74   :  { %1978 = vmatmul.bf16.gmra.mxu1 %v9681_v48  ;;  %v4494_v48 = vld [vmem:[%s16216_s5 + $0x2f0] sm:$0xff] }
  0x75   :  { %2208 = vmatmul.bf16.gmra.mxu2 %v9683_v49  ;;  %v4441_v49 = vld [vmem:[%s16216_s5 + $0x148] sm:$0xff] }
  0x83   :  { %1659 = vmatmul.bf16.gmra.mxu0 %v9706_v56 }
  0x84   :  { %1983 = vmatmul.bf16.gmra.mxu1 %v9708_v57 }
  0x85   :  { %2213 = vmatmul.bf16.gmra.mxu2 %v9710_v58  ;;  %v4434_v58 = vld [vmem:[%s16216_s5 + $0x110] sm:$0xff] }
  0x93   :  { %1664 = vmatmul.bf16.gmra.mxu0 %v9736_v9 }
  0x94   :  { %1988 = vmatmul.bf16.gmra.mxu1 %v9738_v10 }
  0x95   :  { %2218 = vmatmul.bf16.gmra.mxu2 %v9740_v11 }
  0xa0   :  { %v1630_v27 = vpop.f32.mrf.mxu0 }
  0xa1   :  { %v1954_v30 = vpop.f32.mrf.mxu1 }
  0xa2   :  { %v9784_v37 = vadd.f32 %v1954_v30, %v1630_v27  ;;  %v9053_v27 = vld [vmem:[%s16215_s0 + $0xf8] sm:$0xf0]  ;;  %v9052_v30 = vld [vmem:[%s16215_s0 + $0xf4] sm:$0xf] }
  0xa3   :  { %1669 = vmatmul.bf16.gmra.mxu0 %v9769_v26  ;;  %v9877_v42 = vor.u32 %v9052_v30, %v7953_v31  ;;  %v9056_v30 = vld [vmem:[%s16215_s0 + $0x110] sm:$0xf0]  ;;  %v9055_v31 = vld [vmem:[%s16215_s0 + $0x10c] sm:$0xf] }
  0xa4   :  { %1993 = vmatmul.bf16.gmra.mxu1 %v9771_v28  ;;  %v4482_v28 = vld [vmem:[%s16216_s5 + $0x290] sm:$0xff] }
  0xa5   :  { %2223 = vmatmul.bf16.gmra.mxu2 %v9773_v29  ;;  %16558 = vst [vmem:[#allocation33_spill] sm:$0xff] %v9877_v42 }
  0xa8   :  { %v9789_v38 = vpop.f32.mrf.mxu2  ;;  %v1632_v39 = vpop.f32.mrf.mxu0 }
  0xa9   :  { %16550 = vst [vmem:[#allocation25_spill] sm:$0xff] %v9789_v38  ;;  %v1956_v40 = vpop.f32.mrf.mxu1  ;;  %v4446_v38 = vld [vmem:[%s16216_s5 + $0x170] sm:$0xff] }
  0xaa   :  { %v9800_v44 = vadd.f32 %v1956_v40, %v1632_v39  ;;  %v9875_v40 = vor.u32 %v9053_v27, %v7951_v22  ;;  %v8769_v22 = vld [vmem:[%s16214_s1 + $0x158] sm:$0xf0]  ;;  %v7963_v27 = vld [vmem:[%s16215_s0 + $0x108] sm:$0xf] }
  0xab   :  { %v8772_v35 = vor.u32 %v9256_v19, %v8769_v22  ;;  %v9940_v50 = vor.u32 %v9056_v30, %v7963_v27  ;;  %v4425_v27 = vld [vmem:[%s16216_s5 + $0xc8] sm:$0xff]  ;;  %v4432_v30 = vld [vmem:[%s16216_s5 + $0x100] sm:$0xff] }
  0xac   :  { %16557 = vst [vmem:[#allocation32_spill] sm:$0xff] %v9875_v40  ;;  %4647 = vperm.xlu1 %9306, %v4425_v27   ;;  %4682 = vperm.xlu0 %9305, %v4432_v30  }
  0xad   :  { %3237 = vmatpush.bf16.msrb.mxu1 %v8772_v35  ;;  %16562 = vst [vmem:[#allocation37_spill] sm:$0xff] %v9940_v50 }
  0xb0   :  { %v9820_v54 = vpop.f32.mrf.mxu2  ;;  %v1635_v59 = vpop.f32.mrf.mxu0 }
  0xb1   :  { %16551 = vst [vmem:[#allocation26_spill] sm:$0xff] %v9820_v54  ;;  %v1959_v1 = vpop.f32.mrf.mxu1 }
  0xb2   :  { %v9837_v8 = vadd.f32 %v1959_v1, %v1635_v59 }
  0xb3   :  { %1674 = vmatmul.bf16.gmra.mxu0 %v9822_v55  ;;  %v4488_v55 = vld [vmem:[%s16216_s5 + $0x2c0] sm:$0xff] }
  0xb4   :  { %1998 = vmatmul.bf16.gmra.mxu1 %v9824_v63 }
  0xb5   :  { %2228 = vmatmul.bf16.gmra.mxu2 %v9826_v0 }
  0xb8   :  { %v9842_v12 = vpop.f32.mrf.mxu2  ;;  %v1637_v13 = vpop.f32.mrf.mxu0 }
  0xb9   :  { %16555 = vst [vmem:[#allocation30_spill] sm:$0xff] %v9842_v12  ;;  %v1961_v17 = vpop.f32.mrf.mxu1 }
  0xba   :  { %v9853_v21 = vadd.f32 %v1961_v17, %v1637_v13  ;;  %v9240_v17 = vld [vmem:[%s16214_s1 + $0xd4] sm:$0xf] }
  0xbb   :  { %v8708_v20 = vor.u32 %v9240_v17, %v8705_v18  ;;  %v4415_v17 = vld [vmem:[%s16216_s5 + $0x78] sm:$0xff] }
  0xbc   :  { %4597 = vperm.xlu2 %9304, %v4415_v17  }
  0xbd   :  { %2916 = vmatpush.bf16.msrb.mxu0 %v8708_v20 }
  0xc0   :  { %v9873_v39 = vpop.f32.mrf.mxu2  ;;  %v1640_v41 = vpop.f32.mrf.mxu0 }
  0xc1   :  { %16556 = vst [vmem:[#allocation31_spill] sm:$0xff] %v9873_v39  ;;  %v1964_v45 = vpop.f32.mrf.mxu1 }
  0xc2   :  { %v9890_v52 = vadd.f32 %v1964_v45, %v1640_v41  ;;  %v9193_v41 = vld [vmem:[%s16215_s0 + $0x55c] sm:$0xf]  ;;  %v8517_v45 = vld [vmem:[%s16215_s0 + $0x564] sm:$0xf0] }
  0xc3   :  { %1679 = vmatmul.bf16.gmra.mxu0 %v9875_v40 }
  0xc4   :  { %2003 = vmatmul.bf16.gmra.mxu1 %v9877_v42 }
  0xc5   :  { %2233 = vmatmul.bf16.gmra.mxu2 %v9879_v43  ;;  %v4421_v43 = vld [vmem:[%s16216_s5 + $0xa8] sm:$0xff] }
  0xc8   :  { %v9895_v53 = vpop.f32.mrf.mxu2  ;;  %v1642_v59 = vpop.f32.mrf.mxu0 }
  0xc9   :  { %16560 = vst [vmem:[#allocation35_spill] sm:$0xff] %v9895_v53  ;;  %v1966_v1 = vpop.f32.mrf.mxu1 }
  0xca   :  { %v9906_v13 = vadd.f32 %v1966_v1, %v1642_v59  ;;  %v9942_v59 = vor.u32 %v9055_v31, %v7965_v36  ;;  %v9944_v1 = vor.u32 %v9193_v41, %v8517_v45  ;;  %v4418_v31 = vld [vmem:[%s16216_s5 + $0x90] sm:$0xff]  ;;  %v7975_v36 = vld [vmem:[%s16215_s0 + $0x120] sm:$0xf]  ;;  %v9059_v41 = vld [vmem:[%s16215_s0 + $0x128] sm:$0xf0] }
  0xcb   :  { %4612 = vperm.xlu2 %9304, %v4418_v31   ;;  %v9058_v45 = vld [vmem:[%s16215_s0 + $0x124] sm:$0xf]  ;;  %v9993_v17 = vor.u32 %v9059_v41, %v7975_v36 }
  0xcc   :  { %16563 = vst [vmem:[#allocation38_spill] sm:$0xff] %v9942_v59  ;;  %v4428_v31 = vld [vmem:[%s16216_s5 + $0xe0] sm:$0xff] }
  0xcd   :  { %16564 = vst [vmem:[#allocation39_spill] sm:$0xff] %v9944_v1  ;;  %4662 = vperm.xlu1 %9306, %v4428_v31   ;;  %v9061_v31 = vld [vmem:[%s16215_s0 + $0x13c] sm:$0xf] }
  0xce   :  { %16567 = vst [vmem:[#allocation42_spill] sm:$0xff] %v9993_v17 }
  0xd0   :  { %v9938_v46 = vpop.f32.mrf.mxu2  ;;  %v1645_v51 = vpop.f32.mrf.mxu0 }
  0xd1   :  { %16561 = vst [vmem:[#allocation36_spill] sm:$0xff] %v9938_v46  ;;  %v1969_v2 = vpop.f32.mrf.mxu1 }
  0xd2   :  { %v9955_v18 = vadd.f32 %v1969_v2, %v1645_v51  ;;  %v7977_v51 = vld [vmem:[%s16215_s0 + $0x12c] sm:$0xf0]  ;;  %v9196_v2 = vld [vmem:[%s16215_s0 + $0x574] sm:$0xf] }
  0xd3   :  { %1684 = vmatmul.bf16.gmra.mxu0 %v9940_v50  ;;  %v9997_v27 = vor.u32 %v9196_v2, %v8529_v3  ;;  %4627 = vperm.xlu2 %9304, %v4421_v43   ;;  %v4431_v2 = vld [vmem:[%s16216_s5 + $0xf8] sm:$0xff]  ;;  %v4438_v3 = vld [vmem:[%s16216_s5 + $0x130] sm:$0xff]  ;;  %v4424_v43 = vld [vmem:[%s16216_s5 + $0xc0] sm:$0xff] }
  0xd4   :  { %2008 = vmatmul.bf16.gmra.mxu1 %v9942_v59 }
  0xd5   :  { %2238 = vmatmul.bf16.gmra.mxu2 %v9944_v1  ;;  %16569 = vst [vmem:[#allocation44_spill] sm:$0xff] %v9997_v27  ;;  %v4435_v1 = vld [vmem:[%s16216_s5 + $0x118] sm:$0xff]  ;;  %4677 = vperm.xlu1 %9306, %v4431_v2  }
  0xd6   :  { %4697 = vperm.xlu0 %9305, %v4435_v1   ;;  %v8541_v2 = vld [vmem:[%s16215_s0 + $0x594] sm:$0xf0] }
  0xd8   :  { %v9960_v19 = vpop.f32.mrf.mxu2  ;;  %v1647_v20 = vpop.f32.mrf.mxu0 }
  0xd9   :  { %16565 = vst [vmem:[#allocation40_spill] sm:$0xff] %v9960_v19  ;;  %v1971_v22 = vpop.f32.mrf.mxu1 }
  0xda   :  { %v9971_v35 = vadd.f32 %v1971_v22, %v1647_v20  ;;  %v9995_v22 = vor.u32 %v9058_v45, %v7977_v51 }
  0xdb   :  { %4642 = vperm.xlu2 %9304, %v4424_v43  }
  0xdc   :  { %16568 = vst [vmem:[#allocation43_spill] sm:$0xff] %v9995_v22 }
  0xdd   :  { %4692 = vperm.xlu1 %9306, %v4434_v58   ;;  %v4444_v58 = vld [vmem:[%s16216_s5 + $0x160] sm:$0xff] }
  0xde   :  { %4712 = vperm.xlu0 %9305, %v4438_v3  }
  0xe0   :  { %v9991_v4 = vpop.f32.mrf.mxu2  ;;  %v1650_v20 = vpop.f32.mrf.mxu0 }
  0xe1   :  { %16566 = vst [vmem:[#allocation41_spill] sm:$0xff] %v9991_v4  ;;  %v1974_v30 = vpop.f32.mrf.mxu1 }
  0xe2   :  { %v10008_v36 = vadd.f32 %v1974_v30, %v1650_v20  ;;  %v7987_v20 = vld [vmem:[%s16215_s0 + $0x138] sm:$0xf]  ;;  %v9062_v30 = vld [vmem:[%s16215_s0 + $0x140] sm:$0xf0] }
  0xe3   :  { %1689 = vmatmul.bf16.gmra.mxu0 %v9993_v17  ;;  %v10046_v43 = vor.u32 %v9062_v30, %v7987_v20  ;;  %4657 = vperm.xlu2 %9304, %v4427_v34   ;;  %v4430_v34 = vld [vmem:[%s16216_s5 + $0xf0] sm:$0xff]  ;;  %v4476_v17 = vld [vmem:[%s16216_s5 + $0x260] sm:$0xff] }
  0xe4   :  { %2013 = vmatmul.bf16.gmra.mxu1 %v9995_v22  ;;  %v4470_v22 = vld [vmem:[%s16216_s5 + $0x230] sm:$0xff] }
  0xe5   :  { %2243 = vmatmul.bf16.gmra.mxu2 %v9997_v27  ;;  %16572 = vst [vmem:[#allocation47_spill] sm:$0xff] %v10046_v43 }
  0xe6   :  { %4727 = vperm.xlu0 %9305, %v4441_v49  }
  0xe8   :  { %v10013_v41 = vpop.f32.mrf.mxu2  ;;  %v1652_v45 = vpop.f32.mrf.mxu0 }
  0xe9   :  { %16570 = vst [vmem:[#allocation45_spill] sm:$0xff] %v10013_v41  ;;  %v1976_v51 = vpop.f32.mrf.mxu1 }
  0xea   :  { %v10024_v1 = vadd.f32 %v1976_v51, %v1652_v45  ;;  %v7989_v45 = vld [vmem:[%s16215_s0 + $0x144] sm:$0xf0]  ;;  %v9199_v51 = vld [vmem:[%s16215_s0 + $0x58c] sm:$0xf] }
  0xeb   :  { %v10048_v0 = vor.u32 %v9061_v31, %v7989_v45  ;;  %v10050_v29 = vor.u32 %v9199_v51, %v8541_v2  ;;  %v4437_v51 = vld [vmem:[%s16216_s5 + $0x128] sm:$0xff]  ;;  %4672 = vperm.xlu2 %9304, %v4430_v34   ;;  %v9064_v2 = vld [vmem:[%s16215_s0 + $0x154] sm:$0xf] }
  0xec   :  { %4707 = vperm.xlu1 %9306, %v4437_v51   ;;  %v8553_v51 = vld [vmem:[%s16215_s0 + $0x5ac] sm:$0xf0] }
  0xed   :  { %16573 = vst [vmem:[#allocation48_spill] sm:$0xff] %v10048_v0 }
  0xee   :  { %16574 = vst [vmem:[#allocation49_spill] sm:$0xff] %v10050_v29  ;;  %4742 = vperm.xlu0 %9305, %v4444_v58  }
  0xf0   :  { %v10044_v3 = vpop.f32.mrf.mxu2  ;;  %v1655_v27 = vpop.f32.mrf.mxu0 }
  0xf1   :  { %16571 = vst [vmem:[#allocation46_spill] sm:$0xff] %v10044_v3  ;;  %v1979_v11 = vpop.f32.mrf.mxu1  ;;  %v4447_v3 = vld [vmem:[%s16216_s5 + $0x178] sm:$0xff] }
  0xf2   :  { %v10061_v20 = vadd.f32 %v1979_v11, %v1655_v27  ;;  %v7999_v11 = vld [vmem:[%s16215_s0 + $0x150] sm:$0xf]  ;;  %v9065_v27 = vld [vmem:[%s16215_s0 + $0x158] sm:$0xf0] }
  0xf3   :  { %1694 = vmatmul.bf16.gmra.mxu0 %v10046_v43  ;;  %v10101_v34 = vor.u32 %v9065_v27, %v7999_v11 }
  0xf4   :  { %2018 = vmatmul.bf16.gmra.mxu1 %v10048_v0  ;;  %v4459_v0 = vld [vmem:[%s16216_s5 + $0x1d8] sm:$0xff] }
  0xf5   :  { %2248 = vmatmul.bf16.gmra.mxu2 %v10050_v29  ;;  %v10088_v29 = vpop.permute.xlu0 %4527  ;;  %16578 = vst [vmem:[#allocation53_spill] sm:$0xff] %v10101_v34 }
  0xf6   :  { %16576 = vst [vmem:[#allocation51_spill] sm:$0xff] %v10088_v29  ;;  %4757 = vperm.xlu0 %9305, %v4447_v3   ;;  %v8775_v3 = vld [vmem:[%s16214_s1 + $0x160] sm:$0xf] }
  0xf8   :  { %v10066_v30 = vpop.f32.mrf.mxu2  ;;  %v1657_v31 = vpop.f32.mrf.mxu0 }
  0xf9   :  { %16575 = vst [vmem:[#allocation50_spill] sm:$0xff] %v10066_v30  ;;  %v1981_v45 = vpop.f32.mrf.mxu1  ;;  %v4440_v30 = vld [vmem:[%s16216_s5 + $0x140] sm:$0xff] }
  0xfa   :  { %v10077_v49 = vadd.f32 %v1981_v45, %v1657_v31  ;;  %v8001_v31 = vld [vmem:[%s16215_s0 + $0x15c] sm:$0xf0]  ;;  %v9202_v45 = vld [vmem:[%s16215_s0 + $0x5a4] sm:$0xf]  ;;  %4722 = vperm.xlu1 %9306, %v4440_v30   ;;  %v9259_v30 = vld [vmem:[%s16214_s1 + $0x164] sm:$0xf0] }
  0xfb   :  { %v10103_v16 = vor.u32 %v9064_v2, %v8001_v31  ;;  %v10105_v7 = vor.u32 %v9202_v45, %v8553_v51  ;;  %v8783_v2 = vld [vmem:[%s16214_s1 + $0x170] sm:$0xf]  ;;  %v8776_v45 = vor.u32 %v9259_v30, %v8775_v3  ;;  %v9257_v3 = vld [vmem:[%s16214_s1 + $0x154] sm:$0xf0] }
  0xfd   :  { %16579 = vst [vmem:[#allocation54_spill] sm:$0xff] %v10103_v16  ;;  %v10121_v27 = vpop.permute.xlu0 %4547 }
  0xfe   :  { %16580 = vst [vmem:[#allocation55_spill] sm:$0xff] %v10105_v7 }
  0xff   :  { %16581 = vst [vmem:[#allocation56_spill] sm:$0xff] %v10121_v27  ;;  %v4452_v27 = vld [vmem:[%s16216_s5 + $0x1a0] sm:$0xff] }
 0x100   :  { %v10099_v58 = vpop.f32.mrf.mxu2  ;;  %v1660_v25 = vpop.f32.mrf.mxu0 }
 0x101   :  { %16577 = vst [vmem:[#allocation52_spill] sm:$0xff] %v10099_v58  ;;  %v1984_v62 = vpop.f32.mrf.mxu1  ;;  %v4433_v58 = vld [vmem:[%s16216_s5 + $0x108] sm:$0xff] }
 0x102   :  { %v10116_v11 = vadd.f32 %v1984_v62, %v1660_v25  ;;  %4687 = vperm.xlu2 %9304, %v4433_v58   ;;  %v9261_v62 = vld [vmem:[%s16214_s1 + $0x174] sm:$0xf0] }
 0x103   :  { %1699 = vmatmul.bf16.gmra.mxu0 %v10101_v34  ;;  %v8784_v25 = vor.u32 %v9261_v62, %v8783_v2  ;;  %v4450_v2 = vld [vmem:[%s16216_s5 + $0x190] sm:$0xff]  ;;  %v4436_v62 = vld [vmem:[%s16216_s5 + $0x120] sm:$0xff]  ;;  %v4477_v34 = vld [vmem:[%s16216_s5 + $0x268] sm:$0xff] }
 0x104   :  { %2023 = vmatmul.bf16.gmra.mxu1 %v10103_v16  ;;  %4772 = vperm.xlu0 %9305, %v4450_v2   ;;  %v9205_v2 = vld [vmem:[%s16215_s0 + $0x5bc] sm:$0xf] }
 0x105   :  { %2253 = vmatmul.bf16.gmra.mxu2 %v10105_v7  ;;  %v4443_v7 = vld [vmem:[%s16216_s5 + $0x158] sm:$0xff] }
 0x106   :  { %2269 = vmatpush.bf16.msrb.mxu2 %v8784_v25  ;;  %4737 = vperm.xlu1 %9306, %v4443_v7   ;;  %v8767_v25 = vld [vmem:[%s16214_s1 + $0x150] sm:$0xf]  ;;  %v9068_v7 = vld [vmem:[%s16215_s0 + $0x170] sm:$0xf0] }
 0x107   :  { %v8768_v30 = vor.u32 %v9257_v3, %v8767_v25  ;;  %v8759_v25 = vld [vmem:[%s16214_s1 + $0x140] sm:$0xf]  ;;  %v9255_v3 = vld [vmem:[%s16214_s1 + $0x144] sm:$0xf0] }
 0x108   :  { %v10135_v31 = vpop.f32.mrf.mxu2  ;;  %v1662_v51 = vpop.f32.mrf.mxu0  ;;  %v8760_v46 = vor.u32 %v9255_v3, %v8759_v25  ;;  %v4456_v25 = vld [vmem:[%s16216_s5 + $0x1c0] sm:$0xff] }
 0x109   :  { %16582 = vst [vmem:[#allocation57_spill] sm:$0xff] %v10135_v31  ;;  %v1986_v58 = vpop.f32.mrf.mxu1  ;;  %v8011_v31 = vld [vmem:[%s16215_s0 + $0x168] sm:$0xf] }
 0x10a   :  { %v10146_v41 = vadd.f32 %v1986_v58, %v1662_v51  ;;  %2270 = vmatpush.bf16.msrb.mxu2 %v8776_v45  ;;  %4702 = vperm.xlu2 %9304, %v4436_v62   ;;  %v9067_v51 = vld [vmem:[%s16215_s0 + $0x16c] sm:$0xf]  ;;  %v10163_v58 = vpop.permute.xlu0 %4562  ;;  %v8013_v45 = vld [vmem:[%s16215_s0 + $0x174] sm:$0xf0]  ;;  %v8565_v62 = vld [vmem:[%s16215_s0 + $0x5c4] sm:$0xf0]  ;;  %v10182_v19 = vor.u32 %v9068_v7, %v8011_v31 }
 0x10b   :  { %16583 = vst [vmem:[#allocation58_spill] sm:$0xff] %v10163_v58  ;;  %v10184_v39 = vor.u32 %v9067_v51, %v8013_v45  ;;  %v10186_v12 = vor.u32 %v9205_v2, %v8565_v62  ;;  %v4453_v58 = vld [vmem:[%s16216_s5 + $0x1a8] sm:$0xff]  ;;  %v4439_v31 = vld [vmem:[%s16216_s5 + $0x138] sm:$0xff] }
 0x10c   :  { %16585 = vst [vmem:[#allocation60_spill] sm:$0xff] %v10182_v19  ;;  %4787 = vperm.xlu0 %9305, %v4453_v58   ;;  %v9251_v7 = vld [vmem:[%s16214_s1 + $0x124] sm:$0xf0] }
 0x10d   :  { %16586 = vst [vmem:[#allocation61_spill] sm:$0xff] %v10184_v39  ;;  %v4449_v62 = vld [vmem:[%s16216_s5 + $0x188] sm:$0xff] }
 0x10e   :  { %2271 = vmatpush.bf16.msrb.mxu2 %v8768_v30  ;;  %16587 = vst [vmem:[#allocation62_spill] sm:$0xff] %v10186_v12  ;;  %4752 = vperm.xlu1 %9306, %v4446_v38   ;;  %v9253_v38 = vld [vmem:[%s16214_s1 + $0x134] sm:$0xf0] }
 0x110   :  { %v10180_v4 = vpop.f32.mrf.mxu2  ;;  %v1665_v53 = vpop.f32.mrf.mxu0 }
 0x111   :  { %16584 = vst [vmem:[#allocation59_spill] sm:$0xff] %v10180_v4  ;;  %v1989_v54 = vpop.f32.mrf.mxu1 }
 0x112   :  { %v10194_v16 = vadd.f32 %v1989_v54, %v1665_v53  ;;  %2272 = vmatpush.bf16.msrb.mxu2 %v8760_v46  ;;  %v10202_v30 = vpop.permute.xlu0 %4577  ;;  %v8751_v54 = vld [vmem:[%s16214_s1 + $0x130] sm:$0xf]  ;;  %4717 = vperm.xlu2 %9304, %v4439_v31   ;;  %v8743_v46 = vld [vmem:[%s16214_s1 + $0x120] sm:$0xf] }
 0x113   :  { %1704 = vmatmul.bf16.gmra.mxu0 %v10182_v19  ;;  %16588 = vst [vmem:[#allocation63_spill] sm:$0xff] %v10202_v30  ;;  %v8752_v53 = vor.u32 %v9253_v38, %v8751_v54  ;;  %v8744_v58 = vor.u32 %v9251_v7, %v8743_v46  ;;  %v4442_v31 = vld [vmem:[%s16216_s5 + $0x150] sm:$0xff]  ;;  %v9249_v38 = vld [vmem:[%s16214_s1 + $0x114] sm:$0xf0]  ;;  %v8023_v46 = vld [vmem:[%s16215_s0 + $0x180] sm:$0xf] }
 0x114   :  { %2028 = vmatmul.bf16.gmra.mxu1 %v10184_v39  ;;  %4802 = vperm.xlu0 %9305, %v4456_v25   ;;  %v8735_v54 = vld [vmem:[%s16214_s1 + $0x110] sm:$0xf]  ;;  %v9071_v7 = vld [vmem:[%s16215_s0 + $0x188] sm:$0xf0]  ;;  %v8577_v25 = vld [vmem:[%s16215_s0 + $0x5dc] sm:$0xf0] }
 0x115   :  { %2258 = vmatmul.bf16.gmra.mxu2 %v10186_v12 }
 0x116   :  { %2273 = vmatpush.bf16.msrb.mxu2 %v8752_v53  ;;  %4767 = vperm.xlu1 %9306, %v4449_v62   ;;  %v8736_v53 = vor.u32 %v9249_v38, %v8735_v54  ;;  %v8025_v62 = vld [vmem:[%s16215_s0 + $0x18c] sm:$0xf0]  ;;  %v8727_v54 = vld [vmem:[%s16214_s1 + $0x100] sm:$0xf]  ;;  %v9247_v38 = vld [vmem:[%s16214_s1 + $0x104] sm:$0xf0] }
 0x117   :  { %v8728_v4 = vor.u32 %v9247_v38, %v8727_v54  ;;  %v4455_v54 = vld [vmem:[%s16216_s5 + $0x1b8] sm:$0xff]  ;;  %v4462_v38 = vld [vmem:[%s16216_s5 + $0x1f0] sm:$0xff] }
 0x118   :  { %v10216_v51 = vpop.f32.mrf.mxu2  ;;  %v1667_v45 = vpop.f32.mrf.mxu0 }
 0x119   :  { %16589 = vst [vmem:[#allocation64_spill] sm:$0xff] %v10216_v51  ;;  %v1991_v2 = vpop.f32.mrf.mxu1  ;;  %v10263_v51 = vor.u32 %v9071_v7, %v8023_v46  ;;  %v9238_v7 = vld [vmem:[%s16214_s1 + $0xc4] sm:$0xf] }
 0x11a   :  { %v10224_v3 = vadd.f32 %v1991_v2, %v1667_v45  ;;  %2274 = vmatpush.bf16.msrb.mxu2 %v8744_v58  ;;  %v9070_v45 = vld [vmem:[%s16215_s0 + $0x184] sm:$0xf]  ;;  %v10244_v2 = vpop.permute.xlu0 %4592  ;;  %v9208_v58 = vld [vmem:[%s16215_s0 + $0x5d4] sm:$0xf]  ;;  %4732 = vperm.xlu2 %9304, %v4442_v31  }
 0x11b   :  { %16590 = vst [vmem:[#allocation65_spill] sm:$0xff] %v10244_v2  ;;  %v10265_v30 = vor.u32 %v9070_v45, %v8025_v62  ;;  %v10267_v39 = vor.u32 %v9208_v58, %v8577_v25 }
 0x11c   :  { %16592 = vst [vmem:[#allocation67_spill] sm:$0xff] %v10263_v51  ;;  %4817 = vperm.xlu0 %9305, %v4459_v0   ;;  %v8697_v0 = vld [vmem:[%s16214_s1 + $0xc8] sm:$0xf0] }
 0x11d   :  { %16593 = vst [vmem:[#allocation68_spill] sm:$0xff] %v10265_v30 }
 0x11e   :  { %2275 = vmatpush.bf16.msrb.mxu2 %v8736_v53  ;;  %16594 = vst [vmem:[#allocation69_spill] sm:$0xff] %v10267_v39  ;;  %4782 = vperm.xlu1 %9306, %v4452_v27   ;;  %v4445_v53 = vld [vmem:[%s16216_s5 + $0x168] sm:$0xff]  ;;  %v8700_v27 = vor.u32 %v9238_v7, %v8697_v0  ;;  %v8035_v7 = vld [vmem:[%s16215_s0 + $0x198] sm:$0xf]  ;;  %v9074_v0 = vld [vmem:[%s16215_s0 + $0x1a0] sm:$0xf0] }
 0x120   :  { %v10261_v12 = vpop.f32.mrf.mxu2  ;;  %v1670_v2 = vpop.f32.mrf.mxu0  ;;  %2917 = vmatpush.bf16.msrb.mxu0 %v8700_v27  ;;  %v9073_v27 = vld [vmem:[%s16215_s0 + $0x19c] sm:$0xf] }
 0x121   :  { %16591 = vst [vmem:[#allocation66_spill] sm:$0xff] %v10261_v12  ;;  %v1994_v31 = vpop.f32.mrf.mxu1 }
 0x122   :  { %v10275_v29 = vadd.f32 %v1994_v31, %v1670_v2  ;;  %2276 = vmatpush.bf16.msrb.mxu2 %v8728_v4  ;;  %v10283_v46 = vpop.permute.xlu0 %4607  ;;  %4747 = vperm.xlu2 %9304, %v4445_v53   ;;  %v9254_v4 = vld [vmem:[%s16214_s1 + $0x144] sm:$0xf]  ;;  %v8761_v2 = vld [vmem:[%s16214_s1 + $0x148] sm:$0xf0] }
 0x123   :  { %1709 = vmatmul.bf16.gmra.mxu0 %v10263_v51  ;;  %16595 = vst [vmem:[#allocation70_spill] sm:$0xff] %v10283_v46  ;;  %v8764_v58 = vor.u32 %v9254_v4, %v8761_v2  ;;  %v4448_v53 = vld [vmem:[%s16216_s5 + $0x180] sm:$0xff]  ;;  %v8037_v2 = vld [vmem:[%s16215_s0 + $0x1a4] sm:$0xf0]  ;;  %v4471_v51 = vld [vmem:[%s16216_s5 + $0x238] sm:$0xff] }
 0x124   :  { %2033 = vmatmul.bf16.gmra.mxu1 %v10265_v30  ;;  %4832 = vperm.xlu0 %9305, %v4462_v38   ;;  %v4465_v46 = vld [vmem:[%s16216_s5 + $0x208] sm:$0xff] }
 0x125   :  { %2262 = vmatmul.bf16.gmra.mxu2 %v10267_v39  ;;  %3238 = vmatpush.bf16.msrb.mxu1 %v8764_v58  ;;  %v8589_v58 = vld [vmem:[%s16215_s0 + $0x5f4] sm:$0xf0]  ;;  %v10334_v39 = vor.u32 %v9073_v27, %v8037_v2  ;;  %v4468_v2 = vld [vmem:[%s16216_s5 + $0x220] sm:$0xff] }
 0x126   :  { %4797 = vperm.xlu1 %9306, %v4455_v54   ;;  %v10332_v54 = vor.u32 %v9074_v0, %v8035_v7 }
 0x127   :  { %16600 = vst [vmem:[#allocation75_spill] sm:$0xff] %v10334_v39 }
 0x128   :  { %v10291_v45 = vpop.f32.mrf.mxu2  ;;  %v1672_v62 = vpop.f32.mrf.mxu0  ;;  %16599 = vst [vmem:[#allocation74_spill] sm:$0xff] %v10332_v54 }
 0x129   :  { %16596 = vst [vmem:[#allocation71_spill] sm:$0xff] %v10291_v45  ;;  %v1996_v25 = vpop.f32.mrf.mxu1 }
 0x12a   :  { %v10305_v31 = vadd.f32 %v1996_v25, %v1672_v62  ;;  %v10319_v4 = vpop.permute.xlu0 %4622  ;;  %v9211_v62 = vld [vmem:[%s16215_s0 + $0x5ec] sm:$0xf]  ;;  %4762 = vperm.xlu2 %9304, %v4448_v53   ;;  %v4451_v53 = vld [vmem:[%s16216_s5 + $0x198] sm:$0xff] }
 0x12b   :  { %16597 = vst [vmem:[#allocation72_spill] sm:$0xff] %v10319_v4  ;;  %v10336_v45 = vor.u32 %v9211_v62, %v8589_v58  ;;  %v4458_v4 = vld [vmem:[%s16216_s5 + $0x1d0] sm:$0xff] }
 0x12c   :  { %4847 = vperm.xlu0 %9305, %v4465_v46   ;;  %v4454_v62 = vld [vmem:[%s16216_s5 + $0x1b0] sm:$0xff] }
 0x12d   :  { %16601 = vst [vmem:[#allocation76_spill] sm:$0xff] %v10336_v45  ;;  %v8047_v58 = vld [vmem:[%s16215_s0 + $0x1b0] sm:$0xf] }
 0x12e   :  { %4812 = vperm.xlu1 %9306, %v4458_v4   ;;  %v4461_v4 = vld [vmem:[%s16216_s5 + $0x1e8] sm:$0xff] }
 0x130   :  { %v10330_v25 = vpop.f32.mrf.mxu2  ;;  %v1675_v38 = vpop.f32.mrf.mxu0 }
 0x131   :  { %16598 = vst [vmem:[#allocation73_spill] sm:$0xff] %v10330_v25  ;;  %v1999_v12 = vpop.f32.mrf.mxu1 }
 0x132   :  { %v10344_v30 = vadd.f32 %v1999_v12, %v1675_v38  ;;  %v10352_v7 = vpop.permute.xlu0 %4637  ;;  %4777 = vperm.xlu2 %9304, %v4451_v53   ;;  %v9077_v38 = vld [vmem:[%s16215_s0 + $0x1b8] sm:$0xf0]  ;;  %v9076_v53 = vld [vmem:[%s16215_s0 + $0x1b4] sm:$0xf] }
 0x133   :  { %1714 = vmatmul.bf16.gmra.mxu0 %v10332_v54  ;;  %16602 = vst [vmem:[#allocation77_spill] sm:$0xff] %v10352_v7  ;;  %v4464_v54 = vld [vmem:[%s16216_s5 + $0x200] sm:$0xff] }
 0x134   :  { %2038 = vmatmul.bf16.gmra.mxu1 %v10334_v39  ;;  %4862 = vperm.xlu0 %9305, %v4468_v2   ;;  %v9024_v2 = vld [vmem:[%s16215_s0 + $0x10] sm:$0xf0] }
 0x135   :  { %2265 = vmatmul.bf16.gmra.mxu2 %v10336_v45 }
 0x136   :  { %4827 = vperm.xlu1 %9306, %v4461_v4   ;;  %v7839_v4 = vld [vmem:[%s16215_s0 + $0x8] sm:$0xf] }
 0x138   :  { %v10354_v0 = vpop.f32.mrf.mxu2  ;;  %v1677_v27 = vpop.f32.mrf.mxu0 }
 0x139   :  { %16603 = vst [vmem:[#allocation78_spill] sm:$0xff] %v10354_v0  ;;  %v2001_v12 = vpop.f32.mrf.mxu1  ;;  %v10389_v0 = vor.u32 %v9077_v38, %v8047_v58 }
 0x13a   :  { %v10362_v46 = vadd.f32 %v2001_v12, %v1677_v27  ;;  %v10376_v27 = vpop.permute.xlu0 %4652  ;;  %v8049_v12 = vld [vmem:[%s16215_s0 + $0x1bc] sm:$0xf0]  ;;  %4792 = vperm.xlu2 %9304, %v4454_v62   ;;  %v4457_v62 = vld [vmem:[%s16216_s5 + $0x1c8] sm:$0xff] }
 0x13b   :  { %16604 = vst [vmem:[#allocation79_spill] sm:$0xff] %v10376_v27  ;;  %v10391_v7 = vor.u32 %v9076_v53, %v8049_v12  ;;  %v10393_v27 = vor.u32 %v9024_v2, %v7839_v4  ;;  %v4460_v12 = vld [vmem:[%s16216_s5 + $0x1e0] sm:$0xff]  ;;  %v8059_v4 = vld [vmem:[%s16215_s0 + $0x1c8] sm:$0xf]  ;;  %v9080_v2 = vld [vmem:[%s16215_s0 + $0x1d0] sm:$0xf0] }
 0x13c   :  { %16606 = vst [vmem:[#allocation81_spill] sm:$0xff] %v10389_v0  ;;  %4877 = vperm.xlu0 %9305, %v4471_v51  }
 0x13d   :  { %16607 = vst [vmem:[#allocation82_spill] sm:$0xff] %v10391_v7 }
 0x13e   :  { %4842 = vperm.xlu1 %9306, %v4464_v54   ;;  %v4474_v54 = vld [vmem:[%s16216_s5 + $0x250] sm:$0xff] }
 0x140   :  { %v10387_v45 = vpop.f32.mrf.mxu2  ;;  %v1680_v25 = vpop.f32.mrf.mxu0 }
 0x141   :  { %16605 = vst [vmem:[#allocation80_spill] sm:$0xff] %v10387_v45  ;;  %v2004_v39 = vpop.f32.mrf.mxu1  ;;  %v10446_v45 = vor.u32 %v9080_v2, %v8059_v4 }
 0x142   :  { %v10401_v19 = vadd.f32 %v2004_v39, %v1680_v25  ;;  %v10409_v58 = vpop.permute.xlu0 %4667  ;;  %4807 = vperm.xlu2 %9304, %v4457_v62   ;;  %v4467_v25 = vld [vmem:[%s16216_s5 + $0x218] sm:$0xff]  ;;  %v9079_v62 = vld [vmem:[%s16215_s0 + $0x1cc] sm:$0xf] }
 0x143   :  { %1719 = vmatmul.bf16.gmra.mxu0 %v10389_v0  ;;  %16608 = vst [vmem:[#allocation83_spill] sm:$0xff] %v10409_v58 }
 0x144   :  { %2043 = vmatmul.bf16.gmra.mxu1 %v10391_v7  ;;  %4892 = vperm.xlu0 %9305, %v4474_v54   ;;  %v9027_v54 = vld [vmem:[%s16215_s0 + $0x28] sm:$0xf0]  ;;  %16612 = vst [vmem:[#allocation87_spill] sm:$0xff] %v10446_v45 }
 0x145   :  { %2277 = vmatmul.bf16.vlgmr.msrb.gmra.mxu2 %v10393_v27 }
 0x146   :  { %4857 = vperm.xlu1 %9306, %v4467_v25   ;;  %v7851_v25 = vld [vmem:[%s16215_s0 + $0x20] sm:$0xf] }
 0x148   :  { %v10411_v38 = vpop.f32.mrf.mxu2  ;;  %v1682_v53 = vpop.f32.mrf.mxu0 }
 0x149   :  { %16609 = vst [vmem:[#allocation84_spill] sm:$0xff] %v10411_v38  ;;  %v2006_v39 = vpop.f32.mrf.mxu1 }
 0x14a   :  { %v10419_v51 = vadd.f32 %v2006_v39, %v1682_v53  ;;  %v10433_v53 = vpop.permute.xlu0 %4682  ;;  %v8061_v39 = vld [vmem:[%s16215_s0 + $0x1d4] sm:$0xf0]  ;;  %4822 = vperm.xlu2 %9304, %v4460_v12  }
 0x14b   :  { %16610 = vst [vmem:[#allocation85_spill] sm:$0xff] %v10433_v53  ;;  %v10448_v7 = vor.u32 %v9079_v62, %v8061_v39  ;;  %v10450_v53 = vor.u32 %v9027_v54, %v7851_v25  ;;  %v4463_v12 = vld [vmem:[%s16216_s5 + $0x1f8] sm:$0xff]  ;;  %v4466_v39 = vld [vmem:[%s16216_s5 + $0x210] sm:$0xff]  ;;  %v8071_v25 = vld [vmem:[%s16215_s0 + $0x1e0] sm:$0xf] }
 0x14c   :  { %4907 = vperm.xlu0 %9305, %v4477_v34   ;;  %v9083_v54 = vld [vmem:[%s16215_s0 + $0x1e8] sm:$0xf0] }
 0x14d   :  { %16613 = vst [vmem:[#allocation88_spill] sm:$0xff] %v10448_v7 }
 0x14e   :  { %4872 = vperm.xlu1 %9306, %v4470_v22   ;;  %v4473_v22 = vld [vmem:[%s16216_s5 + $0x248] sm:$0xff] }
 0x150   :  { %v10444_v38 = vpop.f32.mrf.mxu2  ;;  %v1685_v58 = vpop.f32.mrf.mxu0 }
 0x151   :  { %16611 = vst [vmem:[#allocation86_spill] sm:$0xff] %v10444_v38  ;;  %v2009_v0 = vpop.f32.mrf.mxu1  ;;  %v9161_v38 = vld [vmem:[%s16215_s0 + $0x458] sm:$0xf0] }
 0x152   :  { %v10458_v59 = vadd.f32 %v2009_v0, %v1685_v58  ;;  %v10466_v4 = vpop.permute.xlu0 %4697  ;;  %4837 = vperm.xlu2 %9304, %v4463_v12   ;;  %v4480_v58 = vld [vmem:[%s16216_s5 + $0x280] sm:$0xff] }
 0x153   :  { %1724 = vmatmul.bf16.gmra.mxu0 %v10446_v45  ;;  %16614 = vst [vmem:[#allocation89_spill] sm:$0xff] %v10466_v4  ;;  %v9082_v12 = vld [vmem:[%s16215_s0 + $0x1e4] sm:$0xf]  ;;  %v10509_v4 = vor.u32 %v9083_v54, %v8071_v25 }
 0x154   :  { %2048 = vmatmul.bf16.gmra.mxu1 %v10448_v7  ;;  %4922 = vperm.xlu0 %9305, %v4480_v58   ;;  %v9030_v58 = vld [vmem:[%s16215_s0 + $0x40] sm:$0xf0] }
 0x155   :  { %2282 = vmatmul.bf16.gmra.mxu2 %v10450_v53  ;;  %16618 = vst [vmem:[#allocation93_spill] sm:$0xff] %v10509_v4 }
 0x156   :  { %4887 = vperm.xlu1 %9306, %v4473_v22   ;;  %v7863_v22 = vld [vmem:[%s16215_s0 + $0x38] sm:$0xf] }
 0x157   :  { %v10515_v42 = vor.u32 %v9030_v58, %v7863_v22  ;;  %v4472_v22 = vld [vmem:[%s16216_s5 + $0x240] sm:$0xff]  ;;  %v8083_v58 = vld [vmem:[%s16215_s0 + $0x1f8] sm:$0xf] }
 0x158   :  { %v10468_v2 = vpop.f32.mrf.mxu2  ;;  %v1687_v62 = vpop.f32.mrf.mxu0 }
 0x159   :  { %16615 = vst [vmem:[#allocation90_spill] sm:$0xff] %v10468_v2  ;;  %v2011_v0 = vpop.f32.mrf.mxu1  ;;  %v8383_v2 = vld [vmem:[%s16215_s0 + $0x450] sm:$0xf] }
 0x15a   :  { %v10476_v34 = vadd.f32 %v2011_v0, %v1687_v62  ;;  %v10490_v62 = vpop.permute.xlu0 %4712  ;;  %v8073_v0 = vld [vmem:[%s16215_s0 + $0x1ec] sm:$0xf0]  ;;  %4852 = vperm.xlu2 %9304, %v4466_v39   ;;  %v10511_v7 = vor.u32 %v9161_v38, %v8383_v2  ;;  %16621 = vst [vmem:[#allocation96_spill] sm:$0xff] %v10515_v42  ;;  %v4469_v38 = vld [vmem:[%s16216_s5 + $0x228] sm:$0xff] }
 0x15b   :  { %16616 = vst [vmem:[#allocation91_spill] sm:$0xff] %v10490_v62  ;;  %v10513_v43 = vor.u32 %v9082_v12, %v8073_v0  ;;  %v4486_v0 = vld [vmem:[%s16216_s5 + $0x2b0] sm:$0xff] }
 0x15c   :  { %16619 = vst [vmem:[#allocation94_spill] sm:$0xff] %v10511_v7  ;;  %1859 = vmatmul.bf16.vlgmr.msra.gmra.mxu3 %v10511_v7  ;;  %v8395_v7 = vld [vmem:[%s16215_s0 + $0x468] sm:$0xf] }
 0x15d   :  { %16620 = vst [vmem:[#allocation95_spill] sm:$0xff] %v10513_v43 }
 0x15e   :  { %4902 = vperm.xlu1 %9306, %v4476_v17   ;;  %v4479_v17 = vld [vmem:[%s16216_s5 + $0x278] sm:$0xff] }
 0x160   :  { %v10507_v62 = vpop.f32.mrf.mxu2  ;;  %v1690_v45 = vpop.f32.mrf.mxu0 }
 0x161   :  { %16617 = vst [vmem:[#allocation92_spill] sm:$0xff] %v10507_v62  ;;  %v2014_v39 = vpop.f32.mrf.mxu1  ;;  %v4483_v62 = vld [vmem:[%s16216_s5 + $0x298] sm:$0xff] }
 0x162   :  { %v10524_v25 = vadd.f32 %v2014_v39, %v1690_v45  ;;  %4937 = vperm.xlu0 %9305, %v4483_v62   ;;  %v10532_v2 = vpop.permute.xlu0 %4727  ;;  %4867 = vperm.xlu2 %9304, %v4469_v38   ;;  %v9086_v39 = vld [vmem:[%s16215_s0 + $0x200] sm:$0xf0]  ;;  %v9085_v38 = vld [vmem:[%s16215_s0 + $0x1fc] sm:$0xf] }
 0x163   :  { %1729 = vmatmul.bf16.gmra.mxu0 %v10509_v4  ;;  %16622 = vst [vmem:[#allocation97_spill] sm:$0xff] %v10532_v2  ;;  %v10575_v2 = vor.u32 %v9086_v39, %v8083_v58 }
 0x164   :  { %2053 = vmatmul.bf16.gmra.mxu1 %v10513_v43 }
 0x165   :  { %2287 = vmatmul.bf16.gmra.mxu2 %v10515_v42  ;;  %16626 = vst [vmem:[#allocation101_spill] sm:$0xff] %v10575_v2 }
 0x166   :  { %4917 = vperm.xlu1 %9306, %v4479_v17   ;;  %v7875_v17 = vld [vmem:[%s16215_s0 + $0x50] sm:$0xf] }
 0x168   :  { %v10534_v54 = vpop.f32.mrf.mxu2  ;;  %v1692_v12 = vpop.f32.mrf.mxu0 }
 0x169   :  { %16623 = vst [vmem:[#allocation98_spill] sm:$0xff] %v10534_v54  ;;  %v2016_v45 = vpop.f32.mrf.mxu1  ;;  %v9164_v54 = vld [vmem:[%s16215_s0 + $0x470] sm:$0xf0] }
 0x16a   :  { %v10542_v62 = vadd.f32 %v2016_v45, %v1692_v12  ;;  %4952 = vperm.xlu0 %9305, %v4486_v0   ;;  %v10556_v12 = vpop.permute.xlu0 %4742  ;;  %v8085_v45 = vld [vmem:[%s16215_s0 + $0x204] sm:$0xf0]  ;;  %v9033_v0 = vld [vmem:[%s16215_s0 + $0x58] sm:$0xf0]  ;;  %4882 = vperm.xlu2 %9304, %v4472_v22   ;;  %v10577_v43 = vor.u32 %v9164_v54, %v8395_v7 }
 0x16b   :  { %16624 = vst [vmem:[#allocation99_spill] sm:$0xff] %v10556_v12  ;;  %v10579_v63 = vor.u32 %v9085_v38, %v8085_v45  ;;  %v10581_v50 = vor.u32 %v9033_v0, %v7875_v17  ;;  %v4475_v7 = vld [vmem:[%s16216_s5 + $0x258] sm:$0xff]  ;;  %v4492_v45 = vld [vmem:[%s16216_s5 + $0x2e0] sm:$0xff]  ;;  %v4478_v17 = vld [vmem:[%s16216_s5 + $0x270] sm:$0xff] }
 0x16c   :  { %16627 = vst [vmem:[#allocation102_spill] sm:$0xff] %v10577_v43  ;;  %1864 = vmatmul.bf16.gmra.mxu3 %v10577_v43  ;;  %v8095_v0 = vld [vmem:[%s16215_s0 + $0x210] sm:$0xf]  ;;  %v8407_v43 = vld [vmem:[%s16215_s0 + $0x480] sm:$0xf] }
 0x16d   :  { %16628 = vst [vmem:[#allocation103_spill] sm:$0xff] %v10579_v63 }
 0x16e   :  { %16629 = vst [vmem:[#allocation104_spill] sm:$0xff] %v10581_v50  ;;  %4932 = vperm.xlu1 %9306, %v4482_v28   ;;  %v4485_v28 = vld [vmem:[%s16216_s5 + $0x2a8] sm:$0xff] }
 0x170   :  { %v10573_v12 = vpop.f32.mrf.mxu2  ;;  %v1695_v4 = vpop.f32.mrf.mxu0 }
 0x171   :  { %16625 = vst [vmem:[#allocation100_spill] sm:$0xff] %v10573_v12  ;;  %v2019_v22 = vpop.f32.mrf.mxu1  ;;  %v4489_v12 = vld [vmem:[%s16216_s5 + $0x2c8] sm:$0xff] }
 0x172   :  { %v10590_v58 = vadd.f32 %v2019_v22, %v1695_v4  ;;  %4967 = vperm.xlu0 %9305, %v4489_v12   ;;  %v10598_v54 = vpop.permute.xlu0 %4757  ;;  %4897 = vperm.xlu2 %9304, %v4475_v7   ;;  %v9089_v22 = vld [vmem:[%s16215_s0 + $0x218] sm:$0xf0]  ;;  %v9088_v7 = vld [vmem:[%s16215_s0 + $0x214] sm:$0xf] }
 0x173   :  { %1734 = vmatmul.bf16.gmra.mxu0 %v10575_v2  ;;  %16630 = vst [vmem:[#allocation105_spill] sm:$0xff] %v10598_v54  ;;  %v10641_v54 = vor.u32 %v9089_v22, %v8095_v0  ;;  %v9236_v0 = vld [vmem:[%s16214_s1 + $0xb4] sm:$0xf]  ;;  %v8689_v22 = vld [vmem:[%s16214_s1 + $0xb8] sm:$0xf0] }
 0x174   :  { %2058 = vmatmul.bf16.gmra.mxu1 %v10579_v63 }
 0x175   :  { %2292 = vmatmul.bf16.gmra.mxu2 %v10581_v50  ;;  %16634 = vst [vmem:[#allocation109_spill] sm:$0xff] %v10641_v54 }
 0x176   :  { %4947 = vperm.xlu1 %9306, %v4485_v28   ;;  %v7887_v28 = vld [vmem:[%s16215_s0 + $0x68] sm:$0xf] }
 0x178   :  { %v10600_v39 = vpop.f32.mrf.mxu2  ;;  %v1697_v38 = vpop.f32.mrf.mxu0 }
 0x179   :  { %16631 = vst [vmem:[#allocation106_spill] sm:$0xff] %v10600_v39  ;;  %v2021_v4 = vpop.f32.mrf.mxu1  ;;  %v9167_v39 = vld [vmem:[%s16215_s0 + $0x488] sm:$0xf0] }
 0x17a   :  { %v10608_v12 = vadd.f32 %v2021_v4, %v1697_v38  ;;  %4982 = vperm.xlu0 %9305, %v4492_v45   ;;  %v10622_v38 = vpop.permute.xlu0 %4772  ;;  %v8097_v4 = vld [vmem:[%s16215_s0 + $0x21c] sm:$0xf0]  ;;  %v9036_v45 = vld [vmem:[%s16215_s0 + $0x70] sm:$0xf0]  ;;  %4912 = vperm.xlu2 %9304, %v4478_v17   ;;  %v10643_v63 = vor.u32 %v9167_v39, %v8407_v43  ;;  %v4481_v43 = vld [vmem:[%s16216_s5 + $0x288] sm:$0xff] }
 0x17b   :  { %16632 = vst [vmem:[#allocation107_spill] sm:$0xff] %v10622_v38  ;;  %v10645_v40 = vor.u32 %v9088_v7, %v8097_v4  ;;  %v10647_v10 = vor.u32 %v9036_v45, %v7887_v28  ;;  %v9252_v7 = vld [vmem:[%s16214_s1 + $0x134] sm:$0xf]  ;;  %v8692_v4 = vor.u32 %v9236_v0, %v8689_v22 }
 0x17c   :  { %16635 = vst [vmem:[#allocation110_spill] sm:$0xff] %v10643_v63  ;;  %1869 = vmatmul.bf16.gmra.mxu3 %v10643_v63  ;;  %v4498_v0 = vld [vmem:[%s16216_s5 + $0x310] sm:$0xff] }
 0x17d   :  { %16636 = vst [vmem:[#allocation111_spill] sm:$0xff] %v10645_v40  ;;  %2918 = vmatpush.bf16.msrb.mxu0 %v8692_v4  ;;  %v9092_v4 = vld [vmem:[%s16215_s0 + $0x230] sm:$0xf0] }
 0x17e   :  { %16637 = vst [vmem:[#allocation112_spill] sm:$0xff] %v10647_v10  ;;  %4962 = vperm.xlu1 %9306, %v4488_v55  }
 0x180   :  { %v10639_v38 = vpop.f32.mrf.mxu2  ;;  %v1700_v2 = vpop.f32.mrf.mxu0 }
 0x181   :  { %16633 = vst [vmem:[#allocation108_spill] sm:$0xff] %v10639_v38  ;;  %v2024_v17 = vpop.f32.mrf.mxu1  ;;  %v4495_v38 = vld [vmem:[%s16216_s5 + $0x2f8] sm:$0xff] }
 0x182   :  { %v10659_v39 = vadd.f32 %v2024_v17, %v1700_v2  ;;  %4997 = vperm.xlu0 %9305, %v4495_v38   ;;  %v8753_v2 = vld [vmem:[%s16214_s1 + $0x138] sm:$0xf0]  ;;  %v10676_v45 = vpop.permute.xlu0 %4787  ;;  %4927 = vperm.xlu2 %9304, %v4481_v43   ;;  %v4484_v43 = vld [vmem:[%s16216_s5 + $0x2a0] sm:$0xff] }
 0x183   :  { %1739 = vmatmul.bf16.gmra.mxu0 %v10641_v54  ;;  %v8756_v28 = vor.u32 %v9252_v7, %v8753_v2  ;;  %16638 = vst [vmem:[#allocation113_spill] sm:$0xff] %v10676_v45  ;;  %v4491_v38 = vld [vmem:[%s16216_s5 + $0x2d8] sm:$0xff]  ;;  %v8107_v7 = vld [vmem:[%s16215_s0 + $0x228] sm:$0xf]  ;;  %v9091_v2 = vld [vmem:[%s16215_s0 + $0x22c] sm:$0xf] }
 0x184   :  { %2063 = vmatmul.bf16.gmra.mxu1 %v10645_v40  ;;  %v10719_v45 = vor.u32 %v9092_v4, %v8107_v7 }
 0x185   :  { %2297 = vmatmul.bf16.gmra.mxu2 %v10647_v10  ;;  %3239 = vmatpush.bf16.msrb.mxu1 %v8756_v28  ;;  %v8109_v28 = vld [vmem:[%s16215_s0 + $0x234] sm:$0xf0] }
 0x186   :  { %4977 = vperm.xlu1 %9306, %v4491_v38   ;;  %v9039_v38 = vld [vmem:[%s16215_s0 + $0x88] sm:$0xf0]  ;;  %16642 = vst [vmem:[#allocation117_spill] sm:$0xff] %v10719_v45  ;;  %v10723_v57 = vor.u32 %v9091_v2, %v8109_v28 }
 0x188   :  { %v10678_v55 = vpop.f32.mrf.mxu2  ;;  %v1702_v17 = vpop.f32.mrf.mxu0  ;;  %16644 = vst [vmem:[#allocation119_spill] sm:$0xff] %v10723_v57 }
 0x189   :  { %16639 = vst [vmem:[#allocation114_spill] sm:$0xff] %v10678_v55  ;;  %v2026_v63 = vpop.f32.mrf.mxu1  ;;  %v9170_v55 = vld [vmem:[%s16215_s0 + $0x4a0] sm:$0xf0] }
 0x18a   :  { %v10686_v22 = vadd.f32 %v2026_v63, %v1702_v17  ;;  %5012 = vperm.xlu0 %9305, %v4498_v0   ;;  %v10700_v63 = vpop.permute.xlu0 %4802  ;;  %v7899_v17 = vld [vmem:[%s16215_s0 + $0x80] sm:$0xf]  ;;  %4942 = vperm.xlu2 %9304, %v4484_v43   ;;  %v8419_v0 = vld [vmem:[%s16215_s0 + $0x498] sm:$0xf] }
 0x18b   :  { %16640 = vst [vmem:[#allocation115_spill] sm:$0xff] %v10700_v63  ;;  %v10721_v40 = vor.u32 %v9170_v55, %v8419_v0  ;;  %v10725_v26 = vor.u32 %v9039_v38, %v7899_v17  ;;  %v4487_v55 = vld [vmem:[%s16216_s5 + $0x2b8] sm:$0xff]  ;;  %v4504_v17 = vld [vmem:[%s16216_s5 + $0x340] sm:$0xff]  ;;  %v4490_v38 = vld [vmem:[%s16216_s5 + $0x2d0] sm:$0xff] }
 0x18c   :  { %v8119_v0 = vld [vmem:[%s16215_s0 + $0x240] sm:$0xf] }
 0x18d   :  { %16643 = vst [vmem:[#allocation118_spill] sm:$0xff] %v10721_v40  ;;  %1874 = vmatmul.bf16.gmra.mxu3 %v10721_v40  ;;  %v8431_v40 = vld [vmem:[%s16215_s0 + $0x4b0] sm:$0xf] }
 0x18e   :  { %16645 = vst [vmem:[#allocation120_spill] sm:$0xff] %v10725_v26  ;;  %4992 = vperm.xlu1 %9306, %v4494_v48   ;;  %v4497_v48 = vld [vmem:[%s16216_s5 + $0x308] sm:$0xff] }
 0x190   :  { %v10717_v63 = vpop.f32.mrf.mxu2  ;;  %v1705_v54 = vpop.f32.mrf.mxu0 }
 0x191   :  { %16641 = vst [vmem:[#allocation116_spill] sm:$0xff] %v10717_v63  ;;  %v2029_v43 = vpop.f32.mrf.mxu1  ;;  %v4501_v63 = vld [vmem:[%s16216_s5 + $0x328] sm:$0xff] }
 0x192   :  { %v10734_v7 = vadd.f32 %v2029_v43, %v1705_v54  ;;  %5027 = vperm.xlu0 %9305, %v4501_v63   ;;  %v10742_v4 = vpop.permute.xlu0 %4817  ;;  %4957 = vperm.xlu2 %9304, %v4487_v55   ;;  %v9095_v43 = vld [vmem:[%s16215_s0 + $0x248] sm:$0xf0]  ;;  %v9094_v55 = vld [vmem:[%s16215_s0 + $0x244] sm:$0xf] }
 0x193   :  { %1744 = vmatmul.bf16.gmra.mxu0 %v10719_v45  ;;  %16646 = vst [vmem:[#allocation121_spill] sm:$0xff] %v10742_v4 }
 0x194   :  { %2068 = vmatmul.bf16.gmra.mxu1 %v10723_v57  ;;  %v10783_v57 = vor.u32 %v9095_v43, %v8119_v0 }
 0x195   :  { %2302 = vmatmul.bf16.gmra.mxu2 %v10725_v26 }
 0x196   :  { %5007 = vperm.xlu1 %9306, %v4497_v48   ;;  %v9042_v48 = vld [vmem:[%s16215_s0 + $0xa0] sm:$0xf0]  ;;  %16649 = vst [vmem:[#allocation124_spill] sm:$0xff] %v10783_v57 }
 0x198   :  { %v10744_v2 = vpop.f32.mrf.mxu2  ;;  %v1707_v28 = vpop.f32.mrf.mxu0 }
 0x199   :  { %16647 = vst [vmem:[#allocation122_spill] sm:$0xff] %v10744_v2  ;;  %v2031_v54 = vpop.f32.mrf.mxu1  ;;  %v9173_v2 = vld [vmem:[%s16215_s0 + $0x4b8] sm:$0xf0] }
 0x19a   :  { %v10752_v63 = vadd.f32 %v2031_v54, %v1707_v28  ;;  %5042 = vperm.xlu0 %9305, %v4504_v17   ;;  %v8121_v28 = vld [vmem:[%s16215_s0 + $0x24c] sm:$0xf0]  ;;  %v7911_v54 = vld [vmem:[%s16215_s0 + $0x98] sm:$0xf]  ;;  %4972 = vperm.xlu2 %9304, %v4490_v38   ;;  %v10775_v17 = vpop.permute.xlu0 %4832  ;;  %v10785_v45 = vor.u32 %v9173_v2, %v8431_v40  ;;  %v4493_v40 = vld [vmem:[%s16216_s5 + $0x2e8] sm:$0xff] }
 0x19b   :  { %16648 = vst [vmem:[#allocation123_spill] sm:$0xff] %v10775_v17  ;;  %v10787_v9 = vor.u32 %v9094_v55, %v8121_v28  ;;  %v10789_v10 = vor.u32 %v9042_v48, %v7911_v54  ;;  %v4500_v17 = vld [vmem:[%s16216_s5 + $0x320] sm:$0xff]  ;;  %v4510_v54 = vld [vmem:[%s16216_s5 + $0x370] sm:$0xff] }
 0x19c   :  { %16650 = vst [vmem:[#allocation125_spill] sm:$0xff] %v10785_v45 }
 0x19d   :  { %16651 = vst [vmem:[#allocation126_spill] sm:$0xff] %v10787_v9  ;;  %1879 = vmatmul.bf16.gmra.mxu3 %v10785_v45  ;;  %v9176_v45 = vld [vmem:[%s16215_s0 + $0x4d0] sm:$0xf0] }
 0x19e   :  { %16652 = vst [vmem:[#allocation127_spill] sm:$0xff] %v10789_v10  ;;  %5022 = vperm.xlu1 %9306, %v4500_v17   ;;  %v4496_v17 = vld [vmem:[%s16216_s5 + $0x300] sm:$0xff] }
 0x1a0   :  { %v2261_v4 = vpop.f32.mrf.mxu2  ;;  %v1710_v26 = vpop.f32.mrf.mxu0 }
 0x1a1   :  { %v2034_v38 = vpop.f32.mrf.mxu1  ;;  %v4507_v4 = vld [vmem:[%s16216_s5 + $0x358] sm:$0xff] }
 0x1a2   :  { %v10798_v0 = vadd.f32 %v2034_v38, %v1710_v26  ;;  %5057 = vperm.xlu0 %9305, %v4507_v4   ;;  %4987 = vperm.xlu2 %9304, %v4493_v40   ;;  %v10806_v2 = vpop.permute.xlu0 %4847  ;;  %v4503_v26 = vld [vmem:[%s16216_s5 + $0x338] sm:$0xff]  ;;  %v9098_v4 = vld [vmem:[%s16215_s0 + $0x260] sm:$0xf0] }
 0x1a3   :  { %1749 = vmatmul.bf16.gmra.mxu0 %v10783_v57  ;;  %16653 = vst [vmem:[#allocation128_spill] sm:$0xff] %v10806_v2  ;;  %v8131_v38 = vld [vmem:[%s16215_s0 + $0x258] sm:$0xf]  ;;  %v9097_v40 = vld [vmem:[%s16215_s0 + $0x25c] sm:$0xf] }
 0x1a4   :  { %2073 = vmatmul.bf16.gmra.mxu1 %v10787_v9  ;;  %v10845_v9 = vor.u32 %v9098_v4, %v8131_v38 }
 0x1a5   :  { %2307 = vmatmul.bf16.gmra.mxu2 %v10789_v10 }
 0x1a6   :  { %5037 = vperm.xlu1 %9306, %v4503_v26   ;;  %16655 = vst [vmem:[#allocation130_spill] sm:$0xff] %v10845_v9 }
 0x1a8   :  { %v2263_v43 = vpop.f32.mrf.mxu2  ;;  %v1712_v55 = vpop.f32.mrf.mxu0 }
 0x1a9   :  { %v2036_v28 = vpop.f32.mrf.mxu1  ;;  %v8133_v43 = vld [vmem:[%s16215_s0 + $0x264] sm:$0xf0] }
 0x1aa   :  { %v10814_v48 = vadd.f32 %v2036_v28, %v1712_v55  ;;  %5072 = vperm.xlu0 %9305, %v4510_v54   ;;  %v7923_v55 = vld [vmem:[%s16215_s0 + $0xb0] sm:$0xf]  ;;  %v9045_v28 = vld [vmem:[%s16215_s0 + $0xb8] sm:$0xf0]  ;;  %5002 = vperm.xlu2 %9304, %v4496_v17   ;;  %v10837_v26 = vpop.permute.xlu0 %4862  ;;  %v8443_v54 = vld [vmem:[%s16215_s0 + $0x4c8] sm:$0xf]  ;;  %v10849_v33 = vor.u32 %v9097_v40, %v8133_v43 }
 0x1ab   :  { %16654 = vst [vmem:[#allocation129_spill] sm:$0xff] %v10837_v26  ;;  %v10847_v57 = vor.u32 %v9176_v45, %v8443_v54  ;;  %v10851_v56 = vor.u32 %v9045_v28, %v7923_v55  ;;  %v4506_v26 = vld [vmem:[%s16216_s5 + $0x350] sm:$0xff]  ;;  %v4499_v45 = vld [vmem:[%s16216_s5 + $0x318] sm:$0xff]  ;;  %v4516_v28 = vld [vmem:[%s16216_s5 + $0x3a0] sm:$0xff] }
 0x1ac   :  { %16657 = vst [vmem:[#allocation132_spill] sm:$0xff] %v10849_v33  ;;  %v4502_v54 = vld [vmem:[%s16216_s5 + $0x330] sm:$0xff] }
 0x1ad   :  { %16656 = vst [vmem:[#allocation131_spill] sm:$0xff] %v10847_v57  ;;  %1884 = vmatmul.bf16.gmra.mxu3 %v10847_v57  ;;  %v9179_v57 = vld [vmem:[%s16215_s0 + $0x4e8] sm:$0xf0] }
 0x1ae   :  { %16658 = vst [vmem:[#allocation133_spill] sm:$0xff] %v10851_v56  ;;  %5052 = vperm.xlu1 %9306, %v4506_v26  }
 0x1b0   :  { %v2264_v2 = vpop.f32.mrf.mxu2  ;;  %v1715_v10 = vpop.f32.mrf.mxu0 }
 0x1b1   :  { %v2039_v17 = vpop.f32.mrf.mxu1  ;;  %v4513_v2 = vld [vmem:[%s16216_s5 + $0x388] sm:$0xff] }
 0x1b2   :  { %v10860_v38 = vadd.f32 %v2039_v17, %v1715_v10  ;;  %5087 = vperm.xlu0 %9305, %v4513_v2   ;;  %5017 = vperm.xlu2 %9304, %v4499_v45   ;;  %v10868_v4 = vpop.permute.xlu0 %4877  ;;  %v4509_v10 = vld [vmem:[%s16216_s5 + $0x368] sm:$0xff]  ;;  %v8143_v17 = vld [vmem:[%s16215_s0 + $0x270] sm:$0xf]  ;;  %v9101_v2 = vld [vmem:[%s16215_s0 + $0x278] sm:$0xf0] }
 0x1b3   :  { %1754 = vmatmul.bf16.gmra.mxu0 %v10845_v9  ;;  %16659 = vst [vmem:[#allocation134_spill] sm:$0xff] %v10868_v4  ;;  %v9100_v45 = vld [vmem:[%s16215_s0 + $0x274] sm:$0xf] }
 0x1b4   :  { %2078 = vmatmul.bf16.gmra.mxu1 %v10849_v33  ;;  %v10907_v33 = vor.u32 %v9101_v2, %v8143_v17 }
 0x1b5   :  { %2312 = vmatmul.bf16.gmra.mxu2 %v10851_v56 }
 0x1b6   :  { %5067 = vperm.xlu1 %9306, %v4509_v10   ;;  %16661 = vst [vmem:[#allocation136_spill] sm:$0xff] %v10907_v33 }
 0x1b8   :  { %v2266_v40 = vpop.f32.mrf.mxu2  ;;  %v1717_v43 = vpop.f32.mrf.mxu0 }
 0x1b9   :  { %v2041_v55 = vpop.f32.mrf.mxu1  ;;  %v8145_v40 = vld [vmem:[%s16215_s0 + $0x27c] sm:$0xf0] }
 0x1ba   :  { %v10876_v26 = vadd.f32 %v2041_v55, %v1717_v43  ;;  %5102 = vperm.xlu0 %9305, %v4516_v28   ;;  %v7935_v43 = vld [vmem:[%s16215_s0 + $0xc8] sm:$0xf]  ;;  %v9048_v55 = vld [vmem:[%s16215_s0 + $0xd0] sm:$0xf0]  ;;  %5032 = vperm.xlu2 %9304, %v4502_v54   ;;  %v10899_v10 = vpop.permute.xlu0 %4892  ;;  %v8455_v28 = vld [vmem:[%s16215_s0 + $0x4e0] sm:$0xf]  ;;  %v10911_v50 = vor.u32 %v9100_v45, %v8145_v40 }
 0x1bb   :  { %16660 = vst [vmem:[#allocation135_spill] sm:$0xff] %v10899_v10  ;;  %v10909_v9 = vor.u32 %v9179_v57, %v8455_v28  ;;  %v10913_v24 = vor.u32 %v9048_v55, %v7935_v43  ;;  %v4512_v10 = vld [vmem:[%s16216_s5 + $0x380] sm:$0xff]  ;;  %v4505_v57 = vld [vmem:[%s16216_s5 + $0x348] sm:$0xff]  ;;  %v4515_v40 = vld [vmem:[%s16216_s5 + $0x398] sm:$0xff] }
 0x1bc   :  { %16663 = vst [vmem:[#allocation138_spill] sm:$0xff] %v10911_v50  ;;  %v4508_v55 = vld [vmem:[%s16216_s5 + $0x360] sm:$0xff] }
 0x1bd   :  { %16662 = vst [vmem:[#allocation137_spill] sm:$0xff] %v10909_v9  ;;  %1889 = vmatmul.bf16.gmra.mxu3 %v10909_v9 }
 0x1be   :  { %16664 = vst [vmem:[#allocation139_spill] sm:$0xff] %v10913_v24  ;;  %5082 = vperm.xlu1 %9306, %v4512_v10   ;;  %v8657_v10 = vld [vmem:[%s16214_s1 + $0x78] sm:$0xf0] }
 0x1c0   :  { %v2267_v4 = vpop.f32.mrf.mxu2  ;;  %v1720_v56 = vpop.f32.mrf.mxu0 }
 0x1c1   :  { %v2044_v54 = vpop.f32.mrf.mxu1 }
 0x1c2   :  { %v10919_v47 = vadd.f32 %v2044_v54, %v1720_v56  ;;  %5047 = vperm.xlu2 %9304, %v4505_v57   ;;  %v10930_v45 = vpop.permute.xlu0 %4907  ;;  %v8155_v54 = vld [vmem:[%s16215_s0 + $0x288] sm:$0xf]  ;;  %v9104_v57 = vld [vmem:[%s16215_s0 + $0x290] sm:$0xf0] }
 0x1c3   :  { %1759 = vmatmul.bf16.gmra.mxu0 %v10907_v33  ;;  %16666 = vst [vmem:[#allocation141_spill] sm:$0xff] %v10930_v45  ;;  %v10970_v9 = vor.u32 %v9104_v57, %v8155_v54  ;;  %v4511_v54 = vld [vmem:[%s16216_s5 + $0x378] sm:$0xff] }
 0x1c4   :  { %2083 = vmatmul.bf16.gmra.mxu1 %v10911_v50 }
 0x1c5   :  { %2317 = vmatmul.bf16.gmra.mxu2 %v10913_v24  ;;  %16667 = vst [vmem:[#allocation142_spill] sm:$0xff] %v10970_v9 }
 0x1c6   :  { %5097 = vperm.xlu1 %9306, %v4515_v40   ;;  %v9051_v40 = vld [vmem:[%s16215_s0 + $0xe8] sm:$0xf0] }
 0x1c8   :  { %v2278_v4 = vpop.f32.mrf.mxu2  ;;  %v1722_v2 = vpop.f32.mrf.mxu0 }
 0x1c9   :  { %v10928_v17 = vadd.f32 %v2278_v4, %v9784_v37  ;;  %v2046_v56 = vpop.f32.mrf.mxu1  ;;  %v9228_v37 = vld [vmem:[%s16214_s1 + $0x74] sm:$0xf]  ;;  %v9103_v4 = vld [vmem:[%s16215_s0 + $0x28c] sm:$0xf] }
 0x1ca   :  { %v10935_v43 = vadd.f32 %v2046_v56, %v1722_v2  ;;  %v8660_v28 = vor.u32 %v9228_v37, %v8657_v10  ;;  %v8157_v2 = vld [vmem:[%s16215_s0 + $0x294] sm:$0xf0]  ;;  %v7947_v56 = vld [vmem:[%s16215_s0 + $0xe0] sm:$0xf]  ;;  %5062 = vperm.xlu2 %9304, %v4508_v55   ;;  %v9182_v10 = vld [vmem:[%s16215_s0 + $0x500] sm:$0xf0]  ;;  %v10984_v15 = vpop.permute.xlu0 %4922 }
 0x1cb   :  { %16665 = vst [vmem:[#allocation140_spill] sm:$0xff] %v10928_v17  ;;  %v8467_v37 = vld [vmem:[%s16215_s0 + $0x4f8] sm:$0xf]  ;;  %v10977_v24 = vor.u32 %v9103_v4, %v8157_v2  ;;  %v10979_v55 = vor.u32 %v9051_v40, %v7947_v56  ;;  %v4514_v2 = vld [vmem:[%s16216_s5 + $0x390] sm:$0xff]  ;;  %v9234_v56 = vld [vmem:[%s16214_s1 + $0xa4] sm:$0xf] }
 0x1cc   :  { %2593 = vmatpush.bf16.msrb.mxu3 %v8660_v28  ;;  %v10972_v50 = vor.u32 %v9182_v10, %v8467_v37  ;;  %16671 = vst [vmem:[#allocation146_spill] sm:$0xff] %v10984_v15  ;;  %v8681_v40 = vld [vmem:[%s16214_s1 + $0xa8] sm:$0xf0] }
 0x1cd   :  { %16669 = vst [vmem:[#allocation144_spill] sm:$0xff] %v10977_v24  ;;  %v8684_v37 = vor.u32 %v9234_v56, %v8681_v40  ;;  %v9107_v10 = vld [vmem:[%s16215_s0 + $0x2a8] sm:$0xf0]  ;;  %v8479_v56 = vld [vmem:[%s16215_s0 + $0x510] sm:$0xf] }
 0x1ce   :  { %16668 = vst [vmem:[#allocation143_spill] sm:$0xff] %v10972_v50  ;;  %1894 = vmatmul.bf16.gmra.mxu3 %v10972_v50  ;;  %v9185_v40 = vld [vmem:[%s16215_s0 + $0x518] sm:$0xf0] }
 0x1cf   :  { %16670 = vst [vmem:[#allocation145_spill] sm:$0xff] %v10979_v55  ;;  %2919 = vmatpush.bf16.msrb.mxu0 %v8684_v37  ;;  %v11034_v50 = vor.u32 %v9185_v40, %v8479_v56  ;;  %v9250_v37 = vld [vmem:[%s16214_s1 + $0x124] sm:$0xf] }
 0x1d0   :  { %v2280_v45 = vpop.f32.mrf.mxu2  ;;  %v1725_v17 = vpop.f32.mrf.mxu0  ;;  %v9110_v40 = vld [vmem:[%s16215_s0 + $0x2c0] sm:$0xf0] }
 0x1d1   :  { %v10975_v33 = vadd.f32 %v2280_v45, %v9800_v44  ;;  %v2049_v28 = vpop.f32.mrf.mxu1  ;;  %16675 = vst [vmem:[#allocation150_spill] sm:$0xff] %v11034_v50 }
 0x1d2   :  { %v10982_v42 = vadd.f32 %v2049_v28, %v1725_v17  ;;  %5077 = vperm.xlu2 %9304, %v4511_v54   ;;  %v9106_v28 = vld [vmem:[%s16215_s0 + $0x2a4] sm:$0xf] }
 0x1d3   :  { %1764 = vmatmul.bf16.gmra.mxu0 %v10970_v9 }
 0x1d4   :  { %2088 = vmatmul.bf16.gmra.mxu1 %v10977_v24  ;;  %v11015_v54 = vpop.permute.xlu0 %4937 }
 0x1d5   :  { %2322 = vmatmul.bf16.gmra.mxu2 %v10979_v55  ;;  %16673 = vst [vmem:[#allocation148_spill] sm:$0xff] %v11015_v54  ;;  %v8745_v55 = vld [vmem:[%s16214_s1 + $0x128] sm:$0xf0] }
 0x1d8   :  { %v2283_v44 = vpop.f32.mrf.mxu2  ;;  %v1727_v57 = vpop.f32.mrf.mxu0 }
 0x1d9   :  { %v10993_v45 = vadd.f32 %v2283_v44, %v9837_v8  ;;  %v2051_v17 = vpop.f32.mrf.mxu1  ;;  %v8167_v8 = vld [vmem:[%s16215_s0 + $0x2a0] sm:$0xf]  ;;  %v8169_v44 = vld [vmem:[%s16215_s0 + $0x2ac] sm:$0xf0] }
 0x1da   :  { %v10995_v4 = vadd.f32 %v2051_v17, %v1727_v57  ;;  %v7959_v57 = vld [vmem:[%s16215_s0 + $0xf8] sm:$0xf]  ;;  %v9054_v17 = vld [vmem:[%s16215_s0 + $0x100] sm:$0xf0]  ;;  %5092 = vperm.xlu2 %9304, %v4514_v2   ;;  %v11032_v15 = vor.u32 %v9107_v10, %v8167_v8  ;;  %v8748_v10 = vor.u32 %v9250_v37, %v8745_v55 }
 0x1db   :  { %16672 = vst [vmem:[#allocation147_spill] sm:$0xff] %v10993_v45  ;;  %v11039_v45 = vor.u32 %v9106_v28, %v8169_v44  ;;  %v11041_v2 = vor.u32 %v9054_v17, %v7959_v57  ;;  %v8179_v17 = vld [vmem:[%s16215_s0 + $0x2b8] sm:$0xf] }
 0x1dc   :  { %16674 = vst [vmem:[#allocation149_spill] sm:$0xff] %v11032_v15  ;;  %3240 = vmatpush.bf16.msrb.mxu1 %v8748_v10  ;;  %v11059_v28 = vpop.permute.xlu0 %4952  ;;  %v7971_v10 = vld [vmem:[%s16215_s0 + $0x110] sm:$0xf] }
 0x1dd   :  { %16677 = vst [vmem:[#allocation152_spill] sm:$0xff] %v11039_v45 }
 0x1de   :  { %16678 = vst [vmem:[#allocation153_spill] sm:$0xff] %v11041_v2  ;;  %1899 = vmatmul.bf16.gmra.mxu3 %v11034_v50  ;;  %v11094_v50 = vor.u32 %v9110_v40, %v8179_v17  ;;  %v8649_v17 = vld [vmem:[%s16214_s1 + $0x68] sm:$0xf0] }
 0x1df   :  { %16680 = vst [vmem:[#allocation155_spill] sm:$0xff] %v11059_v28 }
 0x1e0   :  { %v2285_v54 = vpop.f32.mrf.mxu2  ;;  %v1730_v9 = vpop.f32.mrf.mxu0  ;;  %16683 = vst [vmem:[#allocation158_spill] sm:$0xff] %v11094_v50 }
 0x1e1   :  { %v11037_v24 = vadd.f32 %v2285_v54, %v9853_v21  ;;  %v2054_v8 = vpop.f32.mrf.mxu1  ;;  %v11057_v21 = vpop.f32.mrf.mxu3 }
 0x1e2   :  { %v11050_v56 = vadd.f32 %v2054_v8, %v1730_v9  ;;  %16679 = vst [vmem:[#allocation154_spill] sm:$0xff] %v11057_v21  ;;  %v8181_v8 = vld [vmem:[%s16215_s0 + $0x2c4] sm:$0xf0] }
 0x1e3   :  { %16676 = vst [vmem:[#allocation151_spill] sm:$0xff] %v11037_v24  ;;  %3676 = vrot.lane.b32.xlu0 %v11037_v24, %s9325_s19  ;;  %1769 = vmatmul.bf16.gmra.mxu0 %v11032_v15 }
 0x1e4   :  { %2093 = vmatmul.bf16.gmra.mxu1 %v11039_v45  ;;  %v11105_v24 = vpop.permute.xlu0 %4967 }
 0x1e5   :  { %2327 = vmatmul.bf16.gmra.mxu2 %v11041_v2  ;;  %16688 = vst [vmem:[#allocation163_spill] sm:$0xff] %v11105_v24  ;;  %v9226_v2 = vld [vmem:[%s16214_s1 + $0x64] sm:$0xf] }
 0x1e8   :  { %v2288_v55 = vpop.f32.mrf.mxu2  ;;  %v1732_v9 = vpop.f32.mrf.mxu0 }
 0x1e9   :  { %v11062_v54 = vadd.f32 %v2288_v55, %v9890_v52  ;;  %v2056_v44 = vpop.f32.mrf.mxu1  ;;  %v9109_v52 = vld [vmem:[%s16215_s0 + $0x2bc] sm:$0xf]  ;;  %v11077_v37 = vpop.f32.mrf.mxu3 }
 0x1ea   :  { %v11064_v57 = vadd.f32 %v2056_v44, %v1732_v9  ;;  %16682 = vst [vmem:[#allocation157_spill] sm:$0xff] %v11077_v37  ;;  %v9057_v55 = vld [vmem:[%s16215_s0 + $0x118] sm:$0xf0]  ;;  %v8491_v9 = vld [vmem:[%s16215_s0 + $0x528] sm:$0xf]  ;;  %v11101_v15 = vor.u32 %v9109_v52, %v8181_v8 }
 0x1eb   :  { %16681 = vst [vmem:[#allocation156_spill] sm:$0xff] %v11062_v54  ;;  %3678 = vrot.lane.b32.xlu0 %v11062_v54, %s9325_s19  ;;  %v9188_v44 = vld [vmem:[%s16215_s0 + $0x530] sm:$0xf0]  ;;  %v11103_v54 = vor.u32 %v9057_v55, %v7971_v10 }
 0x1ec   :  { %v11096_v45 = vor.u32 %v9188_v44, %v8491_v9  ;;  %16686 = vst [vmem:[#allocation161_spill] sm:$0xff] %v11101_v15  ;;  %v8652_v9 = vor.u32 %v9226_v2, %v8649_v17  ;;  %v11130_v55 = vpop.permute.xlu0 %4982  ;;  %v8191_v44 = vld [vmem:[%s16215_s0 + $0x2d0] sm:$0xf]  ;;  %v9113_v17 = vld [vmem:[%s16215_s0 + $0x2d8] sm:$0xf0] }
 0x1ed   :  { %16687 = vst [vmem:[#allocation162_spill] sm:$0xff] %v11103_v54 }
 0x1ee   :  { %16684 = vst [vmem:[#allocation159_spill] sm:$0xff] %v11096_v45  ;;  %1904 = vmatmul.bf16.gmra.mxu3 %v11096_v45  ;;  %v11158_v45 = vor.u32 %v9113_v17, %v8191_v44 }
 0x1ef   :  { %2594 = vmatpush.bf16.msrb.mxu3 %v8652_v9  ;;  %16691 = vst [vmem:[#allocation166_spill] sm:$0xff] %v11130_v55  ;;  %v8193_v9 = vld [vmem:[%s16215_s0 + $0x2dc] sm:$0xf0]  ;;  %v9191_v55 = vld [vmem:[%s16215_s0 + $0x548] sm:$0xf0] }
 0x1f0   :  { %v2290_v28 = vpop.f32.mrf.mxu2  ;;  %v1735_v21 = vpop.f32.mrf.mxu0  ;;  %16693 = vst [vmem:[#allocation168_spill] sm:$0xff] %v11158_v45 }
 0x1f1   :  { %v11099_v37 = vadd.f32 %v2290_v28, %v9906_v13  ;;  %v2059_v40 = vpop.f32.mrf.mxu1  ;;  %v11121_v28 = vpop.f32.mrf.mxu3 }
 0x1f2   :  { %v11114_v13 = vadd.f32 %v2059_v40, %v1735_v21  ;;  %16689 = vst [vmem:[#allocation164_spill] sm:$0xff] %v11121_v28 }
 0x1f3   :  { %16685 = vst [vmem:[#allocation160_spill] sm:$0xff] %v11099_v37  ;;  %3680 = vrot.lane.b32.xlu1 %v11099_v37, %s9325_s19  ;;  %1774 = vmatmul.bf16.gmra.mxu0 %v11094_v50 }
 0x1f4   :  { %2098 = vmatmul.bf16.gmra.mxu1 %v11101_v15 }
 0x1f5   :  { %2332 = vmatmul.bf16.gmra.mxu2 %v11103_v54 }
 0x1f8   :  { %v2293_v52 = vpop.f32.mrf.mxu2  ;;  %v1737_v2 = vpop.f32.mrf.mxu0 }
 0x1f9   :  { %v11124_v8 = vadd.f32 %v2293_v52, %v9955_v18  ;;  %v2061_v10 = vpop.f32.mrf.mxu1  ;;  %v9112_v18 = vld [vmem:[%s16215_s0 + $0x2d4] sm:$0xf]  ;;  %v11141_v40 = vpop.f32.mrf.mxu3  ;;  %v7983_v52 = vld [vmem:[%s16215_s0 + $0x128] sm:$0xf] }
 0x1fa   :  { %v11126_v21 = vadd.f32 %v2061_v10, %v1737_v2  ;;  %16692 = vst [vmem:[#allocation167_spill] sm:$0xff] %v11141_v40  ;;  %v9060_v2 = vld [vmem:[%s16215_s0 + $0x130] sm:$0xf0]  ;;  %v8503_v10 = vld [vmem:[%s16215_s0 + $0x540] sm:$0xf]  ;;  %v11165_v50 = vor.u32 %v9112_v18, %v8193_v9 }
 0x1fb   :  { %16690 = vst [vmem:[#allocation165_spill] sm:$0xff] %v11124_v8  ;;  %3682 = vrot.lane.b32.xlu1 %v11124_v8, %s9325_s19  ;;  %v11160_v15 = vor.u32 %v9191_v55, %v8503_v10  ;;  %v11167_v8 = vor.u32 %v9060_v2, %v7983_v52  ;;  %v8203_v18 = vld [vmem:[%s16215_s0 + $0x2e8] sm:$0xf]  ;;  %v9116_v9 = vld [vmem:[%s16215_s0 + $0x2f0] sm:$0xf0] }
 0x1fc   :  { %16696 = vst [vmem:[#allocation171_spill] sm:$0xff] %v11165_v50  ;;  %v8205_v2 = vld [vmem:[%s16215_s0 + $0x2f4] sm:$0xf0]  ;;  %v7995_v10 = vld [vmem:[%s16215_s0 + $0x140] sm:$0xf] }
 0x1fd   :  { %16694 = vst [vmem:[#allocation169_spill] sm:$0xff] %v11160_v15 }
 0x1fe   :  { %16697 = vst [vmem:[#allocation172_spill] sm:$0xff] %v11167_v8  ;;  %1909 = vmatmul.bf16.gmra.mxu3 %v11160_v15 }
 0x200   :  { %v2295_v24 = vpop.f32.mrf.mxu2  ;;  %v1740_v28 = vpop.f32.mrf.mxu0 }
 0x201   :  { %v11163_v40 = vadd.f32 %v2295_v24, %v9971_v35  ;;  %v2064_v37 = vpop.f32.mrf.mxu1  ;;  %v11177_v24 = vpop.permute.xlu0 %4997 }
 0x202   :  { %v11170_v54 = vadd.f32 %v2064_v37, %v1740_v28  ;;  %16698 = vst [vmem:[#allocation173_spill] sm:$0xff] %v11177_v24  ;;  %v11179_v35 = vpop.f32.mrf.mxu3  ;;  %v9194_v24 = vld [vmem:[%s16215_s0 + $0x560] sm:$0xf0] }
 0x203   :  { %16695 = vst [vmem:[#allocation170_spill] sm:$0xff] %v11163_v40  ;;  %3684 = vrot.lane.b32.xlu2 %v11163_v40, %s9325_s19  ;;  %1779 = vmatmul.bf16.gmra.mxu0 %v11158_v45 }
 0x204   :  { %2103 = vmatmul.bf16.gmra.mxu1 %v11165_v50  ;;  %16699 = vst [vmem:[#allocation174_spill] sm:$0xff] %v11179_v35  ;;  %v11216_v50 = vor.u32 %v9116_v9, %v8203_v18 }
 0x205   :  { %2337 = vmatmul.bf16.gmra.mxu2 %v11167_v8 }
 0x206   :  { %16703 = vst [vmem:[#allocation178_spill] sm:$0xff] %v11216_v50 }
 0x208   :  { %v2298_v55 = vpop.f32.mrf.mxu2  ;;  %v1742_v17 = vpop.f32.mrf.mxu0 }
 0x209   :  { %v11182_v44 = vadd.f32 %v2298_v55, %v10008_v36  ;;  %v2066_v37 = vpop.f32.mrf.mxu1  ;;  %v9115_v36 = vld [vmem:[%s16215_s0 + $0x2ec] sm:$0xf] }
 0x20a   :  { %v11184_v28 = vadd.f32 %v2066_v37, %v1742_v17  ;;  %v11197_v52 = vpop.f32.mrf.mxu3  ;;  %v9063_v55 = vld [vmem:[%s16215_s0 + $0x148] sm:$0xf0]  ;;  %v11208_v17 = vpop.permute.xlu0 %5012  ;;  %v8515_v37 = vld [vmem:[%s16215_s0 + $0x558] sm:$0xf] }
 0x20b   :  { %16700 = vst [vmem:[#allocation175_spill] sm:$0xff] %v11182_v44  ;;  %3686 = vrot.lane.b32.xlu1 %v11182_v44, %s9325_s19  ;;  %v11223_v44 = vor.u32 %v9115_v36, %v8205_v2 }
 0x20c   :  { %16701 = vst [vmem:[#allocation176_spill] sm:$0xff] %v11197_v52  ;;  %v11218_v52 = vor.u32 %v9194_v24, %v8515_v37  ;;  %v9224_v24 = vld [vmem:[%s16214_s1 + $0x54] sm:$0xf]  ;;  %v9119_v37 = vld [vmem:[%s16215_s0 + $0x308] sm:$0xf0] }
 0x20d   :  { %16702 = vst [vmem:[#allocation177_spill] sm:$0xff] %v11208_v17  ;;  %v11225_v17 = vor.u32 %v9063_v55, %v7995_v10  ;;  %v8215_v55 = vld [vmem:[%s16215_s0 + $0x300] sm:$0xf] }
 0x20e   :  { %16704 = vst [vmem:[#allocation179_spill] sm:$0xff] %v11218_v52  ;;  %1914 = vmatmul.bf16.gmra.mxu3 %v11218_v52  ;;  %v11278_v52 = vor.u32 %v9119_v37, %v8215_v55 }
 0x20f   :  { %16706 = vst [vmem:[#allocation181_spill] sm:$0xff] %v11223_v44 }
 0x210   :  { %v2300_v15 = vpop.f32.mrf.mxu2  ;;  %v1745_v45 = vpop.f32.mrf.mxu0  ;;  %16707 = vst [vmem:[#allocation182_spill] sm:$0xff] %v11225_v17 }
 0x211   :  { %v11221_v35 = vadd.f32 %v2300_v15, %v10024_v1  ;;  %v2069_v40 = vpop.f32.mrf.mxu1  ;;  %v8641_v15 = vld [vmem:[%s16214_s1 + $0x58] sm:$0xf0]  ;;  %16712 = vst [vmem:[#allocation187_spill] sm:$0xff] %v11278_v52 }
 0x212   :  { %v11228_v8 = vadd.f32 %v2069_v40, %v1745_v45  ;;  %v8644_v1 = vor.u32 %v9224_v24, %v8641_v15  ;;  %v11241_v45 = vpop.f32.mrf.mxu3  ;;  %v11246_v36 = vpop.permute.xlu0 %5027  ;;  %v8217_v15 = vld [vmem:[%s16215_s0 + $0x30c] sm:$0xf0] }
 0x213   :  { %16705 = vst [vmem:[#allocation180_spill] sm:$0xff] %v11221_v35  ;;  %3688 = vrot.lane.b32.xlu1 %v11221_v35, %s9325_s19  ;;  %1784 = vmatmul.bf16.gmra.mxu0 %v11216_v50 }
 0x214   :  { %2108 = vmatmul.bf16.gmra.mxu1 %v11223_v44  ;;  %16708 = vst [vmem:[#allocation183_spill] sm:$0xff] %v11241_v45  ;;  %2595 = vmatpush.bf16.msrb.mxu3 %v8644_v1  ;;  %v8007_v1 = vld [vmem:[%s16215_s0 + $0x158] sm:$0xf] }
 0x215   :  { %2342 = vmatmul.bf16.gmra.mxu2 %v11225_v17  ;;  %16710 = vst [vmem:[#allocation185_spill] sm:$0xff] %v11246_v36 }
 0x218   :  { %v2303_v40 = vpop.f32.mrf.mxu2  ;;  %v1747_v9 = vpop.f32.mrf.mxu0 }
 0x219   :  { %v11244_v18 = vadd.f32 %v2303_v40, %v10061_v20  ;;  %v2071_v2 = vpop.f32.mrf.mxu1  ;;  %v9118_v20 = vld [vmem:[%s16215_s0 + $0x304] sm:$0xf] }
 0x21a   :  { %v11248_v10 = vadd.f32 %v2071_v2, %v1747_v9  ;;  %v11261_v24 = vpop.f32.mrf.mxu3  ;;  %v9066_v40 = vld [vmem:[%s16215_s0 + $0x160] sm:$0xf0]  ;;  %v8527_v9 = vld [vmem:[%s16215_s0 + $0x570] sm:$0xf]  ;;  %v9197_v2 = vld [vmem:[%s16215_s0 + $0x578] sm:$0xf0]  ;;  %v11285_v50 = vor.u32 %v9118_v20, %v8217_v15  ;;  %v11294_v55 = vpop.permute.xlu0 %5042 }
 0x21b   :  { %16709 = vst [vmem:[#allocation184_spill] sm:$0xff] %v11244_v18  ;;  %3690 = vrot.lane.b32.xlu0 %v11244_v18, %s9325_s19  ;;  %v11280_v44 = vor.u32 %v9197_v2, %v8527_v9  ;;  %v11287_v18 = vor.u32 %v9066_v40, %v8007_v1  ;;  %v8227_v1 = vld [vmem:[%s16215_s0 + $0x318] sm:$0xf]  ;;  %v9122_v40 = vld [vmem:[%s16215_s0 + $0x320] sm:$0xf0] }
 0x21c   :  { %16711 = vst [vmem:[#allocation186_spill] sm:$0xff] %v11261_v24  ;;  %v8229_v2 = vld [vmem:[%s16215_s0 + $0x324] sm:$0xf0] }
 0x21d   :  { %16713 = vst [vmem:[#allocation188_spill] sm:$0xff] %v11280_v44 }
 0x21e   :  { %16715 = vst [vmem:[#allocation190_spill] sm:$0xff] %v11285_v50  ;;  %1919 = vmatmul.bf16.gmra.mxu3 %v11280_v44  ;;  %v11336_v44 = vor.u32 %v9122_v40, %v8227_v1 }
 0x21f   :  { %16716 = vst [vmem:[#allocation191_spill] sm:$0xff] %v11287_v18 }
 0x220   :  { %v2305_v36 = vpop.f32.mrf.mxu2  ;;  %v1750_v45 = vpop.f32.mrf.mxu0  ;;  %16717 = vst [vmem:[#allocation192_spill] sm:$0xff] %v11294_v55 }
 0x221   :  { %v11283_v24 = vadd.f32 %v2305_v36, %v10077_v49  ;;  %v2074_v35 = vpop.f32.mrf.mxu1  ;;  %16722 = vst [vmem:[#allocation197_spill] sm:$0xff] %v11336_v44 }
 0x222   :  { %v11290_v17 = vadd.f32 %v2074_v35, %v1750_v45  ;;  %v11299_v49 = vpop.f32.mrf.mxu3  ;;  %v11308_v15 = vpop.permute.xlu0 %5057 }
 0x223   :  { %16714 = vst [vmem:[#allocation189_spill] sm:$0xff] %v11283_v24  ;;  %3692 = vrot.lane.b32.xlu2 %v11283_v24, %s9325_s19  ;;  %1789 = vmatmul.bf16.gmra.mxu0 %v11278_v52 }
 0x224   :  { %2113 = vmatmul.bf16.gmra.mxu1 %v11285_v50  ;;  %16718 = vst [vmem:[#allocation193_spill] sm:$0xff] %v11299_v49 }
 0x225   :  { %2347 = vmatmul.bf16.gmra.mxu2 %v11287_v18  ;;  %16720 = vst [vmem:[#allocation195_spill] sm:$0xff] %v11308_v15  ;;  %v9200_v15 = vld [vmem:[%s16215_s0 + $0x590] sm:$0xf0] }
 0x228   :  { %v2308_v36 = vpop.f32.mrf.mxu2  ;;  %v1752_v20 = vpop.f32.mrf.mxu0 }
 0x229   :  { %v11302_v37 = vadd.f32 %v2308_v36, %v10116_v11  ;;  %v2076_v35 = vpop.f32.mrf.mxu1  ;;  %v9121_v11 = vld [vmem:[%s16215_s0 + $0x31c] sm:$0xf]  ;;  %v8019_v36 = vld [vmem:[%s16215_s0 + $0x170] sm:$0xf] }
 0x22a   :  { %v11304_v45 = vadd.f32 %v2076_v35, %v1752_v20  ;;  %v11319_v9 = vpop.f32.mrf.mxu3  ;;  %v9069_v20 = vld [vmem:[%s16215_s0 + $0x178] sm:$0xf0]  ;;  %v8539_v35 = vld [vmem:[%s16215_s0 + $0x588] sm:$0xf]  ;;  %v11343_v52 = vor.u32 %v9121_v11, %v8229_v2 }
 0x22b   :  { %16719 = vst [vmem:[#allocation194_spill] sm:$0xff] %v11302_v37  ;;  %3694 = vrot.lane.b32.xlu1 %v11302_v37, %s9325_s19  ;;  %v11338_v50 = vor.u32 %v9200_v15, %v8539_v35  ;;  %v11345_v37 = vor.u32 %v9069_v20, %v8019_v36  ;;  %v8673_v20 = vld [vmem:[%s16214_s1 + $0x98] sm:$0xf0]  ;;  %v9248_v35 = vld [vmem:[%s16214_s1 + $0x114] sm:$0xf] }
 0x22c   :  { %16721 = vst [vmem:[#allocation196_spill] sm:$0xff] %v11319_v9 }
 0x22d   :  { %16723 = vst [vmem:[#allocation198_spill] sm:$0xff] %v11338_v50 }
 0x22e   :  { %16725 = vst [vmem:[#allocation200_spill] sm:$0xff] %v11343_v52  ;;  %1924 = vmatmul.bf16.gmra.mxu3 %v11338_v50 }
 0x22f   :  { %16726 = vst [vmem:[#allocation201_spill] sm:$0xff] %v11345_v37 }
 0x230   :  { %v2310_v55 = vpop.f32.mrf.mxu2  ;;  %v1755_v49 = vpop.f32.mrf.mxu0 }
 0x231   :  { %v11341_v9 = vadd.f32 %v2310_v55, %v10146_v41  ;;  %v2079_v24 = vpop.f32.mrf.mxu1  ;;  %v11357_v55 = vpop.permute.xlu0 %5072 }
 0x232   :  { %v11348_v18 = vadd.f32 %v2079_v24, %v1755_v49  ;;  %v11355_v41 = vpop.f32.mrf.mxu3  ;;  %16729 = vst [vmem:[#allocation204_spill] sm:$0xff] %v11357_v55  ;;  %v9222_v24 = vld [vmem:[%s16214_s1 + $0x44] sm:$0xf]  ;;  %v8633_v49 = vld [vmem:[%s16214_s1 + $0x48] sm:$0xf0] }
 0x233   :  { %16724 = vst [vmem:[#allocation199_spill] sm:$0xff] %v11341_v9  ;;  %3696 = vrot.lane.b32.xlu0 %v11341_v9, %s9325_s19  ;;  %1794 = vmatmul.bf16.gmra.mxu0 %v11336_v44  ;;  %v8636_v2 = vor.u32 %v9222_v24, %v8633_v49  ;;  %v8239_v24 = vld [vmem:[%s16215_s0 + $0x330] sm:$0xf]  ;;  %v9125_v49 = vld [vmem:[%s16215_s0 + $0x338] sm:$0xf0] }
 0x234   :  { %16727 = vst [vmem:[#allocation202_spill] sm:$0xff] %v11348_v18  ;;  %2118 = vmatmul.bf16.gmra.mxu1 %v11343_v52  ;;  %v11410_v52 = vpop.permute.xlu2 %4522 }
 0x235   :  { %2352 = vmatmul.bf16.gmra.mxu2 %v11345_v37  ;;  %16728 = vst [vmem:[#allocation203_spill] sm:$0xff] %v11355_v41  ;;  %2596 = vmatpush.bf16.msrb.mxu3 %v8636_v2  ;;  %v8241_v2 = vld [vmem:[%s16215_s0 + $0x33c] sm:$0xf0]  ;;  %v11412_v41 = vor.u32 %v9125_v49, %v8239_v24  ;;  %v11431_v24 = vpop.permute.xlu1 %4542 }
 0x236   :  { %16733 = vst [vmem:[#allocation208_spill] sm:$0xff] %v11410_v52 }
 0x237   :  { %16734 = vst [vmem:[#allocation209_spill] sm:$0xff] %v11412_v41 }
 0x238   :  { %v2313_v15 = vpop.f32.mrf.mxu2  ;;  %v1757_v40 = vpop.f32.mrf.mxu0  ;;  %16740 = vst [vmem:[#allocation215_spill] sm:$0xff] %v11431_v24 }
 0x239   :  { %v11360_v1 = vadd.f32 %v2313_v15, %v10194_v16  ;;  %v2081_v11 = vpop.f32.mrf.mxu1  ;;  %v9232_v16 = vld [vmem:[%s16214_s1 + $0x94] sm:$0xf] }
 0x23a   :  { %v11368_v36 = vadd.f32 %v2081_v11, %v1757_v40  ;;  %v8676_v15 = vor.u32 %v9232_v16, %v8673_v20  ;;  %v8737_v40 = vld [vmem:[%s16214_s1 + $0x118] sm:$0xf0]  ;;  %v9124_v11 = vld [vmem:[%s16215_s0 + $0x334] sm:$0xf]  ;;  %v11393_v50 = vpop.f32.mrf.mxu3  ;;  %v8031_v16 = vld [vmem:[%s16215_s0 + $0x188] sm:$0xf] }
 0x23b   :  { %16730 = vst [vmem:[#allocation205_spill] sm:$0xff] %v11360_v1  ;;  %3698 = vrot.lane.b32.xlu2 %v11360_v1, %s9325_s19  ;;  %v8740_v55 = vor.u32 %v9248_v35, %v8737_v40  ;;  %v9072_v20 = vld [vmem:[%s16215_s0 + $0x190] sm:$0xf0]  ;;  %v8551_v35 = vld [vmem:[%s16215_s0 + $0x5a0] sm:$0xf]  ;;  %v11421_v9 = vor.u32 %v9124_v11, %v8241_v2 }
 0x23c   :  { %16731 = vst [vmem:[#allocation206_spill] sm:$0xff] %v11368_v36  ;;  %2920 = vmatpush.bf16.msrb.mxu0 %v8676_v15  ;;  %v9203_v40 = vld [vmem:[%s16215_s0 + $0x5a8] sm:$0xf0]  ;;  %v11423_v37 = vor.u32 %v9072_v20, %v8031_v16 }
 0x23d   :  { %16732 = vst [vmem:[#allocation207_spill] sm:$0xff] %v11393_v50  ;;  %3241 = vmatpush.bf16.msrb.mxu1 %v8740_v55  ;;  %v11414_v44 = vor.u32 %v9203_v40, %v8551_v35  ;;  %v11419_v55 = vpop.permute.xlu0 %5087  ;;  %v8251_v35 = vld [vmem:[%s16215_s0 + $0x348] sm:$0xf]  ;;  %v9127_v40 = vld [vmem:[%s16215_s0 + $0x34c] sm:$0xf] }
 0x23e   :  { %16737 = vst [vmem:[#allocation212_spill] sm:$0xff] %v11419_v55 }
 0x23f   :  { %16735 = vst [vmem:[#allocation210_spill] sm:$0xff] %v11414_v44  ;;  %1929 = vmatmul.bf16.gmra.mxu3 %v11414_v44 }
 0x240   :  { %v2315_v50 = vpop.f32.mrf.mxu2  ;;  %v1760_v15 = vpop.f32.mrf.mxu0  ;;  %16738 = vst [vmem:[#allocation213_spill] sm:$0xff] %v11421_v9 }
 0x241   :  { %v11417_v1 = vadd.f32 %v2315_v50, %v10224_v3  ;;  %16739 = vst [vmem:[#allocation214_spill] sm:$0xff] %v11423_v37  ;;  %v2084_v36 = vpop.f32.mrf.mxu1 }
 0x242   :  { %v11426_v18 = vadd.f32 %v2084_v36, %v1760_v15  ;;  %v11435_v50 = vpop.f32.mrf.mxu3  ;;  %v11440_v36 = vpop.permute.xlu2 %4532 }
 0x243   :  { %16736 = vst [vmem:[#allocation211_spill] sm:$0xff] %v11417_v1  ;;  %3700 = vrot.lane.b32.xlu1 %v11417_v1, %s9325_s19  ;;  %1799 = vmatmul.bf16.gmra.mxu0 %v11412_v41 }
 0x244   :  { %2123 = vmatmul.bf16.gmra.mxu1 %v11421_v9  ;;  %16741 = vst [vmem:[#allocation216_spill] sm:$0xff] %v11435_v50 }
 0x245   :  { %2357 = vmatmul.bf16.gmra.mxu2 %v11423_v37  ;;  %16743 = vst [vmem:[#allocation218_spill] sm:$0xff] %v11440_v36  ;;  %v11446_v20 = vpop.permute.xlu0 %5102 }
 0x246   :  { %16744 = vst [vmem:[#allocation219_spill] sm:$0xff] %v11446_v20  ;;  %v11468_v20 = vpop.permute.xlu1 %4557 }
 0x247   :  { %16746 = vst [vmem:[#allocation221_spill] sm:$0xff] %v11468_v20 }
 0x248   :  { %v2318_v3 = vpop.f32.mrf.mxu2  ;;  %v1762_v11 = vpop.f32.mrf.mxu0 }
 0x249   :  { %v11438_v49 = vadd.f32 %v2318_v3, %v10275_v29  ;;  %v2086_v2 = vpop.f32.mrf.mxu1  ;;  %v9128_v29 = vld [vmem:[%s16215_s0 + $0x350] sm:$0xf0]  ;;  %v8253_v3 = vld [vmem:[%s16215_s0 + $0x354] sm:$0xf0] }
 0x24a   :  { %v11442_v16 = vadd.f32 %v2086_v2, %v1762_v11  ;;  %v11457_v15 = vpop.f32.mrf.mxu3  ;;  %v8043_v11 = vld [vmem:[%s16215_s0 + $0x1a0] sm:$0xf]  ;;  %v9075_v2 = vld [vmem:[%s16215_s0 + $0x1a8] sm:$0xf0]  ;;  %v11470_v44 = vor.u32 %v9128_v29, %v8251_v35  ;;  %v11475_v50 = vor.u32 %v9127_v40, %v8253_v3  ;;  %v11483_v37 = vpop.permute.xlu2 %4537  ;;  %v9206_v35 = vld [vmem:[%s16215_s0 + $0x5c0] sm:$0xf0] }
 0x24b   :  { %16742 = vst [vmem:[#allocation217_spill] sm:$0xff] %v11438_v49  ;;  %3702 = vrot.lane.b32.xlu0 %v11438_v49, %s9325_s19  ;;  %v11477_v41 = vor.u32 %v9075_v2, %v8043_v11 }
 0x24c   :  { %16745 = vst [vmem:[#allocation220_spill] sm:$0xff] %v11457_v15 }
 0x24d   :  { %16747 = vst [vmem:[#allocation222_spill] sm:$0xff] %v11470_v44 }
 0x24e   :  { %16749 = vst [vmem:[#allocation224_spill] sm:$0xff] %v11475_v50 }
 0x24f   :  { %16750 = vst [vmem:[#allocation225_spill] sm:$0xff] %v11477_v41 }
 0x250   :  { %v2320_v55 = vpop.f32.mrf.mxu2  ;;  %v1765_v15 = vpop.f32.mrf.mxu0  ;;  %16751 = vst [vmem:[#allocation226_spill] sm:$0xff] %v11483_v37 }
 0x251   :  { %v11473_v9 = vadd.f32 %v2320_v55, %v10305_v31  ;;  %v2089_v49 = vpop.f32.mrf.mxu1 }
 0x252   :  { %v11479_v1 = vadd.f32 %v2089_v49, %v1765_v15  ;;  %v11490_v55 = vpop.f32.mrf.mxu3  ;;  %v8563_v49 = vld [vmem:[%s16215_s0 + $0x5b8] sm:$0xf]  ;;  %v11500_v15 = vpop.permute.xlu1 %4572 }
 0x253   :  { %16748 = vst [vmem:[#allocation223_spill] sm:$0xff] %v11473_v9  ;;  %3704 = vrot.lane.b32.xlu2 %v11473_v9, %s9325_s19  ;;  %1804 = vmatmul.bf16.gmra.mxu0 %v11470_v44  ;;  %v11498_v40 = vor.u32 %v9206_v35, %v8563_v49  ;;  %v8625_v49 = vld [vmem:[%s16214_s1 + $0x38] sm:$0xf0]  ;;  %v9078_v44 = vld [vmem:[%s16215_s0 + $0x1c0] sm:$0xf0]  ;;  %v11539_v9 = vpop.permute.xlu2 %4552 }
 0x254   :  { %2128 = vmatmul.bf16.gmra.mxu1 %v11475_v50  ;;  %16752 = vst [vmem:[#allocation227_spill] sm:$0xff] %v11490_v55  ;;  %v9220_v55 = vld [vmem:[%s16214_s1 + $0x34] sm:$0xf] }
 0x255   :  { %2362 = vmatmul.bf16.gmra.mxu2 %v11477_v41  ;;  %v11488_v31 = vpop.permute.xlu0 %3676  ;;  %16753 = vst [vmem:[#allocation228_spill] sm:$0xff] %v11498_v40  ;;  %1934 = vmatmul.bf16.gmra.mxu3 %v11498_v40  ;;  %v8628_v35 = vor.u32 %v9220_v55, %v8625_v49  ;;  %v8265_v55 = vld [vmem:[%s16215_s0 + $0x36c] sm:$0xf0]  ;;  %v8055_v49 = vld [vmem:[%s16215_s0 + $0x1b8] sm:$0xf] }
 0x256   :  { %16754 = vst [vmem:[#allocation229_spill] sm:$0xff] %v11500_v15  ;;  %v11548_v24 = vor.u32 %v9078_v44, %v8055_v49  ;;  %v8277_v49 = vld [vmem:[%s16215_s0 + $0x384] sm:$0xf0] }
 0x257   :  { %2597 = vmatpush.bf16.msrb.mxu3 %v8628_v35 }
 0x258   :  { %v2323_v29 = vpop.f32.mrf.mxu2  ;;  %v1767_v11 = vpop.f32.mrf.mxu0  ;;  %16760 = vst [vmem:[#allocation235_spill] sm:$0xff] %v11548_v24 }
 0x259   :  { %v11503_v3 = vadd.f32 %v2323_v29, %v10344_v30  ;;  %v2091_v2 = vpop.f32.mrf.mxu1  ;;  %v8263_v29 = vld [vmem:[%s16215_s0 + $0x360] sm:$0xf] }
 0x25a   :  { %v11506_v50 = vadd.f32 %v2091_v2, %v1767_v11  ;;  %v9131_v11 = vld [vmem:[%s16215_s0 + $0x368] sm:$0xf0]  ;;  %v9130_v2 = vld [vmem:[%s16215_s0 + $0x364] sm:$0xf]  ;;  %v11550_v36 = vpop.permute.xlu1 %4587 }
 0x25b   :  { %16755 = vst [vmem:[#allocation230_spill] sm:$0xff] %v11503_v3  ;;  %3706 = vrot.lane.b32.xlu1 %v11503_v3, %s9325_s19  ;;  %v11537_v3 = vpop.f32.mrf.mxu3  ;;  %v11546_v20 = vor.u32 %v9130_v2, %v8265_v55  ;;  %v11561_v35 = vpop.permute.xlu2 %4567  ;;  %v8275_v2 = vld [vmem:[%s16215_s0 + $0x378] sm:$0xf]  ;;  %v9134_v55 = vld [vmem:[%s16215_s0 + $0x380] sm:$0xf0] }
 0x25c   :  { %16756 = vst [vmem:[#allocation231_spill] sm:$0xff] %v11537_v3 }
 0x25d   :  { %v3679_v30 = vpop.permute.xlu0 %3678  ;;  %16759 = vst [vmem:[#allocation234_spill] sm:$0xff] %v11546_v20 }
 0x25e   :  { %v11526_v40 = vadd.f32 %v3679_v30, %v10975_v33  ;;  %v11541_v33 = vor.u32 %v9131_v11, %v8263_v29  ;;  %16761 = vst [vmem:[#allocation236_spill] sm:$0xff] %v11550_v36 }
 0x25f   :  { %16763 = vst [vmem:[#allocation238_spill] sm:$0xff] %v11561_v35 }
 0x260   :  { %v2325_v41 = vpop.f32.mrf.mxu2  ;;  %16757 = vst [vmem:[#allocation232_spill] sm:$0xff] %v11541_v33  ;;  %v1770_v15 = vpop.f32.mrf.mxu0 }
 0x261   :  { %v11544_v30 = vadd.f32 %v2325_v41, %v10362_v46  ;;  %v2094_v37 = vpop.f32.mrf.mxu1 }
 0x262   :  { %v11552_v52 = vadd.f32 %v2094_v37, %v1770_v15  ;;  %v11570_v11 = vpop.permute.xlu1 %4602 }
 0x263   :  { %16758 = vst [vmem:[#allocation233_spill] sm:$0xff] %v11544_v30  ;;  %3708 = vrot.lane.b32.xlu0 %v11544_v30, %s9325_s19  ;;  %1809 = vmatmul.bf16.gmra.mxu0 %v11541_v33  ;;  %v11559_v46 = vpop.f32.mrf.mxu3 }
 0x264   :  { %2133 = vmatmul.bf16.gmra.mxu1 %v11546_v20  ;;  %16762 = vst [vmem:[#allocation237_spill] sm:$0xff] %v11559_v46  ;;  %v11592_v46 = vor.u32 %v9134_v55, %v8275_v2 }
 0x265   :  { %2367 = vmatmul.bf16.gmra.mxu2 %v11548_v24  ;;  %16765 = vst [vmem:[#allocation240_spill] sm:$0xff] %v11570_v11  ;;  %v11601_v24 = vpop.permute.xlu2 %4582 }
 0x266   :  { %16767 = vst [vmem:[#allocation242_spill] sm:$0xff] %v11592_v46 }
 0x267   :  { %16771 = vst [vmem:[#allocation246_spill] sm:$0xff] %v11601_v24 }
 0x268   :  { %v2328_v41 = vpop.f32.mrf.mxu2  ;;  %v1772_v29 = vpop.f32.mrf.mxu0 }
 0x269   :  { %v11564_v44 = vadd.f32 %v2328_v41, %v10401_v19  ;;  %v2096_v37 = vpop.f32.mrf.mxu1  ;;  %v9133_v19 = vld [vmem:[%s16215_s0 + $0x37c] sm:$0xf]  ;;  %v8067_v41 = vld [vmem:[%s16215_s0 + $0x1d0] sm:$0xf] }
 0x26a   :  { %v11566_v15 = vadd.f32 %v2096_v37, %v1772_v29  ;;  %v9081_v29 = vld [vmem:[%s16215_s0 + $0x1d8] sm:$0xf0] }
 0x26b   :  { %16764 = vst [vmem:[#allocation239_spill] sm:$0xff] %v11564_v44  ;;  %3710 = vrot.lane.b32.xlu2 %v11564_v44, %s9325_s19  ;;  %v11590_v37 = vpop.f32.mrf.mxu3  ;;  %v11597_v44 = vor.u32 %v9133_v19, %v8277_v49  ;;  %v11599_v30 = vor.u32 %v9081_v29, %v8067_v41  ;;  %v8287_v41 = vld [vmem:[%s16215_s0 + $0x390] sm:$0xf]  ;;  %v9137_v29 = vld [vmem:[%s16215_s0 + $0x398] sm:$0xf0] }
 0x26c   :  { %16766 = vst [vmem:[#allocation241_spill] sm:$0xff] %v11590_v37  ;;  %v11643_v37 = vor.u32 %v9137_v29, %v8287_v41 }
 0x26d   :  { %16769 = vst [vmem:[#allocation244_spill] sm:$0xff] %v11597_v44  ;;  %v11621_v49 = vpop.permute.xlu2 %4597 }
 0x26e   :  { %16770 = vst [vmem:[#allocation245_spill] sm:$0xff] %v11599_v30 }
 0x26f   :  { %16775 = vst [vmem:[#allocation250_spill] sm:$0xff] %v11621_v49 }
 0x270   :  { %v2330_v20 = vpop.f32.mrf.mxu2  ;;  %v1775_v33 = vpop.f32.mrf.mxu0  ;;  %16777 = vst [vmem:[#allocation252_spill] sm:$0xff] %v11643_v37 }
 0x271   :  { %v11595_v3 = vadd.f32 %v2330_v20, %v10419_v51  ;;  %v2099_v11 = vpop.f32.mrf.mxu1  ;;  %v11612_v20 = vpop.permute.xlu1 %4617 }
 0x272   :  { %v11603_v36 = vadd.f32 %v2099_v11, %v1775_v33  ;;  %16773 = vst [vmem:[#allocation248_spill] sm:$0xff] %v11612_v20 }
 0x273   :  { %16768 = vst [vmem:[#allocation243_spill] sm:$0xff] %v11595_v3  ;;  %3712 = vrot.lane.b32.xlu1 %v11595_v3, %s9325_s19  ;;  %1814 = vmatmul.bf16.gmra.mxu0 %v11592_v46  ;;  %v11610_v51 = vpop.f32.mrf.mxu3 }
 0x274   :  { %2138 = vmatmul.bf16.gmra.mxu1 %v11597_v44  ;;  %16772 = vst [vmem:[#allocation247_spill] sm:$0xff] %v11610_v51 }
 0x275   :  { %2372 = vmatmul.bf16.gmra.mxu2 %v11599_v30  ;;  %v9218_v30 = vld [vmem:[%s16214_s1 + $0x24] sm:$0xf] }
 0x278   :  { %v2333_v2 = vpop.f32.mrf.mxu2  ;;  %v1777_v19 = vpop.f32.mrf.mxu0 }
 0x279   :  { %v11615_v55 = vadd.f32 %v2333_v2, %v10458_v59  ;;  %v2101_v33 = vpop.f32.mrf.mxu1  ;;  %v9136_v59 = vld [vmem:[%s16215_s0 + $0x394] sm:$0xf]  ;;  %v8289_v2 = vld [vmem:[%s16215_s0 + $0x39c] sm:$0xf0]  ;;  %v11645_v46 = vpop.permute.xlu1 %4632 }
 0x27a   :  { %v11617_v11 = vadd.f32 %v2101_v33, %v1777_v19  ;;  %v8079_v19 = vld [vmem:[%s16215_s0 + $0x1e8] sm:$0xf]  ;;  %v9084_v33 = vld [vmem:[%s16215_s0 + $0x1f0] sm:$0xf0]  ;;  %16778 = vst [vmem:[#allocation253_spill] sm:$0xff] %v11645_v46  ;;  %v11650_v20 = vor.u32 %v9136_v59, %v8289_v2 }
 0x27b   :  { %16774 = vst [vmem:[#allocation249_spill] sm:$0xff] %v11615_v55  ;;  %3714 = vrot.lane.b32.xlu0 %v11615_v55, %s9325_s19  ;;  %v11641_v44 = vpop.f32.mrf.mxu3  ;;  %v11652_v49 = vor.u32 %v9084_v33, %v8079_v19  ;;  %v8299_v33 = vld [vmem:[%s16215_s0 + $0x3a8] sm:$0xf] }
 0x27c   :  { %16776 = vst [vmem:[#allocation251_spill] sm:$0xff] %v11641_v44  ;;  %v8617_v44 = vld [vmem:[%s16214_s1 + $0x28] sm:$0xf0] }
 0x27d   :  { %16780 = vst [vmem:[#allocation255_spill] sm:$0xff] %v11650_v20  ;;  %v8620_v29 = vor.u32 %v9218_v30, %v8617_v44 }
 0x27e   :  { %16781 = vst [vmem:[#allocation256_spill] sm:$0xff] %v11652_v49 }
 0x27f   :  { %2598 = vmatpush.bf16.msrb.mxu3 %v8620_v29  ;;  %v8301_v29 = vld [vmem:[%s16215_s0 + $0x3b4] sm:$0xf0] }
 0x280   :  { %v2335_v51 = vpop.f32.mrf.mxu2  ;;  %v1780_v3 = vpop.f32.mrf.mxu0 }
 0x281   :  { %v11648_v55 = vadd.f32 %v2335_v51, %v10476_v34  ;;  %v2104_v41 = vpop.f32.mrf.mxu1  ;;  %v11669_v51 = vpop.permute.xlu2 %4612 }
 0x282   :  { %v11660_v24 = vadd.f32 %v2104_v41, %v1780_v3  ;;  %16783 = vst [vmem:[#allocation258_spill] sm:$0xff] %v11669_v51  ;;  %v11674_v44 = vpop.permute.xlu1 %4647  ;;  %v9140_v41 = vld [vmem:[%s16215_s0 + $0x3b0] sm:$0xf0] }
 0x283   :  { %16779 = vst [vmem:[#allocation254_spill] sm:$0xff] %v11648_v55  ;;  %3716 = vrot.lane.b32.xlu2 %v11648_v55, %s9325_s19  ;;  %1819 = vmatmul.bf16.gmra.mxu0 %v11643_v37  ;;  %v11667_v34 = vpop.f32.mrf.mxu3 }
 0x284   :  { %2143 = vmatmul.bf16.gmra.mxu1 %v11650_v20  ;;  %16782 = vst [vmem:[#allocation257_spill] sm:$0xff] %v11667_v34  ;;  %v11700_v34 = vor.u32 %v9140_v41, %v8299_v33 }
 0x285   :  { %2377 = vmatmul.bf16.gmra.mxu2 %v11652_v49  ;;  %16785 = vst [vmem:[#allocation260_spill] sm:$0xff] %v11674_v44 }
 0x286   :  { %16787 = vst [vmem:[#allocation262_spill] sm:$0xff] %v11700_v34 }
 0x288   :  { %v2338_v59 = vpop.f32.mrf.mxu2  ;;  %v1782_v3 = vpop.f32.mrf.mxu0 }
 0x289   :  { %v11672_v2 = vadd.f32 %v2338_v59, %v10524_v25  ;;  %v2106_v30 = vpop.f32.mrf.mxu1  ;;  %v9139_v25 = vld [vmem:[%s16215_s0 + $0x3ac] sm:$0xf]  ;;  %v8091_v59 = vld [vmem:[%s16215_s0 + $0x200] sm:$0xf]  ;;  %v11702_v37 = vpop.permute.xlu2 %4627 }
 0x28a   :  { %v11676_v19 = vadd.f32 %v2106_v30, %v1782_v3  ;;  %v9087_v3 = vld [vmem:[%s16215_s0 + $0x208] sm:$0xf0]  ;;  %16788 = vst [vmem:[#allocation263_spill] sm:$0xff] %v11702_v37  ;;  %v11707_v55 = vor.u32 %v9139_v25, %v8301_v29  ;;  %v11716_v33 = vpop.permute.xlu1 %4662 }
 0x28b   :  { %16784 = vst [vmem:[#allocation259_spill] sm:$0xff] %v11672_v2  ;;  %3718 = vrot.lane.b32.xlu1 %v11672_v2, %s9325_s19  ;;  %v11698_v30 = vpop.f32.mrf.mxu3  ;;  %v11709_v46 = vor.u32 %v9087_v3, %v8091_v59  ;;  %v9246_v59 = vld [vmem:[%s16214_s1 + $0x104] sm:$0xf]  ;;  %v8729_v3 = vld [vmem:[%s16214_s1 + $0x108] sm:$0xf0] }
 0x28c   :  { %16786 = vst [vmem:[#allocation261_spill] sm:$0xff] %v11698_v30 }
 0x28d   :  { %16790 = vst [vmem:[#allocation265_spill] sm:$0xff] %v11707_v55 }
 0x28e   :  { %16791 = vst [vmem:[#allocation266_spill] sm:$0xff] %v11709_v46 }
 0x28f   :  { %16792 = vst [vmem:[#allocation267_spill] sm:$0xff] %v11716_v33 }
 0x290   :  { %v2340_v20 = vpop.f32.mrf.mxu2  ;;  %v1785_v2 = vpop.f32.mrf.mxu0 }
 0x291   :  { %v11705_v44 = vadd.f32 %v2340_v20, %v10542_v62  ;;  %v2109_v51 = vpop.f32.mrf.mxu1  ;;  %v9230_v20 = vld [vmem:[%s16214_s1 + $0x84] sm:$0xf]  ;;  %v11737_v30 = vpop.permute.xlu2 %4642 }
 0x292   :  { %v11711_v49 = vadd.f32 %v2109_v51, %v1785_v2  ;;  %v8665_v51 = vld [vmem:[%s16214_s1 + $0x88] sm:$0xf0]  ;;  %16795 = vst [vmem:[#allocation270_spill] sm:$0xff] %v11737_v30 }
 0x293   :  { %16789 = vst [vmem:[#allocation264_spill] sm:$0xff] %v11705_v44  ;;  %3720 = vrot.lane.b32.xlu0 %v11705_v44, %s9325_s19  ;;  %1824 = vmatmul.bf16.gmra.mxu0 %v11700_v34  ;;  %v11720_v62 = vpop.f32.mrf.mxu3  ;;  %v8668_v2 = vor.u32 %v9230_v20, %v8665_v51  ;;  %v9143_v20 = vld [vmem:[%s16215_s0 + $0x3c8] sm:$0xf0]  ;;  %v9142_v51 = vld [vmem:[%s16215_s0 + $0x3c4] sm:$0xf] }
 0x294   :  { %2148 = vmatmul.bf16.gmra.mxu1 %v11707_v55  ;;  %16793 = vst [vmem:[#allocation268_spill] sm:$0xff] %v11720_v62  ;;  %v8732_v62 = vor.u32 %v9246_v59, %v8729_v3 }
 0x295   :  { %2382 = vmatmul.bf16.gmra.mxu2 %v11709_v46  ;;  %2921 = vmatpush.bf16.msrb.mxu0 %v8668_v2  ;;  %v9090_v2 = vld [vmem:[%s16215_s0 + $0x220] sm:$0xf0] }
 0x296   :  { %3242 = vmatpush.bf16.msrb.mxu1 %v8732_v62  ;;  %v8103_v62 = vld [vmem:[%s16215_s0 + $0x218] sm:$0xf] }
 0x297   :  { %v11772_v44 = vor.u32 %v9090_v2, %v8103_v62 }
 0x298   :  { %v2343_v41 = vpop.f32.mrf.mxu2  ;;  %v1787_v29 = vpop.f32.mrf.mxu0 }
 0x299   :  { %v11729_v25 = vadd.f32 %v2343_v41, %v10590_v58  ;;  %v2111_v55 = vpop.f32.mrf.mxu1  ;;  %v8311_v58 = vld [vmem:[%s16215_s0 + $0x3c0] sm:$0xf]  ;;  %16801 = vst [vmem:[#allocation276_spill] sm:$0xff] %v11772_v44 }
 0x29a   :  { %v11739_v34 = vadd.f32 %v2111_v55, %v1787_v29  ;;  %v8313_v55 = vld [vmem:[%s16215_s0 + $0x3cc] sm:$0xf0]  ;;  %v11763_v29 = vpop.permute.xlu1 %4677  ;;  %v11765_v3 = vor.u32 %v9143_v20, %v8311_v58  ;;  %v11785_v20 = vpop.permute.xlu2 %4657 }
 0x29b   :  { %16794 = vst [vmem:[#allocation269_spill] sm:$0xff] %v11729_v25  ;;  %3722 = vrot.lane.b32.xlu2 %v11729_v25, %s9325_s19  ;;  %v11761_v41 = vpop.f32.mrf.mxu3  ;;  %v11770_v30 = vor.u32 %v9142_v51, %v8313_v55 }
 0x29c   :  { %16796 = vst [vmem:[#allocation271_spill] sm:$0xff] %v11761_v41  ;;  %v9216_v41 = vld [vmem:[%s16214_s1 + $0x14] sm:$0xf] }
 0x29d   :  { %16797 = vst [vmem:[#allocation272_spill] sm:$0xff] %v11763_v29 }
 0x29e   :  { %16798 = vst [vmem:[#allocation273_spill] sm:$0xff] %v11765_v3 }
 0x29f   :  { %16800 = vst [vmem:[#allocation275_spill] sm:$0xff] %v11770_v30 }
 0x2a0   :  { %v2345_v59 = vpop.f32.mrf.mxu2  ;;  %v1790_v25 = vpop.f32.mrf.mxu0  ;;  %16802 = vst [vmem:[#allocation277_spill] sm:$0xff] %v11785_v20 }
 0x2a1   :  { %v11768_v33 = vadd.f32 %v2345_v59, %v10608_v12  ;;  %v2114_v37 = vpop.f32.mrf.mxu1  ;;  %v8609_v12 = vld [vmem:[%s16214_s1 + $0x18] sm:$0xf0] }
 0x2a2   :  { %v11774_v46 = vadd.f32 %v2114_v37, %v1790_v25  ;;  %v8612_v58 = vor.u32 %v9216_v41, %v8609_v12  ;;  %v11791_v51 = vpop.permute.xlu1 %4692  ;;  %v8323_v41 = vld [vmem:[%s16215_s0 + $0x3d8] sm:$0xf]  ;;  %v9146_v12 = vld [vmem:[%s16215_s0 + $0x3e0] sm:$0xf0] }
 0x2a3   :  { %16799 = vst [vmem:[#allocation274_spill] sm:$0xff] %v11768_v33  ;;  %3724 = vrot.lane.b32.xlu1 %v11768_v33, %s9325_s19  ;;  %1829 = vmatmul.bf16.gmra.mxu0 %v11765_v3  ;;  %v11789_v37 = vpop.f32.mrf.mxu3  ;;  %v11822_v3 = vor.u32 %v9146_v12, %v8323_v41 }
 0x2a4   :  { %2153 = vmatmul.bf16.gmra.mxu1 %v11770_v30  ;;  %2599 = vmatpush.bf16.msrb.mxu3 %v8612_v58  ;;  %16803 = vst [vmem:[#allocation278_spill] sm:$0xff] %v11789_v37  ;;  %v8325_v58 = vld [vmem:[%s16215_s0 + $0x3e4] sm:$0xf0]  ;;  %v11820_v30 = vpop.permute.xlu2 %4672 }
 0x2a5   :  { %2387 = vmatmul.bf16.gmra.mxu2 %v11772_v44  ;;  %16804 = vst [vmem:[#allocation279_spill] sm:$0xff] %v11791_v51 }
 0x2a6   :  { %16807 = vst [vmem:[#allocation282_spill] sm:$0xff] %v11820_v30 }
 0x2a7   :  { %16808 = vst [vmem:[#allocation283_spill] sm:$0xff] %v11822_v3 }
 0x2a8   :  { %v2348_v25 = vpop.f32.mrf.mxu2  ;;  %v1792_v62 = vpop.f32.mrf.mxu0 }
 0x2a9   :  { %v11794_v55 = vadd.f32 %v2348_v25, %v10659_v39  ;;  %v2116_v2 = vpop.f32.mrf.mxu1  ;;  %v9145_v39 = vld [vmem:[%s16215_s0 + $0x3dc] sm:$0xf]  ;;  %v8115_v25 = vld [vmem:[%s16215_s0 + $0x230] sm:$0xf] }
 0x2aa   :  { %v11796_v59 = vadd.f32 %v2116_v2, %v1792_v62  ;;  %v9093_v62 = vld [vmem:[%s16215_s0 + $0x238] sm:$0xf0]  ;;  %v11827_v20 = vor.u32 %v9145_v39, %v8325_v58  ;;  %v11831_v44 = vpop.permute.xlu1 %4707 }
 0x2ab   :  { %16805 = vst [vmem:[#allocation280_spill] sm:$0xff] %v11794_v55  ;;  %3726 = vrot.lane.b32.xlu0 %v11794_v55, %s9325_s19  ;;  %v11818_v2 = vpop.f32.mrf.mxu3  ;;  %v11829_v55 = vor.u32 %v9093_v62, %v8115_v25 }
 0x2ac   :  { %16806 = vst [vmem:[#allocation281_spill] sm:$0xff] %v11818_v2  ;;  %v11851_v12 = vpop.permute.xlu2 %4687 }
 0x2ad   :  { %16810 = vst [vmem:[#allocation285_spill] sm:$0xff] %v11827_v20 }
 0x2ae   :  { %16811 = vst [vmem:[#allocation286_spill] sm:$0xff] %v11831_v44 }
 0x2af   :  { %16814 = vst [vmem:[#allocation289_spill] sm:$0xff] %v11851_v12 }
 0x2b0   :  { %v2350_v37 = vpop.f32.mrf.mxu2  ;;  %v1795_v29 = vpop.f32.mrf.mxu0 }
 0x2b1   :  { %v11825_v51 = vadd.f32 %v2350_v37, %v10686_v22  ;;  %v2119_v33 = vpop.f32.mrf.mxu1  ;;  %v8575_v22 = vld [vmem:[%s16215_s0 + $0x5d0] sm:$0xf]  ;;  %v9209_v37 = vld [vmem:[%s16215_s0 + $0x5d8] sm:$0xf0] }
 0x2b2   :  { %v11833_v35 = vadd.f32 %v2119_v33, %v1795_v29  ;;  %v11846_v41 = vor.u32 %v9209_v37, %v8575_v22  ;;  %v8335_v22 = vld [vmem:[%s16215_s0 + $0x3f0] sm:$0xf]  ;;  %v9149_v37 = vld [vmem:[%s16215_s0 + $0x3f8] sm:$0xf0] }
 0x2b3   :  { %16809 = vst [vmem:[#allocation284_spill] sm:$0xff] %v11825_v51  ;;  %3728 = vrot.lane.b32.xlu2 %v11825_v51, %s9325_s19  ;;  %1834 = vmatmul.bf16.gmra.mxu0 %v11822_v3  ;;  %v11848_v33 = vpop.f32.mrf.mxu3 }
 0x2b4   :  { %2158 = vmatmul.bf16.gmra.mxu1 %v11827_v20  ;;  %16812 = vst [vmem:[#allocation287_spill] sm:$0xff] %v11846_v41  ;;  %1938 = vmatmul.bf16.gmra.mxu3 %v11846_v41  ;;  %v11860_v20 = vpop.permute.xlu1 %4722 }
 0x2b5   :  { %2392 = vmatmul.bf16.gmra.mxu2 %v11829_v55  ;;  %16813 = vst [vmem:[#allocation288_spill] sm:$0xff] %v11848_v33  ;;  %v11880_v33 = vor.u32 %v9149_v37, %v8335_v22 }
 0x2b6   :  { %16816 = vst [vmem:[#allocation291_spill] sm:$0xff] %v11860_v20 }
 0x2b7   :  { %16817 = vst [vmem:[#allocation292_spill] sm:$0xff] %v11880_v33 }
 0x2b8   :  { %v2353_v29 = vpop.f32.mrf.mxu2  ;;  %v1797_v58 = vpop.f32.mrf.mxu0 }
 0x2b9   :  { %v11854_v39 = vadd.f32 %v2353_v29, %v10734_v7  ;;  %v2121_v25 = vpop.f32.mrf.mxu1  ;;  %v9148_v7 = vld [vmem:[%s16215_s0 + $0x3f4] sm:$0xf]  ;;  %v8337_v29 = vld [vmem:[%s16215_s0 + $0x3fc] sm:$0xf0] }
 0x2ba   :  { %v11856_v62 = vadd.f32 %v2121_v25, %v1797_v58  ;;  %v8127_v58 = vld [vmem:[%s16215_s0 + $0x248] sm:$0xf]  ;;  %v9096_v25 = vld [vmem:[%s16215_s0 + $0x250] sm:$0xf0]  ;;  %v11885_v20 = vor.u32 %v9148_v7, %v8337_v29  ;;  %v9214_v29 = vld [vmem:[%s16214_s1 + $0x4] sm:$0xf] }
 0x2bb   :  { %16815 = vst [vmem:[#allocation290_spill] sm:$0xff] %v11854_v39  ;;  %3730 = vrot.lane.b32.xlu1 %v11854_v39, %s9325_s19  ;;  %v11887_v44 = vor.u32 %v9096_v25, %v8127_v58  ;;  %v11889_v12 = vpop.f32.mrf.mxu3  ;;  %v11891_v39 = vpop.permute.xlu2 %4702  ;;  %v8601_v58 = vld [vmem:[%s16214_s1 + $0x8] sm:$0xf0] }
 0x2bc   :  { %16819 = vst [vmem:[#allocation294_spill] sm:$0xff] %v11885_v20 }
 0x2bd   :  { %16820 = vst [vmem:[#allocation295_spill] sm:$0xff] %v11889_v12 }
 0x2be   :  { %16821 = vst [vmem:[#allocation296_spill] sm:$0xff] %v11891_v39 }
 0x2c0   :  { %v2355_v41 = vpop.f32.mrf.mxu2  ;;  %v1800_v3 = vpop.f32.mrf.mxu0 }
 0x2c1   :  { %v11883_v2 = vadd.f32 %v2355_v41, %v10752_v63  ;;  %v2124_v30 = vpop.f32.mrf.mxu1  ;;  %v8587_v63 = vld [vmem:[%s16215_s0 + $0x5e8] sm:$0xf]  ;;  %v9212_v41 = vld [vmem:[%s16215_s0 + $0x5f0] sm:$0xf0] }
 0x2c2   :  { %v11893_v51 = vadd.f32 %v2124_v30, %v1800_v3  ;;  %v11906_v22 = vor.u32 %v9212_v41, %v8587_v63  ;;  %v11908_v30 = vpop.permute.xlu1 %4737  ;;  %v8604_v63 = vor.u32 %v9214_v29, %v8601_v58  ;;  %v8349_v29 = vld [vmem:[%s16215_s0 + $0x414] sm:$0xf0]  ;;  %v8139_v58 = vld [vmem:[%s16215_s0 + $0x260] sm:$0xf] }
 0x2c3   :  { %16818 = vst [vmem:[#allocation293_spill] sm:$0xff] %v11883_v2  ;;  %3732 = vrot.lane.b32.xlu0 %v11883_v2, %s9325_s19  ;;  %1839 = vmatmul.bf16.gmra.mxu0 %v11880_v33 }
 0x2c4   :  { %2163 = vmatmul.bf16.gmra.mxu1 %v11885_v20  ;;  %16822 = vst [vmem:[#allocation297_spill] sm:$0xff] %v11906_v22  ;;  %1941 = vmatmul.bf16.gmra.mxu3 %v11906_v22  ;;  %v11924_v22 = vpop.f32.mrf.mxu3  ;;  %v9152_v20 = vld [vmem:[%s16215_s0 + $0x410] sm:$0xf0] }
 0x2c5   :  { %2397 = vmatmul.bf16.gmra.mxu2 %v11887_v44  ;;  %16823 = vst [vmem:[#allocation298_spill] sm:$0xff] %v11908_v30  ;;  %2600 = vmatpush.bf16.msrb.mxu3 %v8604_v63 }
 0x2c6   :  { %16825 = vst [vmem:[#allocation300_spill] sm:$0xff] %v11924_v22 }
 0x2c8   :  { %v2358_v3 = vpop.f32.mrf.mxu2  ;;  %v1802_v7 = vpop.f32.mrf.mxu0 }
 0x2c9   :  { %v11912_v37 = vadd.f32 %v2358_v3, %v10798_v0  ;;  %v2126_v25 = vpop.f32.mrf.mxu1  ;;  %v11926_v0 = vpop.permute.xlu2 %4717  ;;  %v8347_v3 = vld [vmem:[%s16215_s0 + $0x408] sm:$0xf] }
 0x2ca   :  { %v11920_v41 = vadd.f32 %v2126_v25, %v1802_v7  ;;  %16826 = vst [vmem:[#allocation301_spill] sm:$0xff] %v11926_v0  ;;  %v9151_v7 = vld [vmem:[%s16215_s0 + $0x40c] sm:$0xf]  ;;  %v11946_v22 = vor.u32 %v9152_v20, %v8347_v3  ;;  %v11948_v12 = vpop.permute.xlu1 %4752 }
 0x2cb   :  { %16824 = vst [vmem:[#allocation299_spill] sm:$0xff] %v11912_v37  ;;  %3734 = vrot.lane.b32.xlu2 %v11912_v37, %s9325_s19  ;;  %v9099_v25 = vld [vmem:[%s16215_s0 + $0x268] sm:$0xf0]  ;;  %v11953_v0 = vor.u32 %v9151_v7, %v8349_v29 }
 0x2cc   :  { %16827 = vst [vmem:[#allocation302_spill] sm:$0xff] %v11946_v22  ;;  %v11955_v39 = vor.u32 %v9099_v25, %v8139_v58  ;;  %v11964_v20 = vpop.f32.mrf.mxu3  ;;  %v8359_v25 = vld [vmem:[%s16215_s0 + $0x420] sm:$0xf] }
 0x2cd   :  { %16828 = vst [vmem:[#allocation303_spill] sm:$0xff] %v11948_v12 }
 0x2ce   :  { %16830 = vst [vmem:[#allocation305_spill] sm:$0xff] %v11953_v0 }
 0x2cf   :  { %16831 = vst [vmem:[#allocation306_spill] sm:$0xff] %v11964_v20 }
 0x2d0   :  { %v2360_v63 = vpop.f32.mrf.mxu2  ;;  %v1805_v30 = vpop.f32.mrf.mxu0 }
 0x2d1   :  { %v11951_v33 = vadd.f32 %v2360_v63, %v10814_v48  ;;  %v2129_v37 = vpop.f32.mrf.mxu1  ;;  %v11966_v48 = vpop.permute.xlu2 %4732 }
 0x2d2   :  { %v11957_v2 = vadd.f32 %v2129_v37, %v1805_v30  ;;  %16832 = vst [vmem:[#allocation307_spill] sm:$0xff] %v11966_v48  ;;  %v11972_v29 = vpop.permute.xlu1 %4767 }
 0x2d3   :  { %16829 = vst [vmem:[#allocation304_spill] sm:$0xff] %v11951_v33  ;;  %3736 = vrot.lane.b32.xlu1 %v11951_v33, %s9325_s19  ;;  %1844 = vmatmul.bf16.gmra.mxu0 %v11946_v22 }
 0x2d4   :  { %2168 = vmatmul.bf16.gmra.mxu1 %v11953_v0  ;;  %2601 = vmatmul.bf16.vlgmr.msrb.gmra.mxu3 %v9532_v60  ;;  %16834 = vst [vmem:[#allocation309_spill] sm:$0xff] %v11972_v29  ;;  %v9155_v60 = vld [vmem:[%s16215_s0 + $0x428] sm:$0xf0] }
 0x2d5   :  { %2402 = vmatmul.bf16.gmra.mxu2 %v11955_v39  ;;  %v11998_v20 = vor.u32 %v9155_v60, %v8359_v25 }
 0x2d7   :  { %16836 = vst [vmem:[#allocation311_spill] sm:$0xff] %v11998_v20 }
 0x2d8   :  { %v2363_v3 = vpop.f32.mrf.mxu2  ;;  %v1807_v30 = vpop.f32.mrf.mxu0 }
 0x2d9   :  { %v11970_v7 = vadd.f32 %v2363_v3, %v10860_v38  ;;  %v2131_v37 = vpop.f32.mrf.mxu1  ;;  %v9154_v38 = vld [vmem:[%s16215_s0 + $0x424] sm:$0xf]  ;;  %v11987_v63 = vpop.f32.mrf.mxu3  ;;  %v8361_v3 = vld [vmem:[%s16215_s0 + $0x42c] sm:$0xf0] }
 0x2da   :  { %v11974_v58 = vadd.f32 %v2131_v37, %v1807_v30  ;;  %16835 = vst [vmem:[#allocation310_spill] sm:$0xff] %v11987_v63  ;;  %v8151_v30 = vld [vmem:[%s16215_s0 + $0x278] sm:$0xf]  ;;  %v9102_v37 = vld [vmem:[%s16215_s0 + $0x280] sm:$0xf0]  ;;  %v12000_v22 = vpop.permute.xlu2 %4747  ;;  %v12005_v12 = vor.u32 %v9154_v38, %v8361_v3  ;;  %v12014_v25 = vpop.permute.xlu1 %4782 }
 0x2db   :  { %16833 = vst [vmem:[#allocation308_spill] sm:$0xff] %v11970_v7  ;;  %3738 = vrot.lane.b32.xlu0 %v11970_v7, %s9325_s19  ;;  %v12007_v48 = vor.u32 %v9102_v37, %v8151_v30  ;;  %v8371_v30 = vld [vmem:[%s16215_s0 + $0x438] sm:$0xf]  ;;  %v8373_v37 = vld [vmem:[%s16215_s0 + $0x444] sm:$0xf0] }
 0x2dc   :  { %16837 = vst [vmem:[#allocation312_spill] sm:$0xff] %v12000_v22 }
 0x2dd   :  { %16839 = vst [vmem:[#allocation314_spill] sm:$0xff] %v12005_v12 }
 0x2de   :  { %16840 = vst [vmem:[#allocation315_spill] sm:$0xff] %v12014_v25 }
 0x2e0   :  { %v2365_v0 = vpop.f32.mrf.mxu2  ;;  %v1810_v63 = vpop.f32.mrf.mxu0 }
 0x2e1   :  { %v12003_v29 = vadd.f32 %v2365_v0, %v10876_v26  ;;  %v2134_v7 = vpop.f32.mrf.mxu1  ;;  %v1937_v26 = vpop.f32.mrf.mxu3 }
 0x2e2   :  { %v12009_v33 = vadd.f32 %v2134_v7, %v1810_v63  ;;  %v12022_v63 = vpop.permute.xlu2 %4762  ;;  %v8163_v26 = vld [vmem:[%s16215_s0 + $0x290] sm:$0xf] }
 0x2e3   :  { %16838 = vst [vmem:[#allocation313_spill] sm:$0xff] %v12003_v29  ;;  %3740 = vrot.lane.b32.xlu2 %v12003_v29, %s9325_s19  ;;  %1849 = vmatmul.bf16.gmra.mxu0 %v11998_v20 }
 0x2e4   :  { %2173 = vmatmul.bf16.gmra.mxu1 %v12005_v12  ;;  %2604 = vmatmul.bf16.gmra.mxu3 %v9559_v5  ;;  %16842 = vst [vmem:[#allocation317_spill] sm:$0xff] %v12022_v63  ;;  %v9158_v5 = vld [vmem:[%s16215_s0 + $0x440] sm:$0xf0] }
 0x2e5   :  { %2407 = vmatmul.bf16.gmra.mxu2 %v12007_v48  ;;  %v12048_v12 = vor.u32 %v9158_v5, %v8371_v30 }
 0x2e7   :  { %16844 = vst [vmem:[#allocation319_spill] sm:$0xff] %v12048_v12 }
 0x2e8   :  { %v2368_v0 = vpop.f32.mrf.mxu2  ;;  %v1812_v7 = vpop.f32.mrf.mxu0 }
 0x2e9   :  { %v12020_v60 = vadd.f32 %v2368_v0, %v10919_v47  ;;  %v2136_v38 = vpop.f32.mrf.mxu1  ;;  %v9157_v47 = vld [vmem:[%s16215_s0 + $0x43c] sm:$0xf] }
 0x2ea   :  { %v12024_v3 = vadd.f32 %v2136_v38, %v1812_v7  ;;  %v9105_v0 = vld [vmem:[%s16215_s0 + $0x298] sm:$0xf0]  ;;  %v12046_v7 = vpop.permute.xlu1 %4797  ;;  %v12053_v63 = vor.u32 %v9157_v47, %v8373_v37  ;;  %v8175_v37 = vld [vmem:[%s16215_s0 + $0x2a8] sm:$0xf] }
 0x2eb   :  { %16841 = vst [vmem:[#allocation316_spill] sm:$0xff] %v12020_v60  ;;  %3742 = vrot.lane.b32.xlu1 %v12020_v60, %s9325_s19  ;;  %v12055_v22 = vor.u32 %v9105_v0, %v8163_v26 }
 0x2ec   :  { %16843 = vst [vmem:[#allocation318_spill] sm:$0xff] %v12046_v7  ;;  %v12062_v7 = vpop.permute.xlu2 %4777 }
 0x2ed   :  { %16846 = vst [vmem:[#allocation321_spill] sm:$0xff] %v12053_v63 }
 0x2ee   :  { %16847 = vst [vmem:[#allocation322_spill] sm:$0xff] %v12062_v7  ;;  %v16873_v7 = vld [vmem:[#allocation9_spill] sm:$0xff] }
 0x2f0   :  { %v2370_v38 = vpop.f32.mrf.mxu2  ;;  %v1815_v25 = vpop.f32.mrf.mxu0 }
 0x2f1   :  { %v12051_v20 = vadd.f32 %v2370_v38, %v10935_v43  ;;  %v2139_v60 = vpop.f32.mrf.mxu1 }
 0x2f2   :  { %v12057_v29 = vadd.f32 %v2139_v60, %v1815_v25  ;;  %v12067_v30 = vpop.permute.xlu1 %4812 }
 0x2f3   :  { %16845 = vst [vmem:[#allocation320_spill] sm:$0xff] %v12051_v20  ;;  %3744 = vrot.lane.b32.xlu0 %v12051_v20, %s9325_s19  ;;  %1854 = vmatmul.bf16.gmra.mxu0 %v12048_v12 }
 0x2f4   :  { %2178 = vmatmul.bf16.gmra.mxu1 %v12053_v63  ;;  %2607 = vmatmul.bf16.gmra.mxu3 %v9586_v14  ;;  %16848 = vst [vmem:[#allocation323_spill] sm:$0xff] %v12067_v30  ;;  %v9108_v14 = vld [vmem:[%s16215_s0 + $0x2b0] sm:$0xf0]  ;;  %v12082_v26 = vpop.permute.xlu2 %4792 }
 0x2f5   :  { %2412 = vmatmul.bf16.gmra.mxu2 %v12055_v22  ;;  %16850 = vst [vmem:[#allocation325_spill] sm:$0xff] %v12082_v26 }
 0x2f8   :  { %v2373_v43 = vpop.f32.mrf.mxu2  ;;  %v1817_v25 = vpop.f32.mrf.mxu0 }
 0x2f9   :  { %v12070_v5 = vadd.f32 %v2373_v43, %v10982_v42  ;;  %v2141_v60 = vpop.f32.mrf.mxu1  ;;  %v12087_v43 = vor.u32 %v9108_v14, %v8175_v37 }
 0x2fa   :  { %v12072_v47 = vadd.f32 %v2141_v60, %v1817_v25  ;;  %v12089_v60 = vpop.permute.xlu1 %4827 }
 0x2fb   :  { %16849 = vst [vmem:[#allocation324_spill] sm:$0xff] %v12070_v5  ;;  %3746 = vrot.lane.b32.xlu2 %v12070_v5, %s9325_s19 }
 0x2fc   :  { %16852 = vst [vmem:[#allocation327_spill] sm:$0xff] %v12089_v60 }
 0x300   :  { %v2375_v0 = vpop.f32.mrf.mxu2  ;;  %v1820_v38 = vpop.f32.mrf.mxu0 }
 0x301   :  { %v12085_v42 = vadd.f32 %v2375_v0, %v10995_v4  ;;  %v2144_v25 = vpop.f32.mrf.mxu1  ;;  %v12099_v0 = vpop.permute.xlu2 %4807 }
 0x302   :  { %v12091_v63 = vadd.f32 %v2144_v25, %v1820_v38  ;;  %16853 = vst [vmem:[#allocation328_spill] sm:$0xff] %v12099_v0  ;;  %v16865_v0 = vld [vmem:[#allocation96_spill] sm:$0xff] }
 0x303   :  { %16851 = vst [vmem:[#allocation326_spill] sm:$0xff] %v12085_v42  ;;  %3748 = vrot.lane.b32.xlu1 %v12085_v42, %s9325_s19  ;;  %2922 = vmatmul.bf16.vlgmr.msrb.gmra.mxu0 %v9534_v61  ;;  %v12108_v61 = vpop.permute.xlu1 %4842 }
 0x304   :  { %3243 = vmatmul.bf16.vlgmr.msrb.gmra.mxu1 %v10393_v27  ;;  %2610 = vmatmul.bf16.gmra.mxu3 %v9613_v23  ;;  %16855 = vst [vmem:[#allocation330_spill] sm:$0xff] %v12108_v61  ;;  %v8187_v27 = vld [vmem:[%s16215_s0 + $0x2c0] sm:$0xf]  ;;  %v9111_v23 = vld [vmem:[%s16215_s0 + $0x2c8] sm:$0xf0] }
 0x305   :  { %2417 = vmatmul.bf16.gmra.mxu2 %v12087_v43 }
 0x308   :  { %v2378_v4 = vpop.f32.mrf.mxu2  ;;  %v1822_v14 = vpop.f32.mrf.mxu0 }
 0x309   :  { %v12102_v37 = vadd.f32 %v2378_v4, %v11050_v56  ;;  %v2146_v38 = vpop.f32.mrf.mxu1  ;;  %v12121_v60 = vpop.permute.xlu2 %4822 }
 0x30a   :  { %v12104_v25 = vadd.f32 %v2146_v38, %v1822_v14  ;;  %v12119_v14 = vor.u32 %v9111_v23, %v8187_v27  ;;  %16857 = vst [vmem:[#allocation332_spill] sm:$0xff] %v12121_v60 }
 0x30b   :  { %16854 = vst [vmem:[#allocation329_spill] sm:$0xff] %v12102_v37  ;;  %3750 = vrot.lane.b32.xlu0 %v12102_v37, %s9325_s19  ;;  %v12130_v61 = vpop.permute.xlu1 %4857  ;;  %v16949_v37 = vld [vmem:[#allocation140_spill] sm:$0xff] }
 0x30c   :  { %16858 = vst [vmem:[#allocation333_spill] sm:$0xff] %v12130_v61  ;;  %v4036_v42 = vadd.f32 %v11488_v31, %v16949_v37 }
 0x310   :  { %v2380_v12 = vpop.f32.mrf.mxu2  ;;  %v1825_v4 = vpop.f32.mrf.mxu0 }
 0x311   :  { %v12117_v56 = vadd.f32 %v2380_v12, %v11064_v57  ;;  %v2149_v38 = vpop.f32.mrf.mxu1 }
 0x312   :  { %v12123_v30 = vadd.f32 %v2149_v38, %v1825_v4 }
 0x313   :  { %16856 = vst [vmem:[#allocation331_spill] sm:$0xff] %v12117_v56  ;;  %3752 = vrot.lane.b32.xlu2 %v12117_v56, %s9325_s19  ;;  %2925 = vmatmul.bf16.gmra.mxu0 %v9561_v6  ;;  %v12140_v6 = vpop.permute.xlu2 %4837 }
 0x314   :  { %3246 = vmatmul.bf16.gmra.mxu1 %v10450_v53  ;;  %2615 = vmatmul.bf16.gmra.mxu3 %v9640_v32  ;;  %16860 = vst [vmem:[#allocation335_spill] sm:$0xff] %v12140_v6  ;;  %v8199_v53 = vld [vmem:[%s16215_s0 + $0x2d8] sm:$0xf]  ;;  %v9114_v32 = vld [vmem:[%s16215_s0 + $0x2e0] sm:$0xf0] }
 0x315   :  { %2422 = vmatmul.bf16.gmra.mxu2 %v12119_v14  ;;  %v16864_v6 = vld [vmem:[#allocation7_spill] sm:$0xff] }
 0x318   :  { %v2383_v57 = vpop.f32.mrf.mxu2  ;;  %v1827_v27 = vpop.f32.mrf.mxu0 }
 0x319   :  { %v12134_v12 = vadd.f32 %v2383_v57, %v11114_v13  ;;  %v2151_v23 = vpop.f32.mrf.mxu1  ;;  %v12148_v13 = vpop.permute.xlu1 %4872 }
 0x31a   :  { %v12136_v4 = vadd.f32 %v2151_v23, %v1827_v27  ;;  %16861 = vst [vmem:[#allocation336_spill] sm:$0xff] %v12148_v13  ;;  %v12153_v23 = vor.u32 %v9114_v32, %v8199_v53  ;;  %v16867_v13 = vld [vmem:[#allocation13_spill] sm:$0xff] }
 0x31b   :  { %16859 = vst [vmem:[#allocation334_spill] sm:$0xff] %v12134_v12  ;;  %3754 = vrot.lane.b32.xlu1 %v12134_v12, %s9325_s19  ;;  %v12162_v26 = vpop.permute.xlu2 %4852 }
 0x31c   :  { %16863 = vst [vmem:[#allocation338_spill] sm:$0xff] %v12153_v23 }
 0x31d   :  { %16866 = vst [vmem:[#allocation7_spill] sm:$0xff] %v12162_v26 }
 0x320   :  { %v2385_v38 = vpop.f32.mrf.mxu2  ;;  %v1830_v27 = vpop.f32.mrf.mxu0 }
 0x321   :  { %v12151_v57 = vadd.f32 %v2385_v38, %v11126_v21  ;;  %v2154_v61 = vpop.f32.mrf.mxu1  ;;  %v12168_v38 = vpop.permute.xlu1 %4887 }
 0x322   :  { %v12155_v60 = vadd.f32 %v2154_v61, %v1830_v27  ;;  %16869 = vst [vmem:[#allocation13_spill] sm:$0xff] %v12168_v38 }
 0x323   :  { %16862 = vst [vmem:[#allocation337_spill] sm:$0xff] %v12151_v57  ;;  %3756 = vrot.lane.b32.xlu0 %v12151_v57, %s9325_s19  ;;  %2928 = vmatmul.bf16.gmra.mxu0 %v16864_v6  ;;  %v9117_v6 = vld [vmem:[%s16215_s0 + $0x2f8] sm:$0xf0]  ;;  %v16875_v57 = vld [vmem:[#allocation104_spill] sm:$0xff] }
 0x324   :  { %3249 = vmatmul.bf16.gmra.mxu1 %v16865_v0  ;;  %2620 = vmatmul.bf16.gmra.mxu3 %v16867_v13  ;;  %v8211_v0 = vld [vmem:[%s16215_s0 + $0x2f0] sm:$0xf] }
 0x325   :  { %2427 = vmatmul.bf16.gmra.mxu2 %v12153_v23 }
 0x328   :  { %v2388_v21 = vpop.f32.mrf.mxu2  ;;  %v1832_v32 = vpop.f32.mrf.mxu0 }
 0x329   :  { %v12166_v53 = vadd.f32 %v2388_v21, %v11170_v54  ;;  %v2156_v61 = vpop.f32.mrf.mxu1  ;;  %v12180_v54 = vpop.permute.xlu2 %4867 }
 0x32a   :  { %v12170_v27 = vadd.f32 %v2156_v61, %v1832_v32  ;;  %16870 = vst [vmem:[#allocation339_spill] sm:$0xff] %v12180_v54  ;;  %v12185_v32 = vor.u32 %v9117_v6, %v8211_v0  ;;  %v16876_v54 = vld [vmem:[#allocation16_spill] sm:$0xff] }
 0x32b   :  { %16868 = vst [vmem:[#allocation96_spill] sm:$0xff] %v12166_v53  ;;  %3758 = vrot.lane.b32.xlu2 %v12166_v53, %s9325_s19  ;;  %v12192_v53 = vpop.permute.xlu1 %4902 }
 0x32c   :  { %16872 = vst [vmem:[#allocation341_spill] sm:$0xff] %v12185_v32 }
 0x32d   :  { %16874 = vst [vmem:[#allocation9_spill] sm:$0xff] %v12192_v53 }
 0x330   :  { %v2390_v13 = vpop.f32.mrf.mxu2  ;;  %v1835_v38 = vpop.f32.mrf.mxu0 }
 0x331   :  { %v12183_v21 = vadd.f32 %v2390_v13, %v11184_v28  ;;  %v2159_v61 = vpop.f32.mrf.mxu1 }
 0x332   :  { %v12187_v26 = vadd.f32 %v2159_v61, %v1835_v38  ;;  %v12200_v61 = vpop.permute.xlu2 %4882 }
 0x333   :  { %16871 = vst [vmem:[#allocation340_spill] sm:$0xff] %v12183_v21  ;;  %3760 = vrot.lane.b32.xlu1 %v12183_v21, %s9325_s19  ;;  %2931 = vmatmul.bf16.gmra.mxu0 %v16873_v7  ;;  %v8223_v7 = vld [vmem:[%s16215_s0 + $0x308] sm:$0xf] }
 0x334   :  { %3252 = vmatmul.bf16.gmra.mxu1 %v16875_v57  ;;  %2625 = vmatmul.bf16.gmra.mxu3 %v16876_v54  ;;  %16878 = vst [vmem:[#allocation16_spill] sm:$0xff] %v12200_v61  ;;  %v9120_v57 = vld [vmem:[%s16215_s0 + $0x310] sm:$0xf0] }
 0x335   :  { %2432 = vmatmul.bf16.gmra.mxu2 %v12185_v32  ;;  %v16904_v32 = vld [vmem:[#allocation127_spill] sm:$0xff] }
 0x337   :  { %v1939_v13 = vpop.f32.mrf.mxu3 }
 0x338   :  { %v2393_v28 = vpop.f32.mrf.mxu2  ;;  %v1837_v6 = vpop.f32.mrf.mxu0 }
 0x339   :  { %v12198_v0 = vadd.f32 %v2393_v28, %v11228_v8  ;;  %v2161_v38 = vpop.f32.mrf.mxu1  ;;  %v12212_v8 = vpop.permute.xlu1 %4917 }
 0x33a   :  { %v12202_v21 = vadd.f32 %v2161_v38, %v1837_v6  ;;  %16879 = vst [vmem:[#allocation342_spill] sm:$0xff] %v12212_v8  ;;  %v12217_v6 = vor.u32 %v9120_v57, %v8223_v7  ;;  %v12224_v12 = vpop.permute.xlu2 %4897  ;;  %v16884_v8 = vld [vmem:[#allocation112_spill] sm:$0xff] }
 0x33b   :  { %16877 = vst [vmem:[#allocation104_spill] sm:$0xff] %v12198_v0  ;;  %3762 = vrot.lane.b32.xlu0 %v12198_v0, %s9325_s19  ;;  %v16882_v0 = vld [vmem:[#allocation11_spill] sm:$0xff] }
 0x33c   :  { %16881 = vst [vmem:[#allocation344_spill] sm:$0xff] %v12217_v6 }
 0x33d   :  { %16883 = vst [vmem:[#allocation11_spill] sm:$0xff] %v12224_v12 }
 0x33f   :  { %v1940_v53 = vpop.f32.mrf.mxu3 }
 0x340   :  { %v2395_v54 = vpop.f32.mrf.mxu2  ;;  %v1840_v13 = vpop.f32.mrf.mxu0 }
 0x341   :  { %v12215_v28 = vadd.f32 %v2395_v54, %v11248_v10  ;;  %v2164_v38 = vpop.f32.mrf.mxu1  ;;  %v16885_v10 = vld [vmem:[#allocation19_spill] sm:$0xff]  ;;  %v12229_v7 = vpop.permute.xlu1 %4932 }
 0x342   :  { %v12219_v61 = vadd.f32 %v2164_v38, %v1840_v13  ;;  %16886 = vst [vmem:[#allocation112_spill] sm:$0xff] %v12229_v7 }
 0x343   :  { %16880 = vst [vmem:[#allocation343_spill] sm:$0xff] %v12215_v28  ;;  %3764 = vrot.lane.b32.xlu2 %v12215_v28, %s9325_s19  ;;  %2936 = vmatmul.bf16.gmra.mxu0 %v16882_v0  ;;  %v8235_v0 = vld [vmem:[%s16215_s0 + $0x320] sm:$0xf] }
 0x344   :  { %3257 = vmatmul.bf16.gmra.mxu1 %v16884_v8  ;;  %2630 = vmatmul.bf16.gmra.mxu3 %v16885_v10  ;;  %v9123_v8 = vld [vmem:[%s16215_s0 + $0x328] sm:$0xf0]  ;;  %v12244_v10 = vpop.permute.xlu2 %4912 }
 0x345   :  { %2437 = vmatmul.bf16.gmra.mxu2 %v12217_v6  ;;  %16888 = vst [vmem:[#allocation345_spill] sm:$0xff] %v12244_v10  ;;  %v16892_v6 = vld [vmem:[#allocation14_spill] sm:$0xff]  ;;  %v16893_v10 = vld [vmem:[#allocation120_spill] sm:$0xff] }
 0x347   :  { %v1942_v38 = vpop.f32.mrf.mxu3 }
 0x348   :  { %v2398_v54 = vpop.f32.mrf.mxu2  ;;  %v1842_v57 = vpop.f32.mrf.mxu0 }
 0x349   :  { %v12232_v53 = vadd.f32 %v2398_v54, %v11290_v17  ;;  %v2166_v13 = vpop.f32.mrf.mxu1  ;;  %v12251_v12 = vpop.permute.xlu1 %4947 }
 0x34a   :  { %v12234_v28 = vadd.f32 %v2166_v13, %v1842_v57  ;;  %v12249_v57 = vor.u32 %v9123_v8, %v8235_v0  ;;  %16891 = vst [vmem:[#allocation348_spill] sm:$0xff] %v12251_v12  ;;  %v16896_v8 = vld [vmem:[#allocation202_spill] sm:$0xff] }
 0x34b   :  { %16887 = vst [vmem:[#allocation19_spill] sm:$0xff] %v12232_v53  ;;  %3766 = vrot.lane.b32.xlu1 %v12232_v53, %s9325_s19 }
 0x34c   :  { %16890 = vst [vmem:[#allocation347_spill] sm:$0xff] %v12249_v57  ;;  %v12261_v0 = vpop.permute.xlu2 %4927 }
 0x34d   :  { %16895 = vst [vmem:[#allocation14_spill] sm:$0xff] %v12261_v0 }
 0x34f   :  { %v1943_v7 = vpop.f32.mrf.mxu3 }
 0x350   :  { %v2400_v17 = vpop.f32.mrf.mxu2  ;;  %v1845_v38 = vpop.f32.mrf.mxu0 }
 0x351   :  { %v12247_v54 = vadd.f32 %v2400_v17, %v11304_v45  ;;  %v2169_v13 = vpop.f32.mrf.mxu1  ;;  %v16894_v45 = vld [vmem:[#allocation22_spill] sm:$0xff] }
 0x352   :  { %v12253_v53 = vadd.f32 %v2169_v13, %v1845_v38 }
 0x353   :  { %16889 = vst [vmem:[#allocation346_spill] sm:$0xff] %v12247_v54  ;;  %3768 = vrot.lane.b32.xlu0 %v12247_v54, %s9325_s19  ;;  %2941 = vmatmul.bf16.gmra.mxu0 %v16892_v6  ;;  %v12270_v6 = vpop.permute.xlu1 %4962 }
 0x354   :  { %3262 = vmatmul.bf16.gmra.mxu1 %v16893_v10  ;;  %2635 = vmatmul.bf16.gmra.mxu3 %v16894_v45  ;;  %16898 = vst [vmem:[#allocation22_spill] sm:$0xff] %v12270_v6  ;;  %v8247_v10 = vld [vmem:[%s16215_s0 + $0x338] sm:$0xf]  ;;  %v9126_v45 = vld [vmem:[%s16215_s0 + $0x340] sm:$0xf0] }
 0x355   :  { %2442 = vmatmul.bf16.gmra.mxu2 %v12249_v57  ;;  %v16903_v57 = vld [vmem:[#allocation17_spill] sm:$0xff] }
 0x357   :  { %v2602_v13 = vpop.f32.mrf.mxu3 }
 0x358   :  { %v2403_v17 = vpop.f32.mrf.mxu2  ;;  %v1847_v12 = vpop.f32.mrf.mxu0 }
 0x359   :  { %v12264_v7 = vadd.f32 %v2403_v17, %v16896_v8  ;;  %v2171_v38 = vpop.f32.mrf.mxu1  ;;  %v16899_v8 = vld [vmem:[#allocation206_spill] sm:$0xff] }
 0x35a   :  { %v12266_v56 = vadd.f32 %v2171_v38, %v1847_v12  ;;  %v12281_v12 = vor.u32 %v9126_v45, %v8247_v10 }
 0x35b   :  { %16897 = vst [vmem:[#allocation120_spill] sm:$0xff] %v12264_v7  ;;  %3770 = vrot.lane.b32.xlu2 %v12264_v7, %s9325_s19  ;;  %v12283_v7 = vpop.permute.xlu2 %4942 }
 0x35c   :  { %16901 = vst [vmem:[#allocation206_spill] sm:$0xff] %v12281_v12 }
 0x35d   :  { %16902 = vst [vmem:[#allocation349_spill] sm:$0xff] %v12283_v7 }
 0x35f   :  { %v2603_v54 = vpop.f32.mrf.mxu3 }
 0x360   :  { %v2405_v17 = vpop.f32.mrf.mxu2  ;;  %v1850_v13 = vpop.f32.mrf.mxu0 }
 0x361   :  { %v12279_v0 = vadd.f32 %v2405_v17, %v16899_v8  ;;  %v2174_v38 = vpop.f32.mrf.mxu1  ;;  %v12292_v17 = vpop.permute.xlu1 %4977  ;;  %v16906_v8 = vld [vmem:[#allocation27_spill] sm:$0xff] }
 0x362   :  { %v12285_v6 = vadd.f32 %v2174_v38, %v1850_v13  ;;  %16905 = vst [vmem:[#allocation17_spill] sm:$0xff] %v12292_v17 }
 0x363   :  { %16900 = vst [vmem:[#allocation202_spill] sm:$0xff] %v12279_v0  ;;  %3772 = vrot.lane.b32.xlu1 %v12279_v0, %s9325_s19  ;;  %2946 = vmatmul.bf16.gmra.mxu0 %v16903_v57  ;;  %v12302_v57 = vpop.permute.xlu2 %4957  ;;  %v16912_v0 = vld [vmem:[#allocation20_spill] sm:$0xff] }
 0x364   :  { %3267 = vmatmul.bf16.gmra.mxu1 %v16904_v32  ;;  %2640 = vmatmul.bf16.gmra.mxu3 %v16906_v8  ;;  %16908 = vst [vmem:[#allocation27_spill] sm:$0xff] %v12302_v57  ;;  %v8259_v32 = vld [vmem:[%s16215_s0 + $0x350] sm:$0xf]  ;;  %v9129_v8 = vld [vmem:[%s16215_s0 + $0x358] sm:$0xf0] }
 0x365   :  { %2447 = vmatmul.bf16.gmra.mxu2 %v12281_v12  ;;  %v16913_v12 = vld [vmem:[#allocation133_spill] sm:$0xff] }
 0x367   :  { %v2605_v38 = vpop.f32.mrf.mxu3 }
 0x368   :  { %v2408_v10 = vpop.f32.mrf.mxu2  ;;  %v1852_v45 = vpop.f32.mrf.mxu0 }
 0x369   :  { %v12296_v54 = vadd.f32 %v2408_v10, %v11426_v18  ;;  %v2176_v13 = vpop.f32.mrf.mxu1  ;;  %v12310_v10 = vpop.permute.xlu1 %4992 }
 0x36a   :  { %v12298_v7 = vadd.f32 %v2176_v13, %v1852_v45  ;;  %16909 = vst [vmem:[#allocation350_spill] sm:$0xff] %v12310_v10  ;;  %v12315_v13 = vor.u32 %v9129_v8, %v8259_v32 }
 0x36b   :  { %16907 = vst [vmem:[#allocation127_spill] sm:$0xff] %v12296_v54  ;;  %3774 = vrot.lane.b32.xlu0 %v12296_v54, %s9325_s19  ;;  %v12324_v10 = vpop.permute.xlu2 %4972 }
 0x36c   :  { %16911 = vst [vmem:[#allocation352_spill] sm:$0xff] %v12315_v13 }
 0x36d   :  { %16914 = vst [vmem:[#allocation20_spill] sm:$0xff] %v12324_v10  ;;  %v16921_v10 = vld [vmem:[#allocation23_spill] sm:$0xff] }
 0x36f   :  { %v2606_v54 = vpop.f32.mrf.mxu3 }
 0x370   :  { %v2410_v18 = vpop.f32.mrf.mxu2  ;;  %v1855_v45 = vpop.f32.mrf.mxu0 }
 0x371   :  { %v12313_v38 = vadd.f32 %v2410_v18, %v11442_v16  ;;  %v2179_v17 = vpop.f32.mrf.mxu1  ;;  %v16915_v16 = vld [vmem:[#allocation32_spill] sm:$0xff] }
 0x372   :  { %v12317_v57 = vadd.f32 %v2179_v17, %v1855_v45  ;;  %v12330_v45 = vpop.permute.xlu1 %5007 }
 0x373   :  { %16910 = vst [vmem:[#allocation351_spill] sm:$0xff] %v12313_v38  ;;  %3776 = vrot.lane.b32.xlu2 %v12313_v38, %s9325_s19  ;;  %2951 = vmatmul.bf16.gmra.mxu0 %v16912_v0  ;;  %v8271_v0 = vld [vmem:[%s16215_s0 + $0x368] sm:$0xf] }
 0x374   :  { %3272 = vmatmul.bf16.gmra.mxu1 %v16913_v12  ;;  %2645 = vmatmul.bf16.gmra.mxu3 %v16915_v16  ;;  %16917 = vst [vmem:[#allocation32_spill] sm:$0xff] %v12330_v45  ;;  %v9132_v12 = vld [vmem:[%s16215_s0 + $0x370] sm:$0xf0]  ;;  %v12342_v16 = vpop.permute.xlu2 %4987 }
 0x375   :  { %2452 = vmatmul.bf16.gmra.mxu2 %v12315_v13  ;;  %16918 = vst [vmem:[#allocation353_spill] sm:$0xff] %v12342_v16  ;;  %v16923_v13 = vld [vmem:[#allocation139_spill] sm:$0xff]  ;;  %v16924_v16 = vld [vmem:[#allocation37_spill] sm:$0xff] }
 0x377   :  { %v2608_v8 = vpop.f32.mrf.mxu3 }
 0x378   :  { %v2413_v18 = vpop.f32.mrf.mxu2  ;;  %v1857_v54 = vpop.f32.mrf.mxu0 }
 0x379   :  { %v12328_v32 = vadd.f32 %v2413_v18, %v11479_v1  ;;  %v2181_v17 = vpop.f32.mrf.mxu1 }
 0x37a   :  { %v12332_v38 = vadd.f32 %v2181_v17, %v1857_v54  ;;  %v12347_v54 = vor.u32 %v9132_v12, %v8271_v0 }
 0x37b   :  { %16916 = vst [vmem:[#allocation133_spill] sm:$0xff] %v12328_v32  ;;  %3778 = vrot.lane.b32.xlu1 %v12328_v32, %s9325_s19  ;;  %v12352_v32 = vpop.permute.xlu1 %5022 }
 0x37c   :  { %16920 = vst [vmem:[#allocation355_spill] sm:$0xff] %v12347_v54 }
 0x37d   :  { %16922 = vst [vmem:[#allocation23_spill] sm:$0xff] %v12352_v32 }
 0x37f   :  { %v2609_v45 = vpop.f32.mrf.mxu3 }
 0x380   :  { %v2415_v1 = vpop.f32.mrf.mxu2  ;;  %v2923_v8 = vpop.f32.mrf.mxu0 }
 0x381   :  { %v12345_v18 = vadd.f32 %v2415_v1, %v11506_v50  ;;  %v3244_v17 = vpop.f32.mrf.mxu1  ;;  %v12360_v8 = vpop.permute.xlu2 %5002 }
 0x382   :  { %16926 = vst [vmem:[#allocation37_spill] sm:$0xff] %v12360_v8  ;;  %v16930_v8 = vld [vmem:[#allocation28_spill] sm:$0xff] }
 0x383   :  { %16919 = vst [vmem:[#allocation354_spill] sm:$0xff] %v12345_v18  ;;  %3780 = vrot.lane.b32.xlu0 %v12345_v18, %s9325_s19  ;;  %2956 = vmatmul.bf16.gmra.mxu0 %v16921_v10  ;;  %v8283_v10 = vld [vmem:[%s16215_s0 + $0x380] sm:$0xf]  ;;  %v16933_v18 = vld [vmem:[#allocation42_spill] sm:$0xff] }
 0x384   :  { %3277 = vmatmul.bf16.gmra.mxu1 %v16923_v13  ;;  %2650 = vmatmul.bf16.gmra.mxu3 %v16924_v16  ;;  %v9135_v13 = vld [vmem:[%s16215_s0 + $0x388] sm:$0xf0]  ;;  %v12370_v16 = vpop.permute.xlu1 %5037 }
 0x385   :  { %2457 = vmatmul.bf16.gmra.mxu2 %v12347_v54  ;;  %16927 = vst [vmem:[#allocation356_spill] sm:$0xff] %v12370_v16  ;;  %v16932_v16 = vld [vmem:[#allocation145_spill] sm:$0xff] }
 0x387   :  { %v2611_v45 = vpop.f32.mrf.mxu3 }
 0x388   :  { %v2418_v50 = vpop.f32.mrf.mxu2  ;;  %v2924_v0 = vpop.f32.mrf.mxu0 }
 0x389   :  { %v12358_v1 = vadd.f32 %v2418_v50, %v11552_v52  ;;  %v3245_v12 = vpop.f32.mrf.mxu1  ;;  %v12375_v0 = vor.u32 %v9135_v13, %v8283_v10 }
 0x38b   :  { %16925 = vst [vmem:[#allocation139_spill] sm:$0xff] %v12358_v1  ;;  %3782 = vrot.lane.b32.xlu2 %v12358_v1, %s9325_s19  ;;  %v12382_v1 = vpop.permute.xlu2 %5017 }
 0x38c   :  { %16929 = vst [vmem:[#allocation358_spill] sm:$0xff] %v12375_v0 }
 0x38d   :  { %16931 = vst [vmem:[#allocation28_spill] sm:$0xff] %v12382_v1 }
 0x38f   :  { %v12377_v32 = vpop.f32.mrf.mxu3 }
 0x390   :  { %v2420_v52 = vpop.f32.mrf.mxu2  ;;  %v2926_v50 = vpop.f32.mrf.mxu0 }
 0x391   :  { %v12373_v17 = vadd.f32 %v2420_v52, %v11566_v15  ;;  %v3247_v12 = vpop.f32.mrf.mxu1  ;;  %v12387_v52 = vpop.permute.xlu1 %5052 }
 0x392   :  { %16934 = vst [vmem:[#allocation145_spill] sm:$0xff] %v12387_v52 }
 0x393   :  { %16928 = vst [vmem:[#allocation357_spill] sm:$0xff] %v12373_v17  ;;  %3784 = vrot.lane.b32.xlu1 %v12373_v17, %s9325_s19  ;;  %2961 = vmatmul.bf16.gmra.mxu0 %v16930_v8  ;;  %v8295_v8 = vld [vmem:[%s16215_s0 + $0x398] sm:$0xf]  ;;  %v16940_v17 = vld [vmem:[#allocation33_spill] sm:$0xff] }
 0x394   :  { %3282 = vmatmul.bf16.gmra.mxu1 %v16932_v16  ;;  %2655 = vmatmul.bf16.gmra.mxu3 %v16933_v18  ;;  %v9138_v18 = vld [vmem:[%s16215_s0 + $0x3a0] sm:$0xf0]  ;;  %v12402_v16 = vpop.permute.xlu2 %5032 }
 0x395   :  { %2462 = vmatmul.bf16.gmra.mxu2 %v12375_v0  ;;  %16936 = vst [vmem:[#allocation359_spill] sm:$0xff] %v12402_v16  ;;  %v16941_v16 = vld [vmem:[#allocation153_spill] sm:$0xff]  ;;  %v16942_v0 = vld [vmem:[#allocation47_spill] sm:$0xff] }
 0x397   :  { %v12392_v12 = vpop.f32.mrf.mxu3 }
 0x398   :  { %v2423_v15 = vpop.f32.mrf.mxu2  ;;  %v2927_v13 = vpop.f32.mrf.mxu0 }
 0x399   :  { %v12390_v10 = vadd.f32 %v2423_v15, %v11603_v36  ;;  %v3248_v50 = vpop.f32.mrf.mxu1  ;;  %v12407_v13 = vor.u32 %v9138_v18, %v8295_v8 }
 0x39b   :  { %16935 = vst [vmem:[#allocation42_spill] sm:$0xff] %v12390_v10  ;;  %3786 = vrot.lane.b32.xlu0 %v12390_v10, %s9325_s19  ;;  %v12411_v10 = vpop.permute.xlu1 %5067 }
 0x39c   :  { %16938 = vst [vmem:[#allocation361_spill] sm:$0xff] %v12407_v13 }
 0x39d   :  { %16939 = vst [vmem:[#allocation362_spill] sm:$0xff] %v12411_v10 }
 0x39f   :  { %v12409_v1 = vpop.f32.mrf.mxu3 }
 0x3a0   :  { %v2425_v52 = vpop.f32.mrf.mxu2  ;;  %v2929_v15 = vpop.f32.mrf.mxu0 }
 0x3a1   :  { %v12405_v36 = vadd.f32 %v2425_v52, %v11617_v11  ;;  %v3250_v50 = vpop.f32.mrf.mxu1  ;;  %v12419_v52 = vpop.permute.xlu2 %5047 }
 0x3a2   :  { %16943 = vst [vmem:[#allocation33_spill] sm:$0xff] %v12419_v52 }
 0x3a3   :  { %16937 = vst [vmem:[#allocation360_spill] sm:$0xff] %v12405_v36  ;;  %3788 = vrot.lane.b32.xlu2 %v12405_v36, %s9325_s19  ;;  %2966 = vmatmul.bf16.gmra.mxu0 %v16940_v17  ;;  %v12428_v17 = vpop.permute.xlu1 %5082 }
 0x3a4   :  { %3287 = vmatmul.bf16.gmra.mxu1 %v16941_v16  ;;  %2660 = vmatmul.bf16.gmra.mxu3 %v16942_v0  ;;  %16945 = vst [vmem:[#allocation47_spill] sm:$0xff] %v12428_v17  ;;  %v8307_v16 = vld [vmem:[%s16215_s0 + $0x3b0] sm:$0xf]  ;;  %v9141_v0 = vld [vmem:[%s16215_s0 + $0x3b8] sm:$0xf0] }
 0x3a5   :  { %2467 = vmatmul.bf16.gmra.mxu2 %v12407_v13  ;;  %v12445_v52 = vor.u32 %v9141_v0, %v8307_v16  ;;  %v16953_v16 = vld [vmem:[#allocation53_spill] sm:$0xff] }
 0x3a7   :  { %v12424_v50 = vpop.f32.mrf.mxu3  ;;  %16947 = vst [vmem:[#allocation364_spill] sm:$0xff] %v12445_v52 }
 0x3a8   :  { %v2428_v11 = vpop.f32.mrf.mxu2  ;;  %v2930_v18 = vpop.f32.mrf.mxu0 }
 0x3a9   :  { %v12422_v8 = vadd.f32 %v2428_v11, %v11660_v24  ;;  %v3251_v15 = vpop.f32.mrf.mxu1  ;;  %v8823_v24 = vld [vmem:[%s16218_s6 + $0x70] sm:$0xf]  ;;  %v9277_v11 = vld [vmem:[%s16218_s6 + $0x74] sm:$0xf0]  ;;  %v12449_v54 = vpop.permute.xlu2 %5062 }
 0x3aa   :  { %v8824_v15 = vor.u32 %v9277_v11, %v8823_v24  ;;  %16948 = vst [vmem:[#allocation365_spill] sm:$0xff] %v12449_v54  ;;  %v16950_v11 = vld [vmem:[#allocation38_spill] sm:$0xff] }
 0x3ab   :  { %16944 = vst [vmem:[#allocation153_spill] sm:$0xff] %v12422_v8  ;;  %3790 = vrot.lane.b32.xlu1 %v12422_v8, %s9325_s19 }
 0x3ac   :  { %6555 = vmatpush.bf16.msra.mxu2 %v8824_v15 }
 0x3af   :  { %v12447_v13 = vpop.f32.mrf.mxu3 }
 0x3b0   :  { %v2430_v18 = vpop.f32.mrf.mxu2  ;;  %v2932_v10 = vpop.f32.mrf.mxu0 }
 0x3b1   :  { %v12443_v17 = vadd.f32 %v2430_v18, %v11676_v19  ;;  %v2933_v8 = vadd.f32 %v2932_v10, %v2611_v45  ;;  %v3253_v36 = vpop.f32.mrf.mxu1  ;;  %v16951_v19 = vld [vmem:[#allocation162_spill] sm:$0xff]  ;;  %v12458_v10 = vpop.permute.xlu1 %5097 }
 0x3b2   :  { %16952 = vst [vmem:[#allocation140_spill] sm:$0xff] %v12458_v10 }
 0x3b3   :  { %16946 = vst [vmem:[#allocation363_spill] sm:$0xff] %v12443_v17  ;;  %3792 = vrot.lane.b32.xlu0 %v12443_v17, %s9325_s19  ;;  %v3254_v24 = vadd.f32 %v3253_v36, %v2933_v8  ;;  %2971 = vmatmul.bf16.gmra.mxu0 %v16950_v11  ;;  %v12469_v8 = vpop.permute.xlu2 %5077 }
 0x3b4   :  { %3292 = vmatmul.bf16.gmra.mxu1 %v16951_v19  ;;  %2665 = vmatmul.bf16.gmra.mxu3 %v16953_v16  ;;  %16955 = vst [vmem:[#allocation162_spill] sm:$0xff] %v12469_v8  ;;  %v16959_v8 = vld [vmem:[#allocation43_spill] sm:$0xff] }
 0x3b5   :  { %2472 = vmatmul.bf16.gmra.mxu2 %v12445_v52  ;;  %v4156_v45 = vadd.f32 %v4036_v42, %v3254_v24  ;;  %v8319_v24 = vld [vmem:[%s16215_s0 + $0x3c8] sm:$0xf] }
 0x3b7   :  { %v12465_v37 = vpop.f32.mrf.mxu3 }
 0x3b8   :  { %v2433_v0 = vpop.f32.mrf.mxu2  ;;  %v2934_v15 = vpop.f32.mrf.mxu0 }
 0x3b9   :  { %v12462_v18 = vadd.f32 %v2433_v0, %v11711_v49  ;;  %v2935_v54 = vadd.f32 %v2934_v15, %v12377_v32  ;;  %v3255_v31 = vpop.f32.mrf.mxu1  ;;  %v9144_v49 = vld [vmem:[%s16215_s0 + $0x3d0] sm:$0xf0]  ;;  %v3681_v11 = vpop.permute.xlu1 %3680 }
 0x3ba   :  { %v12481_v0 = vor.u32 %v9144_v49, %v8319_v24  ;;  %v16962_v49 = vld [vmem:[#allocation60_spill] sm:$0xff] }
 0x3bb   :  { %16954 = vst [vmem:[#allocation38_spill] sm:$0xff] %v12462_v18  ;;  %3794 = vrot.lane.b32.xlu2 %v12462_v18, %s9325_s19  ;;  %v3256_v36 = vadd.f32 %v3255_v31, %v2935_v54  ;;  %v16958_v31 = vld [vmem:[#allocation147_spill] sm:$0xff]  ;;  %v12492_v24 = vpop.permute.xlu2 %5092 }
 0x3bc   :  { %16957 = vst [vmem:[#allocation366_spill] sm:$0xff] %v12481_v0 }
 0x3bd   :  { %v4157_v42 = vadd.f32 %v11526_v40, %v3256_v36  ;;  %v4038_v36 = vadd.f32 %v3681_v11, %v16958_v31  ;;  %16961 = vst [vmem:[#allocation147_spill] sm:$0xff] %v12492_v24  ;;  %v16964_v31 = vld [vmem:[#allocation151_spill] sm:$0xff] }
 0x3bf   :  { %v12484_v40 = vpop.f32.mrf.mxu3 }
 0x3c0   :  { %v2435_v32 = vpop.f32.mrf.mxu2  ;;  %v2937_v16 = vpop.f32.mrf.mxu0 }
 0x3c1   :  { %v12479_v19 = vadd.f32 %v2435_v32, %v11739_v34  ;;  %v2938_v54 = vadd.f32 %v2937_v16, %v12392_v12  ;;  %v3258_v15 = vpop.f32.mrf.mxu1  ;;  %v16960_v34 = vld [vmem:[#allocation172_spill] sm:$0xff] }
 0x3c3   :  { %16956 = vst [vmem:[#allocation53_spill] sm:$0xff] %v12479_v19  ;;  %3796 = vrot.lane.b32.xlu1 %v12479_v19, %s9325_s19  ;;  %v3259_v10 = vadd.f32 %v3258_v15, %v2938_v54  ;;  %2976 = vmatmul.bf16.gmra.mxu0 %v16959_v8  ;;  %v3683_v8 = vpop.permute.xlu1 %3682 }
 0x3c4   :  { %3297 = vmatmul.bf16.gmra.mxu1 %v16960_v34  ;;  %2670 = vmatmul.bf16.gmra.mxu3 %v16962_v49  ;;  %v3685_v49 = vpop.permute.xlu2 %3684 }
 0x3c5   :  { %2477 = vmatmul.bf16.gmra.mxu2 %v12481_v0  ;;  %v4158_v32 = vadd.f32 %v4038_v36, %v3259_v10  ;;  %v12506_v10 = vld [vmem:[%s16217_s2] ss:$0 sm:$0xff]  ;;  %v4039_v36 = vadd.f32 %v3683_v8, %v16964_v31 }
 0x3c7   :  { %v12499_v54 = vpop.f32.mrf.mxu3  ;;  %v4282_v24 = vadd.f32 %v12506_v10, %v4158_v32  ;;  %v16973_v32 = vld [vmem:[#allocation208_spill] sm:$0xff] }
 0x3c8   :  { %v2438_v12 = vpop.f32.mrf.mxu2  ;;  %v2939_v18 = vpop.f32.mrf.mxu0 }
 0x3c9   :  { %v12496_v16 = vadd.f32 %v2438_v12, %v11774_v46  ;;  %v2940_v19 = vadd.f32 %v2939_v18, %v12409_v1  ;;  %v3260_v11 = vpop.f32.mrf.mxu1  ;;  %v8331_v46 = vld [vmem:[%s16215_s0 + $0x3e0] sm:$0xf]  ;;  %v9147_v1 = vld [vmem:[%s16215_s0 + $0x3e8] sm:$0xf0]  ;;  %v12516_v18 = vadd.f32 %v12506_v10, %v4157_v42  ;;  %v12519_v12 = vadd.f32 %v12506_v10, %v4156_v45 }
 0x3ca   :  { %v12524_v31 = vor.u32 %v9147_v1, %v8331_v46  ;;  %v16969_v42 = vld [vmem:[#allocation156_spill] sm:$0xff]  ;;  %v16970_v45 = vld [vmem:[#allocation51_spill] sm:$0xff] }
 0x3cb   :  { %16963 = vst [vmem:[#allocation43_spill] sm:$0xff] %v12496_v16  ;;  %3798 = vrot.lane.b32.xlu0 %v12496_v16, %s9325_s19  ;;  %v3261_v15 = vadd.f32 %v3260_v11, %v2940_v19  ;;  %v16972_v1 = vld [vmem:[#allocation48_spill] sm:$0xff] }
 0x3cc   :  { %16965 = vst [vmem:[#allocation172_spill] sm:$0xff] %v12516_v18 }
 0x3cd   :  { %v4159_v34 = vadd.f32 %v4039_v36, %v3261_v15  ;;  %16966 = vst [vmem:[#allocation60_spill] sm:$0xff] %v12519_v12  ;;  %v4040_v15 = vadd.f32 %v3685_v49, %v16969_v42  ;;  %v5121_v36 = vmul.f32 %v16970_v45, %v12516_v18  ;;  %v3687_v49 = vpop.permute.xlu1 %3686  ;;  %v16976_v42 = vld [vmem:[#allocation67_spill] sm:$0xff] }
 0x3ce   :  { %16968 = vst [vmem:[#allocation367_spill] sm:$0xff] %v12524_v31 }
 0x3cf   :  { %v12528_v0 = vpop.f32.mrf.mxu3 }
 0x3d0   :  { %v2440_v19 = vpop.f32.mrf.mxu2  ;;  %v2942_v8 = vpop.f32.mrf.mxu0 }
 0x3d1   :  { %v12522_v11 = vadd.f32 %v2440_v19, %v11796_v59  ;;  %v2943_v16 = vadd.f32 %v2942_v8, %v12424_v50  ;;  %v3263_v17 = vpop.f32.mrf.mxu1  ;;  %v12536_v59 = vadd.f32 %v12506_v10, %v4159_v34  ;;  %v5120_v50 = vmul.f32 %v16973_v32, %v12519_v12  ;;  %v16974_v19 = vld [vmem:[#allocation182_spill] sm:$0xff] }
 0x3d2   :  { %v16975_v8 = vld [vmem:[#allocation218_spill] sm:$0xff]  ;;  %v5487_v34 = vmul.f32 %v5121_v36, %v12516_v18 }
 0x3d3   :  { %16967 = vst [vmem:[#allocation151_spill] sm:$0xff] %v12522_v11  ;;  %3800 = vrot.lane.b32.xlu2 %v12522_v11, %s9325_s19  ;;  %v3264_v46 = vadd.f32 %v3263_v17, %v2943_v16  ;;  %2981 = vmatmul.bf16.gmra.mxu0 %v16972_v1  ;;  %v5122_v11 = vmul.f32 %v16975_v8, %v4282_v24  ;;  %v16977_v17 = vld [vmem:[#allocation226_spill] sm:$0xff]  ;;  %v5241_v20 = vsel %vm5240_vm0, %v5120_v50, 0.0 }
 0x3d4   :  { %16971 = vst [vmem:[#allocation156_spill] sm:$0xff] %v12536_v59  ;;  %3302 = vmatmul.bf16.gmra.mxu1 %v16974_v19  ;;  %2675 = vmatmul.bf16.gmra.mxu3 %v16976_v42  ;;  %v5123_v16 = vmul.f32 %v16977_v17, %v12536_v59  ;;  %v5486_v32 = vmul.f32 %v5120_v50, %v12519_v12  ;;  %v16980_v42 = vld [vmem:[#allocation215_spill] sm:$0xff] }
 0x3d5   :  { %2482 = vmatmul.bf16.gmra.mxu2 %v12524_v31  ;;  %v4160_v52 = vadd.f32 %v4040_v15, %v3264_v46  ;;  %v5242_v15 = vsel %vm5240_vm0, %v5121_v36, 0.0  ;;  %v5488_v46 = vmul.f32 %v5122_v11, %v4282_v24  ;;  %v5244_v36 = vsel %vm5240_vm0, %v5122_v11, 0.0  ;;  %v9150_v11 = vld [vmem:[%s16215_s0 + $0x400] sm:$0xf0] }
 0x3d6   :  { %v5489_v24 = vmul.f32 %v5123_v16, %v12536_v59  ;;  %v5246_v12 = vsel %vm5240_vm0, %v5123_v16, 0.0 }
 0x3d7   :  { %v12549_v45 = vadd.f32 %v12506_v10, %v4160_v52  ;;  %v12559_v17 = vpop.f32.mrf.mxu3  ;;  %v16981_v52 = vld [vmem:[#allocation160_spill] sm:$0xff] }
 0x3d8   :  { %v2443_v1 = vpop.f32.mrf.mxu2  ;;  %v2944_v8 = vpop.f32.mrf.mxu0  ;;  %v4041_v5 = vadd.f32 %v3687_v49, %v16981_v52  ;;  %v8343_v52 = vld [vmem:[%s16215_s0 + $0x3f8] sm:$0xf] }
 0x3d9   :  { %16978 = vst [vmem:[#allocation51_spill] sm:$0xff] %v12549_v45  ;;  %v12553_v19 = vadd.f32 %v2443_v1, %v11833_v35  ;;  %v5124_v31 = vmul.f32 %v16980_v42, %v12549_v45  ;;  %v2945_v18 = vadd.f32 %v2944_v8, %v12447_v13  ;;  %v3265_v23 = vpop.f32.mrf.mxu1  ;;  %v5607_v35 = vsel %vm5240_vm0, %v5487_v34, 0.0 }
 0x3da   :  { %v5606_v42 = vsel %vm5240_vm0, %v5486_v32, 0.0  ;;  %v5243_v13 = vadd.f32 %v5242_v15, %v5241_v20  ;;  %v5609_v8 = vsel %vm5240_vm0, %v5488_v46, 0.0  ;;  %v3689_v15 = vpop.permute.xlu1 %3688  ;;  %v12584_v59 = vor.u32 %v9150_v11, %v8343_v52 }
 0x3db   :  { %16979 = vst [vmem:[#allocation48_spill] sm:$0xff] %v12553_v19  ;;  %3802 = vrot.lane.b32.xlu1 %v12553_v19, %s9325_s19  ;;  %v3266_v1 = vadd.f32 %v3265_v23, %v2945_v18  ;;  %v5490_v49 = vmul.f32 %v5124_v31, %v12549_v45  ;;  %v5608_v34 = vadd.f32 %v5607_v35, %v5606_v42  ;;  %v5611_v18 = vsel %vm5240_vm0, %v5489_v24, 0.0  ;;  %v16982_v35 = vld [vmem:[#allocation56_spill] sm:$0xff] }
 0x3dc   :  { %v5245_v23 = vadd.f32 %v5244_v36, %v5243_v13  ;;  %v5248_v20 = vsel %vm5240_vm0, %v5124_v31, 0.0 }
 0x3dd   :  { %v4161_v50 = vadd.f32 %v4041_v5, %v3266_v1  ;;  %v5610_v46 = vadd.f32 %v5609_v8, %v5608_v34  ;;  %v5613_v19 = vsel %vm5240_vm0, %v5490_v49, 0.0  ;;  %v16984_v34 = vld [vmem:[#allocation54_spill] sm:$0xff] }
 0x3de   :  { %v5247_v5 = vadd.f32 %v5246_v12, %v5245_v23  ;;  %v16983_v12 = vld [vmem:[#allocation165_spill] sm:$0xff] }
 0x3df   :  { %v4285_v32 = vadd.f32 %v12506_v10, %v4161_v50  ;;  %v12589_v31 = vpop.f32.mrf.mxu3  ;;  %v5612_v13 = vadd.f32 %v5611_v18, %v5610_v46 }
 0x3e0   :  { %v2445_v16 = vpop.f32.mrf.mxu2  ;;  %v2947_v45 = vpop.f32.mrf.mxu0  ;;  %v5249_v50 = vadd.f32 %v5248_v20, %v5247_v5 }
 0x3e1   :  { %v12582_v1 = vadd.f32 %v2445_v16, %v11856_v62  ;;  %v5125_v36 = vmul.f32 %v16982_v35, %v4285_v32  ;;  %v2948_v24 = vadd.f32 %v2947_v45, %v12465_v37  ;;  %v3268_v42 = vpop.f32.mrf.mxu1  ;;  %v4042_v62 = vadd.f32 %v3689_v15, %v16983_v12  ;;  %v16985_v37 = vld [vmem:[#allocation191_spill] sm:$0xff]  ;;  %v16986_v16 = vld [vmem:[#allocation74_spill] sm:$0xff]  ;;  %v3691_v15 = vpop.permute.xlu0 %3690 }
 0x3e2   :  { %v5614_v49 = vadd.f32 %v5613_v19, %v5612_v13 }
 0x3e3   :  { %3804 = vrot.lane.b32.xlu0 %v12582_v1, %s9325_s19  ;;  %v5250_v8 = vsel %vm5240_vm0, %v5125_v36, 0.0  ;;  %v5491_v52 = vmul.f32 %v5125_v36, %v4285_v32  ;;  %v3269_v11 = vadd.f32 %v3268_v42, %v2948_v24  ;;  %2986 = vmatmul.bf16.gmra.mxu0 %v16984_v34  ;;  %v16987_v24 = vld [vmem:[#allocation170_spill] sm:$0xff] }
 0x3e4   :  { %v5251_v23 = vadd.f32 %v5250_v8, %v5249_v50  ;;  %3307 = vmatmul.bf16.gmra.mxu1 %v16985_v37  ;;  %2680 = vmatmul.bf16.gmra.mxu3 %v16986_v16  ;;  %v4043_v42 = vadd.f32 %v3691_v15, %v16987_v24  ;;  %v16993_v24 = vld [vmem:[#allocation201_spill] sm:$0xff] }
 0x3e5   :  { %2487 = vmatmul.bf16.gmra.mxu2 %v12584_v59  ;;  %v5615_v45 = vsel %vm5240_vm0, %v5491_v52, 0.0  ;;  %v4162_v18 = vadd.f32 %v4042_v62, %v3269_v11  ;;  %v3693_v11 = vpop.permute.xlu2 %3692 }
 0x3e6   :  { %v5616_v20 = vadd.f32 %v5615_v45, %v5614_v49  ;;  %v16990_v45 = vld [vmem:[#allocation221_spill] sm:$0xff] }
 0x3e7   :  { %v12604_v36 = vpop.f32.mrf.mxu3  ;;  %v12610_v13 = vadd.f32 %v12506_v10, %v4162_v18 }
 0x3e8   :  { %v2448_v46 = vpop.f32.mrf.mxu2  ;;  %v2949_v32 = vpop.f32.mrf.mxu0 }
 0x3e9   :  { %v12601_v5 = vadd.f32 %v2448_v46, %v11893_v51  ;;  %v2950_v35 = vadd.f32 %v2949_v32, %v12484_v40  ;;  %v3270_v19 = vpop.f32.mrf.mxu1  ;;  %16988 = vst [vmem:[#allocation208_spill] sm:$0xff] %v12610_v13  ;;  %v8355_v51 = vld [vmem:[%s16215_s0 + $0x410] sm:$0xf]  ;;  %v9153_v40 = vld [vmem:[%s16215_s0 + $0x418] sm:$0xf0]  ;;  %v5126_v62 = vmul.f32 %v11539_v9, %v12610_v13 }
 0x3ea   :  { %v12626_v37 = vor.u32 %v9153_v40, %v8355_v51  ;;  %v16991_v9 = vld [vmem:[#allocation175_spill] sm:$0xff] }
 0x3eb   :  { %3806 = vrot.lane.b32.xlu2 %v12601_v5, %s9325_s19  ;;  %v3271_v50 = vadd.f32 %v3270_v19, %v2950_v35  ;;  %v4044_v32 = vadd.f32 %v3693_v11, %v16991_v9  ;;  %v5492_v35 = vmul.f32 %v5126_v62, %v12610_v13  ;;  %v16992_v19 = vld [vmem:[#allocation61_spill] sm:$0xff]  ;;  %v16995_v9 = vld [vmem:[#allocation58_spill] sm:$0xff] }
 0x3ed   :  { %v4163_v12 = vadd.f32 %v4043_v42, %v3271_v50  ;;  %v5252_v42 = vsel %vm5240_vm0, %v5126_v62, 0.0  ;;  %v5617_v51 = vsel %vm5240_vm0, %v5492_v35, 0.0 }
 0x3ee   :  { %v5618_v35 = vadd.f32 %v5617_v51, %v5616_v20  ;;  %v9156_v20 = vld [vmem:[%s16215_s0 + $0x430] sm:$0xf0] }
 0x3ef   :  { %v12621_v8 = vadd.f32 %v12506_v10, %v4163_v12  ;;  %v12631_v15 = vpop.f32.mrf.mxu3  ;;  %v16994_v12 = vld [vmem:[#allocation81_spill] sm:$0xff] }
 0x3f0   :  { %v2450_v52 = vpop.f32.mrf.mxu2  ;;  %v2952_v49 = vpop.f32.mrf.mxu0 }
 0x3f1   :  { %16989 = vst [vmem:[#allocation182_spill] sm:$0xff] %v12621_v8  ;;  %v12624_v34 = vadd.f32 %v2450_v52, %v11920_v41  ;;  %v5127_v18 = vmul.f32 %v16990_v45, %v12621_v8  ;;  %v2953_v16 = vadd.f32 %v2952_v49, %v12499_v54  ;;  %v3273_v46 = vpop.f32.mrf.mxu1  ;;  %v3695_v49 = vpop.permute.xlu1 %3694  ;;  %v5253_v45 = vadd.f32 %v5252_v42, %v5251_v23 }
 0x3f3   :  { %3808 = vrot.lane.b32.xlu1 %v12624_v34, %s9325_s19  ;;  %v3274_v41 = vadd.f32 %v3273_v46, %v2953_v16  ;;  %2991 = vmatmul.bf16.gmra.mxu0 %v16992_v19  ;;  %v5493_v54 = vmul.f32 %v5127_v18, %v12621_v8  ;;  %v5254_v40 = vsel %vm5240_vm0, %v5127_v18, 0.0 }
 0x3f4   :  { %3312 = vmatmul.bf16.gmra.mxu1 %v16993_v24  ;;  %2685 = vmatmul.bf16.gmra.mxu3 %v16994_v12  ;;  %v5255_v18 = vadd.f32 %v5254_v40, %v5253_v45 }
 0x3f5   :  { %2492 = vmatmul.bf16.gmra.mxu2 %v12626_v37  ;;  %v4164_v50 = vadd.f32 %v4044_v32, %v3274_v41  ;;  %v5619_v62 = vsel %vm5240_vm0, %v5493_v54, 0.0 }
 0x3f7   :  { %v4288_v52 = vadd.f32 %v12506_v10, %v4164_v50  ;;  %v12652_v24 = vpop.f32.mrf.mxu3  ;;  %v16996_v50 = vld [vmem:[#allocation180_spill] sm:$0xff] }
 0x3f8   :  { %v2453_v11 = vpop.f32.mrf.mxu2  ;;  %v2954_v46 = vpop.f32.mrf.mxu0  ;;  %v4045_v23 = vadd.f32 %v3695_v49, %v16996_v50 }
 0x3f9   :  { %v12647_v16 = vadd.f32 %v2453_v11, %v11957_v2  ;;  %v5128_v19 = vmul.f32 %v16995_v9, %v4288_v52  ;;  %v2955_v32 = vadd.f32 %v2954_v46, %v12528_v0  ;;  %v3275_v41 = vpop.f32.mrf.mxu1  ;;  %v5620_v11 = vadd.f32 %v5619_v62, %v5618_v35  ;;  %v8367_v0 = vld [vmem:[%s16215_s0 + $0x428] sm:$0xf]  ;;  %v3697_v49 = vpop.permute.xlu0 %3696 }
 0x3fa   :  { %v12668_v46 = vor.u32 %v9156_v20, %v8367_v0  ;;  %v3699_v0 = vpop.permute.xlu2 %3698 }
 0x3fb   :  { %3810 = vrot.lane.b32.xlu0 %v12647_v16, %s9325_s19  ;;  %v5256_v2 = vsel %vm5240_vm0, %v5128_v19, 0.0  ;;  %v5494_v42 = vmul.f32 %v5128_v19, %v4288_v52  ;;  %v3276_v12 = vadd.f32 %v3275_v41, %v2955_v32  ;;  %v16997_v41 = vld [vmem:[#allocation184_spill] sm:$0xff] }
 0x3fc   :  { %v5257_v54 = vadd.f32 %v5256_v2, %v5255_v18  ;;  %v4046_v35 = vadd.f32 %v3697_v49, %v16997_v41  ;;  %v17005_v41 = vld [vmem:[#allocation189_spill] sm:$0xff] }
 0x3fd   :  { %v5621_v9 = vsel %vm5240_vm0, %v5494_v42, 0.0  ;;  %v4165_v8 = vadd.f32 %v4045_v23, %v3276_v12  ;;  %v16999_v23 = vld [vmem:[#allocation68_spill] sm:$0xff]  ;;  %v17002_v42 = vld [vmem:[#allocation238_spill] sm:$0xff] }
 0x3fe   :  { %v5622_v51 = vadd.f32 %v5621_v9, %v5620_v11 }
 0x3ff   :  { %v12671_v32 = vpop.f32.mrf.mxu3  ;;  %v12677_v18 = vadd.f32 %v12506_v10, %v4165_v8 }
 0x400   :  { %v2455_v40 = vpop.f32.mrf.mxu2  ;;  %v2957_v52 = vpop.f32.mrf.mxu0 }
 0x401   :  { %v12666_v45 = vadd.f32 %v2455_v40, %v11974_v58  ;;  %v2958_v62 = vadd.f32 %v2957_v52, %v12559_v17  ;;  %v3278_v19 = vpop.f32.mrf.mxu1  ;;  %16998 = vst [vmem:[#allocation218_spill] sm:$0xff] %v12677_v18  ;;  %v17000_v58 = vld [vmem:[#allocation214_spill] sm:$0xff]  ;;  %v17001_v17 = vld [vmem:[#allocation87_spill] sm:$0xff]  ;;  %v5129_v12 = vmul.f32 %v17002_v42, %v12677_v18  ;;  %v17004_v40 = vld [vmem:[#allocation229_spill] sm:$0xff] }
 0x403   :  { %3812 = vrot.lane.b32.xlu2 %v12666_v45, %s9325_s19  ;;  %v3279_v50 = vadd.f32 %v3278_v19, %v2958_v62  ;;  %2996 = vmatmul.bf16.gmra.mxu0 %v16999_v23 }
 0x404   :  { %3317 = vmatmul.bf16.gmra.mxu1 %v17000_v58  ;;  %2690 = vmatmul.bf16.gmra.mxu3 %v17001_v17  ;;  %v9159_v17 = vld [vmem:[%s16215_s0 + $0x448] sm:$0xf0] }
 0x405   :  { %2497 = vmatmul.bf16.gmra.mxu2 %v12668_v46  ;;  %v4166_v2 = vadd.f32 %v4046_v35, %v3279_v50  ;;  %v4047_v35 = vadd.f32 %v3699_v0, %v17005_v41  ;;  %v5495_v50 = vmul.f32 %v5129_v12, %v12677_v18 }
 0x407   :  { %v12686_v11 = vadd.f32 %v12506_v10, %v4166_v2  ;;  %v12694_v19 = vpop.f32.mrf.mxu3  ;;  %v5623_v42 = vsel %vm5240_vm0, %v5495_v50, 0.0 }
 0x408   :  { %v2458_v9 = vpop.f32.mrf.mxu2  ;;  %v2959_v20 = vpop.f32.mrf.mxu0 }
 0x409   :  { %17003 = vst [vmem:[#allocation67_spill] sm:$0xff] %v12686_v11  ;;  %v12689_v8 = vadd.f32 %v2458_v9, %v12009_v33  ;;  %v5130_v49 = vmul.f32 %v17004_v40, %v12686_v11  ;;  %v2960_v52 = vadd.f32 %v2959_v20, %v12589_v31  ;;  %v3280_v62 = vpop.f32.mrf.mxu1  ;;  %v5258_v33 = vsel %vm5240_vm0, %v5129_v12, 0.0  ;;  %v8379_v31 = vld [vmem:[%s16215_s0 + $0x440] sm:$0xf]  ;;  %v3701_v40 = vpop.permute.xlu1 %3700 }
 0x40a   :  { %v5259_v12 = vadd.f32 %v5258_v33, %v5257_v54  ;;  %v12714_v41 = vor.u32 %v9159_v17, %v8379_v31  ;;  %v17007_v54 = vld [vmem:[#allocation194_spill] sm:$0xff] }
 0x40b   :  { %3814 = vrot.lane.b32.xlu1 %v12689_v8, %s9325_s19  ;;  %v3281_v23 = vadd.f32 %v3280_v62, %v2960_v52  ;;  %v5496_v58 = vmul.f32 %v5130_v49, %v12686_v11  ;;  %v5260_v9 = vsel %vm5240_vm0, %v5130_v49, 0.0  ;;  %v5624_v49 = vadd.f32 %v5623_v42, %v5622_v51 }
 0x40d   :  { %v4167_v2 = vadd.f32 %v4047_v35, %v3281_v23  ;;  %v5625_v35 = vsel %vm5240_vm0, %v5496_v58, 0.0  ;;  %v17006_v23 = vld [vmem:[#allocation63_spill] sm:$0xff] }
 0x40e   :  { %v5626_v58 = vadd.f32 %v5625_v35, %v5624_v49 }
 0x40f   :  { %v4291_v0 = vadd.f32 %v12506_v10, %v4167_v2  ;;  %v12719_v13 = vpop.f32.mrf.mxu3  ;;  %v5261_v2 = vadd.f32 %v5260_v9, %v5259_v12  ;;  %v17010_v12 = vld [vmem:[#allocation93_spill] sm:$0xff] }
 0x410   :  { %v2460_v20 = vpop.f32.mrf.mxu2  ;;  %v2962_v62 = vpop.f32.mrf.mxu0 }
 0x411   :  { %v12712_v52 = vadd.f32 %v2460_v20, %v12024_v3  ;;  %v5131_v11 = vmul.f32 %v17006_v23, %v4291_v0  ;;  %v2963_v18 = vadd.f32 %v2962_v62, %v12604_v36  ;;  %v3283_v50 = vpop.f32.mrf.mxu1  ;;  %v4048_v3 = vadd.f32 %v3701_v40, %v17007_v54  ;;  %v17008_v20 = vld [vmem:[#allocation75_spill] sm:$0xff]  ;;  %v17009_v36 = vld [vmem:[#allocation225_spill] sm:$0xff]  ;;  %v3703_v40 = vpop.permute.xlu0 %3702 }
 0x413   :  { %3816 = vrot.lane.b32.xlu0 %v12712_v52, %s9325_s19  ;;  %v5262_v33 = vsel %vm5240_vm0, %v5131_v11, 0.0  ;;  %v5497_v31 = vmul.f32 %v5131_v11, %v4291_v0  ;;  %v3284_v17 = vadd.f32 %v3283_v50, %v2963_v18  ;;  %3001 = vmatmul.bf16.gmra.mxu0 %v17008_v20  ;;  %v17012_v50 = vld [vmem:[#allocation199_spill] sm:$0xff] }
 0x414   :  { %v5263_v23 = vadd.f32 %v5262_v33, %v5261_v2  ;;  %3322 = vmatmul.bf16.gmra.mxu1 %v17009_v36  ;;  %2695 = vmatmul.bf16.gmra.mxu3 %v17010_v12  ;;  %v4049_v49 = vadd.f32 %v3703_v40, %v17012_v50  ;;  %v3705_v36 = vpop.permute.xlu2 %3704  ;;  %v17018_v50 = vld [vmem:[#allocation205_spill] sm:$0xff] }
 0x415   :  { %2502 = vmatmul.bf16.gmra.mxu2 %v12714_v41  ;;  %v5627_v51 = vsel %vm5240_vm0, %v5497_v31, 0.0  ;;  %v4168_v42 = vadd.f32 %v4048_v3, %v3284_v17  ;;  %v17014_v31 = vld [vmem:[#allocation246_spill] sm:$0xff] }
 0x416   :  { %v5628_v9 = vadd.f32 %v5627_v51, %v5626_v58 }
 0x417   :  { %v12734_v35 = vpop.f32.mrf.mxu3  ;;  %v12740_v2 = vadd.f32 %v12506_v10, %v4168_v42 }
 0x418   :  { %v2463_v62 = vpop.f32.mrf.mxu2  ;;  %v2964_v18 = vpop.f32.mrf.mxu0 }
 0x419   :  { %v12731_v54 = vadd.f32 %v2463_v62, %v12057_v29  ;;  %v2965_v11 = vadd.f32 %v2964_v18, %v12631_v15  ;;  %v3285_v0 = vpop.f32.mrf.mxu1  ;;  %17013 = vst [vmem:[#allocation215_spill] sm:$0xff] %v12740_v2  ;;  %v8391_v29 = vld [vmem:[%s16215_s0 + $0x458] sm:$0xf]  ;;  %v9162_v15 = vld [vmem:[%s16215_s0 + $0x460] sm:$0xf0]  ;;  %v5132_v17 = vmul.f32 %v17014_v31, %v12740_v2 }
 0x41a   :  { %v12756_v12 = vor.u32 %v9162_v15, %v8391_v29  ;;  %v17017_v62 = vld [vmem:[#allocation236_spill] sm:$0xff]  ;;  %v17020_v29 = vld [vmem:[#allocation235_spill] sm:$0xff] }
 0x41b   :  { %17011 = vst [vmem:[#allocation226_spill] sm:$0xff] %v12731_v54  ;;  %3818 = vrot.lane.b32.xlu2 %v12731_v54, %s9325_s19  ;;  %v3286_v3 = vadd.f32 %v3285_v0, %v2965_v11  ;;  %v5264_v15 = vsel %vm5240_vm0, %v5132_v17, 0.0 }
 0x41d   :  { %v4169_v33 = vadd.f32 %v4049_v49, %v3286_v3  ;;  %v4050_v49 = vadd.f32 %v3705_v36, %v17018_v50  ;;  %v5498_v3 = vmul.f32 %v5132_v17, %v12740_v2  ;;  %v8825_v36 = vld [vmem:[%s16218_s6 + $0x78] sm:$0xf0]  ;;  %v17022_v2 = vld [vmem:[#allocation65_spill] sm:$0xff] }
 0x41f   :  { %v12751_v20 = vadd.f32 %v12506_v10, %v4169_v33  ;;  %v12761_v0 = vpop.f32.mrf.mxu3  ;;  %v17019_v33 = vld [vmem:[#allocation82_spill] sm:$0xff] }
 0x420   :  { %v2465_v58 = vpop.f32.mrf.mxu2  ;;  %v2967_v42 = vpop.f32.mrf.mxu0 }
 0x421   :  { %17015 = vst [vmem:[#allocation160_spill] sm:$0xff] %v12751_v20  ;;  %v12754_v51 = vadd.f32 %v2465_v58, %v12072_v47  ;;  %v5133_v40 = vmul.f32 %v17017_v62, %v12751_v20  ;;  %v2968_v18 = vadd.f32 %v2967_v42, %v12652_v24  ;;  %v3288_v11 = vpop.f32.mrf.mxu1  ;;  %v9276_v58 = vld [vmem:[%s16218_s6 + $0x74] sm:$0xf]  ;;  %v17021_v42 = vld [vmem:[#allocation101_spill] sm:$0xff]  ;;  %v5629_v62 = vsel %vm5240_vm0, %v5498_v3, 0.0 }
 0x422   :  { %v8828_v50 = vor.u32 %v9276_v58, %v8825_v36 }
 0x423   :  { %17016 = vst [vmem:[#allocation56_spill] sm:$0xff] %v12754_v51  ;;  %3820 = vrot.lane.b32.xlu1 %v12754_v51, %s9325_s19  ;;  %v3289_v47 = vadd.f32 %v3288_v11, %v2968_v18  ;;  %3006 = vmatmul.bf16.gmra.mxu0 %v17019_v33  ;;  %v5499_v24 = vmul.f32 %v5133_v40, %v12751_v20  ;;  %v5266_v18 = vsel %vm5240_vm0, %v5133_v40, 0.0  ;;  %v3707_v33 = vpop.permute.xlu1 %3706 }
 0x424   :  { %3327 = vmatmul.bf16.gmra.mxu1 %v17020_v29  ;;  %2700 = vmatmul.bf16.gmra.mxu3 %v17021_v42  ;;  %v5630_v40 = vadd.f32 %v5629_v62, %v5628_v9  ;;  %v9165_v9 = vld [vmem:[%s16215_s0 + $0x478] sm:$0xf0] }
 0x425   :  { %2507 = vmatmul.bf16.gmra.mxu2 %v12756_v12  ;;  %v4170_v31 = vadd.f32 %v4050_v49, %v3289_v47  ;;  %v5265_v49 = vadd.f32 %v5264_v15, %v5263_v23  ;;  %v5631_v20 = vsel %vm5240_vm0, %v5499_v24, 0.0  ;;  %6603 = vmatpush.bf16.msra.mxu3 %v8828_v50  ;;  %v17023_v23 = vld [vmem:[#allocation211_spill] sm:$0xff]  ;;  %v8403_v50 = vld [vmem:[%s16215_s0 + $0x470] sm:$0xf] }
 0x426   :  { %v4051_v15 = vadd.f32 %v3707_v33, %v17023_v23  ;;  %v5632_v24 = vadd.f32 %v5631_v20, %v5630_v40  ;;  %v3709_v33 = vpop.permute.xlu0 %3708  ;;  %v12804_v20 = vor.u32 %v9165_v9, %v8403_v50  ;;  %v3711_v50 = vpop.permute.xlu2 %3710 }
 0x427   :  { %v4294_v11 = vadd.f32 %v12506_v10, %v4170_v31  ;;  %v12788_v3 = vpop.f32.mrf.mxu3  ;;  %v5267_v31 = vadd.f32 %v5266_v18, %v5265_v49 }
 0x428   :  { %v2468_v17 = vpop.f32.mrf.mxu2  ;;  %v2969_v29 = vpop.f32.mrf.mxu0 }
 0x429   :  { %v12783_v47 = vadd.f32 %v2468_v17, %v12091_v63  ;;  %v5134_v51 = vmul.f32 %v17022_v2, %v4294_v11  ;;  %v2970_v42 = vadd.f32 %v2969_v29, %v12671_v32  ;;  %v3290_v54 = vpop.f32.mrf.mxu1 }
 0x42b   :  { %3822 = vrot.lane.b32.xlu0 %v12783_v47, %s9325_s19  ;;  %v5268_v63 = vsel %vm5240_vm0, %v5134_v51, 0.0  ;;  %v5500_v58 = vmul.f32 %v5134_v51, %v4294_v11  ;;  %v3291_v36 = vadd.f32 %v3290_v54, %v2970_v42  ;;  %v17024_v42 = vld [vmem:[#allocation217_spill] sm:$0xff] }
 0x42c   :  { %v5269_v17 = vadd.f32 %v5268_v63, %v5267_v31  ;;  %v4052_v40 = vadd.f32 %v3709_v33, %v17024_v42  ;;  %v17033_v42 = vld [vmem:[#allocation223_spill] sm:$0xff] }
 0x42d   :  { %v5633_v2 = vsel %vm5240_vm0, %v5500_v58, 0.0  ;;  %v4171_v32 = vadd.f32 %v4051_v15, %v3291_v36  ;;  %v17026_v15 = vld [vmem:[#allocation88_spill] sm:$0xff]  ;;  %v17029_v58 = vld [vmem:[#allocation250_spill] sm:$0xff] }
 0x42e   :  { %v5634_v62 = vadd.f32 %v5633_v2, %v5632_v24 }
 0x42f   :  { %v12807_v29 = vpop.f32.mrf.mxu3  ;;  %v12813_v31 = vadd.f32 %v12506_v10, %v4171_v32 }
 0x430   :  { %v2470_v18 = vpop.f32.mrf.mxu2  ;;  %v2972_v54 = vpop.f32.mrf.mxu0 }
 0x431   :  { %v12802_v49 = vadd.f32 %v2470_v18, %v12104_v25  ;;  %v2973_v51 = vadd.f32 %v2972_v54, %v12694_v19  ;;  %v3293_v11 = vpop.f32.mrf.mxu1  ;;  %17025 = vst [vmem:[#allocation165_spill] sm:$0xff] %v12813_v31  ;;  %v17027_v25 = vld [vmem:[#allocation245_spill] sm:$0xff]  ;;  %v5135_v36 = vmul.f32 %v17029_v58, %v12813_v31  ;;  %v17032_v18 = vld [vmem:[#allocation240_spill] sm:$0xff] }
 0x432   :  { %v17028_v19 = vld [vmem:[#allocation109_spill] sm:$0xff] }
 0x433   :  { %3824 = vrot.lane.b32.xlu2 %v12802_v49, %s9325_s19  ;;  %v3294_v23 = vadd.f32 %v3293_v11, %v2973_v51  ;;  %3011 = vmatmul.bf16.gmra.mxu0 %v17026_v15 }
 0x434   :  { %3332 = vmatmul.bf16.gmra.mxu1 %v17027_v25  ;;  %2705 = vmatmul.bf16.gmra.mxu3 %v17028_v19  ;;  %v9168_v19 = vld [vmem:[%s16215_s0 + $0x490] sm:$0xf0] }
 0x435   :  { %2512 = vmatmul.bf16.gmra.mxu2 %v12804_v20  ;;  %v4172_v63 = vadd.f32 %v4052_v40, %v3294_v23  ;;  %v4053_v40 = vadd.f32 %v3711_v50, %v17033_v42  ;;  %v5501_v23 = vmul.f32 %v5135_v36, %v12813_v31 }
 0x437   :  { %v12822_v24 = vadd.f32 %v12506_v10, %v4172_v63  ;;  %v12830_v11 = vpop.f32.mrf.mxu3  ;;  %v5635_v58 = vsel %vm5240_vm0, %v5501_v23, 0.0 }
 0x438   :  { %v2473_v2 = vpop.f32.mrf.mxu2  ;;  %v2974_v9 = vpop.f32.mrf.mxu0 }
 0x439   :  { %17030 = vst [vmem:[#allocation54_spill] sm:$0xff] %v12822_v24  ;;  %v12825_v32 = vadd.f32 %v2473_v2, %v12123_v30  ;;  %v5136_v33 = vmul.f32 %v17032_v18, %v12822_v24  ;;  %v2975_v54 = vadd.f32 %v2974_v9, %v12719_v13  ;;  %v3295_v51 = vpop.f32.mrf.mxu1  ;;  %v5270_v30 = vsel %vm5240_vm0, %v5135_v36, 0.0  ;;  %v8415_v13 = vld [vmem:[%s16215_s0 + $0x488] sm:$0xf]  ;;  %v3713_v18 = vpop.permute.xlu1 %3712 }
 0x43a   :  { %v5271_v36 = vadd.f32 %v5270_v30, %v5269_v17  ;;  %v12850_v42 = vor.u32 %v9168_v19, %v8415_v13  ;;  %v17035_v17 = vld [vmem:[#allocation230_spill] sm:$0xff] }
 0x43b   :  { %17031 = vst [vmem:[#allocation191_spill] sm:$0xff] %v12825_v32  ;;  %3826 = vrot.lane.b32.xlu1 %v12825_v32, %s9325_s19  ;;  %v3296_v15 = vadd.f32 %v3295_v51, %v2975_v54  ;;  %v5502_v25 = vmul.f32 %v5136_v33, %v12822_v24  ;;  %v5272_v2 = vsel %vm5240_vm0, %v5136_v33, 0.0  ;;  %v5636_v33 = vadd.f32 %v5635_v58, %v5634_v62 }
 0x43d   :  { %v4173_v63 = vadd.f32 %v4053_v40, %v3296_v15  ;;  %v5637_v40 = vsel %vm5240_vm0, %v5502_v25, 0.0  ;;  %v17034_v15 = vld [vmem:[#allocation70_spill] sm:$0xff] }
 0x43e   :  { %v5638_v25 = vadd.f32 %v5637_v40, %v5636_v33 }
 0x43f   :  { %v4297_v50 = vadd.f32 %v12506_v10, %v4173_v63  ;;  %v12855_v32 = vpop.f32.mrf.mxu3  ;;  %v5273_v63 = vadd.f32 %v5272_v2, %v5271_v36  ;;  %v17038_v36 = vld [vmem:[#allocation117_spill] sm:$0xff] }
 0x440   :  { %v2475_v9 = vpop.f32.mrf.mxu2  ;;  %v2977_v51 = vpop.f32.mrf.mxu0 }
 0x441   :  { %v12848_v54 = vadd.f32 %v2475_v9, %v12136_v4  ;;  %v5137_v24 = vmul.f32 %v17034_v15, %v4297_v50  ;;  %v2978_v31 = vadd.f32 %v2977_v51, %v12734_v35  ;;  %v3298_v23 = vpop.f32.mrf.mxu1  ;;  %v4054_v4 = vadd.f32 %v3713_v18, %v17035_v17  ;;  %v17036_v9 = vld [vmem:[#allocation95_spill] sm:$0xff]  ;;  %v17037_v35 = vld [vmem:[#allocation256_spill] sm:$0xff]  ;;  %v3715_v18 = vpop.permute.xlu0 %3714 }
 0x443   :  { %3828 = vrot.lane.b32.xlu0 %v12848_v54, %s9325_s19  ;;  %v5274_v30 = vsel %vm5240_vm0, %v5137_v24, 0.0  ;;  %v5503_v13 = vmul.f32 %v5137_v24, %v4297_v50  ;;  %v3299_v19 = vadd.f32 %v3298_v23, %v2978_v31  ;;  %3016 = vmatmul.bf16.gmra.mxu0 %v17036_v9  ;;  %v17040_v23 = vld [vmem:[#allocation233_spill] sm:$0xff] }
 0x444   :  { %v5275_v15 = vadd.f32 %v5274_v30, %v5273_v63  ;;  %3337 = vmatmul.bf16.gmra.mxu1 %v17037_v35  ;;  %2710 = vmatmul.bf16.gmra.mxu3 %v17038_v36  ;;  %v4055_v33 = vadd.f32 %v3715_v18, %v17040_v23  ;;  %v3717_v35 = vpop.permute.xlu2 %3716  ;;  %v17046_v23 = vld [vmem:[#allocation239_spill] sm:$0xff] }
 0x445   :  { %2517 = vmatmul.bf16.gmra.mxu2 %v12850_v42  ;;  %v5639_v62 = vsel %vm5240_vm0, %v5503_v13, 0.0  ;;  %v4174_v58 = vadd.f32 %v4054_v4, %v3299_v19  ;;  %v17042_v13 = vld [vmem:[#allocation258_spill] sm:$0xff] }
 0x446   :  { %v5640_v2 = vadd.f32 %v5639_v62, %v5638_v25 }
 0x447   :  { %v12870_v40 = vpop.f32.mrf.mxu3  ;;  %v12876_v63 = vadd.f32 %v12506_v10, %v4174_v58 }
 0x448   :  { %v2478_v51 = vpop.f32.mrf.mxu2  ;;  %v2979_v31 = vpop.f32.mrf.mxu0 }
 0x449   :  { %v12867_v17 = vadd.f32 %v2478_v51, %v12155_v60  ;;  %v2980_v24 = vadd.f32 %v2979_v31, %v12761_v0  ;;  %v3300_v50 = vpop.f32.mrf.mxu1  ;;  %17041 = vst [vmem:[#allocation170_spill] sm:$0xff] %v12876_v63  ;;  %v8427_v60 = vld [vmem:[%s16215_s0 + $0x4a0] sm:$0xf]  ;;  %v9171_v0 = vld [vmem:[%s16215_s0 + $0x4a8] sm:$0xf0]  ;;  %v5138_v19 = vmul.f32 %v17042_v13, %v12876_v63 }
 0x44a   :  { %v12892_v36 = vor.u32 %v9171_v0, %v8427_v60  ;;  %v17045_v51 = vld [vmem:[#allocation248_spill] sm:$0xff]  ;;  %v17048_v60 = vld [vmem:[#allocation266_spill] sm:$0xff] }
 0x44b   :  { %17039 = vst [vmem:[#allocation74_spill] sm:$0xff] %v12867_v17  ;;  %3830 = vrot.lane.b32.xlu2 %v12867_v17, %s9325_s19  ;;  %v3301_v4 = vadd.f32 %v3300_v50, %v2980_v24  ;;  %v5276_v0 = vsel %vm5240_vm0, %v5138_v19, 0.0 }
 0x44d   :  { %v4175_v30 = vadd.f32 %v4055_v33, %v3301_v4  ;;  %v4056_v33 = vadd.f32 %v3717_v35, %v17046_v23  ;;  %v5504_v4 = vmul.f32 %v5138_v19, %v12876_v63  ;;  %v5277_v23 = vadd.f32 %v5276_v0, %v5275_v15  ;;  %v17050_v63 = vld [vmem:[#allocation72_spill] sm:$0xff] }
 0x44f   :  { %v12887_v9 = vadd.f32 %v12506_v10, %v4175_v30  ;;  %v12897_v50 = vpop.f32.mrf.mxu3  ;;  %v17047_v30 = vld [vmem:[#allocation103_spill] sm:$0xff] }
 0x450   :  { %v2480_v25 = vpop.f32.mrf.mxu2  ;;  %v2982_v58 = vpop.f32.mrf.mxu0 }
 0x451   :  { %17043 = vst [vmem:[#allocation221_spill] sm:$0xff] %v12887_v9  ;;  %v12890_v62 = vadd.f32 %v2480_v25, %v12170_v27  ;;  %v5139_v18 = vmul.f32 %v17045_v51, %v12887_v9  ;;  %v2983_v31 = vadd.f32 %v2982_v58, %v12788_v3  ;;  %v3303_v24 = vpop.f32.mrf.mxu1  ;;  %v17049_v25 = vld [vmem:[#allocation124_spill] sm:$0xff]  ;;  %v5641_v58 = vsel %vm5240_vm0, %v5504_v4, 0.0 }
 0x452   :  { %v5642_v4 = vadd.f32 %v5641_v58, %v5640_v2  ;;  %v9174_v2 = vld [vmem:[%s16215_s0 + $0x4c0] sm:$0xf0] }
 0x453   :  { %17044 = vst [vmem:[#allocation175_spill] sm:$0xff] %v12890_v62  ;;  %3832 = vrot.lane.b32.xlu1 %v12890_v62, %s9325_s19  ;;  %v3304_v27 = vadd.f32 %v3303_v24, %v2983_v31  ;;  %3021 = vmatmul.bf16.gmra.mxu0 %v17047_v30  ;;  %v5505_v3 = vmul.f32 %v5139_v18, %v12887_v9  ;;  %v5278_v35 = vsel %vm5240_vm0, %v5139_v18, 0.0  ;;  %v3719_v24 = vpop.permute.xlu1 %3718 }
 0x454   :  { %3342 = vmatmul.bf16.gmra.mxu1 %v17048_v60  ;;  %2715 = vmatmul.bf16.gmra.mxu3 %v17049_v25  ;;  %v5279_v18 = vadd.f32 %v5278_v35, %v5277_v23 }
 0x455   :  { %2522 = vmatmul.bf16.gmra.mxu2 %v12892_v36  ;;  %v4176_v13 = vadd.f32 %v4056_v33, %v3304_v27  ;;  %v5643_v19 = vsel %vm5240_vm0, %v5505_v3, 0.0 }
 0x456   :  { %v5644_v62 = vadd.f32 %v5643_v19, %v5642_v4 }
 0x457   :  { %v4300_v51 = vadd.f32 %v12506_v10, %v4176_v13  ;;  %v12918_v25 = vpop.f32.mrf.mxu3  ;;  %v17051_v13 = vld [vmem:[#allocation243_spill] sm:$0xff] }
 0x458   :  { %v2483_v31 = vpop.f32.mrf.mxu2  ;;  %v2984_v60 = vpop.f32.mrf.mxu0  ;;  %v4057_v15 = vadd.f32 %v3719_v24, %v17051_v13  ;;  %v17054_v13 = vld [vmem:[#allocation111_spill] sm:$0xff] }
 0x459   :  { %v12913_v30 = vadd.f32 %v2483_v31, %v12187_v26  ;;  %v5140_v9 = vmul.f32 %v17050_v63, %v4300_v51  ;;  %v2985_v33 = vadd.f32 %v2984_v60, %v12807_v29  ;;  %v3305_v27 = vpop.f32.mrf.mxu1  ;;  %v8439_v29 = vld [vmem:[%s16215_s0 + $0x4b8] sm:$0xf]  ;;  %v3721_v24 = vpop.permute.xlu0 %3720 }
 0x45b   :  { %3834 = vrot.lane.b32.xlu0 %v12913_v30, %s9325_s19  ;;  %v5280_v26 = vsel %vm5240_vm0, %v5140_v9, 0.0  ;;  %v5506_v0 = vmul.f32 %v5140_v9, %v4300_v51  ;;  %v3306_v31 = vadd.f32 %v3305_v27, %v2985_v33  ;;  %v12934_v51 = vor.u32 %v9174_v2, %v8439_v29  ;;  %v17052_v27 = vld [vmem:[#allocation249_spill] sm:$0xff]  ;;  %v3723_v29 = vpop.permute.xlu2 %3722 }
 0x45c   :  { %v5281_v3 = vadd.f32 %v5280_v26, %v5279_v18  ;;  %v4058_v4 = vadd.f32 %v3721_v24, %v17052_v27  ;;  %v17057_v26 = vld [vmem:[#allocation263_spill] sm:$0xff]  ;;  %v17061_v27 = vld [vmem:[#allocation254_spill] sm:$0xff] }
 0x45d   :  { %v5645_v63 = vsel %vm5240_vm0, %v5506_v0, 0.0  ;;  %v4177_v17 = vadd.f32 %v4057_v15, %v3306_v31 }
 0x45e   :  { %v5646_v58 = vadd.f32 %v5645_v63, %v5644_v62 }
 0x45f   :  { %v12937_v33 = vpop.f32.mrf.mxu3  ;;  %v12943_v62 = vadd.f32 %v12506_v10, %v4177_v17 }
 0x460   :  { %v2485_v35 = vpop.f32.mrf.mxu2  ;;  %v2987_v9 = vpop.f32.mrf.mxu0 }
 0x461   :  { %v12932_v23 = vadd.f32 %v2485_v35, %v12202_v21  ;;  %v2988_v60 = vadd.f32 %v2987_v9, %v12830_v11  ;;  %v3308_v19 = vpop.f32.mrf.mxu1  ;;  %17053 = vst [vmem:[#allocation61_spill] sm:$0xff] %v12943_v62  ;;  %v17055_v21 = vld [vmem:[#allocation276_spill] sm:$0xff]  ;;  %v17056_v11 = vld [vmem:[#allocation130_spill] sm:$0xff]  ;;  %v5141_v0 = vmul.f32 %v17057_v26, %v12943_v62  ;;  %v17060_v35 = vld [vmem:[#allocation253_spill] sm:$0xff] }
 0x463   :  { %3836 = vrot.lane.b32.xlu2 %v12932_v23, %s9325_s19  ;;  %v3309_v18 = vadd.f32 %v3308_v19, %v2988_v60  ;;  %3026 = vmatmul.bf16.gmra.mxu0 %v17054_v13 }
 0x464   :  { %3347 = vmatmul.bf16.gmra.mxu1 %v17055_v21  ;;  %2720 = vmatmul.bf16.gmra.mxu3 %v17056_v11  ;;  %v9177_v11 = vld [vmem:[%s16215_s0 + $0x4d8] sm:$0xf0] }
 0x465   :  { %2527 = vmatmul.bf16.gmra.mxu2 %v12934_v51  ;;  %v4178_v15 = vadd.f32 %v4058_v4, %v3309_v18  ;;  %v4059_v4 = vadd.f32 %v3723_v29, %v17061_v27  ;;  %v5507_v18 = vmul.f32 %v5141_v0, %v12943_v62 }
 0x467   :  { %v12952_v31 = vadd.f32 %v12506_v10, %v4178_v15  ;;  %v12960_v19 = vpop.f32.mrf.mxu3  ;;  %v5647_v26 = vsel %vm5240_vm0, %v5507_v18, 0.0 }
 0x468   :  { %v2488_v63 = vpop.f32.mrf.mxu2  ;;  %v2989_v2 = vpop.f32.mrf.mxu0 }
 0x469   :  { %17058 = vst [vmem:[#allocation201_spill] sm:$0xff] %v12952_v31  ;;  %v12955_v17 = vadd.f32 %v2488_v63, %v12219_v61  ;;  %v5142_v24 = vmul.f32 %v17060_v35, %v12952_v31  ;;  %v2990_v9 = vadd.f32 %v2989_v2, %v12855_v32  ;;  %v3310_v60 = vpop.f32.mrf.mxu1  ;;  %v5282_v61 = vsel %vm5240_vm0, %v5141_v0, 0.0  ;;  %v8451_v32 = vld [vmem:[%s16215_s0 + $0x4d0] sm:$0xf]  ;;  %v3725_v35 = vpop.permute.xlu1 %3724 }
 0x46a   :  { %v5283_v0 = vadd.f32 %v5282_v61, %v5281_v3  ;;  %v12980_v27 = vor.u32 %v9177_v11, %v8451_v32  ;;  %v17063_v3 = vld [vmem:[#allocation259_spill] sm:$0xff] }
 0x46b   :  { %17059 = vst [vmem:[#allocation81_spill] sm:$0xff] %v12955_v17  ;;  %3838 = vrot.lane.b32.xlu1 %v12955_v17, %s9325_s19  ;;  %v3311_v13 = vadd.f32 %v3310_v60, %v2990_v9  ;;  %v5508_v21 = vmul.f32 %v5142_v24, %v12952_v31  ;;  %v5284_v63 = vsel %vm5240_vm0, %v5142_v24, 0.0  ;;  %v5648_v24 = vadd.f32 %v5647_v26, %v5646_v58 }
 0x46d   :  { %v4179_v15 = vadd.f32 %v4059_v4, %v3311_v13  ;;  %v5649_v4 = vsel %vm5240_vm0, %v5508_v21, 0.0  ;;  %v17062_v13 = vld [vmem:[#allocation77_spill] sm:$0xff] }
 0x46e   :  { %v5650_v21 = vadd.f32 %v5649_v4, %v5648_v24 }
 0x46f   :  { %v4303_v29 = vadd.f32 %v12506_v10, %v4179_v15  ;;  %v12985_v17 = vpop.f32.mrf.mxu3  ;;  %v5285_v15 = vadd.f32 %v5284_v63, %v5283_v0  ;;  %v17065_v63 = vld [vmem:[#allocation136_spill] sm:$0xff] }
 0x470   :  { %v2490_v2 = vpop.f32.mrf.mxu2  ;;  %v2992_v60 = vpop.f32.mrf.mxu0 }
 0x471   :  { %v12978_v9 = vadd.f32 %v2490_v2, %v12234_v28  ;;  %v5143_v31 = vmul.f32 %v17062_v13, %v4303_v29  ;;  %v2993_v62 = vadd.f32 %v2992_v60, %v12870_v40  ;;  %v3313_v18 = vpop.f32.mrf.mxu1  ;;  %v4060_v28 = vadd.f32 %v3725_v35, %v17063_v3  ;;  %v17064_v2 = vld [vmem:[#allocation119_spill] sm:$0xff]  ;;  %v3727_v35 = vpop.permute.xlu0 %3726 }
 0x473   :  { %3840 = vrot.lane.b32.xlu0 %v12978_v9, %s9325_s19  ;;  %v5286_v61 = vsel %vm5240_vm0, %v5143_v31, 0.0  ;;  %v5509_v32 = vmul.f32 %v5143_v31, %v4303_v29  ;;  %v3314_v11 = vadd.f32 %v3313_v18, %v2993_v62  ;;  %3031 = vmatmul.bf16.gmra.mxu0 %v17064_v2  ;;  %v3729_v2 = vpop.permute.xlu2 %3728 }
 0x474   :  { %v5287_v13 = vadd.f32 %v5286_v61, %v5285_v15  ;;  %3352 = vmatmul.bf16.gmra.mxu1 %v11829_v55  ;;  %2725 = vmatmul.bf16.gmra.mxu3 %v17065_v63  ;;  %v17066_v55 = vld [vmem:[#allocation264_spill] sm:$0xff] }
 0x475   :  { %2532 = vmatmul.bf16.gmra.mxu2 %v12980_v27  ;;  %v5651_v40 = vsel %vm5240_vm0, %v5509_v32, 0.0  ;;  %v4180_v58 = vadd.f32 %v4060_v28, %v3314_v11  ;;  %v4061_v18 = vadd.f32 %v3727_v35, %v17066_v55  ;;  %v17068_v28 = vld [vmem:[#allocation270_spill] sm:$0xff]  ;;  %v17070_v63 = vld [vmem:[#allocation260_spill] sm:$0xff] }
 0x476   :  { %v5652_v26 = vadd.f32 %v5651_v40, %v5650_v21 }
 0x477   :  { %v13000_v4 = vpop.f32.mrf.mxu3  ;;  %v13006_v24 = vadd.f32 %v12506_v10, %v4180_v58 }
 0x478   :  { %v2493_v0 = vpop.f32.mrf.mxu2  ;;  %v2994_v62 = vpop.f32.mrf.mxu0 }
 0x479   :  { %v12997_v60 = vadd.f32 %v2493_v0, %v12253_v53  ;;  %v2995_v31 = vadd.f32 %v2994_v62, %v12897_v50  ;;  %v3315_v29 = vpop.f32.mrf.mxu1  ;;  %17067 = vst [vmem:[#allocation58_spill] sm:$0xff] %v13006_v24  ;;  %v8463_v53 = vld [vmem:[%s16215_s0 + $0x4e8] sm:$0xf]  ;;  %v9180_v50 = vld [vmem:[%s16215_s0 + $0x4f0] sm:$0xf0]  ;;  %v5144_v61 = vmul.f32 %v17068_v28, %v13006_v24 }
 0x47a   :  { %v13022_v58 = vor.u32 %v9180_v50, %v8463_v53  ;;  %v17073_v53 = vld [vmem:[#allocation142_spill] sm:$0xff] }
 0x47b   :  { %3842 = vrot.lane.b32.xlu2 %v12997_v60, %s9325_s19  ;;  %v3316_v15 = vadd.f32 %v3315_v29, %v2995_v31  ;;  %v5510_v55 = vmul.f32 %v5144_v61, %v13006_v24 }
 0x47d   :  { %v4181_v3 = vadd.f32 %v4061_v18, %v3316_v15  ;;  %v17072_v18 = vld [vmem:[#allocation126_spill] sm:$0xff]  ;;  %v5288_v15 = vsel %vm5240_vm0, %v5144_v61, 0.0  ;;  %v5653_v50 = vsel %vm5240_vm0, %v5510_v55, 0.0 }
 0x47f   :  { %v13017_v32 = vadd.f32 %v12506_v10, %v4181_v3  ;;  %v13027_v31 = vpop.f32.mrf.mxu3  ;;  %v17071_v10 = vld [vmem:[#allocation269_spill] sm:$0xff] }
 0x480   :  { %v2495_v11 = vpop.f32.mrf.mxu2  ;;  %v2997_v40 = vpop.f32.mrf.mxu0  ;;  %v4062_v29 = vadd.f32 %v3729_v2, %v17071_v10 }
 0x481   :  { %17069 = vst [vmem:[#allocation180_spill] sm:$0xff] %v13017_v32  ;;  %v13020_v21 = vadd.f32 %v2495_v11, %v12266_v56  ;;  %v5145_v0 = vmul.f32 %v17070_v63, %v13017_v32  ;;  %v2998_v35 = vadd.f32 %v2997_v40, %v12918_v25  ;;  %v3318_v62 = vpop.f32.mrf.mxu1  ;;  %v13044_v11 = vld [vmem:[%s16217_s2] ss:$0 sm:$0xff] }
 0x483   :  { %3844 = vrot.lane.b32.xlu1 %v13020_v21, %s9325_s19  ;;  %v3319_v56 = vadd.f32 %v3318_v62, %v2998_v35  ;;  %3036 = vmatmul.bf16.gmra.mxu0 %v17072_v18  ;;  %v5511_v25 = vmul.f32 %v5145_v0, %v13017_v32  ;;  %v5290_v28 = vsel %vm5240_vm0, %v5145_v0, 0.0  ;;  %v17074_v62 = vld [vmem:[#allocation79_spill] sm:$0xff]  ;;  %v5654_v18 = vadd.f32 %v5653_v50, %v5652_v26  ;;  %v9183_v26 = vld [vmem:[%s16215_s0 + $0x508] sm:$0xf0] }
 0x484   :  { %3357 = vmatmul.bf16.gmra.mxu1 %v11887_v44  ;;  %2730 = vmatmul.bf16.gmra.mxu3 %v17073_v53  ;;  %v5289_v44 = vadd.f32 %v5288_v15, %v5287_v13 }
 0x485   :  { %2537 = vmatmul.bf16.gmra.mxu2 %v13022_v58  ;;  %v4182_v3 = vadd.f32 %v4062_v29, %v3319_v56  ;;  %v5655_v35 = vsel %vm5240_vm0, %v5511_v25, 0.0  ;;  %v3731_v56 = vpop.permute.xlu1 %3730  ;;  %v17075_v25 = vld [vmem:[#allocation274_spill] sm:$0xff] }
 0x486   :  { %v5291_v53 = vadd.f32 %v5290_v28, %v5289_v44  ;;  %v4063_v32 = vadd.f32 %v3731_v56, %v17075_v25 }
 0x487   :  { %v4306_v2 = vadd.f32 %v13044_v11, %v4182_v3  ;;  %v13053_v55 = vpop.f32.mrf.mxu3  ;;  %v5656_v3 = vadd.f32 %v5655_v35, %v5654_v18  ;;  %v17076_v18 = vld [vmem:[#allocation280_spill] sm:$0xff] }
 0x488   :  { %v2498_v40 = vpop.f32.mrf.mxu2  ;;  %v2999_v63 = vpop.f32.mrf.mxu0 }
 0x489   :  { %v13048_v61 = vadd.f32 %v2498_v40, %v12285_v6  ;;  %v5146_v10 = vmul.f32 %v17074_v62, %v4306_v2  ;;  %v3000_v29 = vadd.f32 %v2999_v63, %v12937_v33  ;;  %v3320_v0 = vpop.f32.mrf.mxu1  ;;  %v8475_v33 = vld [vmem:[%s16215_s0 + $0x500] sm:$0xf]  ;;  %v3733_v63 = vpop.permute.xlu0 %3732 }
 0x48b   :  { %3846 = vrot.lane.b32.xlu0 %v13048_v61, %s9325_s19  ;;  %v5292_v13 = vsel %vm5240_vm0, %v5146_v10, 0.0  ;;  %v5512_v6 = vmul.f32 %v5146_v10, %v4306_v2  ;;  %v3321_v15 = vadd.f32 %v3320_v0, %v3000_v29  ;;  %v13069_v10 = vor.u32 %v9183_v26, %v8475_v33  ;;  %v3735_v33 = vpop.permute.xlu2 %3734 }
 0x48c   :  { %v5293_v40 = vadd.f32 %v5292_v13, %v5291_v53  ;;  %v4064_v53 = vadd.f32 %v3733_v63, %v17076_v18 }
 0x48d   :  { %v5657_v62 = vsel %vm5240_vm0, %v5512_v6, 0.0  ;;  %v4183_v28 = vadd.f32 %v4063_v32, %v3321_v15  ;;  %v17078_v6 = vld [vmem:[#allocation132_spill] sm:$0xff]  ;;  %v17080_v15 = vld [vmem:[#allocation277_spill] sm:$0xff] }
 0x48e   :  { %v5658_v50 = vadd.f32 %v5657_v62, %v5656_v3 }
 0x48f   :  { %v13072_v56 = vpop.f32.mrf.mxu3  ;;  %v13078_v32 = vadd.f32 %v13044_v11, %v4183_v28 }
 0x490   :  { %v2500_v44 = vpop.f32.mrf.mxu2  ;;  %v3002_v35 = vpop.f32.mrf.mxu0 }
 0x491   :  { %v13067_v2 = vadd.f32 %v2500_v44, %v12298_v7  ;;  %v3003_v29 = vadd.f32 %v3002_v35, %v12960_v19  ;;  %v3323_v0 = vpop.f32.mrf.mxu1  ;;  %17077 = vst [vmem:[#allocation184_spill] sm:$0xff] %v13078_v32  ;;  %v17079_v19 = vld [vmem:[#allocation149_spill] sm:$0xff]  ;;  %v5147_v3 = vmul.f32 %v17080_v15, %v13078_v32  ;;  %v17083_v44 = vld [vmem:[#allocation267_spill] sm:$0xff] }
 0x493   :  { %3848 = vrot.lane.b32.xlu2 %v13067_v2, %s9325_s19  ;;  %v3324_v13 = vadd.f32 %v3323_v0, %v3003_v29  ;;  %3041 = vmatmul.bf16.gmra.mxu0 %v17078_v6  ;;  %v17084_v0 = vld [vmem:[#allocation284_spill] sm:$0xff] }
 0x494   :  { %3362 = vmatmul.bf16.gmra.mxu1 %v11955_v39  ;;  %2735 = vmatmul.bf16.gmra.mxu3 %v17079_v19  ;;  %v4065_v18 = vadd.f32 %v3735_v33, %v17084_v0  ;;  %v9186_v19 = vld [vmem:[%s16215_s0 + $0x520] sm:$0xf0] }
 0x495   :  { %2542 = vmatmul.bf16.gmra.mxu2 %v13069_v10  ;;  %v4184_v7 = vadd.f32 %v4064_v53, %v3324_v13  ;;  %v5513_v53 = vmul.f32 %v5147_v3, %v13078_v32 }
 0x497   :  { %v13087_v25 = vadd.f32 %v13044_v11, %v4184_v7  ;;  %v13095_v29 = vpop.f32.mrf.mxu3  ;;  %v5659_v15 = vsel %vm5240_vm0, %v5513_v53, 0.0 }
 0x498   :  { %v2503_v62 = vpop.f32.mrf.mxu2  ;;  %v3004_v28 = vpop.f32.mrf.mxu0  ;;  %v5660_v24 = vadd.f32 %v5659_v15, %v5658_v50  ;;  %v17089_v15 = vld [vmem:[#allocation154_spill] sm:$0xff] }
 0x499   :  { %17081 = vst [vmem:[#allocation68_spill] sm:$0xff] %v13087_v25  ;;  %v13090_v26 = vadd.f32 %v2503_v62, %v12317_v57  ;;  %v5148_v63 = vmul.f32 %v17083_v44, %v13087_v25  ;;  %v3005_v39 = vadd.f32 %v3004_v28, %v12985_v17  ;;  %v3325_v35 = vpop.f32.mrf.mxu1  ;;  %v5294_v57 = vsel %vm5240_vm0, %v5147_v3, 0.0  ;;  %v8487_v17 = vld [vmem:[%s16215_s0 + $0x518] sm:$0xf] }
 0x49a   :  { %v5295_v44 = vadd.f32 %v5294_v57, %v5293_v40 }
 0x49b   :  { %17082 = vst [vmem:[#allocation214_spill] sm:$0xff] %v13090_v26  ;;  %3850 = vrot.lane.b32.xlu1 %v13090_v26, %s9325_s19  ;;  %v3326_v13 = vadd.f32 %v3325_v35, %v3005_v39  ;;  %v5514_v6 = vmul.f32 %v5148_v63, %v13087_v25  ;;  %v5296_v62 = vsel %vm5240_vm0, %v5148_v63, 0.0  ;;  %v13115_v35 = vor.u32 %v9186_v19, %v8487_v17  ;;  %v3737_v63 = vpop.permute.xlu1 %3736  ;;  %v17087_v17 = vld [vmem:[#allocation138_spill] sm:$0xff] }
 0x49d   :  { %v4185_v7 = vadd.f32 %v4065_v18, %v3326_v13  ;;  %v5661_v0 = vsel %vm5240_vm0, %v5514_v6, 0.0  ;;  %v17086_v18 = vld [vmem:[#allocation83_spill] sm:$0xff] }
 0x49e   :  { %v5662_v6 = vadd.f32 %v5661_v0, %v5660_v24 }
 0x49f   :  { %v4309_v33 = vadd.f32 %v13044_v11, %v4185_v7  ;;  %v13120_v53 = vpop.f32.mrf.mxu3  ;;  %v5297_v7 = vadd.f32 %v5296_v62, %v5295_v44  ;;  %v17090_v62 = vld [vmem:[#allocation25_spill] sm:$0xff] }
 0x4a0   :  { %v2505_v28 = vpop.f32.mrf.mxu2  ;;  %v3007_v39 = vpop.f32.mrf.mxu0  ;;  %v2185_v44 = vadd.f32 %v17090_v62, %v17089_v15  ;;  %v8815_v15 = vld [vmem:[%s16218_s6 + $0x60] sm:$0xf]  ;;  %v9275_v62 = vld [vmem:[%s16218_s6 + $0x64] sm:$0xf0] }
 0x4a1   :  { %v13113_v3 = vadd.f32 %v2505_v28, %v12332_v38  ;;  %v5149_v13 = vmul.f32 %v17086_v18, %v4309_v33  ;;  %v3008_v25 = vadd.f32 %v3007_v39, %v13000_v4  ;;  %v3328_v32 = vpop.f32.mrf.mxu1  ;;  %v17088_v4 = vld [vmem:[#allocation290_spill] sm:$0xff] }
 0x4a2   :  { %v4066_v28 = vadd.f32 %v3737_v63, %v17088_v4  ;;  %v17091_v18 = vld [vmem:[#allocation158_spill] sm:$0xff]  ;;  %v17093_v63 = vld [vmem:[#allocation293_spill] sm:$0xff] }
 0x4a3   :  { %17085 = vst [vmem:[#allocation87_spill] sm:$0xff] %v13113_v3  ;;  %3852 = vrot.lane.b32.xlu0 %v13113_v3, %s9325_s19  ;;  %v5298_v38 = vsel %vm5240_vm0, %v5149_v13, 0.0  ;;  %v5515_v40 = vmul.f32 %v5149_v13, %v4309_v33  ;;  %v3329_v57 = vadd.f32 %v3328_v32, %v3008_v25  ;;  %3046 = vmatmul.bf16.gmra.mxu0 %v17087_v17  ;;  %v3739_v25 = vpop.permute.xlu0 %3738  ;;  %v17095_v4 = vld [vmem:[#allocation157_spill] sm:$0xff] }
 0x4a4   :  { %v5299_v19 = vadd.f32 %v5298_v38, %v5297_v7  ;;  %3367 = vmatmul.bf16.gmra.mxu1 %v12007_v48  ;;  %2740 = vmatmul.bf16.gmra.mxu3 %v17091_v18  ;;  %v4067_v38 = vadd.f32 %v3739_v25, %v17093_v63  ;;  %v8816_v25 = vor.u32 %v9275_v62, %v8815_v15 }
 0x4a5   :  { %2547 = vmatmul.bf16.gmra.mxu2 %v13115_v35  ;;  %v5663_v50 = vsel %vm5240_vm0, %v5515_v40, 0.0  ;;  %v4186_v33 = vadd.f32 %v4066_v28, %v3329_v57  ;;  %v17096_v28 = vld [vmem:[#allocation26_spill] sm:$0xff] }
 0x4a6   :  { %v5664_v39 = vadd.f32 %v5663_v50, %v5662_v6  ;;  %v8499_v6 = vld [vmem:[%s16215_s0 + $0x530] sm:$0xf]  ;;  %v2187_v50 = vadd.f32 %v17096_v28, %v17095_v4  ;;  %6556 = vmatpush.bf16.msra.mxu2 %v8816_v25 }
 0x4a7   :  { %v13136_v48 = vpop.f32.mrf.mxu3  ;;  %v13142_v40 = vadd.f32 %v13044_v11, %v4186_v33  ;;  %v17104_v25 = vld [vmem:[#allocation30_spill] sm:$0xff] }
 0x4a8   :  { %v2508_v32 = vpop.f32.mrf.mxu2  ;;  %v3009_v24 = vpop.f32.mrf.mxu0 }
 0x4a9   :  { %v13133_v13 = vadd.f32 %v2508_v32, %v2185_v44  ;;  %v3010_v0 = vadd.f32 %v3009_v24, %v13027_v31  ;;  %v3330_v7 = vpop.f32.mrf.mxu1  ;;  %17094 = vst [vmem:[#allocation229_spill] sm:$0xff] %v13142_v40  ;;  %v9189_v31 = vld [vmem:[%s16215_s0 + $0x538] sm:$0xf0]  ;;  %v17097_v44 = vld [vmem:[#allocation282_spill] sm:$0xff]  ;;  %v3741_v24 = vpop.permute.xlu2 %3740 }
 0x4aa   :  { %v5150_v18 = vmul.f32 %v17097_v44, %v13142_v40  ;;  %v13165_v63 = vor.u32 %v9189_v31, %v8499_v6  ;;  %v17102_v44 = vld [vmem:[#allocation144_spill] sm:$0xff] }
 0x4ab   :  { %17092 = vst [vmem:[#allocation238_spill] sm:$0xff] %v13133_v13  ;;  %3854 = vrot.lane.b32.xlu2 %v13133_v13, %s9325_s19  ;;  %v3331_v17 = vadd.f32 %v3330_v7, %v3010_v0 }
 0x4ad   :  { %v4187_v57 = vadd.f32 %v4067_v38, %v3331_v17  ;;  %v17100_v38 = vld [vmem:[#allocation272_spill] sm:$0xff] }
 0x4af   :  { %v13161_v33 = vadd.f32 %v13044_v11, %v4187_v57  ;;  %v13170_v13 = vpop.f32.mrf.mxu3  ;;  %v17101_v57 = vld [vmem:[#allocation299_spill] sm:$0xff] }
 0x4b0   :  { %v2510_v32 = vpop.f32.mrf.mxu2  ;;  %v3012_v7 = vpop.f32.mrf.mxu0  ;;  %v4068_v15 = vadd.f32 %v3741_v24, %v17101_v57 }
 0x4b1   :  { %17098 = vst [vmem:[#allocation189_spill] sm:$0xff] %v13161_v33  ;;  %v13163_v0 = vadd.f32 %v2510_v32, %v2187_v50  ;;  %v5151_v17 = vmul.f32 %v17100_v38, %v13161_v33  ;;  %v3013_v4 = vadd.f32 %v3012_v7, %v13053_v55  ;;  %v3333_v28 = vpop.f32.mrf.mxu1  ;;  %v5516_v50 = vmul.f32 %v5150_v18, %v13142_v40  ;;  %v17103_v32 = vld [vmem:[#allocation164_spill] sm:$0xff] }
 0x4b2   :  { %v5300_v55 = vsel %vm5240_vm0, %v5150_v18, 0.0  ;;  %v2190_v7 = vadd.f32 %v17104_v25, %v17103_v32  ;;  %v17105_v38 = vld [vmem:[#allocation168_spill] sm:$0xff] }
 0x4b3   :  { %17099 = vst [vmem:[#allocation63_spill] sm:$0xff] %v13163_v0  ;;  %3856 = vrot.lane.b32.xlu1 %v13163_v0, %s9325_s19  ;;  %v3334_v62 = vadd.f32 %v3333_v28, %v3013_v4  ;;  %3051 = vmatmul.bf16.gmra.mxu0 %v17102_v44  ;;  %v5517_v6 = vmul.f32 %v5151_v17, %v13161_v33  ;;  %v5665_v24 = vsel %vm5240_vm0, %v5516_v50, 0.0  ;;  %v5302_v4 = vsel %vm5240_vm0, %v5151_v17, 0.0  ;;  %v17107_v33 = vld [vmem:[#allocation85_spill] sm:$0xff] }
 0x4b4   :  { %3372 = vmatmul.bf16.gmra.mxu1 %v12055_v22  ;;  %2745 = vmatmul.bf16.gmra.mxu3 %v17105_v38  ;;  %v5301_v44 = vadd.f32 %v5300_v55, %v5299_v19  ;;  %v3743_v38 = vpop.permute.xlu1 %3742  ;;  %v5666_v50 = vadd.f32 %v5665_v24, %v5664_v39  ;;  %v9192_v39 = vld [vmem:[%s16215_s0 + $0x550] sm:$0xf0]  ;;  %v17109_v24 = vld [vmem:[#allocation167_spill] sm:$0xff] }
 0x4b5   :  { %2552 = vmatmul.bf16.gmra.mxu2 %v13165_v63  ;;  %v4188_v31 = vadd.f32 %v4068_v15, %v3334_v62  ;;  %v5667_v18 = vsel %vm5240_vm0, %v5517_v6, 0.0  ;;  %v17108_v6 = vld [vmem:[#allocation304_spill] sm:$0xff] }
 0x4b6   :  { %v5303_v0 = vadd.f32 %v5302_v4, %v5301_v44  ;;  %v17110_v4 = vld [vmem:[#allocation31_spill] sm:$0xff] }
 0x4b7   :  { %v4312_v28 = vadd.f32 %v13044_v11, %v4188_v31  ;;  %v13192_v25 = vpop.f32.mrf.mxu3  ;;  %v5668_v31 = vadd.f32 %v5667_v18, %v5666_v50  ;;  %v2192_v44 = vadd.f32 %v17110_v4, %v17109_v24  ;;  %v3745_v18 = vpop.permute.xlu0 %3744  ;;  %v17117_v24 = vld [vmem:[#allocation178_spill] sm:$0xff]  ;;  %v17118_v4 = vld [vmem:[#allocation289_spill] sm:$0xff] }
 0x4b8   :  { %v2513_v57 = vpop.f32.mrf.mxu2  ;;  %v3014_v22 = vpop.f32.mrf.mxu0 }
 0x4b9   :  { %v13187_v40 = vadd.f32 %v2513_v57, %v2190_v7  ;;  %v5152_v15 = vmul.f32 %v17107_v33, %v4312_v28  ;;  %v3015_v62 = vadd.f32 %v3014_v22, %v13072_v56  ;;  %v3335_v32 = vpop.f32.mrf.mxu1  ;;  %v4069_v57 = vadd.f32 %v3743_v38, %v17108_v6  ;;  %v8511_v56 = vld [vmem:[%s16215_s0 + $0x548] sm:$0xf] }
 0x4bb   :  { %17106 = vst [vmem:[#allocation194_spill] sm:$0xff] %v13187_v40  ;;  %3858 = vrot.lane.b32.xlu0 %v13187_v40, %s9325_s19  ;;  %v5304_v19 = vsel %vm5240_vm0, %v5152_v15, 0.0  ;;  %v5518_v17 = vmul.f32 %v5152_v15, %v4312_v28  ;;  %v3336_v55 = vadd.f32 %v3335_v32, %v3015_v62  ;;  %v13209_v32 = vor.u32 %v9192_v39, %v8511_v56  ;;  %v17116_v56 = vld [vmem:[#allocation35_spill] sm:$0xff] }
 0x4bc   :  { %v5305_v7 = vadd.f32 %v5304_v19, %v5303_v0 }
 0x4bd   :  { %v5669_v33 = vsel %vm5240_vm0, %v5518_v17, 0.0  ;;  %v4189_v28 = vadd.f32 %v4069_v57, %v3336_v55  ;;  %v17112_v17 = vld [vmem:[#allocation308_spill] sm:$0xff] }
 0x4be   :  { %v5670_v22 = vadd.f32 %v5669_v33, %v5668_v31  ;;  %v4070_v6 = vadd.f32 %v3745_v18, %v17112_v17  ;;  %v17114_v57 = vld [vmem:[#allocation152_spill] sm:$0xff]  ;;  %v3747_v18 = vpop.permute.xlu2 %3746 }
 0x4bf   :  { %v13212_v19 = vpop.f32.mrf.mxu3  ;;  %v13218_v31 = vadd.f32 %v13044_v11, %v4189_v28 }
 0x4c0   :  { %v2515_v15 = vpop.f32.mrf.mxu2  ;;  %v3017_v62 = vpop.f32.mrf.mxu0 }
 0x4c1   :  { %v13207_v0 = vadd.f32 %v2515_v15, %v2192_v44  ;;  %v3018_v38 = vadd.f32 %v3017_v62, %v13095_v29  ;;  %v3338_v50 = vpop.f32.mrf.mxu1  ;;  %17113 = vst [vmem:[#allocation225_spill] sm:$0xff] %v13218_v31  ;;  %v17115_v29 = vld [vmem:[#allocation174_spill] sm:$0xff]  ;;  %v5153_v44 = vmul.f32 %v17118_v4, %v13218_v31 }
 0x4c2   :  { %v2195_v39 = vadd.f32 %v17116_v56, %v17115_v29 }
 0x4c3   :  { %17111 = vst [vmem:[#allocation75_spill] sm:$0xff] %v13207_v0  ;;  %3860 = vrot.lane.b32.xlu2 %v13207_v0, %s9325_s19  ;;  %v3339_v55 = vadd.f32 %v3338_v50, %v3018_v38  ;;  %3056 = vmatmul.bf16.gmra.mxu0 %v17114_v57  ;;  %v17121_v50 = vld [vmem:[#allocation279_spill] sm:$0xff]  ;;  %v17122_v57 = vld [vmem:[#allocation313_spill] sm:$0xff] }
 0x4c4   :  { %3377 = vmatmul.bf16.gmra.mxu1 %v12087_v43  ;;  %2750 = vmatmul.bf16.gmra.mxu3 %v17117_v24  ;;  %v4071_v29 = vadd.f32 %v3747_v18, %v17122_v57  ;;  %v17127_v0 = vld [vmem:[#allocation89_spill] sm:$0xff] }
 0x4c5   :  { %2557 = vmatmul.bf16.gmra.mxu2 %v13209_v32  ;;  %v4190_v33 = vadd.f32 %v4070_v6, %v3339_v55 }
 0x4c7   :  { %v13229_v15 = vadd.f32 %v13044_v11, %v4190_v33  ;;  %v13236_v55 = vpop.f32.mrf.mxu3  ;;  %v5519_v33 = vmul.f32 %v5153_v44, %v13218_v31 }
 0x4c8   :  { %v2518_v28 = vpop.f32.mrf.mxu2  ;;  %v3019_v38 = vpop.f32.mrf.mxu0 }
 0x4c9   :  { %17119 = vst [vmem:[#allocation93_spill] sm:$0xff] %v13229_v15  ;;  %v13231_v62 = vadd.f32 %v2518_v28, %v2195_v39  ;;  %v5154_v43 = vmul.f32 %v17121_v50, %v13229_v15  ;;  %v3020_v17 = vadd.f32 %v3019_v38, %v13120_v53  ;;  %v3340_v6 = vpop.f32.mrf.mxu1  ;;  %v5306_v39 = vsel %vm5240_vm0, %v5153_v44, 0.0  ;;  %v8523_v53 = vld [vmem:[%s16215_s0 + $0x560] sm:$0xf]  ;;  %v9195_v28 = vld [vmem:[%s16215_s0 + $0x568] sm:$0xf0] }
 0x4ca   :  { %v17123_v38 = vld [vmem:[#allocation176_spill] sm:$0xff]  ;;  %v5671_v18 = vsel %vm5240_vm0, %v5519_v33, 0.0  ;;  %v5307_v57 = vadd.f32 %v5306_v39, %v5305_v7  ;;  %v3749_v33 = vpop.permute.xlu1 %3748 }
 0x4cb   :  { %17120 = vst [vmem:[#allocation199_spill] sm:$0xff] %v13231_v62  ;;  %3862 = vrot.lane.b32.xlu1 %v13231_v62, %s9325_s19  ;;  %v3341_v56 = vadd.f32 %v3340_v6, %v3020_v17  ;;  %v5520_v24 = vmul.f32 %v5154_v43, %v13229_v15  ;;  %v17124_v50 = vld [vmem:[#allocation36_spill] sm:$0xff]  ;;  %v5308_v17 = vsel %vm5240_vm0, %v5154_v43, 0.0  ;;  %v13257_v15 = vor.u32 %v9195_v28, %v8523_v53  ;;  %v17130_v28 = vld [vmem:[#allocation183_spill] sm:$0xff] }
 0x4cc   :  { %v2197_v62 = vadd.f32 %v17124_v50, %v17123_v38  ;;  %v5672_v43 = vadd.f32 %v5671_v18, %v5670_v22  ;;  %v5309_v26 = vadd.f32 %v5308_v17, %v5307_v57  ;;  %v17131_v18 = vld [vmem:[#allocation40_spill] sm:$0xff]  ;;  %v17132_v57 = vld [vmem:[#allocation187_spill] sm:$0xff] }
 0x4cd   :  { %v4191_v4 = vadd.f32 %v4071_v29, %v3341_v56  ;;  %17126 = vst [vmem:[#allocation236_spill] sm:$0xff] %v13257_v15  ;;  %v5673_v31 = vsel %vm5240_vm0, %v5520_v24, 0.0  ;;  %v2200_v17 = vadd.f32 %v17131_v18, %v17130_v28 }
 0x4ce   :  { %v5674_v24 = vadd.f32 %v5673_v31, %v5672_v43 }
 0x4cf   :  { %v4315_v44 = vadd.f32 %v13044_v11, %v4191_v4  ;;  %v13262_v50 = vpop.f32.mrf.mxu3  ;;  %v17128_v4 = vld [vmem:[#allocation161_spill] sm:$0xff] }
 0x4d0   :  { %v2520_v6 = vpop.f32.mrf.mxu2  ;;  %v3022_v56 = vpop.f32.mrf.mxu0 }
 0x4d1   :  { %v13255_v29 = vadd.f32 %v2520_v6, %v2197_v62  ;;  %v5155_v40 = vmul.f32 %v17127_v0, %v4315_v44  ;;  %v3023_v3 = vadd.f32 %v3022_v56, %v13136_v48  ;;  %v3343_v38 = vpop.f32.mrf.mxu1  ;;  %v17129_v48 = vld [vmem:[#allocation316_spill] sm:$0xff] }
 0x4d2   :  { %v4072_v0 = vadd.f32 %v3749_v33, %v17129_v48  ;;  %v17134_v33 = vld [vmem:[#allocation320_spill] sm:$0xff]  ;;  %v17137_v48 = vld [vmem:[#allocation41_spill] sm:$0xff] }
 0x4d3   :  { %17125 = vst [vmem:[#allocation246_spill] sm:$0xff] %v13255_v29  ;;  %3864 = vrot.lane.b32.xlu0 %v13255_v29, %s9325_s19  ;;  %v5310_v7 = vsel %vm5240_vm0, %v5155_v40, 0.0  ;;  %v5521_v62 = vmul.f32 %v5155_v40, %v4315_v44  ;;  %v3344_v39 = vadd.f32 %v3343_v38, %v3023_v3  ;;  %3061 = vmatmul.bf16.gmra.mxu0 %v17128_v4  ;;  %v3751_v44 = vpop.permute.xlu0 %3750  ;;  %v8535_v4 = vld [vmem:[%s16215_s0 + $0x578] sm:$0xf] }
 0x4d4   :  { %v5311_v53 = vadd.f32 %v5310_v7, %v5309_v26  ;;  %3382 = vmatmul.bf16.gmra.mxu1 %v12119_v14  ;;  %2755 = vmatmul.bf16.gmra.mxu3 %v17132_v57  ;;  %v4073_v43 = vadd.f32 %v3751_v44, %v17134_v33  ;;  %v3753_v57 = vpop.permute.xlu2 %3752 }
 0x4d5   :  { %2562 = vmatmul.bf16.gmra.mxu2 %v13257_v15  ;;  %v5675_v22 = vsel %vm5240_vm0, %v5521_v62, 0.0  ;;  %v4192_v40 = vadd.f32 %v4072_v0, %v3344_v39 }
 0x4d6   :  { %v5676_v6 = vadd.f32 %v5675_v22, %v5674_v24  ;;  %v17136_v24 = vld [vmem:[#allocation186_spill] sm:$0xff]  ;;  %v17138_v22 = vld [vmem:[#allocation296_spill] sm:$0xff] }
 0x4d7   :  { %v13278_v14 = vpop.f32.mrf.mxu3  ;;  %v13284_v7 = vadd.f32 %v13044_v11, %v4192_v40  ;;  %v2202_v0 = vadd.f32 %v17137_v48, %v17136_v24 }
 0x4d8   :  { %v2523_v3 = vpop.f32.mrf.mxu2  ;;  %v3024_v26 = vpop.f32.mrf.mxu0 }
 0x4d9   :  { %v13275_v56 = vadd.f32 %v2523_v3, %v2200_v17  ;;  %v3025_v31 = vadd.f32 %v3024_v26, %v13170_v13  ;;  %v3345_v38 = vpop.f32.mrf.mxu1  ;;  %17135 = vst [vmem:[#allocation82_spill] sm:$0xff] %v13284_v7  ;;  %v9198_v13 = vld [vmem:[%s16215_s0 + $0x580] sm:$0xf0]  ;;  %v5156_v28 = vmul.f32 %v17138_v22, %v13284_v7  ;;  %v17142_v26 = vld [vmem:[#allocation286_spill] sm:$0xff] }
 0x4da   :  { %v13301_v44 = vor.u32 %v9198_v13, %v8535_v4  ;;  %v17145_v4 = vld [vmem:[#allocation338_spill] sm:$0xff] }
 0x4db   :  { %17133 = vst [vmem:[#allocation205_spill] sm:$0xff] %v13275_v56  ;;  %3866 = vrot.lane.b32.xlu2 %v13275_v56, %s9325_s19  ;;  %v3346_v62 = vadd.f32 %v3345_v38, %v3025_v31  ;;  %v5522_v24 = vmul.f32 %v5156_v28, %v13284_v7  ;;  %v5312_v13 = vsel %vm5240_vm0, %v5156_v28, 0.0 }
 0x4dc   :  { %17141 = vst [vmem:[#allocation65_spill] sm:$0xff] %v13301_v44 }
 0x4dd   :  { %v4193_v39 = vadd.f32 %v4073_v43, %v3346_v62  ;;  %v17143_v62 = vld [vmem:[#allocation324_spill] sm:$0xff] }
 0x4df   :  { %v13297_v18 = vadd.f32 %v13044_v11, %v4193_v39  ;;  %v13306_v43 = vpop.f32.mrf.mxu3  ;;  %v4074_v39 = vadd.f32 %v3753_v57, %v17143_v62  ;;  %v5677_v57 = vsel %vm5240_vm0, %v5522_v24, 0.0 }
 0x4e0   :  { %v2525_v17 = vpop.f32.mrf.mxu2  ;;  %v3027_v3 = vpop.f32.mrf.mxu0  ;;  %v5678_v24 = vadd.f32 %v5677_v57, %v5676_v6  ;;  %v9201_v6 = vld [vmem:[%s16215_s0 + $0x598] sm:$0xf0]  ;;  %v17152_v57 = vld [vmem:[#allocation196_spill] sm:$0xff] }
 0x4e1   :  { %17139 = vst [vmem:[#allocation235_spill] sm:$0xff] %v13297_v18  ;;  %v13299_v40 = vadd.f32 %v2525_v17, %v2202_v0  ;;  %v5157_v31 = vmul.f32 %v17142_v26, %v13297_v18  ;;  %v3028_v38 = vadd.f32 %v3027_v3, %v13192_v25  ;;  %v3348_v33 = vpop.f32.mrf.mxu1  ;;  %v17144_v0 = vld [vmem:[#allocation171_spill] sm:$0xff]  ;;  %v17146_v17 = vld [vmem:[#allocation193_spill] sm:$0xff] }
 0x4e2   :  { %v17147_v3 = vld [vmem:[#allocation45_spill] sm:$0xff] }
 0x4e3   :  { %17140 = vst [vmem:[#allocation101_spill] sm:$0xff] %v13299_v40  ;;  %3868 = vrot.lane.b32.xlu1 %v13299_v40, %s9325_s19  ;;  %v3349_v48 = vadd.f32 %v3348_v33, %v3028_v38  ;;  %3066 = vmatmul.bf16.gmra.mxu0 %v17144_v0  ;;  %v5523_v25 = vmul.f32 %v5157_v31, %v13297_v18  ;;  %v17148_v40 = vld [vmem:[#allocation197_spill] sm:$0xff]  ;;  %v5314_v38 = vsel %vm5240_vm0, %v5157_v31, 0.0  ;;  %v17150_v18 = vld [vmem:[#allocation91_spill] sm:$0xff] }
 0x4e4   :  { %3387 = vmatmul.bf16.gmra.mxu1 %v17145_v4  ;;  %v2205_v26 = vadd.f32 %v17147_v3, %v17146_v17  ;;  %2760 = vmatmul.bf16.gmra.mxu3 %v17148_v40  ;;  %v5313_v0 = vadd.f32 %v5312_v13, %v5311_v53  ;;  %v3755_v40 = vpop.permute.xlu1 %3754 }
 0x4e5   :  { %2567 = vmatmul.bf16.gmra.mxu2 %v13301_v44  ;;  %v4194_v22 = vadd.f32 %v4074_v39, %v3349_v48  ;;  %v5679_v28 = vsel %vm5240_vm0, %v5523_v25, 0.0  ;;  %v17151_v25 = vld [vmem:[#allocation326_spill] sm:$0xff] }
 0x4e6   :  { %v5315_v56 = vadd.f32 %v5314_v38, %v5313_v0  ;;  %v17153_v38 = vld [vmem:[#allocation46_spill] sm:$0xff] }
 0x4e7   :  { %v4318_v33 = vadd.f32 %v13044_v11, %v4194_v22  ;;  %v13328_v3 = vpop.f32.mrf.mxu3  ;;  %v5680_v22 = vadd.f32 %v5679_v28, %v5678_v24  ;;  %v2207_v0 = vadd.f32 %v17153_v38, %v17152_v57  ;;  %v3757_v28 = vpop.permute.xlu0 %3756  ;;  %v17162_v38 = vld [vmem:[#allocation209_spill] sm:$0xff] }
 0x4e8   :  { %v2528_v62 = vpop.f32.mrf.mxu2  ;;  %v3029_v4 = vpop.f32.mrf.mxu0 }
 0x4e9   :  { %v13323_v7 = vadd.f32 %v2528_v62, %v2205_v26  ;;  %v5158_v39 = vmul.f32 %v17150_v18, %v4318_v33  ;;  %v3030_v48 = vadd.f32 %v3029_v4, %v13212_v19  ;;  %v3350_v17 = vpop.f32.mrf.mxu1  ;;  %v4075_v62 = vadd.f32 %v3755_v40, %v17151_v25  ;;  %v8547_v19 = vld [vmem:[%s16215_s0 + $0x590] sm:$0xf] }
 0x4eb   :  { %17149 = vst [vmem:[#allocation211_spill] sm:$0xff] %v13323_v7  ;;  %3870 = vrot.lane.b32.xlu0 %v13323_v7, %s9325_s19  ;;  %v5316_v53 = vsel %vm5240_vm0, %v5158_v39, 0.0  ;;  %v5524_v31 = vmul.f32 %v5158_v39, %v4318_v33  ;;  %v3351_v13 = vadd.f32 %v3350_v17, %v3030_v48  ;;  %v13345_v17 = vor.u32 %v9201_v6, %v8547_v19  ;;  %v17161_v6 = vld [vmem:[#allocation50_spill] sm:$0xff]  ;;  %v17172_v7 = vld [vmem:[#allocation97_spill] sm:$0xff] }
 0x4ec   :  { %v5317_v26 = vadd.f32 %v5316_v53, %v5315_v56 }
 0x4ed   :  { %v5681_v18 = vsel %vm5240_vm0, %v5524_v31, 0.0  ;;  %v4195_v33 = vadd.f32 %v4075_v62, %v3351_v13  ;;  %17155 = vst [vmem:[#allocation88_spill] sm:$0xff] %v13345_v17  ;;  %v17156_v31 = vld [vmem:[#allocation329_spill] sm:$0xff] }
 0x4ee   :  { %v5682_v4 = vadd.f32 %v5681_v18, %v5680_v22  ;;  %v4076_v25 = vadd.f32 %v3757_v28, %v17156_v31  ;;  %v17158_v62 = vld [vmem:[#allocation181_spill] sm:$0xff]  ;;  %v17166_v31 = vld [vmem:[#allocation291_spill] sm:$0xff] }
 0x4ef   :  { %v13348_v53 = vpop.f32.mrf.mxu3  ;;  %v13354_v22 = vadd.f32 %v13044_v11, %v4195_v33  ;;  %v17159_v18 = vld [vmem:[#allocation341_spill] sm:$0xff] }
 0x4f0   :  { %v2530_v39 = vpop.f32.mrf.mxu2  ;;  %v3032_v48 = vpop.f32.mrf.mxu0 }
 0x4f1   :  { %v13343_v56 = vadd.f32 %v2530_v39, %v2207_v0  ;;  %v3033_v40 = vadd.f32 %v3032_v48, %v13236_v55  ;;  %v3353_v24 = vpop.f32.mrf.mxu1  ;;  %17157 = vst [vmem:[#allocation245_spill] sm:$0xff] %v13354_v22  ;;  %v17160_v55 = vld [vmem:[#allocation203_spill] sm:$0xff]  ;;  %v17163_v0 = vld [vmem:[#allocation301_spill] sm:$0xff]  ;;  %v3759_v48 = vpop.permute.xlu2 %3758 }
 0x4f2   :  { %v2210_v57 = vadd.f32 %v17161_v6, %v17160_v55  ;;  %v5159_v39 = vmul.f32 %v17163_v0, %v13354_v22  ;;  %v17167_v55 = vld [vmem:[#allocation331_spill] sm:$0xff] }
 0x4f3   :  { %17154 = vst [vmem:[#allocation217_spill] sm:$0xff] %v13343_v56  ;;  %3872 = vrot.lane.b32.xlu2 %v13343_v56, %s9325_s19  ;;  %v3354_v13 = vadd.f32 %v3353_v24, %v3033_v40  ;;  %3071 = vmatmul.bf16.gmra.mxu0 %v17158_v62  ;;  %v4077_v6 = vadd.f32 %v3759_v48, %v17167_v55 }
 0x4f4   :  { %3392 = vmatmul.bf16.gmra.mxu1 %v17159_v18  ;;  %2765 = vmatmul.bf16.gmra.mxu3 %v17162_v38 }
 0x4f5   :  { %2572 = vmatmul.bf16.gmra.mxu2 %v13345_v17  ;;  %v4196_v19 = vadd.f32 %v4076_v25, %v3354_v13 }
 0x4f7   :  { %v13365_v28 = vadd.f32 %v13044_v11, %v4196_v19  ;;  %v13372_v18 = vpop.f32.mrf.mxu3  ;;  %v5525_v19 = vmul.f32 %v5159_v39, %v13354_v22 }
 0x4f8   :  { %v2533_v33 = vpop.f32.mrf.mxu2  ;;  %v3034_v24 = vpop.f32.mrf.mxu0 }
 0x4f9   :  { %17164 = vst [vmem:[#allocation109_spill] sm:$0xff] %v13365_v28  ;;  %v13367_v40 = vadd.f32 %v2533_v33, %v2210_v57  ;;  %v5160_v62 = vmul.f32 %v17166_v31, %v13365_v28  ;;  %v3035_v25 = vadd.f32 %v3034_v24, %v13262_v50  ;;  %v3355_v13 = vpop.f32.mrf.mxu1  ;;  %v5318_v57 = vsel %vm5240_vm0, %v5159_v39, 0.0  ;;  %v8559_v50 = vld [vmem:[%s16215_s0 + $0x5a8] sm:$0xf]  ;;  %v9204_v24 = vld [vmem:[%s16215_s0 + $0x5b0] sm:$0xf0] }
 0x4fa   :  { %v17168_v31 = vld [vmem:[#allocation207_spill] sm:$0xff]  ;;  %v5683_v48 = vsel %vm5240_vm0, %v5525_v19, 0.0  ;;  %v5319_v55 = vadd.f32 %v5318_v57, %v5317_v26  ;;  %v3761_v19 = vpop.permute.xlu1 %3760 }
 0x4fb   :  { %17165 = vst [vmem:[#allocation250_spill] sm:$0xff] %v13367_v40  ;;  %3874 = vrot.lane.b32.xlu1 %v13367_v40, %s9325_s19  ;;  %v3356_v38 = vadd.f32 %v3355_v13, %v3035_v25  ;;  %v5526_v0 = vmul.f32 %v5160_v62, %v13365_v28  ;;  %v17169_v40 = vld [vmem:[#allocation52_spill] sm:$0xff]  ;;  %v5320_v25 = vsel %vm5240_vm0, %v5160_v62, 0.0  ;;  %v13393_v28 = vor.u32 %v9204_v24, %v8559_v50 }
 0x4fc   :  { %v2212_v56 = vadd.f32 %v17169_v40, %v17168_v31  ;;  %v5684_v62 = vadd.f32 %v5683_v48, %v5682_v4  ;;  %v5321_v44 = vadd.f32 %v5320_v25, %v5319_v55  ;;  %v17176_v48 = vld [vmem:[#allocation216_spill] sm:$0xff]  ;;  %v17177_v25 = vld [vmem:[#allocation57_spill] sm:$0xff] }
 0x4fd   :  { %v4197_v33 = vadd.f32 %v4077_v6, %v3356_v38  ;;  %17171 = vst [vmem:[#allocation223_spill] sm:$0xff] %v13393_v28  ;;  %v5685_v22 = vsel %vm5240_vm0, %v5526_v0, 0.0 }
 0x4fe   :  { %v5686_v0 = vadd.f32 %v5685_v22, %v5684_v62 }
 0x4ff   :  { %v4321_v39 = vadd.f32 %v13044_v11, %v4197_v33  ;;  %v13398_v31 = vpop.f32.mrf.mxu3  ;;  %v17173_v33 = vld [vmem:[#allocation190_spill] sm:$0xff] }
 0x500   :  { %v2535_v13 = vpop.f32.mrf.mxu2  ;;  %v3037_v38 = vpop.f32.mrf.mxu0 }
 0x501   :  { %v13391_v6 = vadd.f32 %v2535_v13, %v2212_v56  ;;  %v5161_v29 = vmul.f32 %v17172_v7, %v4321_v39  ;;  %v3038_v17 = vadd.f32 %v3037_v38, %v13278_v14  ;;  %v3358_v40 = vpop.f32.mrf.mxu1  ;;  %v17174_v14 = vld [vmem:[#allocation344_spill] sm:$0xff]  ;;  %v17175_v7 = vld [vmem:[#allocation334_spill] sm:$0xff]  ;;  %v2215_v13 = vadd.f32 %v17177_v25, %v17176_v48  ;;  %v17184_v48 = vld [vmem:[#allocation307_spill] sm:$0xff] }
 0x502   :  { %v4078_v24 = vadd.f32 %v3761_v19, %v17175_v7  ;;  %v17178_v38 = vld [vmem:[#allocation222_spill] sm:$0xff]  ;;  %v17180_v19 = vld [vmem:[#allocation337_spill] sm:$0xff]  ;;  %v17182_v7 = vld [vmem:[#allocation220_spill] sm:$0xff] }
 0x503   :  { %17170 = vst [vmem:[#allocation240_spill] sm:$0xff] %v13391_v6  ;;  %3876 = vrot.lane.b32.xlu0 %v13391_v6, %s9325_s19  ;;  %v5322_v26 = vsel %vm5240_vm0, %v5161_v29, 0.0  ;;  %v5527_v56 = vmul.f32 %v5161_v29, %v4321_v39  ;;  %v3359_v57 = vadd.f32 %v3358_v40, %v3038_v17  ;;  %3076 = vmatmul.bf16.gmra.mxu0 %v17173_v33  ;;  %v3763_v39 = vpop.permute.xlu0 %3762 }
 0x504   :  { %v5323_v50 = vadd.f32 %v5322_v26, %v5321_v44  ;;  %3397 = vmatmul.bf16.gmra.mxu1 %v17174_v14  ;;  %2770 = vmatmul.bf16.gmra.mxu3 %v17178_v38  ;;  %v8571_v14 = vld [vmem:[%s16215_s0 + $0x5c0] sm:$0xf] }
 0x505   :  { %2577 = vmatmul.bf16.gmra.mxu2 %v13393_v28  ;;  %v5687_v4 = vsel %vm5240_vm0, %v5527_v56, 0.0  ;;  %v4198_v29 = vadd.f32 %v4078_v24, %v3359_v57  ;;  %v4079_v56 = vadd.f32 %v3763_v39, %v17180_v19  ;;  %v17183_v24 = vld [vmem:[#allocation59_spill] sm:$0xff] }
 0x506   :  { %v5688_v55 = vadd.f32 %v5687_v4, %v5686_v0  ;;  %v2217_v4 = vadd.f32 %v17183_v24, %v17182_v7 }
 0x507   :  { %v13414_v26 = vpop.f32.mrf.mxu3  ;;  %v13420_v33 = vadd.f32 %v13044_v11, %v4198_v29  ;;  %v3765_v29 = vpop.permute.xlu2 %3764 }
 0x508   :  { %v2538_v17 = vpop.f32.mrf.mxu2  ;;  %v3039_v44 = vpop.f32.mrf.mxu0 }
 0x509   :  { %v13411_v40 = vadd.f32 %v2538_v17, %v2215_v13  ;;  %v3040_v22 = vadd.f32 %v3039_v44, %v13306_v43  ;;  %v3360_v62 = vpop.f32.mrf.mxu1  ;;  %17181 = vst [vmem:[#allocation230_spill] sm:$0xff] %v13420_v33  ;;  %v9207_v43 = vld [vmem:[%s16215_s0 + $0x5c8] sm:$0xf0]  ;;  %v5162_v25 = vmul.f32 %v17184_v48, %v13420_v33  ;;  %v17190_v48 = vld [vmem:[#allocation200_spill] sm:$0xff] }
 0x50a   :  { %v13437_v44 = vor.u32 %v9207_v43, %v8571_v14  ;;  %v17191_v14 = vld [vmem:[#allocation347_spill] sm:$0xff] }
 0x50b   :  { %17179 = vst [vmem:[#allocation70_spill] sm:$0xff] %v13411_v40  ;;  %3878 = vrot.lane.b32.xlu2 %v13411_v40, %s9325_s19  ;;  %v3361_v0 = vadd.f32 %v3360_v62, %v3040_v22  ;;  %v17188_v22 = vld [vmem:[#allocation298_spill] sm:$0xff]  ;;  %v5528_v24 = vmul.f32 %v5162_v25, %v13420_v33  ;;  %v5324_v43 = vsel %vm5240_vm0, %v5162_v25, 0.0 }
 0x50c   :  { %17187 = vst [vmem:[#allocation117_spill] sm:$0xff] %v13437_v44 }
 0x50d   :  { %v4199_v57 = vadd.f32 %v4079_v56, %v3361_v0 }
 0x50f   :  { %v13433_v13 = vadd.f32 %v13044_v11, %v4199_v57  ;;  %v13442_v0 = vpop.f32.mrf.mxu3  ;;  %v17189_v57 = vld [vmem:[#allocation96_spill] sm:$0xff] }
 0x510   :  { %v2540_v38 = vpop.f32.mrf.mxu2  ;;  %v3042_v39 = vpop.f32.mrf.mxu0  ;;  %v4080_v7 = vadd.f32 %v3765_v29, %v17189_v57  ;;  %v5689_v29 = vsel %vm5240_vm0, %v5528_v24, 0.0 }
 0x511   :  { %17185 = vst [vmem:[#allocation95_spill] sm:$0xff] %v13433_v13  ;;  %v13435_v17 = vadd.f32 %v2540_v38, %v2217_v4  ;;  %v5163_v62 = vmul.f32 %v17188_v22, %v13433_v13  ;;  %v3043_v19 = vadd.f32 %v3042_v39, %v13328_v3  ;;  %v3363_v56 = vpop.f32.mrf.mxu1  ;;  %v17192_v39 = vld [vmem:[#allocation227_spill] sm:$0xff]  ;;  %v17193_v22 = vld [vmem:[#allocation64_spill] sm:$0xff]  ;;  %v5690_v24 = vadd.f32 %v5689_v29, %v5688_v55  ;;  %v3769_v29 = vpop.permute.xlu0 %3768 }
 0x512   :  { %v2220_v40 = vadd.f32 %v17193_v22, %v17192_v39 }
 0x513   :  { %17186 = vst [vmem:[#allocation256_spill] sm:$0xff] %v13435_v17  ;;  %3880 = vrot.lane.b32.xlu1 %v13435_v17, %s9325_s19  ;;  %v3364_v4 = vadd.f32 %v3363_v56, %v3043_v19  ;;  %3081 = vmatmul.bf16.gmra.mxu0 %v17190_v48  ;;  %v5529_v3 = vmul.f32 %v5163_v62, %v13433_v13  ;;  %v17194_v17 = vld [vmem:[#allocation232_spill] sm:$0xff]  ;;  %v5326_v19 = vsel %vm5240_vm0, %v5163_v62, 0.0  ;;  %v17196_v13 = vld [vmem:[#allocation99_spill] sm:$0xff] }
 0x514   :  { %3402 = vmatmul.bf16.gmra.mxu1 %v17191_v14  ;;  %2775 = vmatmul.bf16.gmra.mxu3 %v17194_v17  ;;  %v5325_v48 = vadd.f32 %v5324_v43, %v5323_v50  ;;  %v3767_v17 = vpop.permute.xlu1 %3766 }
 0x515   :  { %2582 = vmatmul.bf16.gmra.mxu2 %v13437_v44  ;;  %v4200_v38 = vadd.f32 %v4080_v7, %v3364_v4  ;;  %v5691_v25 = vsel %vm5240_vm0, %v5529_v3, 0.0  ;;  %v17197_v3 = vld [vmem:[#allocation340_spill] sm:$0xff] }
 0x516   :  { %v5327_v6 = vadd.f32 %v5326_v19, %v5325_v48 }
 0x517   :  { %v4324_v56 = vadd.f32 %v13044_v11, %v4200_v38  ;;  %v13464_v22 = vpop.f32.mrf.mxu3  ;;  %v5692_v38 = vadd.f32 %v5691_v25, %v5690_v24  ;;  %v17203_v24 = vld [vmem:[#allocation206_spill] sm:$0xff] }
 0x518   :  { %v2543_v57 = vpop.f32.mrf.mxu2  ;;  %v3044_v14 = vpop.f32.mrf.mxu0 }
 0x519   :  { %v13459_v33 = vadd.f32 %v2543_v57, %v2220_v40  ;;  %v5164_v7 = vmul.f32 %v17196_v13, %v4324_v56  ;;  %v3045_v4 = vadd.f32 %v3044_v14, %v13348_v53  ;;  %v3365_v39 = vpop.f32.mrf.mxu1  ;;  %v4081_v57 = vadd.f32 %v3767_v17, %v17197_v3  ;;  %v17198_v53 = vld [vmem:[#allocation231_spill] sm:$0xff]  ;;  %v17199_v14 = vld [vmem:[#allocation66_spill] sm:$0xff]  ;;  %v17202_v17 = vld [vmem:[#allocation213_spill] sm:$0xff] }
 0x51a   :  { %v2222_v44 = vadd.f32 %v17199_v14, %v17198_v53  ;;  %v17206_v3 = vld [vmem:[#allocation242_spill] sm:$0xff]  ;;  %v3771_v14 = vpop.permute.xlu2 %3770 }
 0x51b   :  { %17195 = vst [vmem:[#allocation233_spill] sm:$0xff] %v13459_v33  ;;  %3882 = vrot.lane.b32.xlu0 %v13459_v33, %s9325_s19  ;;  %v5328_v50 = vsel %vm5240_vm0, %v5164_v7, 0.0  ;;  %v5530_v40 = vmul.f32 %v5164_v7, %v4324_v56  ;;  %v3366_v62 = vadd.f32 %v3365_v39, %v3045_v4 }
 0x51c   :  { %v5329_v43 = vadd.f32 %v5328_v50, %v5327_v6  ;;  %v17200_v6 = vld [vmem:[#allocation104_spill] sm:$0xff]  ;;  %v17204_v50 = vld [vmem:[#allocation237_spill] sm:$0xff] }
 0x51d   :  { %v5693_v13 = vsel %vm5240_vm0, %v5530_v40, 0.0  ;;  %v4201_v15 = vadd.f32 %v4081_v57, %v3366_v62  ;;  %v4082_v25 = vadd.f32 %v3769_v29, %v17200_v6  ;;  %v17205_v40 = vld [vmem:[#allocation71_spill] sm:$0xff]  ;;  %v9274_v62 = vld [vmem:[%s16218_s6 + $0x64] sm:$0xf] }
 0x51e   :  { %v5694_v28 = vadd.f32 %v5693_v13, %v5692_v38  ;;  %v8817_v38 = vld [vmem:[%s16218_s6 + $0x68] sm:$0xf0] }
 0x51f   :  { %v13476_v7 = vpop.f32.mrf.mxu3  ;;  %v13482_v4 = vadd.f32 %v13044_v11, %v4201_v15  ;;  %v17207_v15 = vld [vmem:[#allocation312_spill] sm:$0xff]  ;;  %v8820_v53 = vor.u32 %v9274_v62, %v8817_v38  ;;  %v17211_v38 = vld [vmem:[#allocation241_spill] sm:$0xff] }
 0x520   :  { %v2545_v55 = vpop.f32.mrf.mxu2  ;;  %v3047_v48 = vpop.f32.mrf.mxu0 }
 0x521   :  { %v13473_v19 = vadd.f32 %v2545_v55, %v2222_v44  ;;  %v3048_v33 = vadd.f32 %v3047_v48, %v13372_v18  ;;  %v3368_v56 = vpop.f32.mrf.mxu1  ;;  %17201 = vst [vmem:[#allocation258_spill] sm:$0xff] %v13482_v4  ;;  %v2225_v18 = vadd.f32 %v17205_v40, %v17204_v50  ;;  %v17209_v48 = vld [vmem:[#allocation303_spill] sm:$0xff]  ;;  %6604 = vmatpush.bf16.msra.mxu3 %v8820_v53 }
 0x523   :  { %3884 = vrot.lane.b32.xlu2 %v13473_v19, %s9325_s19  ;;  %v3369_v39 = vadd.f32 %v3368_v56, %v3048_v33  ;;  %3086 = vmatmul.bf16.gmra.mxu0 %v17202_v17  ;;  %v5165_v33 = vmul.f32 %v17207_v15, %v13482_v4  ;;  %v17210_v17 = vld [vmem:[#allocation343_spill] sm:$0xff] }
 0x524   :  { %3407 = vmatmul.bf16.gmra.mxu1 %v17203_v24  ;;  %2780 = vmatmul.bf16.gmra.mxu3 %v17206_v3  ;;  %v4083_v24 = vadd.f32 %v3771_v14, %v17210_v17  ;;  %v17212_v3 = vld [vmem:[#allocation73_spill] sm:$0xff] }
 0x525   :  { %v4202_v44 = vadd.f32 %v4082_v25, %v3369_v39  ;;  %v5330_v40 = vsel %vm5240_vm0, %v5165_v33, 0.0 }
 0x526   :  { %v5331_v14 = vadd.f32 %v5330_v40, %v5329_v43 }
 0x527   :  { %v13498_v57 = vadd.f32 %v13044_v11, %v4202_v44  ;;  %v13505_v39 = vpop.f32.mrf.mxu3  ;;  %v5531_v44 = vmul.f32 %v5165_v33, %v13482_v4  ;;  %v17217_v4 = vld [vmem:[#allocation352_spill] sm:$0xff] }
 0x528   :  { %v2548_v13 = vpop.f32.mrf.mxu2  ;;  %v3049_v29 = vpop.f32.mrf.mxu0 }
 0x529   :  { %17208 = vst [vmem:[#allocation248_spill] sm:$0xff] %v13498_v57  ;;  %v13500_v55 = vadd.f32 %v2548_v13, %v2225_v18  ;;  %v5166_v56 = vmul.f32 %v17209_v48, %v13498_v57  ;;  %v3050_v6 = vadd.f32 %v3049_v29, %v13398_v31  ;;  %v3370_v25 = vpop.f32.mrf.mxu1  ;;  %v2227_v31 = vadd.f32 %v17212_v3, %v17211_v38  ;;  %v3773_v48 = vpop.permute.xlu1 %3772 }
 0x52a   :  { %v5695_v15 = vsel %vm5240_vm0, %v5531_v44, 0.0 }
 0x52b   :  { %3886 = vrot.lane.b32.xlu1 %v13500_v55, %s9325_s19  ;;  %v3371_v50 = vadd.f32 %v3370_v25, %v3050_v6  ;;  %v5532_v18 = vmul.f32 %v5166_v56, %v13498_v57  ;;  %v5332_v13 = vsel %vm5240_vm0, %v5166_v56, 0.0  ;;  %v17214_v25 = vld [vmem:[#allocation105_spill] sm:$0xff]  ;;  %v5696_v44 = vadd.f32 %v5695_v15, %v5694_v28  ;;  %v17215_v56 = vld [vmem:[#allocation19_spill] sm:$0xff]  ;;  %v17219_v15 = vld [vmem:[#allocation78_spill] sm:$0xff] }
 0x52c   :  { %v5333_v3 = vadd.f32 %v5332_v13, %v5331_v14  ;;  %v17218_v28 = vld [vmem:[#allocation247_spill] sm:$0xff] }
 0x52d   :  { %v4203_v62 = vadd.f32 %v4083_v24, %v3371_v50  ;;  %v5697_v33 = vsel %vm5240_vm0, %v5532_v18, 0.0  ;;  %v2230_v13 = vadd.f32 %v17219_v15, %v17218_v28  ;;  %v13552_v15 = vld [vmem:[%s16217_s2] ss:$0 sm:$0xff] }
 0x52e   :  { %v5698_v18 = vadd.f32 %v5697_v33, %v5696_v44  ;;  %v17222_v33 = vld [vmem:[#allocation317_spill] sm:$0xff] }
 0x52f   :  { %v4327_v53 = vadd.f32 %v13044_v11, %v4203_v62  ;;  %v13523_v38 = vpop.f32.mrf.mxu3  ;;  %v4084_v62 = vadd.f32 %v3773_v48, %v17215_v56 }
 0x530   :  { %v2550_v29 = vpop.f32.mrf.mxu2  ;;  %v3052_v6 = vpop.f32.mrf.mxu0 }
 0x531   :  { %v13518_v17 = vadd.f32 %v2550_v29, %v2227_v31  ;;  %v5167_v57 = vmul.f32 %v17214_v25, %v4327_v53  ;;  %v3053_v24 = vadd.f32 %v3052_v6, %v13414_v26  ;;  %v3373_v50 = vpop.f32.mrf.mxu1  ;;  %v17216_v29 = vld [vmem:[#allocation224_spill] sm:$0xff] }
 0x533   :  { %17213 = vst [vmem:[#allocation239_spill] sm:$0xff] %v13518_v17  ;;  %3888 = vrot.lane.b32.xlu0 %v13518_v17, %s9325_s19  ;;  %v5334_v43 = vsel %vm5240_vm0, %v5167_v57, 0.0  ;;  %v5533_v40 = vmul.f32 %v5167_v57, %v4327_v53  ;;  %v3374_v31 = vadd.f32 %v3373_v50, %v3053_v24  ;;  %3091 = vmatmul.bf16.gmra.mxu0 %v17216_v29  ;;  %v17220_v17 = vld [vmem:[#allocation252_spill] sm:$0xff]  ;;  %v3775_v57 = vpop.permute.xlu0 %3774 }
 0x534   :  { %v5335_v25 = vadd.f32 %v5334_v43, %v5333_v3  ;;  %3412 = vmatmul.bf16.gmra.mxu1 %v17217_v4  ;;  %2785 = vmatmul.bf16.gmra.mxu3 %v17220_v17 }
 0x535   :  { %v5699_v26 = vsel %vm5240_vm0, %v5533_v40, 0.0  ;;  %v4204_v6 = vadd.f32 %v4084_v62, %v3374_v31  ;;  %v17223_v62 = vld [vmem:[#allocation346_spill] sm:$0xff] }
 0x536   :  { %v5700_v14 = vadd.f32 %v5699_v26, %v5698_v18  ;;  %v4085_v43 = vadd.f32 %v3775_v57, %v17223_v62  ;;  %v17224_v26 = vld [vmem:[#allocation251_spill] sm:$0xff]  ;;  %v3777_v57 = vpop.permute.xlu2 %3776 }
 0x537   :  { %v4328_v48 = vadd.f32 %v13044_v11, %v4204_v6  ;;  %v13540_v3 = vpop.f32.mrf.mxu3  ;;  %v17225_v6 = vld [vmem:[#allocation80_spill] sm:$0xff] }
 0x538   :  { %v2553_v56 = vpop.f32.mrf.mxu2  ;;  %v3054_v24 = vpop.f32.mrf.mxu0  ;;  %v2232_v28 = vadd.f32 %v17225_v6, %v17224_v26  ;;  %v17231_v6 = vld [vmem:[#allocation257_spill] sm:$0xff] }
 0x539   :  { %v13536_v53 = vadd.f32 %v2553_v56, %v2230_v13  ;;  %v5168_v50 = vmul.f32 %v17222_v33, %v4328_v48  ;;  %v3055_v4 = vadd.f32 %v3054_v24, %v13442_v0  ;;  %v3375_v44 = vpop.f32.mrf.mxu1 }
 0x53b   :  { %17221 = vst [vmem:[#allocation103_spill] sm:$0xff] %v13536_v53  ;;  %3890 = vrot.lane.b32.xlu2 %v13536_v53, %s9325_s19  ;;  %v5336_v17 = vsel %vm5240_vm0, %v5168_v50, 0.0  ;;  %v5534_v11 = vmul.f32 %v5168_v50, %v4328_v48  ;;  %v3376_v40 = vadd.f32 %v3375_v44, %v3055_v4 }
 0x53c   :  { %v5337_v31 = vadd.f32 %v5336_v17, %v5335_v25  ;;  %v17227_v25 = vld [vmem:[#allocation309_spill] sm:$0xff] }
 0x53d   :  { %v5701_v29 = vsel %vm5240_vm0, %v5534_v11, 0.0  ;;  %v4205_v18 = vadd.f32 %v4085_v43, %v3376_v40  ;;  %v17229_v40 = vld [vmem:[#allocation234_spill] sm:$0xff] }
 0x53e   :  { %v5702_v0 = vadd.f32 %v5701_v29, %v5700_v14  ;;  %v17228_v14 = vld [vmem:[#allocation120_spill] sm:$0xff] }
 0x53f   :  { %v4329_v13 = vadd.f32 %v13552_v15, %v4205_v18  ;;  %v13559_v44 = vpop.f32.mrf.mxu3  ;;  %v4086_v62 = vadd.f32 %v3777_v57, %v17228_v14  ;;  %v17230_v18 = vld [vmem:[#allocation355_spill] sm:$0xff] }
 0x540   :  { %v2555_v56 = vpop.f32.mrf.mxu2  ;;  %v3057_v48 = vpop.f32.mrf.mxu0 }
 0x541   :  { %v13555_v24 = vadd.f32 %v2555_v56, %v2232_v28  ;;  %v5169_v33 = vmul.f32 %v17227_v25, %v4329_v13  ;;  %v3058_v50 = vadd.f32 %v3057_v48, %v13464_v22  ;;  %v3378_v4 = vpop.f32.mrf.mxu1  ;;  %v17232_v28 = vld [vmem:[#allocation84_spill] sm:$0xff]  ;;  %v17233_v25 = vld [vmem:[#allocation262_spill] sm:$0xff] }
 0x542   :  { %v2235_v56 = vadd.f32 %v17232_v28, %v17231_v6  ;;  %v17237_v28 = vld [vmem:[#allocation261_spill] sm:$0xff] }
 0x543   :  { %17226 = vst [vmem:[#allocation266_spill] sm:$0xff] %v13555_v24  ;;  %3892 = vrot.lane.b32.xlu1 %v13555_v24, %s9325_s19  ;;  %v5338_v43 = vsel %vm5240_vm0, %v5169_v33, 0.0  ;;  %v5535_v17 = vmul.f32 %v5169_v33, %v4329_v13  ;;  %v3379_v11 = vadd.f32 %v3378_v4, %v3058_v50  ;;  %3096 = vmatmul.bf16.gmra.mxu0 %v17229_v40  ;;  %v3779_v24 = vpop.permute.xlu1 %3778  ;;  %v17235_v50 = vld [vmem:[#allocation107_spill] sm:$0xff] }
 0x544   :  { %v5339_v29 = vadd.f32 %v5338_v43, %v5337_v31  ;;  %3417 = vmatmul.bf16.gmra.mxu1 %v17230_v18  ;;  %2790 = vmatmul.bf16.gmra.mxu3 %v17233_v25 }
 0x545   :  { %v5703_v26 = vsel %vm5240_vm0, %v5535_v17, 0.0  ;;  %v4206_v22 = vadd.f32 %v4086_v62, %v3379_v11 }
 0x546   :  { %v5704_v48 = vadd.f32 %v5703_v26, %v5702_v0  ;;  %v17236_v0 = vld [vmem:[#allocation202_spill] sm:$0xff] }
 0x547   :  { %v4330_v57 = vadd.f32 %v13552_v15, %v4206_v22  ;;  %v13576_v17 = vpop.f32.mrf.mxu3  ;;  %v4087_v62 = vadd.f32 %v3779_v24, %v17236_v0  ;;  %v17240_v24 = vld [vmem:[#allocation322_spill] sm:$0xff] }
 0x548   :  { %v2558_v14 = vpop.f32.mrf.mxu2  ;;  %v3059_v33 = vpop.f32.mrf.mxu0 }
 0x549   :  { %v13572_v13 = vadd.f32 %v2558_v14, %v2235_v56  ;;  %v5170_v31 = vmul.f32 %v17235_v50, %v4330_v57  ;;  %v3060_v4 = vadd.f32 %v3059_v33, %v13476_v7  ;;  %v3380_v43 = vpop.f32.mrf.mxu1  ;;  %v17238_v56 = vld [vmem:[#allocation86_spill] sm:$0xff]  ;;  %v3781_v50 = vpop.permute.xlu0 %3780 }
 0x54a   :  { %v2237_v25 = vadd.f32 %v17238_v56, %v17237_v28  ;;  %v17245_v28 = vld [vmem:[#allocation90_spill] sm:$0xff] }
 0x54b   :  { %17234 = vst [vmem:[#allocation124_spill] sm:$0xff] %v13572_v13  ;;  %3894 = vrot.lane.b32.xlu0 %v13572_v13, %s9325_s19  ;;  %v5340_v11 = vsel %vm5240_vm0, %v5170_v31, 0.0  ;;  %v5536_v40 = vmul.f32 %v5170_v31, %v4330_v57  ;;  %v3381_v18 = vadd.f32 %v3380_v43, %v3060_v4  ;;  %v17241_v4 = vld [vmem:[#allocation127_spill] sm:$0xff] }
 0x54c   :  { %v5341_v26 = vadd.f32 %v5340_v11, %v5339_v29  ;;  %v4088_v43 = vadd.f32 %v3781_v50, %v17241_v4  ;;  %v3783_v4 = vpop.permute.xlu2 %3782 }
 0x54d   :  { %v5705_v22 = vsel %vm5240_vm0, %v5536_v40, 0.0  ;;  %v4207_v6 = vadd.f32 %v4087_v62, %v3381_v18  ;;  %v17242_v40 = vld [vmem:[#allocation244_spill] sm:$0xff] }
 0x54e   :  { %v5706_v7 = vadd.f32 %v5705_v22, %v5704_v48  ;;  %v17243_v22 = vld [vmem:[#allocation358_spill] sm:$0xff] }
 0x54f   :  { %v4331_v14 = vadd.f32 %v13552_v15, %v4207_v6  ;;  %v13590_v29 = vpop.f32.mrf.mxu3 }
 0x550   :  { %v2560_v33 = vpop.f32.mrf.mxu2  ;;  %v3062_v13 = vpop.f32.mrf.mxu0 }
 0x551   :  { %v13586_v53 = vadd.f32 %v2560_v33, %v2237_v25  ;;  %v5171_v0 = vmul.f32 %v17240_v24, %v4331_v14  ;;  %v3063_v57 = vadd.f32 %v3062_v13, %v13505_v39  ;;  %v3383_v31 = vpop.f32.mrf.mxu1  ;;  %v17244_v13 = vld [vmem:[#allocation268_spill] sm:$0xff]  ;;  %v17246_v33 = vld [vmem:[#allocation273_spill] sm:$0xff] }
 0x552   :  { %v2240_v56 = vadd.f32 %v17245_v28, %v17244_v13  ;;  %v17250_v28 = vld [vmem:[#allocation271_spill] sm:$0xff] }
 0x553   :  { %17239 = vst [vmem:[#allocation72_spill] sm:$0xff] %v13586_v53  ;;  %3896 = vrot.lane.b32.xlu2 %v13586_v53, %s9325_s19  ;;  %v5342_v48 = vsel %vm5240_vm0, %v5171_v0, 0.0  ;;  %v5537_v62 = vmul.f32 %v5171_v0, %v4331_v14  ;;  %v3384_v11 = vadd.f32 %v3383_v31, %v3063_v57  ;;  %3101 = vmatmul.bf16.gmra.mxu0 %v17242_v40  ;;  %v17248_v57 = vld [vmem:[#allocation315_spill] sm:$0xff] }
 0x554   :  { %v5343_v18 = vadd.f32 %v5342_v48, %v5341_v26  ;;  %3422 = vmatmul.bf16.gmra.mxu1 %v17243_v22  ;;  %2795 = vmatmul.bf16.gmra.mxu3 %v17246_v33 }
 0x555   :  { %v5707_v6 = vsel %vm5240_vm0, %v5537_v62, 0.0  ;;  %v4208_v39 = vadd.f32 %v4088_v43, %v3384_v11 }
 0x556   :  { %v5708_v25 = vadd.f32 %v5707_v6, %v5706_v7  ;;  %v17249_v7 = vld [vmem:[#allocation351_spill] sm:$0xff] }
 0x557   :  { %v4332_v50 = vadd.f32 %v13552_v15, %v4208_v39  ;;  %v13607_v62 = vpop.f32.mrf.mxu3  ;;  %v4089_v43 = vadd.f32 %v3783_v4, %v17249_v7  ;;  %v17253_v4 = vld [vmem:[#allocation113_spill] sm:$0xff] }
 0x558   :  { %v2563_v24 = vpop.f32.mrf.mxu2  ;;  %v3064_v0 = vpop.f32.mrf.mxu0 }
 0x559   :  { %v13603_v14 = vadd.f32 %v2563_v24, %v2240_v56  ;;  %v5172_v26 = vmul.f32 %v17248_v57, %v4332_v50  ;;  %v3065_v31 = vadd.f32 %v3064_v0, %v13523_v38  ;;  %v3385_v48 = vpop.f32.mrf.mxu1  ;;  %v17251_v56 = vld [vmem:[#allocation92_spill] sm:$0xff]  ;;  %v3785_v57 = vpop.permute.xlu1 %3784 }
 0x55a   :  { %v2242_v33 = vadd.f32 %v17251_v56, %v17250_v28  ;;  %v17258_v28 = vld [vmem:[#allocation98_spill] sm:$0xff] }
 0x55b   :  { %17247 = vst [vmem:[#allocation243_spill] sm:$0xff] %v13603_v14  ;;  %3898 = vrot.lane.b32.xlu1 %v13603_v14, %s9325_s19  ;;  %v5344_v11 = vsel %vm5240_vm0, %v5172_v26, 0.0  ;;  %v5538_v40 = vmul.f32 %v5172_v26, %v4332_v50  ;;  %v3386_v22 = vadd.f32 %v3385_v48, %v3065_v31  ;;  %v17254_v31 = vld [vmem:[#allocation133_spill] sm:$0xff] }
 0x55c   :  { %v5345_v6 = vadd.f32 %v5344_v11, %v5343_v18  ;;  %v4090_v48 = vadd.f32 %v3785_v57, %v17254_v31  ;;  %v3787_v31 = vpop.permute.xlu0 %3786 }
 0x55d   :  { %v5709_v39 = vsel %vm5240_vm0, %v5538_v40, 0.0  ;;  %v4209_v13 = vadd.f32 %v4089_v43, %v3386_v22  ;;  %v17255_v40 = vld [vmem:[#allocation255_spill] sm:$0xff] }
 0x55e   :  { %v5710_v38 = vadd.f32 %v5709_v39, %v5708_v25  ;;  %v17256_v39 = vld [vmem:[#allocation361_spill] sm:$0xff] }
 0x55f   :  { %v4333_v24 = vadd.f32 %v13552_v15, %v4209_v13  ;;  %v13621_v18 = vpop.f32.mrf.mxu3 }
 0x560   :  { %v2565_v0 = vpop.f32.mrf.mxu2  ;;  %v3067_v14 = vpop.f32.mrf.mxu0 }
 0x561   :  { %v13617_v53 = vadd.f32 %v2565_v0, %v2242_v33  ;;  %v5173_v7 = vmul.f32 %v17253_v4, %v4333_v24  ;;  %v3068_v50 = vadd.f32 %v3067_v14, %v13540_v3  ;;  %v3388_v26 = vpop.f32.mrf.mxu1  ;;  %v17257_v14 = vld [vmem:[#allocation278_spill] sm:$0xff]  ;;  %v17259_v0 = vld [vmem:[#allocation283_spill] sm:$0xff] }
 0x562   :  { %v2245_v56 = vadd.f32 %v17258_v28, %v17257_v14  ;;  %v17263_v28 = vld [vmem:[#allocation281_spill] sm:$0xff] }
 0x563   :  { %17252 = vst [vmem:[#allocation249_spill] sm:$0xff] %v13617_v53  ;;  %3900 = vrot.lane.b32.xlu0 %v13617_v53, %s9325_s19  ;;  %v5346_v25 = vsel %vm5240_vm0, %v5173_v7, 0.0  ;;  %v5539_v43 = vmul.f32 %v5173_v7, %v4333_v24  ;;  %v3389_v11 = vadd.f32 %v3388_v26, %v3068_v50  ;;  %3106 = vmatmul.bf16.gmra.mxu0 %v17255_v40  ;;  %v17261_v50 = vld [vmem:[#allocation325_spill] sm:$0xff] }
 0x564   :  { %v5347_v22 = vadd.f32 %v5346_v25, %v5345_v6  ;;  %3427 = vmatmul.bf16.gmra.mxu1 %v17256_v39  ;;  %2800 = vmatmul.bf16.gmra.mxu3 %v17259_v0 }
 0x565   :  { %v5711_v13 = vsel %vm5240_vm0, %v5539_v43, 0.0  ;;  %v4210_v3 = vadd.f32 %v4090_v48, %v3389_v11 }
 0x566   :  { %v5712_v33 = vadd.f32 %v5711_v13, %v5710_v38  ;;  %v17262_v38 = vld [vmem:[#allocation354_spill] sm:$0xff] }
 0x567   :  { %v4334_v57 = vadd.f32 %v13552_v15, %v4210_v3  ;;  %v13638_v43 = vpop.f32.mrf.mxu3  ;;  %v4091_v48 = vadd.f32 %v3787_v31, %v17262_v38  ;;  %v17266_v31 = vld [vmem:[#allocation318_spill] sm:$0xff] }
 0x568   :  { %v2568_v4 = vpop.f32.mrf.mxu2  ;;  %v3069_v7 = vpop.f32.mrf.mxu0 }
 0x569   :  { %v13634_v24 = vadd.f32 %v2568_v4, %v2245_v56  ;;  %v5174_v6 = vmul.f32 %v17261_v50, %v4334_v57  ;;  %v3070_v26 = vadd.f32 %v3069_v7, %v13559_v44  ;;  %v3390_v25 = vpop.f32.mrf.mxu1  ;;  %v17264_v56 = vld [vmem:[#allocation100_spill] sm:$0xff]  ;;  %v3789_v50 = vpop.permute.xlu2 %3788 }
 0x56a   :  { %v2247_v0 = vadd.f32 %v17264_v56, %v17263_v28  ;;  %v17271_v28 = vld [vmem:[#allocation106_spill] sm:$0xff] }
 0x56b   :  { %17260 = vst [vmem:[#allocation111_spill] sm:$0xff] %v13634_v24  ;;  %3902 = vrot.lane.b32.xlu2 %v13634_v24, %s9325_s19  ;;  %v5348_v11 = vsel %vm5240_vm0, %v5174_v6, 0.0  ;;  %v5540_v40 = vmul.f32 %v5174_v6, %v4334_v57  ;;  %v3391_v39 = vadd.f32 %v3390_v25, %v3070_v26  ;;  %v17267_v26 = vld [vmem:[#allocation139_spill] sm:$0xff] }
 0x56c   :  { %v5349_v13 = vadd.f32 %v5348_v11, %v5347_v22  ;;  %v4092_v25 = vadd.f32 %v3789_v50, %v17267_v26  ;;  %v3791_v26 = vpop.permute.xlu1 %3790 }
 0x56d   :  { %v5713_v3 = vsel %vm5240_vm0, %v5540_v40, 0.0  ;;  %v4211_v14 = vadd.f32 %v4091_v48, %v3391_v39  ;;  %v17268_v40 = vld [vmem:[#allocation265_spill] sm:$0xff] }
 0x56e   :  { %v5714_v44 = vadd.f32 %v5713_v3, %v5712_v33  ;;  %v17269_v3 = vld [vmem:[#allocation364_spill] sm:$0xff] }
 0x56f   :  { %v4335_v4 = vadd.f32 %v13552_v15, %v4211_v14  ;;  %v13652_v22 = vpop.f32.mrf.mxu3 }
 0x570   :  { %v2570_v7 = vpop.f32.mrf.mxu2  ;;  %v3072_v24 = vpop.f32.mrf.mxu0 }
 0x571   :  { %v13648_v53 = vadd.f32 %v2570_v7, %v2247_v0  ;;  %v5175_v38 = vmul.f32 %v17266_v31, %v4335_v4  ;;  %v3073_v57 = vadd.f32 %v3072_v24, %v13576_v17  ;;  %v3393_v6 = vpop.f32.mrf.mxu1  ;;  %v17270_v24 = vld [vmem:[#allocation288_spill] sm:$0xff] }
 0x572   :  { %v2250_v56 = vadd.f32 %v17271_v28, %v17270_v24  ;;  %v17272_v7 = vld [vmem:[#allocation292_spill] sm:$0xff]  ;;  %v17276_v28 = vld [vmem:[#allocation295_spill] sm:$0xff] }
 0x573   :  { %17265 = vst [vmem:[#allocation276_spill] sm:$0xff] %v13648_v53  ;;  %3904 = vrot.lane.b32.xlu1 %v13648_v53, %s9325_s19  ;;  %v5350_v33 = vsel %vm5240_vm0, %v5175_v38, 0.0  ;;  %v5541_v48 = vmul.f32 %v5175_v38, %v4335_v4  ;;  %v3394_v11 = vadd.f32 %v3393_v6, %v3073_v57  ;;  %3111 = vmatmul.bf16.gmra.mxu0 %v17268_v40  ;;  %v17274_v57 = vld [vmem:[#allocation115_spill] sm:$0xff] }
 0x574   :  { %v5351_v39 = vadd.f32 %v5350_v33, %v5349_v13  ;;  %3432 = vmatmul.bf16.gmra.mxu1 %v17269_v3  ;;  %2805 = vmatmul.bf16.gmra.mxu3 %v17272_v7 }
 0x575   :  { %v5715_v14 = vsel %vm5240_vm0, %v5541_v48, 0.0  ;;  %v4212_v17 = vadd.f32 %v4092_v25, %v3394_v11 }
 0x576   :  { %v5716_v0 = vadd.f32 %v5715_v14, %v5714_v44  ;;  %v17275_v44 = vld [vmem:[#allocation357_spill] sm:$0xff] }
 0x577   :  { %v4336_v50 = vadd.f32 %v13552_v15, %v4212_v17  ;;  %v13669_v48 = vpop.f32.mrf.mxu3  ;;  %v4093_v25 = vadd.f32 %v3791_v26, %v17275_v44  ;;  %v17279_v26 = vld [vmem:[#allocation328_spill] sm:$0xff] }
 0x578   :  { %v2573_v31 = vpop.f32.mrf.mxu2  ;;  %v3074_v38 = vpop.f32.mrf.mxu0 }
 0x579   :  { %v13665_v4 = vadd.f32 %v2573_v31, %v2250_v56  ;;  %v5176_v13 = vmul.f32 %v17274_v57, %v4336_v50  ;;  %v3075_v6 = vadd.f32 %v3074_v38, %v13590_v29  ;;  %v3395_v33 = vpop.f32.mrf.mxu1  ;;  %v17277_v56 = vld [vmem:[#allocation108_spill] sm:$0xff]  ;;  %v3793_v57 = vpop.permute.xlu0 %3792 }
 0x57a   :  { %v2252_v7 = vadd.f32 %v17277_v56, %v17276_v28  ;;  %v17284_v28 = vld [vmem:[#allocation114_spill] sm:$0xff] }
 0x57b   :  { %17273 = vst [vmem:[#allocation130_spill] sm:$0xff] %v13665_v4  ;;  %3906 = vrot.lane.b32.xlu0 %v13665_v4, %s9325_s19  ;;  %v5352_v11 = vsel %vm5240_vm0, %v5176_v13, 0.0  ;;  %v5542_v40 = vmul.f32 %v5176_v13, %v4336_v50  ;;  %v3396_v3 = vadd.f32 %v3395_v33, %v3075_v6  ;;  %v17280_v6 = vld [vmem:[#allocation42_spill] sm:$0xff] }
 0x57c   :  { %v5353_v14 = vadd.f32 %v5352_v11, %v5351_v39  ;;  %v4094_v33 = vadd.f32 %v3793_v57, %v17280_v6  ;;  %v3795_v6 = vpop.permute.xlu2 %3794 }
 0x57d   :  { %v5717_v17 = vsel %vm5240_vm0, %v5542_v40, 0.0  ;;  %v4213_v24 = vadd.f32 %v4093_v25, %v3396_v3  ;;  %v17281_v40 = vld [vmem:[#allocation275_spill] sm:$0xff] }
 0x57e   :  { %v5718_v29 = vadd.f32 %v5717_v17, %v5716_v0  ;;  %v17282_v17 = vld [vmem:[#allocation366_spill] sm:$0xff] }
 0x57f   :  { %v4337_v31 = vadd.f32 %v13552_v15, %v4213_v24  ;;  %v13685_v39 = vpop.f32.mrf.mxu3 }
 0x580   :  { %v2575_v38 = vpop.f32.mrf.mxu2  ;;  %v3077_v4 = vpop.f32.mrf.mxu0 }
 0x581   :  { %v13679_v53 = vadd.f32 %v2575_v38, %v2252_v7  ;;  %v5177_v44 = vmul.f32 %v17279_v26, %v4337_v31  ;;  %v3078_v50 = vadd.f32 %v3077_v4, %v13607_v62  ;;  %v3398_v13 = vpop.f32.mrf.mxu1  ;;  %v17283_v4 = vld [vmem:[#allocation300_spill] sm:$0xff]  ;;  %v17285_v38 = vld [vmem:[#allocation302_spill] sm:$0xff] }
 0x582   :  { %v2255_v56 = vadd.f32 %v17284_v28, %v17283_v4  ;;  %v17288_v28 = vld [vmem:[#allocation306_spill] sm:$0xff] }
 0x583   :  { %17278 = vst [vmem:[#allocation263_spill] sm:$0xff] %v13679_v53  ;;  %3908 = vrot.lane.b32.xlu2 %v13679_v53, %s9325_s19  ;;  %v5354_v0 = vsel %vm5240_vm0, %v5177_v44, 0.0  ;;  %v5543_v25 = vmul.f32 %v5177_v44, %v4337_v31  ;;  %v3399_v11 = vadd.f32 %v3398_v13, %v3078_v50  ;;  %3116 = vmatmul.bf16.gmra.mxu0 %v17281_v40  ;;  %v17286_v50 = vld [vmem:[#allocation323_spill] sm:$0xff] }
 0x584   :  { %v5355_v3 = vadd.f32 %v5354_v0, %v5353_v14  ;;  %3437 = vmatmul.bf16.gmra.mxu1 %v17282_v17  ;;  %2810 = vmatmul.bf16.gmra.mxu3 %v17285_v38 }
 0x585   :  { %v5719_v24 = vsel %vm5240_vm0, %v5543_v25, 0.0  ;;  %v4214_v62 = vadd.f32 %v4094_v33, %v3399_v11  ;;  %v17287_v25 = vld [vmem:[#allocation360_spill] sm:$0xff] }
 0x586   :  { %v5720_v7 = vadd.f32 %v5719_v24, %v5718_v29  ;;  %v4095_v11 = vadd.f32 %v3795_v6, %v17287_v25  ;;  %v17290_v25 = vld [vmem:[#allocation121_spill] sm:$0xff] }
 0x587   :  { %v4338_v57 = vadd.f32 %v13552_v15, %v4214_v62  ;;  %v13699_v33 = vpop.f32.mrf.mxu3 }
 0x588   :  { %v2578_v26 = vpop.f32.mrf.mxu2  ;;  %v3079_v44 = vpop.f32.mrf.mxu0 }
 0x589   :  { %v2579_v31 = vadd.f32 %v2578_v26, %v2255_v56  ;;  %v5178_v13 = vmul.f32 %v17286_v50, %v4338_v57  ;;  %v3080_v14 = vadd.f32 %v3079_v44, %v13621_v18  ;;  %v3400_v0 = vpop.f32.mrf.mxu1  ;;  %v17289_v56 = vld [vmem:[#allocation116_spill] sm:$0xff] }
 0x58a   :  { %v2257_v38 = vadd.f32 %v17289_v56, %v17288_v28  ;;  %v17294_v56 = vld [vmem:[#allocation310_spill] sm:$0xff] }
 0x58b   :  { %3910 = vrot.lane.b32.xlu1 %v2579_v31, %s9325_s19  ;;  %v5356_v29 = vsel %vm5240_vm0, %v5178_v13, 0.0  ;;  %v5544_v40 = vmul.f32 %v5178_v13, %v4338_v57  ;;  %v3401_v17 = vadd.f32 %v3400_v0, %v3080_v14  ;;  %v4517_v31 = vld [vmem:[%s16216_s5 + $0x3a8] sm:$0xff]  ;;  %v3797_v14 = vpop.permute.xlu1 %3796 }
 0x58c   :  { %v5357_v24 = vadd.f32 %v5356_v29, %v5355_v3 }
 0x58d   :  { %v5721_v62 = vsel %vm5240_vm0, %v5544_v40, 0.0  ;;  %v4215_v4 = vadd.f32 %v4095_v11, %v3401_v17  ;;  %v17291_v40 = vld [vmem:[#allocation285_spill] sm:$0xff] }
 0x58e   :  { %v5722_v26 = vadd.f32 %v5721_v62, %v5720_v7  ;;  %v17292_v62 = vld [vmem:[#allocation367_spill] sm:$0xff] }
 0x58f   :  { %v4339_v18 = vadd.f32 %v13552_v15, %v4215_v4  ;;  %v13713_v0 = vpop.f32.mrf.mxu3  ;;  %v17293_v4 = vld [vmem:[#allocation153_spill] sm:$0xff] }
 0x590   :  { %v2580_v44 = vpop.f32.mrf.mxu2  ;;  %v3082_v50 = vpop.f32.mrf.mxu0  ;;  %v4096_v28 = vadd.f32 %v3797_v14, %v17293_v4 }
 0x591   :  { %v2581_v6 = vadd.f32 %v2580_v44, %v2257_v38  ;;  %v5179_v57 = vmul.f32 %v17290_v25, %v4339_v18  ;;  %v3083_v3 = vadd.f32 %v3082_v50, %v13638_v43  ;;  %v3403_v13 = vpop.f32.mrf.mxu1  ;;  %v17295_v38 = vld [vmem:[#allocation122_spill] sm:$0xff] }
 0x592   :  { %v2260_v44 = vadd.f32 %v17295_v38, %v17294_v56  ;;  %v7116_v38 = vld [vmem:[%s16219_s10 + $0x20] sm:$0xff] }
 0x593   :  { %5107 = vperm.xlu1 %9306, %v4517_v31   ;;  %3912 = vrot.lane.b32.xlu0 %v2581_v6, %s9325_s19  ;;  %v5358_v7 = vsel %vm5240_vm0, %v5179_v57, 0.0  ;;  %v5545_v11 = vmul.f32 %v5179_v57, %v4339_v18  ;;  %v3404_v29 = vadd.f32 %v3403_v13, %v3083_v3  ;;  %v17296_v6 = vld [vmem:[#allocation311_spill] sm:$0xff]  ;;  %v7113_v18 = vld [vmem:[%s16219_s10 + $0x8] sm:$0xff]  ;;  %v3799_v57 = vpop.permute.xlu0 %3798 }
 0x594   :  { %3121 = vmatmul.bf16.gmra.mxu0 %v17291_v40  ;;  %v5359_v17 = vadd.f32 %v5358_v7, %v5357_v24  ;;  %3442 = vmatmul.bf16.gmra.mxu1 %v17292_v62  ;;  %v4519_v13 = vld [vmem:[%s16216_s5 + $0x3b8] sm:$0xff] }
 0x595   :  { %v5723_v43 = vsel %vm5240_vm0, %v5545_v11, 0.0  ;;  %2815 = vmatmul.bf16.gmra.mxu3 %v17296_v6  ;;  %v4216_v50 = vadd.f32 %v4096_v28, %v3404_v29  ;;  %v17297_v11 = vld [vmem:[#allocation363_spill] sm:$0xff]  ;;  %v17299_v28 = vld [vmem:[#allocation332_spill] sm:$0xff]  ;;  %v3801_v6 = vpop.permute.xlu2 %3800 }
 0x596   :  { %v5724_v31 = vadd.f32 %v5723_v43, %v5722_v26  ;;  %v4097_v29 = vadd.f32 %v3799_v57, %v17297_v11 }
 0x597   :  { %v13731_v26 = vpop.f32.mrf.mxu3  ;;  %v13735_v40 = vadd.f32 %v13552_v15, %v4216_v50 }
 0x598   :  { %v2583_v25 = vpop.f32.mrf.mxu2  ;;  %v3084_v3 = vpop.f32.mrf.mxu0 }
 0x599   :  { %v2584_v24 = vadd.f32 %v2583_v25, %v2260_v44  ;;  %v3085_v14 = vadd.f32 %v3084_v3, %v13652_v22  ;;  %v3405_v7 = vpop.f32.mrf.mxu1  ;;  %17298 = vst [vmem:[#allocation253_spill] sm:$0xff] %v13735_v40  ;;  %v5180_v43 = vmul.f32 %v17299_v28, %v13735_v40  ;;  %v4518_v22 = vld [vmem:[%s16216_s5 + $0x3b0] sm:$0xff]  ;;  %v7112_v25 = vld [vmem:[%s16219_s10] sm:$0xff] }
 0x59b   :  { %3914 = vrot.lane.b32.xlu2 %v2584_v24, %s9325_s19  ;;  %7133 = vperm.xlu1 %9306, %v7113_v18   ;;  %v3406_v62 = vadd.f32 %v3405_v7, %v3085_v14  ;;  %v17301_v18 = vld [vmem:[#allocation327_spill] sm:$0xff]  ;;  %v17302_v14 = vld [vmem:[#allocation38_spill] sm:$0xff]  ;;  %v5546_v11 = vmul.f32 %v5180_v43, %v13735_v40 }
 0x59c   :  { %5117 = vperm.xlu0 %9305, %v4519_v13   ;;  %v4098_v7 = vadd.f32 %v3801_v6, %v17302_v14 }
 0x59d   :  { %v4217_v4 = vadd.f32 %v4097_v29, %v3406_v62  ;;  %v17303_v62 = vld [vmem:[#allocation294_spill] sm:$0xff] }
 0x59f   :  { %v13740_v56 = vadd.f32 %v13552_v15, %v4217_v4  ;;  %v13754_v13 = vpop.f32.mrf.mxu3  ;;  %v5360_v4 = vsel %vm5240_vm0, %v5180_v43, 0.0 }
 0x5a0   :  { %v2585_v44 = vpop.f32.mrf.mxu2  ;;  %v3087_v50 = vpop.f32.mrf.mxu0  ;;  %v5361_v43 = vadd.f32 %v5360_v4, %v5359_v17 }
 0x5a1   :  { %17300 = vst [vmem:[#allocation254_spill] sm:$0xff] %v13740_v56  ;;  %v5181_v57 = vmul.f32 %v17301_v18, %v13740_v56  ;;  %v3088_v24 = vadd.f32 %v3087_v50, %v13669_v48  ;;  %v3408_v3 = vpop.f32.mrf.mxu1  ;;  %v17304_v44 = vld [vmem:[#allocation319_spill] sm:$0xff]  ;;  %v7114_v18 = vld [vmem:[%s16219_s10 + $0x10] sm:$0xff] }
 0x5a2   :  { %v7115_v50 = vld [vmem:[%s16219_s10 + $0x18] sm:$0xff] }
 0x5a3   :  { %5112 = vperm.xlu2 %9304, %v4518_v22   ;;  %7148 = vperm.xlu1 %9306, %v7116_v38   ;;  %v3409_v29 = vadd.f32 %v3408_v3, %v3088_v24  ;;  %v5547_v28 = vmul.f32 %v5181_v57, %v13740_v56  ;;  %v5725_v22 = vsel %vm5240_vm0, %v5546_v11, 0.0  ;;  %v5362_v38 = vsel %vm5240_vm0, %v5181_v57, 0.0  ;;  %v17305_v3 = vld [vmem:[#allocation123_spill] sm:$0xff]  ;;  %v3803_v11 = vpop.permute.xlu1 %3802 }
 0x5a4   :  { %7128 = vperm.xlu0 %9305, %v7112_v25   ;;  %3126 = vmatmul.bf16.gmra.mxu0 %v17303_v62  ;;  %v5363_v62 = vadd.f32 %v5362_v38, %v5361_v43  ;;  %v3805_v43 = vpop.permute.xlu0 %3804 }
 0x5a5   :  { %3447 = vmatmul.bf16.gmra.mxu1 %v12584_v59  ;;  %v4218_v48 = vadd.f32 %v4098_v7, %v3409_v29  ;;  %2820 = vmatmul.bf16.gmra.mxu3 %v17304_v44  ;;  %v7119_v59 = vld [vmem:[%s16219_s10 + $0x38] sm:$0xff]  ;;  %v5727_v24 = vsel %vm5240_vm0, %v5547_v28, 0.0  ;;  %v5726_v29 = vadd.f32 %v5725_v22, %v5724_v31  ;;  %v17306_v28 = vld [vmem:[#allocation53_spill] sm:$0xff] }
 0x5a6   :  { %v4099_v53 = vadd.f32 %v3803_v11, %v17306_v28  ;;  %v8807_v31 = vld [vmem:[%s16218_s6 + $0x50] sm:$0xf]  ;;  %v9273_v22 = vld [vmem:[%s16218_s6 + $0x54] sm:$0xf0]  ;;  %v7121_v28 = vld [vmem:[%s16219_s10 + $0x48] sm:$0xff] }
 0x5a7   :  { %v4342_v6 = vadd.f32 %v13552_v15, %v4218_v48  ;;  %v13778_v48 = vpop.f32.mrf.mxu3  ;;  %v5728_v40 = vadd.f32 %v5727_v24, %v5726_v29  ;;  %v17308_v29 = vld [vmem:[#allocation305_spill] sm:$0xff] }
 0x5a8   :  { %v3089_v25 = vpop.f32.mrf.mxu0 }
 0x5a9   :  { %v5182_v57 = vmul.f32 %v17305_v3, %v4342_v6  ;;  %v3090_v14 = vadd.f32 %v3089_v25, %v13685_v39  ;;  %v3410_v7 = vpop.f32.mrf.mxu1  ;;  %v7117_v25 = vld [vmem:[%s16219_s10 + $0x28] sm:$0xff] }
 0x5ab   :  { %7143 = vperm.xlu2 %9304, %v7115_v50   ;;  %7163 = vperm.xlu1 %9306, %v7119_v59   ;;  %v5364_v17 = vsel %vm5240_vm0, %v5182_v57, 0.0  ;;  %v5548_v4 = vmul.f32 %v5182_v57, %v4342_v6  ;;  %v3411_v44 = vadd.f32 %v3410_v7, %v3090_v14  ;;  %v7118_v6 = vld [vmem:[%s16219_s10 + $0x30] sm:$0xff]  ;;  %v8808_v59 = vor.u32 %v9273_v22, %v8807_v31  ;;  %v17307_v57 = vld [vmem:[#allocation43_spill] sm:$0xff] }
 0x5ac   :  { %7138 = vperm.xlu0 %9305, %v7114_v18   ;;  %v5365_v56 = vadd.f32 %v5364_v17, %v5363_v62  ;;  %v7122_v50 = vld [vmem:[%s16219_s10 + $0x50] sm:$0xff]  ;;  %v4100_v14 = vadd.f32 %v3805_v43, %v17307_v57  ;;  %v7120_v22 = vld [vmem:[%s16219_s10 + $0x40] sm:$0xff] }
 0x5ad   :  { %v5729_v3 = vsel %vm5240_vm0, %v5548_v4, 0.0  ;;  %v4219_v38 = vadd.f32 %v4099_v53, %v3411_v44  ;;  %6557 = vmatpush.bf16.msra.mxu2 %v8808_v59  ;;  %v17309_v17 = vld [vmem:[#allocation94_spill] sm:$0xff]  ;;  %v17312_v43 = vld [vmem:[#allocation151_spill] sm:$0xff] }
 0x5ae   :  { %v5730_v39 = vadd.f32 %v5729_v3, %v5728_v40  ;;  %v3807_v3 = vpop.permute.xlu2 %3806 }
 0x5af   :  { %v13799_v53 = vpop.f32.mrf.mxu3  ;;  %v13803_v7 = vadd.f32 %v13552_v15, %v4219_v38 }
 0x5b0   :  { %v3092_v40 = vpop.f32.mrf.mxu0 }
 0x5b1   :  { %v3093_v18 = vadd.f32 %v3092_v40, %v13699_v33  ;;  %v3413_v24 = vpop.f32.mrf.mxu1  ;;  %v17310_v33 = vld [vmem:[#allocation335_spill] sm:$0xff]  ;;  %v4101_v40 = vadd.f32 %v3807_v3, %v17312_v43 }
 0x5b2   :  { %v5183_v4 = vmul.f32 %v17310_v33, %v13803_v7 }
 0x5b3   :  { %7158 = vperm.xlu2 %9304, %v7118_v6   ;;  %7178 = vperm.xlu1 %9306, %v7122_v50   ;;  %v3414_v11 = vadd.f32 %v3413_v24, %v3093_v18 }
 0x5b4   :  { %7153 = vperm.xlu0 %9305, %v7117_v25   ;;  %3131 = vmatmul.bf16.gmra.mxu0 %v17308_v29  ;;  %v5549_v25 = vmul.f32 %v5183_v4, %v13803_v7  ;;  %v5366_v24 = vsel %vm5240_vm0, %v5183_v4, 0.0 }
 0x5b5   :  { %3452 = vmatmul.bf16.gmra.mxu1 %v12626_v37  ;;  %v4220_v62 = vadd.f32 %v4100_v14, %v3414_v11  ;;  %2825 = vmatmul.bf16.gmra.mxu3 %v17309_v17  ;;  %v17311_v37 = vld [vmem:[#allocation330_spill] sm:$0xff] }
 0x5b6   :  { %v5731_v11 = vsel %vm5240_vm0, %v5549_v25, 0.0  ;;  %v17314_v25 = vld [vmem:[#allocation314_spill] sm:$0xff] }
 0x5b7   :  { %v13811_v44 = vadd.f32 %v13552_v15, %v4220_v62  ;;  %v13822_v59 = vpop.f32.mrf.mxu3  ;;  %v5367_v62 = vadd.f32 %v5366_v24, %v5365_v56  ;;  %v5732_v4 = vadd.f32 %v5731_v11, %v5730_v39  ;;  %v17315_v24 = vld [vmem:[#allocation48_spill] sm:$0xff]  ;;  %v3811_v11 = vpop.permute.xlu0 %3810 }
 0x5b8   :  { %v3094_v31 = vpop.f32.mrf.mxu0 }
 0x5b9   :  { %v5184_v38 = vmul.f32 %v17311_v37, %v13811_v44  ;;  %v3095_v6 = vadd.f32 %v3094_v31, %v13713_v0  ;;  %v3415_v50 = vpop.f32.mrf.mxu1  ;;  %v3809_v37 = vpop.permute.xlu1 %3808 }
 0x5bb   :  { %7173 = vperm.xlu2 %9304, %v7121_v28   ;;  %v3416_v18 = vadd.f32 %v3415_v50, %v3095_v6  ;;  %v5550_v57 = vmul.f32 %v5184_v38, %v13811_v44  ;;  %v5368_v29 = vsel %vm5240_vm0, %v5184_v38, 0.0  ;;  %v17313_v28 = vld [vmem:[#allocation128_spill] sm:$0xff] }
 0x5bc   :  { %7168 = vperm.xlu0 %9305, %v7120_v22   ;;  %v5369_v6 = vadd.f32 %v5368_v29, %v5367_v62 }
 0x5bd   :  { %v4221_v14 = vadd.f32 %v4101_v40, %v3416_v18  ;;  %v5733_v33 = vsel %vm5240_vm0, %v5550_v57, 0.0  ;;  %v4102_v57 = vadd.f32 %v3809_v37, %v17315_v24 }
 0x5be   :  { %v5734_v56 = vadd.f32 %v5733_v33, %v5732_v4  ;;  %v4103_v33 = vadd.f32 %v3811_v11, %v12582_v1 }
 0x5bf   :  { %v4345_v0 = vadd.f32 %v13552_v15, %v4221_v14  ;;  %v13834_v50 = vpop.f32.mrf.mxu3 }
 0x5c0   :  { %v3097_v17 = vpop.f32.mrf.mxu0 }
 0x5c1   :  { %v5185_v3 = vmul.f32 %v17313_v28, %v4345_v0  ;;  %v3098_v31 = vadd.f32 %v3097_v17, %v13731_v26  ;;  %v3418_v22 = vpop.f32.mrf.mxu1  ;;  %v17316_v17 = vld [vmem:[#allocation102_spill] sm:$0xff] }
 0x5c3   :  { %v5370_v43 = vsel %vm5240_vm0, %v5185_v3, 0.0  ;;  %v5551_v40 = vmul.f32 %v5185_v3, %v4345_v0  ;;  %v3419_v38 = vadd.f32 %v3418_v22, %v3098_v31  ;;  %v17317_v22 = vld [vmem:[#allocation7_spill] sm:$0xff] }
 0x5c4   :  { %3136 = vmatmul.bf16.gmra.mxu0 %v17314_v25  ;;  %v5371_v18 = vadd.f32 %v5370_v43, %v5369_v6  ;;  %v3813_v6 = vpop.permute.xlu2 %3812 }
 0x5c5   :  { %3457 = vmatmul.bf16.gmra.mxu1 %v12668_v46  ;;  %v5735_v26 = vsel %vm5240_vm0, %v5551_v40, 0.0  ;;  %2830 = vmatmul.bf16.gmra.mxu3 %v17316_v17  ;;  %v4222_v39 = vadd.f32 %v4102_v57, %v3419_v38 }
 0x5c6   :  { %v5736_v14 = vadd.f32 %v5735_v26, %v5734_v56  ;;  %v4104_v56 = vadd.f32 %v3813_v6, %v12601_v5  ;;  %v17319_v26 = vld [vmem:[#allocation321_spill] sm:$0xff]  ;;  %v3815_v6 = vpop.permute.xlu1 %3814 }
 0x5c7   :  { %v13843_v28 = vpop.f32.mrf.mxu3  ;;  %v13847_v3 = vadd.f32 %v13552_v15, %v4222_v39 }
 0x5c8   :  { %v3099_v29 = vpop.f32.mrf.mxu0 }
 0x5c9   :  { %v3100_v62 = vadd.f32 %v3099_v29, %v13754_v13  ;;  %v3420_v0 = vpop.f32.mrf.mxu1  ;;  %v5186_v37 = vmul.f32 %v17317_v22, %v13847_v3  ;;  %v17318_v13 = vld [vmem:[#allocation333_spill] sm:$0xff]  ;;  %v17320_v29 = vld [vmem:[#allocation110_spill] sm:$0xff] }
 0x5cb   :  { %v3421_v46 = vadd.f32 %v3420_v0, %v3100_v62  ;;  %v5552_v24 = vmul.f32 %v5186_v37, %v13847_v3  ;;  %v5372_v17 = vsel %vm5240_vm0, %v5186_v37, 0.0 }
 0x5cc   :  { %v5373_v0 = vadd.f32 %v5372_v17, %v5371_v18  ;;  %v4105_v18 = vadd.f32 %v3815_v6, %v12624_v34 }
 0x5cd   :  { %v4223_v31 = vadd.f32 %v4103_v33, %v3421_v46 }
 0x5cf   :  { %v13852_v4 = vadd.f32 %v13552_v15, %v4223_v31  ;;  %v13857_v1 = vpop.f32.mrf.mxu3  ;;  %v17321_v31 = vld [vmem:[#allocation129_spill] sm:$0xff] }
 0x5d0   :  { %v3102_v43 = vpop.f32.mrf.mxu0 }
 0x5d1   :  { %v5187_v40 = vmul.f32 %v17318_v13, %v13852_v4  ;;  %v3103_v38 = vadd.f32 %v3102_v43, %v13778_v48  ;;  %v3423_v25 = vpop.f32.mrf.mxu1  ;;  %v5737_v48 = vsel %vm5240_vm0, %v5552_v24, 0.0 }
 0x5d2   :  { %v5738_v43 = vadd.f32 %v5737_v48, %v5736_v14 }
 0x5d3   :  { %v3424_v57 = vadd.f32 %v3423_v25, %v3103_v38  ;;  %v5553_v39 = vmul.f32 %v5187_v40, %v13852_v4  ;;  %v5374_v62 = vsel %vm5240_vm0, %v5187_v40, 0.0 }
 0x5d4   :  { %3141 = vmatmul.bf16.gmra.mxu0 %v17319_v26  ;;  %v5375_v13 = vadd.f32 %v5374_v62, %v5373_v0 }
 0x5d5   :  { %3462 = vmatmul.bf16.gmra.mxu1 %v12714_v41  ;;  %v4224_v11 = vadd.f32 %v4104_v56, %v3424_v57  ;;  %2835 = vmatmul.bf16.gmra.mxu3 %v17320_v29  ;;  %v5739_v46 = vsel %vm5240_vm0, %v5553_v39, 0.0 }
 0x5d6   :  { %v5740_v57 = vadd.f32 %v5739_v46, %v5738_v43  ;;  %v17323_v46 = vld [vmem:[#allocation118_spill] sm:$0xff] }
 0x5d7   :  { %v4348_v5 = vadd.f32 %v13552_v15, %v4224_v11  ;;  %v13872_v38 = vpop.f32.mrf.mxu3  ;;  %v3817_v11 = vpop.permute.xlu0 %3816 }
 0x5d8   :  { %v3104_v33 = vpop.f32.mrf.mxu0  ;;  %v4106_v62 = vadd.f32 %v3817_v11, %v12647_v16  ;;  %v17325_v16 = vld [vmem:[#allocation336_spill] sm:$0xff] }
 0x5d9   :  { %v5188_v22 = vmul.f32 %v17321_v31, %v4348_v5  ;;  %v3105_v41 = vadd.f32 %v3104_v33, %v13799_v53  ;;  %v3425_v37 = vpop.f32.mrf.mxu1  ;;  %v17322_v33 = vld [vmem:[#allocation5_spill] sm:$0xff]  ;;  %v17324_v31 = vld [vmem:[#allocation339_spill] sm:$0xff] }
 0x5db   :  { %v5376_v25 = vsel %vm5240_vm0, %v5188_v22, 0.0  ;;  %v5554_v56 = vmul.f32 %v5188_v22, %v4348_v5  ;;  %v3426_v40 = vadd.f32 %v3425_v37, %v3105_v41  ;;  %v3819_v41 = vpop.permute.xlu2 %3818 }
 0x5dc   :  { %v5377_v24 = vadd.f32 %v5376_v25, %v5375_v13 }
 0x5dd   :  { %v5741_v26 = vsel %vm5240_vm0, %v5554_v56, 0.0  ;;  %v4225_v39 = vadd.f32 %v4105_v18, %v3426_v40 }
 0x5de   :  { %v5742_v17 = vadd.f32 %v5741_v26, %v5740_v57 }
 0x5df   :  { %v13878_v48 = vpop.f32.mrf.mxu3  ;;  %v13882_v5 = vadd.f32 %v13552_v15, %v4225_v39 }
 0x5e0   :  { %v3107_v53 = vpop.f32.mrf.mxu0 }
 0x5e1   :  { %v3108_v29 = vadd.f32 %v3107_v53, %v13822_v59  ;;  %v3428_v14 = vpop.f32.mrf.mxu1  ;;  %v5189_v22 = vmul.f32 %v17324_v31, %v13882_v5 }
 0x5e3   :  { %v3429_v0 = vadd.f32 %v3428_v14, %v3108_v29  ;;  %v5555_v56 = vmul.f32 %v5189_v22, %v13882_v5  ;;  %v5378_v57 = vsel %vm5240_vm0, %v5189_v22, 0.0 }
 0x5e4   :  { %3146 = vmatmul.bf16.gmra.mxu0 %v17322_v33 }
 0x5e5   :  { %3467 = vmatmul.bf16.gmra.mxu1 %v12756_v12  ;;  %v4226_v34 = vadd.f32 %v4106_v62, %v3429_v0  ;;  %2840 = vmatmul.bf16.gmra.mxu3 %v17323_v46  ;;  %v4107_v12 = vadd.f32 %v3819_v41, %v12666_v45  ;;  %v5743_v39 = vsel %vm5240_vm0, %v5555_v56, 0.0  ;;  %v17326_v62 = vld [vmem:[#allocation134_spill] sm:$0xff]  ;;  %v17328_v56 = vld [vmem:[#allocation125_spill] sm:$0xff] }
 0x5e6   :  { %v5744_v46 = vadd.f32 %v5743_v39, %v5742_v17 }
 0x5e7   :  { %v13890_v59 = vadd.f32 %v13552_v15, %v4226_v34  ;;  %v13895_v25 = vpop.f32.mrf.mxu3  ;;  %v3821_v34 = vpop.permute.xlu1 %3820 }
 0x5e8   :  { %v3109_v37 = vpop.f32.mrf.mxu0 }
 0x5e9   :  { %v5190_v6 = vmul.f32 %v17325_v16, %v13890_v59  ;;  %v3110_v43 = vadd.f32 %v3109_v37, %v13834_v50  ;;  %v3430_v13 = vpop.f32.mrf.mxu1  ;;  %v5379_v50 = vadd.f32 %v5378_v57, %v5377_v24 }
 0x5eb   :  { %v3431_v40 = vadd.f32 %v3430_v13, %v3110_v43  ;;  %v5556_v18 = vmul.f32 %v5190_v6, %v13890_v59  ;;  %v5380_v11 = vsel %vm5240_vm0, %v5190_v6, 0.0  ;;  %v17327_v6 = vld [vmem:[#allocation6_spill] sm:$0xff]  ;;  %v4108_v13 = vadd.f32 %v3821_v34, %v12689_v8 }
 0x5ec   :  { %v5381_v31 = vadd.f32 %v5380_v11, %v5379_v50  ;;  %v17329_v50 = vld [vmem:[#allocation16_spill] sm:$0xff] }
 0x5ed   :  { %v4227_v26 = vadd.f32 %v4107_v12, %v3431_v40  ;;  %v5745_v14 = vsel %vm5240_vm0, %v5556_v18, 0.0  ;;  %v3823_v40 = vpop.permute.xlu0 %3822 }
 0x5ee   :  { %v5746_v24 = vadd.f32 %v5745_v14, %v5744_v46  ;;  %v4109_v11 = vadd.f32 %v3823_v40, %v12712_v52  ;;  %v17331_v46 = vld [vmem:[#allocation226_spill] sm:$0xff] }
 0x5ef   :  { %v4351_v53 = vadd.f32 %v13552_v15, %v4227_v26  ;;  %v13907_v22 = vpop.f32.mrf.mxu3 }
 0x5f0   :  { %v3112_v29 = vpop.f32.mrf.mxu0 }
 0x5f1   :  { %v5191_v45 = vmul.f32 %v17326_v62, %v4351_v53  ;;  %v3113_v0 = vadd.f32 %v3112_v29, %v13843_v28  ;;  %v3433_v33 = vpop.f32.mrf.mxu1  ;;  %v3825_v62 = vpop.permute.xlu2 %3824 }
 0x5f3   :  { %v5382_v41 = vsel %vm5240_vm0, %v5191_v45, 0.0  ;;  %v5557_v37 = vmul.f32 %v5191_v45, %v4351_v53  ;;  %v3434_v16 = vadd.f32 %v3433_v33, %v3113_v0 }
 0x5f4   :  { %3151 = vmatmul.bf16.gmra.mxu0 %v17327_v6  ;;  %v5383_v43 = vadd.f32 %v5382_v41, %v5381_v31  ;;  %v4110_v31 = vadd.f32 %v3825_v62, %v17331_v46 }
 0x5f5   :  { %3472 = vmatmul.bf16.gmra.mxu1 %v12804_v20  ;;  %v5747_v28 = vsel %vm5240_vm0, %v5557_v37, 0.0  ;;  %2845 = vmatmul.bf16.gmra.mxu3 %v17328_v56  ;;  %v4228_v17 = vadd.f32 %v4108_v13, %v3434_v16  ;;  %v17332_v16 = vld [vmem:[#allocation8_spill] sm:$0xff] }
 0x5f6   :  { %v5748_v12 = vadd.f32 %v5747_v28, %v5746_v24  ;;  %v17333_v28 = vld [vmem:[#allocation131_spill] sm:$0xff] }
 0x5f7   :  { %v13916_v39 = vpop.f32.mrf.mxu3  ;;  %v13920_v53 = vadd.f32 %v13552_v15, %v4228_v17 }
 0x5f8   :  { %v3114_v57 = vpop.f32.mrf.mxu0 }
 0x5f9   :  { %v3115_v18 = vadd.f32 %v3114_v57, %v13857_v1  ;;  %v3435_v26 = vpop.f32.mrf.mxu1  ;;  %v5192_v29 = vmul.f32 %v17329_v50, %v13920_v53  ;;  %v17330_v1 = vld [vmem:[#allocation13_spill] sm:$0xff] }
 0x5fb   :  { %v3436_v20 = vadd.f32 %v3435_v26, %v3115_v18  ;;  %v5558_v41 = vmul.f32 %v5192_v29, %v13920_v53  ;;  %v5384_v6 = vsel %vm5240_vm0, %v5192_v29, 0.0  ;;  %v17334_v26 = vld [vmem:[#allocation135_spill] sm:$0xff] }
 0x5fc   :  { %v5385_v40 = vadd.f32 %v5384_v6, %v5383_v43  ;;  %v17335_v43 = vld [vmem:[#allocation56_spill] sm:$0xff] }
 0x5fd   :  { %v4229_v8 = vadd.f32 %v4109_v11, %v3436_v20 }
 0x5ff   :  { %v13925_v14 = vadd.f32 %v13552_v15, %v4229_v8  ;;  %v13930_v52 = vpop.f32.mrf.mxu3  ;;  %v3827_v8 = vpop.permute.xlu1 %3826 }
 0x600   :  { %v3117_v45 = vpop.f32.mrf.mxu0 }
 0x601   :  { %v5193_v0 = vmul.f32 %v17330_v1, %v13925_v14  ;;  %v3118_v33 = vadd.f32 %v3117_v45, %v13872_v38  ;;  %v3438_v34 = vpop.f32.mrf.mxu1  ;;  %v5749_v38 = vsel %vm5240_vm0, %v5558_v41, 0.0 }
 0x602   :  { %v5750_v50 = vadd.f32 %v5749_v38, %v5748_v12 }
 0x603   :  { %v3439_v37 = vadd.f32 %v3438_v34, %v3118_v33  ;;  %v5559_v24 = vmul.f32 %v5193_v0, %v13925_v14  ;;  %v5386_v56 = vsel %vm5240_vm0, %v5193_v0, 0.0  ;;  %v4111_v34 = vadd.f32 %v3827_v8, %v17335_v43 }
 0x604   :  { %3156 = vmatmul.bf16.gmra.mxu0 %v17332_v16  ;;  %v5387_v29 = vadd.f32 %v5386_v56, %v5385_v40  ;;  %v17336_v56 = vld [vmem:[#allocation10_spill] sm:$0xff]  ;;  %v17338_v40 = vld [vmem:[#allocation11_spill] sm:$0xff] }
 0x605   :  { %3477 = vmatmul.bf16.gmra.mxu1 %v12850_v42  ;;  %v4230_v13 = vadd.f32 %v4110_v31, %v3439_v37  ;;  %2850 = vmatmul.bf16.gmra.mxu3 %v17333_v28  ;;  %v5751_v18 = vsel %vm5240_vm0, %v5559_v24, 0.0  ;;  %v3829_v37 = vpop.permute.xlu0 %3828 }
 0x606   :  { %v4112_v24 = vadd.f32 %v3829_v37, %v12783_v47 }
 0x607   :  { %v4354_v17 = vadd.f32 %v13552_v15, %v4230_v13  ;;  %v13945_v62 = vpop.f32.mrf.mxu3  ;;  %v5752_v15 = vadd.f32 %v5751_v18, %v5750_v50  ;;  %v13957_v13 = vld [vmem:[%s16217_s2] ss:$0 sm:$0xff]  ;;  %v3831_v18 = vpop.permute.xlu2 %3830 }
 0x608   :  { %v3119_v57 = vpop.f32.mrf.mxu0 }
 0x609   :  { %v5194_v11 = vmul.f32 %v17334_v26, %v4354_v17  ;;  %v3120_v42 = vadd.f32 %v3119_v57, %v13878_v48  ;;  %v3440_v20 = vpop.f32.mrf.mxu1 }
 0x60b   :  { %v5388_v45 = vsel %vm5240_vm0, %v5194_v11, 0.0  ;;  %v5560_v1 = vmul.f32 %v5194_v11, %v4354_v17  ;;  %v3441_v0 = vadd.f32 %v3440_v20, %v3120_v42  ;;  %v17339_v11 = vld [vmem:[#allocation9_spill] sm:$0xff] }
 0x60c   :  { %v5389_v33 = vadd.f32 %v5388_v45, %v5387_v29 }
 0x60d   :  { %v5753_v46 = vsel %vm5240_vm0, %v5560_v1, 0.0  ;;  %v4231_v41 = vadd.f32 %v4111_v34, %v3441_v0 }
 0x60e   :  { %v5754_v31 = vadd.f32 %v5753_v46, %v5752_v15 }
 0x60f   :  { %v13951_v6 = vpop.f32.mrf.mxu3  ;;  %v13960_v28 = vadd.f32 %v13957_v13, %v4231_v41 }
 0x611   :  { %v3122_v48 = vpop.f32.mrf.mxu0  ;;  %v3443_v12 = vpop.f32.mrf.mxu1  ;;  %v5195_v57 = vmul.f32 %v17338_v40, %v13960_v28 }
 0x612   :  { %v3123_v16 = vadd.f32 %v3122_v48, %v13895_v25  ;;  %v17337_v25 = vld [vmem:[#allocation137_spill] sm:$0xff] }
 0x613   :  { %v5561_v29 = vmul.f32 %v5195_v57, %v13960_v28  ;;  %v5390_v1 = vsel %vm5240_vm0, %v5195_v57, 0.0  ;;  %v17340_v48 = vld [vmem:[#allocation141_spill] sm:$0xff] }
 0x614   :  { %v3444_v38 = vadd.f32 %v3443_v12, %v3123_v16  ;;  %3161 = vmatmul.bf16.gmra.mxu0 %v17336_v56 }
 0x615   :  { %3482 = vmatmul.bf16.gmra.mxu1 %v12892_v36  ;;  %2855 = vmatmul.bf16.gmra.mxu3 %v17337_v25  ;;  %v4113_v36 = vadd.f32 %v3831_v18, %v12802_v49  ;;  %v5755_v43 = vsel %vm5240_vm0, %v5561_v29, 0.0  ;;  %v17341_v18 = vld [vmem:[#allocation12_spill] sm:$0xff] }
 0x616   :  { %v4232_v17 = vadd.f32 %v4112_v24, %v3444_v38  ;;  %v3833_v24 = vpop.permute.xlu1 %3832  ;;  %v5756_v38 = vadd.f32 %v5755_v43, %v5754_v31  ;;  %v9272_v31 = vld [vmem:[%s16218_s6 + $0x54] sm:$0xf] }
 0x618   :  { %v13968_v47 = vadd.f32 %v13957_v13, %v4232_v17  ;;  %v13973_v50 = vpop.f32.mrf.mxu3 }
 0x619   :  { %v3124_v26 = vpop.f32.mrf.mxu0  ;;  %v3445_v8 = vpop.f32.mrf.mxu1 }
 0x61a   :  { %v5196_v42 = vmul.f32 %v17339_v11, %v13968_v47  ;;  %v3125_v20 = vadd.f32 %v3124_v26, %v13907_v22  ;;  %v5391_v22 = vadd.f32 %v5390_v1, %v5389_v33  ;;  %v17342_v11 = vld [vmem:[#allocation191_spill] sm:$0xff]  ;;  %v3835_v1 = vpop.permute.xlu0 %3834 }
 0x61c   :  { %v3446_v45 = vadd.f32 %v3445_v8, %v3125_v20  ;;  %v5562_v0 = vmul.f32 %v5196_v42, %v13968_v47  ;;  %v5392_v34 = vsel %vm5240_vm0, %v5196_v42, 0.0  ;;  %v4114_v42 = vadd.f32 %v3833_v24, %v17342_v11  ;;  %v8809_v8 = vld [vmem:[%s16218_s6 + $0x58] sm:$0xf0] }
 0x61d   :  { %v5393_v56 = vadd.f32 %v5392_v34, %v5391_v22  ;;  %v4115_v34 = vadd.f32 %v3835_v1, %v12848_v54 }
 0x61e   :  { %v4233_v15 = vadd.f32 %v4113_v36, %v3446_v45  ;;  %v5757_v37 = vsel %vm5240_vm0, %v5562_v0, 0.0  ;;  %v17343_v36 = vld [vmem:[#allocation143_spill] sm:$0xff]  ;;  %v8812_v45 = vor.u32 %v9272_v31, %v8809_v8  ;;  %v17348_v31 = vld [vmem:[#allocation150_spill] sm:$0xff] }
 0x61f   :  { %v5758_v33 = vadd.f32 %v5757_v37, %v5756_v38  ;;  %v17344_v37 = vld [vmem:[#allocation345_spill] sm:$0xff] }
 0x620   :  { %v4357_v46 = vadd.f32 %v13957_v13, %v4233_v15  ;;  %v13985_v17 = vpop.f32.mrf.mxu3  ;;  %6605 = vmatpush.bf16.msra.mxu3 %v8812_v45 }
 0x621   :  { %v3127_v41 = vpop.f32.mrf.mxu0 }
 0x622   :  { %v5197_v49 = vmul.f32 %v17340_v48, %v4357_v46  ;;  %v3128_v16 = vadd.f32 %v3127_v41, %v13916_v39  ;;  %v3448_v12 = vpop.f32.mrf.mxu1 }
 0x624   :  { %v5394_v25 = vsel %vm5240_vm0, %v5197_v49, 0.0  ;;  %v5563_v40 = vmul.f32 %v5197_v49, %v4357_v46  ;;  %v3449_v57 = vadd.f32 %v3448_v12, %v3128_v16  ;;  %3166 = vmatmul.bf16.gmra.mxu0 %v17341_v18  ;;  %v3837_v16 = vpop.permute.xlu2 %3836 }
 0x625   :  { %v5395_v26 = vadd.f32 %v5394_v25, %v5393_v56  ;;  %3487 = vmatmul.bf16.gmra.mxu1 %v12934_v51  ;;  %2860 = vmatmul.bf16.gmra.mxu3 %v17343_v36  ;;  %v17346_v25 = vld [vmem:[#allocation74_spill] sm:$0xff] }
 0x626   :  { %v5759_v39 = vsel %vm5240_vm0, %v5563_v40, 0.0  ;;  %v4234_v29 = vadd.f32 %v4114_v42, %v3449_v57  ;;  %v4116_v40 = vadd.f32 %v3837_v16, %v17346_v25 }
 0x627   :  { %v5760_v20 = vadd.f32 %v5759_v39, %v5758_v33  ;;  %v17347_v33 = vld [vmem:[#allocation15_spill] sm:$0xff] }
 0x628   :  { %v14000_v43 = vpop.f32.mrf.mxu3  ;;  %v14004_v46 = vadd.f32 %v13957_v13, %v4234_v29 }
 0x629   :  { %v3129_v0 = vpop.f32.mrf.mxu0 }
 0x62a   :  { %v3130_v51 = vadd.f32 %v3129_v0, %v13930_v52  ;;  %v3450_v15 = vpop.f32.mrf.mxu1  ;;  %v5198_v48 = vmul.f32 %v17344_v37, %v14004_v46  ;;  %v17345_v52 = vld [vmem:[#allocation342_spill] sm:$0xff] }
 0x62b   :  { %v17349_v0 = vld [vmem:[#allocation146_spill] sm:$0xff] }
 0x62c   :  { %v3451_v22 = vadd.f32 %v3450_v15, %v3130_v51  ;;  %v5564_v57 = vmul.f32 %v5198_v48, %v14004_v46  ;;  %v5396_v11 = vsel %vm5240_vm0, %v5198_v48, 0.0 }
 0x62d   :  { %v5397_v29 = vadd.f32 %v5396_v11, %v5395_v26  ;;  %v17350_v26 = vld [vmem:[#allocation175_spill] sm:$0xff] }
 0x62e   :  { %v4235_v41 = vadd.f32 %v4115_v34, %v3451_v22  ;;  %v3839_v34 = vpop.permute.xlu1 %3838 }
 0x630   :  { %v14009_v49 = vadd.f32 %v13957_v13, %v4235_v41  ;;  %v14014_v54 = vpop.f32.mrf.mxu3 }
 0x631   :  { %v3132_v12 = vpop.f32.mrf.mxu0 }
 0x632   :  { %v5199_v24 = vmul.f32 %v17345_v52, %v14009_v49  ;;  %v3133_v38 = vadd.f32 %v3132_v12, %v13945_v62  ;;  %v3453_v56 = vpop.f32.mrf.mxu1  ;;  %v5761_v62 = vsel %vm5240_vm0, %v5564_v57, 0.0  ;;  %v3841_v57 = vpop.permute.xlu0 %3840 }
 0x633   :  { %v5762_v22 = vadd.f32 %v5761_v62, %v5760_v20  ;;  %v4118_v11 = vadd.f32 %v3841_v57, %v12913_v30  ;;  %v17354_v30 = vld [vmem:[#allocation112_spill] sm:$0xff] }
 0x634   :  { %v3454_v18 = vadd.f32 %v3453_v56, %v3133_v38  ;;  %3171 = vmatmul.bf16.gmra.mxu0 %v17347_v33  ;;  %v5565_v42 = vmul.f32 %v5199_v24, %v14009_v49  ;;  %v5398_v8 = vsel %vm5240_vm0, %v5199_v24, 0.0  ;;  %v4117_v38 = vadd.f32 %v3839_v34, %v17350_v26 }
 0x635   :  { %3492 = vmatmul.bf16.gmra.mxu1 %v12980_v27  ;;  %2865 = vmatmul.bf16.gmra.mxu3 %v17348_v31  ;;  %v5399_v41 = vadd.f32 %v5398_v8, %v5397_v29  ;;  %v17351_v31 = vld [vmem:[#allocation18_spill] sm:$0xff]  ;;  %v17352_v8 = vld [vmem:[#allocation159_spill] sm:$0xff] }
 0x636   :  { %v4236_v39 = vadd.f32 %v4116_v40, %v3454_v18  ;;  %v5763_v1 = vsel %vm5240_vm0, %v5565_v42, 0.0 }
 0x637   :  { %v5764_v24 = vadd.f32 %v5763_v1, %v5762_v22 }
 0x638   :  { %v4360_v36 = vadd.f32 %v13957_v13, %v4236_v39  ;;  %v14029_v37 = vpop.f32.mrf.mxu3 }
 0x639   :  { %v3134_v45 = vpop.f32.mrf.mxu0 }
 0x63a   :  { %v5200_v51 = vmul.f32 %v17349_v0, %v4360_v36  ;;  %v3135_v27 = vadd.f32 %v3134_v45, %v13951_v6  ;;  %v3455_v15 = vpop.f32.mrf.mxu1  ;;  %v3843_v45 = vpop.permute.xlu2 %3842 }
 0x63c   :  { %v5400_v48 = vsel %vm5240_vm0, %v5200_v51, 0.0  ;;  %v5566_v16 = vmul.f32 %v5200_v51, %v4360_v36  ;;  %v3456_v12 = vadd.f32 %v3455_v15, %v3135_v27  ;;  %v17353_v36 = vld [vmem:[#allocation14_spill] sm:$0xff] }
 0x63d   :  { %v5401_v52 = vadd.f32 %v5400_v48, %v5399_v41 }
 0x63e   :  { %v5765_v56 = vsel %vm5240_vm0, %v5566_v16, 0.0  ;;  %v4237_v40 = vadd.f32 %v4117_v38, %v3456_v12 }
 0x63f   :  { %v5766_v25 = vadd.f32 %v5765_v56, %v5764_v24 }
 0x640   :  { %v14035_v33 = vpop.f32.mrf.mxu3  ;;  %v14039_v42 = vadd.f32 %v13957_v13, %v4237_v40  ;;  %v17355_v40 = vld [vmem:[#allocation148_spill] sm:$0xff] }
 0x641   :  { %v3137_v6 = vpop.f32.mrf.mxu0 }
 0x642   :  { %v3138_v18 = vadd.f32 %v3137_v6, %v13973_v50  ;;  %v3458_v20 = vpop.f32.mrf.mxu1  ;;  %v5201_v29 = vmul.f32 %v17353_v36, %v14039_v42  ;;  %v17356_v36 = vld [vmem:[#allocation21_spill] sm:$0xff] }
 0x644   :  { %v3459_v39 = vadd.f32 %v3458_v20, %v3138_v18  ;;  %3176 = vmatmul.bf16.gmra.mxu0 %v17351_v31  ;;  %v5567_v34 = vmul.f32 %v5201_v29, %v14039_v42  ;;  %v5402_v41 = vsel %vm5240_vm0, %v5201_v29, 0.0  ;;  %v3845_v18 = vpop.permute.xlu1 %3844 }
 0x645   :  { %3497 = vmatmul.bf16.gmra.mxu1 %v13022_v58  ;;  %2870 = vmatmul.bf16.gmra.mxu3 %v17352_v8  ;;  %v4119_v58 = vadd.f32 %v3843_v45, %v12932_v23  ;;  %v17357_v45 = vld [vmem:[#allocation81_spill] sm:$0xff] }
 0x646   :  { %v4238_v62 = vadd.f32 %v4118_v11, %v3459_v39  ;;  %v5767_v12 = vsel %vm5240_vm0, %v5567_v34, 0.0 }
 0x647   :  { %v5768_v20 = vadd.f32 %v5767_v12, %v5766_v25  ;;  %v17359_v12 = vld [vmem:[#allocation349_spill] sm:$0xff] }
 0x648   :  { %v14047_v50 = vadd.f32 %v13957_v13, %v4238_v62  ;;  %v14052_v15 = vpop.f32.mrf.mxu3 }
 0x649   :  { %v3139_v1 = vpop.f32.mrf.mxu0 }
 0x64a   :  { %v5202_v0 = vmul.f32 %v17354_v30, %v14047_v50  ;;  %v3140_v51 = vadd.f32 %v3139_v1, %v13985_v17  ;;  %v3460_v27 = vpop.f32.mrf.mxu1  ;;  %v5403_v17 = vadd.f32 %v5402_v41, %v5401_v52  ;;  %v4120_v1 = vadd.f32 %v3845_v18, %v17357_v45 }
 0x64c   :  { %v3461_v22 = vadd.f32 %v3460_v27, %v3140_v51  ;;  %v5568_v48 = vmul.f32 %v5202_v0, %v14047_v50  ;;  %v5404_v24 = vsel %vm5240_vm0, %v5202_v0, 0.0  ;;  %v17358_v0 = vld [vmem:[#allocation169_spill] sm:$0xff]  ;;  %v3847_v51 = vpop.permute.xlu0 %3846 }
 0x64d   :  { %v5405_v11 = vadd.f32 %v5404_v24, %v5403_v17  ;;  %v4121_v41 = vadd.f32 %v3847_v51, %v12978_v9  ;;  %v3849_v17 = vpop.permute.xlu2 %3848  ;;  %v3851_v51 = vpop.permute.xlu1 %3850 }
 0x64e   :  { %v4239_v16 = vadd.f32 %v4119_v58, %v3461_v22  ;;  %v5769_v56 = vsel %vm5240_vm0, %v5568_v48, 0.0 }
 0x64f   :  { %v5770_v52 = vadd.f32 %v5769_v56, %v5768_v20  ;;  %v17361_v20 = vld [vmem:[#allocation24_spill] sm:$0xff] }
 0x650   :  { %v4363_v26 = vadd.f32 %v13957_v13, %v4239_v16  ;;  %v14064_v39 = vpop.f32.mrf.mxu3 }
 0x651   :  { %v3142_v38 = vpop.f32.mrf.mxu0 }
 0x652   :  { %v5203_v23 = vmul.f32 %v17355_v40, %v4363_v26  ;;  %v3143_v57 = vadd.f32 %v3142_v38, %v14000_v43  ;;  %v3463_v6 = vpop.f32.mrf.mxu1 }
 0x654   :  { %v5406_v31 = vsel %vm5240_vm0, %v5203_v23, 0.0  ;;  %v5569_v62 = vmul.f32 %v5203_v23, %v4363_v26  ;;  %v3464_v8 = vadd.f32 %v3463_v6, %v3143_v57  ;;  %3181 = vmatmul.bf16.gmra.mxu0 %v17356_v36  ;;  %v4122_v57 = vadd.f32 %v3849_v17, %v12997_v60 }
 0x655   :  { %v5407_v29 = vadd.f32 %v5406_v31, %v5405_v11  ;;  %3502 = vmatmul.bf16.gmra.mxu1 %v13069_v10  ;;  %2875 = vmatmul.bf16.gmra.mxu3 %v17358_v0 }
 0x656   :  { %v5771_v43 = vsel %vm5240_vm0, %v5569_v62, 0.0  ;;  %v4240_v25 = vadd.f32 %v4120_v1, %v3464_v8  ;;  %v17362_v8 = vld [vmem:[#allocation179_spill] sm:$0xff] }
 0x657   :  { %v5772_v30 = vadd.f32 %v5771_v43, %v5770_v52  ;;  %v17363_v43 = vld [vmem:[#allocation155_spill] sm:$0xff] }
 0x658   :  { %v14073_v22 = vpop.f32.mrf.mxu3  ;;  %v14077_v48 = vadd.f32 %v13957_v13, %v4240_v25 }
 0x659   :  { %v3144_v27 = vpop.f32.mrf.mxu0 }
 0x65a   :  { %v3145_v58 = vadd.f32 %v3144_v27, %v14014_v54  ;;  %v3465_v34 = vpop.f32.mrf.mxu1  ;;  %v5204_v24 = vmul.f32 %v17359_v12, %v14077_v48  ;;  %v17360_v54 = vld [vmem:[#allocation348_spill] sm:$0xff] }
 0x65c   :  { %v3466_v10 = vadd.f32 %v3465_v34, %v3145_v58  ;;  %v5570_v6 = vmul.f32 %v5204_v24, %v14077_v48  ;;  %v5408_v11 = vsel %vm5240_vm0, %v5204_v24, 0.0 }
 0x65d   :  { %v5409_v52 = vadd.f32 %v5408_v11, %v5407_v29  ;;  %v4123_v29 = vadd.f32 %v3851_v51, %v13020_v21  ;;  %v17365_v11 = vld [vmem:[#allocation188_spill] sm:$0xff] }
 0x65e   :  { %v4241_v16 = vadd.f32 %v4121_v41, %v3466_v10 }
 0x660   :  { %v14082_v26 = vadd.f32 %v13957_v13, %v4241_v16  ;;  %v14087_v9 = vpop.f32.mrf.mxu3 }
 0x661   :  { %v3147_v38 = vpop.f32.mrf.mxu0 }
 0x662   :  { %v5205_v56 = vmul.f32 %v17360_v54, %v14082_v26  ;;  %v3148_v40 = vadd.f32 %v3147_v38, %v14029_v37  ;;  %v3468_v23 = vpop.f32.mrf.mxu1  ;;  %v5773_v37 = vsel %vm5240_vm0, %v5570_v6, 0.0 }
 0x663   :  { %v5774_v27 = vadd.f32 %v5773_v37, %v5772_v30 }
 0x664   :  { %v3469_v18 = vadd.f32 %v3468_v23, %v3148_v40  ;;  %3186 = vmatmul.bf16.gmra.mxu0 %v17361_v20  ;;  %v5571_v31 = vmul.f32 %v5205_v56, %v14082_v26  ;;  %v5410_v36 = vsel %vm5240_vm0, %v5205_v56, 0.0  ;;  %v3853_v56 = vpop.permute.xlu0 %3852  ;;  %v17364_v20 = vld [vmem:[#allocation29_spill] sm:$0xff] }
 0x665   :  { %3507 = vmatmul.bf16.gmra.mxu1 %v13115_v35  ;;  %2880 = vmatmul.bf16.gmra.mxu3 %v17362_v8  ;;  %v5411_v58 = vadd.f32 %v5410_v36, %v5409_v52  ;;  %v3855_v8 = vpop.permute.xlu2 %3854 }
 0x666   :  { %v4242_v62 = vadd.f32 %v4122_v57, %v3469_v18  ;;  %v5775_v1 = vsel %vm5240_vm0, %v5571_v31, 0.0  ;;  %v4124_v57 = vadd.f32 %v3853_v56, %v13048_v61  ;;  %v17366_v31 = vld [vmem:[#allocation27_spill] sm:$0xff]  ;;  %v17367_v61 = vld [vmem:[#allocation22_spill] sm:$0xff] }
 0x667   :  { %v5776_v24 = vadd.f32 %v5775_v1, %v5774_v27 }
 0x668   :  { %v4366_v60 = vadd.f32 %v13957_v13, %v4242_v62  ;;  %v14102_v34 = vpop.f32.mrf.mxu3 }
 0x669   :  { %v3149_v45 = vpop.f32.mrf.mxu0 }
 0x66a   :  { %v5206_v0 = vmul.f32 %v17363_v43, %v4366_v60  ;;  %v3150_v35 = vadd.f32 %v3149_v45, %v14035_v33  ;;  %v3470_v25 = vpop.f32.mrf.mxu1 }
 0x66c   :  { %v5412_v41 = vsel %vm5240_vm0, %v5206_v0, 0.0  ;;  %v5572_v10 = vmul.f32 %v5206_v0, %v4366_v60  ;;  %v3471_v16 = vadd.f32 %v3470_v25, %v3150_v35 }
 0x66d   :  { %v5413_v12 = vadd.f32 %v5412_v41, %v5411_v58 }
 0x66e   :  { %v5777_v17 = vsel %vm5240_vm0, %v5572_v10, 0.0  ;;  %v4243_v54 = vadd.f32 %v4123_v29, %v3471_v16  ;;  %v17368_v16 = vld [vmem:[#allocation163_spill] sm:$0xff] }
 0x66f   :  { %v5778_v38 = vadd.f32 %v5777_v17, %v5776_v24  ;;  %v3857_v17 = vpop.permute.xlu1 %3856 }
 0x670   :  { %v14108_v23 = vpop.f32.mrf.mxu3  ;;  %v14112_v6 = vadd.f32 %v13957_v13, %v4243_v54 }
 0x671   :  { %v3152_v33 = vpop.f32.mrf.mxu0 }
 0x672   :  { %v3153_v40 = vadd.f32 %v3152_v33, %v14052_v15  ;;  %v3473_v30 = vpop.f32.mrf.mxu1  ;;  %v5207_v62 = vmul.f32 %v17366_v31, %v14112_v6 }
 0x674   :  { %v3474_v18 = vadd.f32 %v3473_v30, %v3153_v40  ;;  %3191 = vmatmul.bf16.gmra.mxu0 %v17364_v20  ;;  %v5573_v1 = vmul.f32 %v5207_v62, %v14112_v6  ;;  %v5414_v0 = vsel %vm5240_vm0, %v5207_v62, 0.0  ;;  %v17371_v62 = vld [vmem:[#allocation198_spill] sm:$0xff] }
 0x675   :  { %3512 = vmatmul.bf16.gmra.mxu1 %v13165_v63  ;;  %2885 = vmatmul.bf16.gmra.mxu3 %v17365_v11  ;;  %v4125_v63 = vadd.f32 %v3855_v8, %v13067_v2  ;;  %v3859_v8 = vpop.permute.xlu0 %3858 }
 0x676   :  { %v4244_v21 = vadd.f32 %v4124_v57, %v3474_v18  ;;  %v5779_v51 = vsel %vm5240_vm0, %v5573_v1, 0.0  ;;  %v17369_v18 = vld [vmem:[#allocation34_spill] sm:$0xff] }
 0x677   :  { %v5780_v54 = vadd.f32 %v5779_v51, %v5778_v38  ;;  %v3861_v51 = vpop.permute.xlu2 %3860 }
 0x678   :  { %v14120_v15 = vadd.f32 %v13957_v13, %v4244_v21  ;;  %v14125_v45 = vpop.f32.mrf.mxu3  ;;  %v17370_v21 = vld [vmem:[#allocation214_spill] sm:$0xff] }
 0x679   :  { %v3154_v37 = vpop.f32.mrf.mxu0  ;;  %v4126_v11 = vadd.f32 %v3857_v17, %v17370_v21  ;;  %v17376_v17 = vld [vmem:[#allocation39_spill] sm:$0xff] }
 0x67a   :  { %v5208_v36 = vmul.f32 %v17367_v61, %v14120_v15  ;;  %v3155_v60 = vadd.f32 %v3154_v37, %v14064_v39  ;;  %v3475_v52 = vpop.f32.mrf.mxu1  ;;  %v5415_v39 = vadd.f32 %v5414_v0, %v5413_v12  ;;  %v17373_v0 = vld [vmem:[#allocation20_spill] sm:$0xff] }
 0x67c   :  { %v3476_v43 = vadd.f32 %v3475_v52, %v3155_v60  ;;  %v5574_v35 = vmul.f32 %v5208_v36, %v14120_v15  ;;  %v5416_v27 = vsel %vm5240_vm0, %v5208_v36, 0.0  ;;  %v17372_v52 = vld [vmem:[#allocation87_spill] sm:$0xff] }
 0x67d   :  { %v5417_v56 = vadd.f32 %v5416_v27, %v5415_v39 }
 0x67e   :  { %v4245_v25 = vadd.f32 %v4125_v63, %v3476_v43  ;;  %v5781_v10 = vsel %vm5240_vm0, %v5574_v35, 0.0  ;;  %v4127_v63 = vadd.f32 %v3859_v8, %v17372_v52 }
 0x67f   :  { %v5782_v12 = vadd.f32 %v5781_v10, %v5780_v54  ;;  %v17377_v54 = vld [vmem:[#allocation236_spill] sm:$0xff] }
 0x680   :  { %v4369_v58 = vadd.f32 %v13957_v13, %v4245_v25  ;;  %v14137_v33 = vpop.f32.mrf.mxu3 }
 0x681   :  { %v3157_v41 = vpop.f32.mrf.mxu0 }
 0x682   :  { %v5209_v2 = vmul.f32 %v17368_v16, %v4369_v58  ;;  %v3158_v24 = vadd.f32 %v3157_v41, %v14073_v22  ;;  %v3478_v29 = vpop.f32.mrf.mxu1  ;;  %v17375_v16 = vld [vmem:[#allocation238_spill] sm:$0xff] }
 0x684   :  { %v5418_v40 = vsel %vm5240_vm0, %v5209_v2, 0.0  ;;  %v5575_v30 = vmul.f32 %v5209_v2, %v4369_v58  ;;  %v3479_v57 = vadd.f32 %v3478_v29, %v3158_v24  ;;  %3196 = vmatmul.bf16.gmra.mxu0 %v17369_v18  ;;  %v4128_v2 = vadd.f32 %v3861_v51, %v17375_v16 }
 0x685   :  { %v5419_v20 = vadd.f32 %v5418_v40, %v5417_v56  ;;  %3517 = vmatmul.bf16.gmra.mxu1 %v13209_v32  ;;  %2890 = vmatmul.bf16.gmra.mxu3 %v17371_v62  ;;  %v17379_v62 = vld [vmem:[#allocation166_spill] sm:$0xff] }
 0x686   :  { %v5783_v22 = vsel %vm5240_vm0, %v5575_v30, 0.0  ;;  %v4246_v38 = vadd.f32 %v4126_v11, %v3479_v57  ;;  %v17378_v57 = vld [vmem:[#allocation210_spill] sm:$0xff] }
 0x687   :  { %v5784_v31 = vadd.f32 %v5783_v22, %v5782_v12 }
 0x688   :  { %v14146_v60 = vpop.f32.mrf.mxu3  ;;  %v14150_v1 = vadd.f32 %v13957_v13, %v4246_v38 }
 0x689   :  { %v3159_v37 = vpop.f32.mrf.mxu0 }
 0x68a   :  { %v3160_v61 = vadd.f32 %v3159_v37, %v14087_v9  ;;  %v3480_v36 = vpop.f32.mrf.mxu1  ;;  %v5210_v35 = vmul.f32 %v17373_v0, %v14150_v1  ;;  %v17374_v9 = vld [vmem:[#allocation17_spill] sm:$0xff] }
 0x68c   :  { %v3481_v32 = vadd.f32 %v3480_v36, %v3160_v61  ;;  %v5576_v24 = vmul.f32 %v5210_v35, %v14150_v1  ;;  %v5420_v56 = vsel %vm5240_vm0, %v5210_v35, 0.0  ;;  %v3863_v61 = vpop.permute.xlu1 %3862 }
 0x68d   :  { %v5421_v21 = vadd.f32 %v5420_v56, %v5419_v20  ;;  %v17380_v20 = vld [vmem:[#allocation63_spill] sm:$0xff]  ;;  %v17382_v56 = vld [vmem:[#allocation44_spill] sm:$0xff] }
 0x68e   :  { %v4247_v43 = vadd.f32 %v4127_v63, %v3481_v32 }
 0x690   :  { %v14155_v25 = vadd.f32 %v13957_v13, %v4247_v43  ;;  %v14160_v10 = vpop.f32.mrf.mxu3 }
 0x691   :  { %v3162_v27 = vpop.f32.mrf.mxu0 }
 0x692   :  { %v5211_v58 = vmul.f32 %v17374_v9, %v14155_v25  ;;  %v3163_v39 = vadd.f32 %v3162_v27, %v14102_v34  ;;  %v3483_v41 = vpop.f32.mrf.mxu1  ;;  %v5785_v34 = vsel %vm5240_vm0, %v5576_v24, 0.0  ;;  %v4129_v27 = vadd.f32 %v3863_v61, %v17380_v20  ;;  %v17381_v24 = vld [vmem:[#allocation194_spill] sm:$0xff] }
 0x693   :  { %v5786_v36 = vadd.f32 %v5785_v34, %v5784_v31  ;;  %v17385_v34 = vld [vmem:[#allocation353_spill] sm:$0xff] }
 0x694   :  { %v3484_v29 = vadd.f32 %v3483_v41, %v3163_v39  ;;  %3201 = vmatmul.bf16.gmra.mxu0 %v17376_v17  ;;  %v5577_v40 = vmul.f32 %v5211_v58, %v14155_v25  ;;  %v5422_v18 = vsel %vm5240_vm0, %v5211_v58, 0.0  ;;  %v3865_v41 = vpop.permute.xlu0 %3864 }
 0x695   :  { %3522 = vmatmul.bf16.gmra.mxu1 %v17377_v54  ;;  %2895 = vmatmul.bf16.gmra.mxu3 %v17378_v57  ;;  %v5423_v52 = vadd.f32 %v5422_v18, %v5421_v21  ;;  %v17384_v57 = vld [vmem:[#allocation228_spill] sm:$0xff] }
 0x696   :  { %v4248_v30 = vadd.f32 %v4128_v2, %v3484_v29  ;;  %v5787_v22 = vsel %vm5240_vm0, %v5577_v40, 0.0  ;;  %v4130_v29 = vadd.f32 %v3865_v41, %v17381_v24  ;;  %v17383_v40 = vld [vmem:[#allocation65_spill] sm:$0xff] }
 0x697   :  { %v5788_v51 = vadd.f32 %v5787_v22, %v5786_v36 }
 0x698   :  { %v4372_v12 = vadd.f32 %v13957_v13, %v4248_v30  ;;  %v14175_v63 = vpop.f32.mrf.mxu3 }
 0x699   :  { %v3164_v11 = vpop.f32.mrf.mxu0 }
 0x69a   :  { %v5212_v38 = vmul.f32 %v17379_v62, %v4372_v12  ;;  %v3165_v8 = vadd.f32 %v3164_v11, %v14108_v23  ;;  %v3485_v37 = vpop.f32.mrf.mxu1  ;;  %v17386_v11 = vld [vmem:[#allocation350_spill] sm:$0xff] }
 0x69c   :  { %v5424_v32 = vsel %vm5240_vm0, %v5212_v38, 0.0  ;;  %v5578_v43 = vmul.f32 %v5212_v38, %v4372_v12  ;;  %v3486_v0 = vadd.f32 %v3485_v37, %v3165_v8  ;;  %v3867_v12 = vpop.permute.xlu2 %3866  ;;  %v17387_v37 = vld [vmem:[#allocation75_spill] sm:$0xff] }
 0x69d   :  { %v5425_v35 = vadd.f32 %v5424_v32, %v5423_v52  ;;  %v4131_v61 = vadd.f32 %v3867_v12, %v17387_v37 }
 0x69e   :  { %v5789_v9 = vsel %vm5240_vm0, %v5578_v43, 0.0  ;;  %v4249_v39 = vadd.f32 %v4129_v27, %v3486_v0 }
 0x69f   :  { %v5790_v58 = vadd.f32 %v5789_v9, %v5788_v51  ;;  %v8799_v51 = vld [vmem:[%s16218_s6 + $0x40] sm:$0xf] }
 0x6a0   :  { %v14181_v2 = vpop.f32.mrf.mxu3  ;;  %v14185_v17 = vadd.f32 %v13957_v13, %v4249_v39 }
 0x6a1   :  { %v3167_v23 = vpop.f32.mrf.mxu0 }
 0x6a2   :  { %v3168_v16 = vadd.f32 %v3167_v23, %v14125_v45  ;;  %v3488_v31 = vpop.f32.mrf.mxu1  ;;  %v5213_v18 = vmul.f32 %v17385_v34, %v14185_v17 }
 0x6a4   :  { %v3489_v54 = vadd.f32 %v3488_v31, %v3168_v16  ;;  %3206 = vmatmul.bf16.gmra.mxu0 %v17382_v56  ;;  %v5579_v36 = vmul.f32 %v5213_v18, %v14185_v17  ;;  %v5426_v32 = vsel %vm5240_vm0, %v5213_v18, 0.0  ;;  %v17388_v31 = vld [vmem:[#allocation173_spill] sm:$0xff]  ;;  %v3869_v56 = vpop.permute.xlu1 %3868 }
 0x6a5   :  { %3527 = vmatmul.bf16.gmra.mxu1 %v17383_v40  ;;  %2900 = vmatmul.bf16.gmra.mxu3 %v17384_v57  ;;  %v5427_v41 = vadd.f32 %v5426_v32, %v5425_v35 }
 0x6a6   :  { %v4250_v30 = vadd.f32 %v4130_v29, %v3489_v54  ;;  %v5791_v20 = vsel %vm5240_vm0, %v5579_v36, 0.0  ;;  %v3871_v36 = vpop.permute.xlu0 %3870 }
 0x6a7   :  { %v5792_v40 = vadd.f32 %v5791_v20, %v5790_v58 }
 0x6a8   :  { %v14193_v45 = vadd.f32 %v13957_v13, %v4250_v30  ;;  %v14198_v8 = vpop.f32.mrf.mxu3 }
 0x6a9   :  { %v3169_v21 = vpop.f32.mrf.mxu0 }
 0x6aa   :  { %v5214_v22 = vmul.f32 %v17386_v11, %v14193_v45  ;;  %v3170_v62 = vadd.f32 %v3169_v21, %v14137_v33  ;;  %v3490_v38 = vpop.f32.mrf.mxu1  ;;  %v9271_v33 = vld [vmem:[%s16218_s6 + $0x44] sm:$0xf0] }
 0x6ab   :  { %v8800_v39 = vor.u32 %v9271_v33, %v8799_v51  ;;  %v17389_v21 = vld [vmem:[#allocation49_spill] sm:$0xff]  ;;  %v17393_v51 = vld [vmem:[#allocation246_spill] sm:$0xff] }
 0x6ac   :  { %v3491_v52 = vadd.f32 %v3490_v38, %v3170_v62  ;;  %v5580_v43 = vmul.f32 %v5214_v22, %v14193_v45  ;;  %v5428_v27 = vsel %vm5240_vm0, %v5214_v22, 0.0  ;;  %v17390_v22 = vld [vmem:[#allocation88_spill] sm:$0xff]  ;;  %v17391_v62 = vld [vmem:[#allocation199_spill] sm:$0xff]  ;;  %v4133_v33 = vadd.f32 %v3871_v36, %v17393_v51 }
 0x6ad   :  { %6558 = vmatpush.bf16.msra.mxu2 %v8800_v39  ;;  %v5429_v30 = vadd.f32 %v5428_v27, %v5427_v41  ;;  %v4132_v38 = vadd.f32 %v3869_v56, %v17391_v62  ;;  %v17394_v39 = vld [vmem:[#allocation37_spill] sm:$0xff] }
 0x6ae   :  { %v4251_v0 = vadd.f32 %v4131_v61, %v3491_v52  ;;  %v5793_v16 = vsel %vm5240_vm0, %v5580_v43, 0.0  ;;  %v17392_v61 = vld [vmem:[#allocation287_spill] sm:$0xff] }
 0x6af   :  { %v5794_v35 = vadd.f32 %v5793_v16, %v5792_v40  ;;  %v3873_v16 = vpop.permute.xlu2 %3872  ;;  %v8583_v40 = vld [vmem:[%s16215_s0 + $0x5d8] sm:$0xf] }
 0x6b0   :  { %v4375_v9 = vadd.f32 %v13957_v13, %v4251_v0  ;;  %v14216_v57 = vpop.f32.mrf.mxu3 }
 0x6b1   :  { %v3172_v23 = vpop.f32.mrf.mxu0 }
 0x6b2   :  { %v5215_v24 = vmul.f32 %v17388_v31, %v4375_v9  ;;  %v3173_v29 = vadd.f32 %v3172_v23, %v14146_v60  ;;  %v3493_v54 = vpop.f32.mrf.mxu1 }
 0x6b4   :  { %v5430_v34 = vsel %vm5240_vm0, %v5215_v24, 0.0  ;;  %v5581_v18 = vmul.f32 %v5215_v24, %v4375_v9  ;;  %v3494_v12 = vadd.f32 %v3493_v54, %v3173_v29  ;;  %3211 = vmatmul.bf16.gmra.mxu0 %v17389_v21 }
 0x6b5   :  { %v5431_v11 = vadd.f32 %v5430_v34, %v5429_v30  ;;  %3532 = vmatmul.bf16.gmra.mxu1 %v17390_v22  ;;  %2905 = vmatmul.bf16.gmra.mxu3 %v17392_v61  ;;  %v9210_v30 = vld [vmem:[%s16215_s0 + $0x5e0] sm:$0xf0]  ;;  %v17396_v34 = vld [vmem:[#allocation205_spill] sm:$0xff] }
 0x6b6   :  { %v5795_v60 = vsel %vm5240_vm0, %v5581_v18, 0.0  ;;  %v4252_v58 = vadd.f32 %v4132_v38, %v3494_v12  ;;  %v4134_v18 = vadd.f32 %v3873_v16, %v17396_v34  ;;  %v14250_v22 = vor.u32 %v9210_v30, %v8583_v40  ;;  %v17399_v61 = vld [vmem:[#allocation297_spill] sm:$0xff] }
 0x6b7   :  { %v5796_v37 = vadd.f32 %v5795_v60, %v5794_v35  ;;  %v17397_v35 = vld [vmem:[#allocation55_spill] sm:$0xff] }
 0x6b8   :  { %v14225_v0 = vpop.f32.mrf.mxu3  ;;  %v14229_v20 = vadd.f32 %v13957_v13, %v4252_v58  ;;  %2586 = vmatmul.bf16.gmra.mxu2 %v14250_v22 }
 0x6b9   :  { %v3174_v52 = vpop.f32.mrf.mxu0 }
 0x6ba   :  { %v3175_v32 = vadd.f32 %v3174_v52, %v14160_v10  ;;  %v3495_v43 = vpop.f32.mrf.mxu1  ;;  %v5216_v41 = vmul.f32 %v17394_v39, %v14229_v20  ;;  %v17395_v10 = vld [vmem:[#allocation32_spill] sm:$0xff] }
 0x6bc   :  { %v3496_v27 = vadd.f32 %v3495_v43, %v3175_v32  ;;  %v5582_v12 = vmul.f32 %v5216_v41, %v14229_v20  ;;  %v5432_v62 = vsel %vm5240_vm0, %v5216_v41, 0.0  ;;  %v3875_v41 = vpop.permute.xlu1 %3874 }
 0x6bd   :  { %v5433_v32 = vadd.f32 %v5432_v62, %v5431_v11  ;;  %v17401_v11 = vld [vmem:[#allocation101_spill] sm:$0xff] }
 0x6be   :  { %v4253_v9 = vadd.f32 %v4133_v33, %v3496_v27  ;;  %v5797_v58 = vsel %vm5240_vm0, %v5582_v12, 0.0  ;;  %v17400_v33 = vld [vmem:[#allocation177_spill] sm:$0xff]  ;;  %v4135_v34 = vadd.f32 %v3875_v41, %v17401_v11 }
 0x6bf   :  { %v5798_v16 = vadd.f32 %v5797_v58, %v5796_v37 }
 0x6c0   :  { %v14234_v23 = vadd.f32 %v13957_v13, %v4253_v9  ;;  %v14239_v56 = vpop.f32.mrf.mxu3 }
 0x6c1   :  { %v3177_v31 = vpop.f32.mrf.mxu0 }
 0x6c2   :  { %v5217_v24 = vmul.f32 %v17395_v10, %v14234_v23  ;;  %v3178_v29 = vadd.f32 %v3177_v31, %v14175_v63  ;;  %v3498_v54 = vpop.f32.mrf.mxu1  ;;  %v17398_v63 = vld [vmem:[#allocation223_spill] sm:$0xff] }
 0x6c4   :  { %v3499_v21 = vadd.f32 %v3498_v54, %v3178_v29  ;;  %3216 = vmatmul.bf16.gmra.mxu0 %v17397_v35  ;;  %v5583_v38 = vmul.f32 %v5217_v24, %v14234_v23  ;;  %v5434_v36 = vsel %vm5240_vm0, %v5217_v24, 0.0  ;;  %v3877_v35 = vpop.permute.xlu0 %3876 }
 0x6c5   :  { %3537 = vmatmul.bf16.gmra.mxu1 %v17398_v63  ;;  %2910 = vmatmul.bf16.gmra.mxu3 %v17399_v61  ;;  %v5435_v31 = vadd.f32 %v5434_v36, %v5433_v32  ;;  %v17403_v36 = vld [vmem:[#allocation62_spill] sm:$0xff] }
 0x6c6   :  { %v4254_v60 = vadd.f32 %v4134_v18, %v3499_v21  ;;  %v5799_v51 = vsel %vm5240_vm0, %v5583_v38, 0.0  ;;  %v17402_v38 = vld [vmem:[#allocation211_spill] sm:$0xff] }
 0x6c7   :  { %v5800_v30 = vadd.f32 %v5799_v51, %v5798_v16 }
 0x6c8   :  { %v4378_v52 = vadd.f32 %v13957_v13, %v4254_v60  ;;  %v14263_v10 = vpop.f32.mrf.mxu3  ;;  %v4136_v60 = vadd.f32 %v3877_v35, %v17402_v38  ;;  %v17408_v38 = vld [vmem:[#allocation185_spill] sm:$0xff] }
 0x6c9   :  { %v3179_v43 = vpop.f32.mrf.mxu0 }
 0x6ca   :  { %v5218_v27 = vmul.f32 %v17400_v33, %v4378_v52  ;;  %v3180_v9 = vadd.f32 %v3179_v43, %v14181_v2  ;;  %v3500_v39 = vpop.f32.mrf.mxu1  ;;  %v17405_v43 = vld [vmem:[#allocation28_spill] sm:$0xff] }
 0x6cc   :  { %v5436_v29 = vsel %vm5240_vm0, %v5218_v27, 0.0  ;;  %v5584_v54 = vmul.f32 %v5218_v27, %v4378_v52  ;;  %v3501_v24 = vadd.f32 %v3500_v39, %v3180_v9  ;;  %v17404_v52 = vld [vmem:[#allocation117_spill] sm:$0xff]  ;;  %v17406_v9 = vld [vmem:[#allocation23_spill] sm:$0xff] }
 0x6cd   :  { %v5437_v40 = vadd.f32 %v5436_v29, %v5435_v31  ;;  %v17407_v29 = vld [vmem:[#allocation217_spill] sm:$0xff] }
 0x6ce   :  { %v5801_v18 = vsel %vm5240_vm0, %v5584_v54, 0.0  ;;  %v4255_v21 = vadd.f32 %v4135_v34, %v3501_v24 }
 0x6cf   :  { %v5802_v12 = vadd.f32 %v5801_v18, %v5800_v30 }
 0x6d0   :  { %v14269_v62 = vpop.f32.mrf.mxu3  ;;  %v14273_v61 = vadd.f32 %v13957_v13, %v4255_v21 }
 0x6d1   :  { %v3182_v2 = vpop.f32.mrf.mxu0 }
 0x6d2   :  { %v3183_v63 = vadd.f32 %v3182_v2, %v14198_v8  ;;  %v3503_v37 = vpop.f32.mrf.mxu1  ;;  %v5219_v51 = vmul.f32 %v17405_v43, %v14273_v61  ;;  %v3879_v8 = vpop.permute.xlu2 %3878 }
 0x6d3   :  { %v4137_v54 = vadd.f32 %v3879_v8, %v17407_v29 }
 0x6d4   :  { %v3504_v58 = vadd.f32 %v3503_v37, %v3183_v63  ;;  %3221 = vmatmul.bf16.gmra.mxu0 %v17403_v36  ;;  %v5585_v24 = vmul.f32 %v5219_v51, %v14273_v61  ;;  %v5438_v11 = vsel %vm5240_vm0, %v5219_v51, 0.0 }
 0x6d5   :  { %3542 = vmatmul.bf16.gmra.mxu1 %v17404_v52  ;;  %v3881_v52 = vpop.permute.xlu1 %3880 }
 0x6d6   :  { %v4256_v32 = vadd.f32 %v4136_v60, %v3504_v58  ;;  %v5803_v21 = vsel %vm5240_vm0, %v5585_v24, 0.0 }
 0x6d8   :  { %v14280_v33 = vadd.f32 %v13957_v13, %v4256_v32  ;;  %v14285_v31 = vpop.f32.mrf.mxu3  ;;  %v5804_v32 = vadd.f32 %v5803_v21, %v5802_v12  ;;  %v3883_v12 = vpop.permute.xlu0 %3882  ;;  %v17411_v21 = vld [vmem:[#allocation240_spill] sm:$0xff] }
 0x6d9   :  { %v3184_v27 = vpop.f32.mrf.mxu0 }
 0x6da   :  { %v5220_v39 = vmul.f32 %v17406_v9, %v14280_v33  ;;  %v3185_v41 = vadd.f32 %v3184_v27, %v14216_v57  ;;  %v3505_v16 = vpop.f32.mrf.mxu1  ;;  %v5439_v57 = vadd.f32 %v5438_v11, %v5437_v40 }
 0x6dc   :  { %v3506_v30 = vadd.f32 %v3505_v16, %v3185_v41  ;;  %v5586_v34 = vmul.f32 %v5220_v39, %v14280_v33  ;;  %v5440_v35 = vsel %vm5240_vm0, %v5220_v39, 0.0  ;;  %v17409_v39 = vld [vmem:[#allocation69_spill] sm:$0xff]  ;;  %v17410_v16 = vld [vmem:[#allocation250_spill] sm:$0xff] }
 0x6dd   :  { %v5441_v43 = vadd.f32 %v5440_v35, %v5439_v57  ;;  %v4138_v29 = vadd.f32 %v3881_v52, %v17410_v16  ;;  %v4139_v35 = vadd.f32 %v3883_v12, %v17411_v21  ;;  %v17416_v21 = vld [vmem:[#allocation192_spill] sm:$0xff] }
 0x6de   :  { %v4257_v18 = vadd.f32 %v4137_v54, %v3506_v30  ;;  %v5805_v37 = vsel %vm5240_vm0, %v5586_v34, 0.0 }
 0x6df   :  { %v5806_v41 = vadd.f32 %v5805_v37, %v5804_v32 }
 0x6e0   :  { %v4381_v2 = vadd.f32 %v13957_v13, %v4257_v18  ;;  %v14297_v51 = vpop.f32.mrf.mxu3 }
 0x6e1   :  { %v3187_v63 = vpop.f32.mrf.mxu0 }
 0x6e2   :  { %v5221_v60 = vmul.f32 %v17408_v38, %v4381_v2  ;;  %v3188_v58 = vadd.f32 %v3187_v63, %v14225_v0  ;;  %v3508_v36 = vpop.f32.mrf.mxu1  ;;  %v17412_v63 = vld [vmem:[#allocation359_spill] sm:$0xff] }
 0x6e4   :  { %v5442_v8 = vsel %vm5240_vm0, %v5221_v60, 0.0  ;;  %v5587_v27 = vmul.f32 %v5221_v60, %v4381_v2  ;;  %v3509_v9 = vadd.f32 %v3508_v36, %v3188_v58  ;;  %3226 = vmatmul.bf16.gmra.mxu0 %v17409_v39  ;;  %v3885_v60 = vpop.permute.xlu2 %3884 }
 0x6e5   :  { %v5443_v40 = vadd.f32 %v5442_v8, %v5441_v43  ;;  %3547 = vmatmul.bf16.gmra.mxu1 %v14250_v22  ;;  %v17414_v8 = vld [vmem:[#allocation70_spill] sm:$0xff] }
 0x6e6   :  { %v5807_v0 = vsel %vm5240_vm0, %v5587_v27, 0.0  ;;  %v4258_v24 = vadd.f32 %v4138_v29, %v3509_v9  ;;  %v4140_v27 = vadd.f32 %v3885_v60, %v17414_v8 }
 0x6e7   :  { %v5808_v54 = vadd.f32 %v5807_v0, %v5806_v41  ;;  %v17415_v41 = vld [vmem:[#allocation76_spill] sm:$0xff] }
 0x6e8   :  { %v14305_v18 = vpop.f32.mrf.mxu3  ;;  %v14309_v2 = vadd.f32 %v13957_v13, %v4258_v24 }
 0x6e9   :  { %v3189_v30 = vpop.f32.mrf.mxu0 }
 0x6ea   :  { %v3190_v11 = vadd.f32 %v3189_v30, %v14239_v56  ;;  %v3510_v34 = vpop.f32.mrf.mxu1  ;;  %v5222_v37 = vmul.f32 %v17412_v63, %v14309_v2  ;;  %v17413_v56 = vld [vmem:[#allocation356_spill] sm:$0xff]  ;;  %v3887_v63 = vpop.permute.xlu1 %3886 }
 0x6ec   :  { %v3511_v57 = vadd.f32 %v3510_v34, %v3190_v11  ;;  %v5588_v9 = vmul.f32 %v5222_v37, %v14309_v2  ;;  %v5444_v16 = vsel %vm5240_vm0, %v5222_v37, 0.0 }
 0x6ed   :  { %v5445_v30 = vadd.f32 %v5444_v16, %v5443_v40  ;;  %v17417_v40 = vld [vmem:[#allocation256_spill] sm:$0xff]  ;;  %v3889_v16 = vpop.permute.xlu0 %3888 }
 0x6ee   :  { %v4259_v22 = vadd.f32 %v4139_v35, %v3511_v57  ;;  %v5809_v24 = vsel %vm5240_vm0, %v5588_v9, 0.0 }
 0x6ef   :  { %v5810_v37 = vadd.f32 %v5809_v24, %v5808_v54  ;;  %v17418_v24 = vld [vmem:[#allocation233_spill] sm:$0xff] }
 0x6f0   :  { %v14314_v38 = vadd.f32 %v13957_v13, %v4259_v22  ;;  %v14319_v43 = vpop.f32.mrf.mxu3 }
 0x6f1   :  { %v3192_v58 = vpop.f32.mrf.mxu0 }
 0x6f2   :  { %v5223_v36 = vmul.f32 %v17413_v56, %v14314_v38  ;;  %v3193_v52 = vadd.f32 %v3192_v58, %v14263_v10  ;;  %v3513_v32 = vpop.f32.mrf.mxu1 }
 0x6f4   :  { %v3514_v39 = vadd.f32 %v3513_v32, %v3193_v52  ;;  %3231 = vmatmul.bf16.gmra.mxu0 %v17415_v41  ;;  %v5589_v29 = vmul.f32 %v5223_v36, %v14314_v38  ;;  %v5446_v12 = vsel %vm5240_vm0, %v5223_v36, 0.0 }
 0x6f5   :  { %v5447_v60 = vadd.f32 %v5446_v12, %v5445_v30  ;;  %v4142_v12 = vadd.f32 %v3889_v16, %v17418_v24  ;;  %v17421_v24 = vld [vmem:[#allocation195_spill] sm:$0xff] }
 0x6f6   :  { %v4260_v0 = vadd.f32 %v4140_v27, %v3514_v39  ;;  %v5811_v34 = vsel %vm5240_vm0, %v5589_v29, 0.0  ;;  %v4141_v27 = vadd.f32 %v3887_v63, %v17417_v40 }
 0x6f7   :  { %v5812_v8 = vadd.f32 %v5811_v34, %v5810_v37  ;;  %v17419_v34 = vld [vmem:[#allocation33_spill] sm:$0xff] }
 0x6f8   :  { %v4384_v10 = vadd.f32 %v13957_v13, %v4260_v0  ;;  %v14332_v58 = vpop.f32.mrf.mxu3 }
 0x6f9   :  { %v3194_v11 = vpop.f32.mrf.mxu0 }
 0x6fa   :  { %v5224_v35 = vmul.f32 %v17416_v21, %v4384_v10  ;;  %v3195_v57 = vadd.f32 %v3194_v11, %v14269_v62  ;;  %v3515_v22 = vpop.f32.mrf.mxu1 }
 0x6fc   :  { %v5448_v56 = vsel %vm5240_vm0, %v5224_v35, 0.0  ;;  %v5590_v52 = vmul.f32 %v5224_v35, %v4384_v10  ;;  %v3516_v36 = vadd.f32 %v3515_v22, %v3195_v57  ;;  %v3891_v57 = vpop.permute.xlu2 %3890 }
 0x6fd   :  { %v5449_v32 = vadd.f32 %v5448_v56, %v5447_v60 }
 0x6fe   :  { %v5813_v9 = vsel %vm5240_vm0, %v5590_v52, 0.0  ;;  %v4261_v41 = vadd.f32 %v4141_v27, %v3516_v36  ;;  %v4143_v52 = vadd.f32 %v3891_v57, %v13473_v19  ;;  %v3893_v19 = vpop.permute.xlu1 %3892 }
 0x6ff   :  { %v5814_v39 = vadd.f32 %v5813_v9, %v5812_v8 }
 0x700   :  { %v14338_v0 = vpop.f32.mrf.mxu3  ;;  %v14342_v10 = vadd.f32 %v13957_v13, %v4261_v41 }
 0x701   :  { %v3197_v62 = vpop.f32.mrf.mxu0 }
 0x702   :  { %v3198_v29 = vadd.f32 %v3197_v62, %v14285_v31  ;;  %v3518_v54 = vpop.f32.mrf.mxu1  ;;  %v5225_v21 = vmul.f32 %v17419_v34, %v14342_v10  ;;  %v17420_v31 = vld [vmem:[#allocation145_spill] sm:$0xff] }
 0x704   :  { %v3519_v30 = vadd.f32 %v3518_v54, %v3198_v29  ;;  %v5591_v36 = vmul.f32 %v5225_v21, %v14342_v10  ;;  %v5450_v40 = vsel %vm5240_vm0, %v5225_v21, 0.0 }
 0x705   :  { %v5451_v62 = vadd.f32 %v5450_v40, %v5449_v32 }
 0x706   :  { %v4262_v11 = vadd.f32 %v4142_v12, %v3519_v30  ;;  %v5815_v9 = vsel %vm5240_vm0, %v5591_v36, 0.0 }
 0x707   :  { %v5816_v34 = vadd.f32 %v5815_v9, %v5814_v39  ;;  %v17422_v39 = vld [vmem:[#allocation365_spill] sm:$0xff] }
 0x708   :  { %v14347_v35 = vadd.f32 %v13957_v13, %v4262_v11  ;;  %v14352_v56 = vpop.f32.mrf.mxu3 }
 0x709   :  { %v3199_v22 = vpop.f32.mrf.mxu0 }
 0x70a   :  { %v5226_v63 = vmul.f32 %v17420_v31, %v14347_v35  ;;  %v3200_v37 = vadd.f32 %v3199_v22, %v14297_v51  ;;  %v3520_v60 = vpop.f32.mrf.mxu1  ;;  %v14363_v51 = vld [vmem:[%s16217_s2] ss:$0 sm:$0xff]  ;;  %v4144_v22 = vadd.f32 %v3893_v19, %v13500_v55 }
 0x70b   :  { %v17423_v19 = vld [vmem:[#allocation239_spill] sm:$0xff] }
 0x70c   :  { %v3521_v8 = vadd.f32 %v3520_v60, %v3200_v37  ;;  %v5592_v13 = vmul.f32 %v5226_v63, %v14347_v35  ;;  %v5452_v41 = vsel %vm5240_vm0, %v5226_v63, 0.0 }
 0x70d   :  { %v5453_v21 = vadd.f32 %v5452_v41, %v5451_v62 }
 0x70e   :  { %v4263_v27 = vadd.f32 %v4143_v52, %v3521_v8  ;;  %v5817_v54 = vsel %vm5240_vm0, %v5592_v13, 0.0 }
 0x70f   :  { %v5818_v32 = vadd.f32 %v5817_v54, %v5816_v34 }
 0x710   :  { %v4387_v16 = vadd.f32 %v14363_v51, %v4263_v27  ;;  %v14369_v57 = vpop.f32.mrf.mxu3 }
 0x711   :  { %v3202_v29 = vpop.f32.mrf.mxu0 }
 0x712   :  { %v5227_v12 = vmul.f32 %v17421_v24, %v4387_v16  ;;  %v3203_v30 = vadd.f32 %v3202_v29, %v14305_v18  ;;  %v3523_v11 = vpop.f32.mrf.mxu1  ;;  %v3895_v18 = vpop.permute.xlu0 %3894 }
 0x714   :  { %v5454_v31 = vsel %vm5240_vm0, %v5227_v12, 0.0  ;;  %v5593_v63 = vmul.f32 %v5227_v12, %v4387_v16  ;;  %v3524_v37 = vadd.f32 %v3523_v11, %v3203_v30  ;;  %v4145_v16 = vadd.f32 %v3895_v18, %v17423_v19 }
 0x715   :  { %v5455_v60 = vadd.f32 %v5454_v31, %v5453_v21  ;;  %v3897_v21 = vpop.permute.xlu2 %3896  ;;  %v17424_v31 = vld [vmem:[#allocation362_spill] sm:$0xff] }
 0x716   :  { %v5819_v52 = vsel %vm5240_vm0, %v5593_v63, 0.0  ;;  %v4264_v36 = vadd.f32 %v4144_v22, %v3524_v37 }
 0x717   :  { %v5820_v8 = vadd.f32 %v5819_v52, %v5818_v32  ;;  %v17425_v52 = vld [vmem:[#allocation103_spill] sm:$0xff] }
 0x718   :  { %v4388_v40 = vadd.f32 %v14363_v51, %v4264_v36  ;;  %v14377_v55 = vpop.f32.mrf.mxu3  ;;  %v4146_v36 = vadd.f32 %v3897_v21, %v17425_v52 }
 0x719   :  { %v3204_v13 = vpop.f32.mrf.mxu0 }
 0x71a   :  { %v5228_v27 = vmul.f32 %v17422_v39, %v4388_v40  ;;  %v3205_v9 = vadd.f32 %v3204_v13, %v14319_v43  ;;  %v3525_v41 = vpop.f32.mrf.mxu1 }
 0x71c   :  { %v5456_v62 = vsel %vm5240_vm0, %v5228_v27, 0.0  ;;  %v5594_v29 = vmul.f32 %v5228_v27, %v4388_v40  ;;  %v3526_v54 = vadd.f32 %v3525_v41, %v3205_v9  ;;  %v9270_v9 = vld [vmem:[%s16218_s6 + $0x44] sm:$0xf] }
 0x71d   :  { %v5457_v24 = vadd.f32 %v5456_v62, %v5455_v60 }
 0x71e   :  { %v5821_v12 = vsel %vm5240_vm0, %v5594_v29, 0.0  ;;  %v4265_v30 = vadd.f32 %v4145_v16, %v3526_v54  ;;  %v3899_v16 = vpop.permute.xlu1 %3898  ;;  %v17426_v29 = vld [vmem:[#allocation204_spill] sm:$0xff] }
 0x71f   :  { %v5822_v11 = vadd.f32 %v5821_v12, %v5820_v8 }
 0x720   :  { %v4389_v34 = vadd.f32 %v14363_v51, %v4265_v30  ;;  %v14385_v32 = vpop.f32.mrf.mxu3 }
 0x721   :  { %v3207_v22 = vpop.f32.mrf.mxu0 }
 0x722   :  { %v5229_v43 = vmul.f32 %v17424_v31, %v4389_v34  ;;  %v3208_v63 = vadd.f32 %v3207_v22, %v14332_v58  ;;  %v3528_v37 = vpop.f32.mrf.mxu1  ;;  %v8801_v58 = vld [vmem:[%s16218_s6 + $0x48] sm:$0xf0] }
 0x723   :  { %v8804_v19 = vor.u32 %v9270_v9, %v8801_v58  ;;  %v17429_v58 = vld [vmem:[#allocation124_spill] sm:$0xff] }
 0x724   :  { %v5458_v40 = vsel %vm5240_vm0, %v5229_v43, 0.0  ;;  %v5595_v60 = vmul.f32 %v5229_v43, %v4389_v34  ;;  %v3529_v18 = vadd.f32 %v3528_v37, %v3208_v63 }
 0x725   :  { %v5459_v13 = vadd.f32 %v5458_v40, %v5457_v24  ;;  %6606 = vmatpush.bf16.msra.mxu3 %v8804_v19  ;;  %v3901_v40 = vpop.permute.xlu0 %3900 }
 0x726   :  { %v5823_v8 = vsel %vm5240_vm0, %v5595_v60, 0.0  ;;  %v4266_v39 = vadd.f32 %v4146_v36, %v3529_v18  ;;  %v4148_v19 = vadd.f32 %v3901_v40, %v17429_v58 }
 0x727   :  { %v5824_v27 = vadd.f32 %v5823_v8, %v5822_v11  ;;  %v17427_v11 = vld [vmem:[#allocation266_spill] sm:$0xff] }
 0x728   :  { %v4390_v41 = vadd.f32 %v14363_v51, %v4266_v39  ;;  %v14399_v30 = vpop.f32.mrf.mxu3  ;;  %v4147_v34 = vadd.f32 %v3899_v16, %v17427_v11 }
 0x729   :  { %v3209_v62 = vpop.f32.mrf.mxu0 }
 0x72a   :  { %v5230_v54 = vmul.f32 %v17426_v29, %v4390_v41  ;;  %v3210_v24 = vadd.f32 %v3209_v62, %v14338_v0  ;;  %v3530_v12 = vpop.f32.mrf.mxu1  ;;  %v17428_v0 = vld [vmem:[#allocation162_spill] sm:$0xff] }
 0x72c   :  { %v5460_v21 = vsel %vm5240_vm0, %v5230_v54, 0.0  ;;  %v5596_v22 = vmul.f32 %v5230_v54, %v4390_v41  ;;  %v3531_v31 = vadd.f32 %v3530_v12, %v3210_v24  ;;  %v3903_v12 = vpop.permute.xlu2 %3902 }
 0x72d   :  { %v5461_v43 = vadd.f32 %v5460_v21, %v5459_v13 }
 0x72e   :  { %v5825_v63 = vsel %vm5240_vm0, %v5596_v22, 0.0  ;;  %v4267_v37 = vadd.f32 %v4147_v34, %v3531_v31  ;;  %v17430_v34 = vld [vmem:[#allocation47_spill] sm:$0xff] }
 0x72f   :  { %v5826_v52 = vadd.f32 %v5825_v63, %v5824_v27  ;;  %v17431_v63 = vld [vmem:[#allocation72_spill] sm:$0xff] }
 0x730   :  { %v4391_v36 = vadd.f32 %v14363_v51, %v4267_v37  ;;  %v14407_v9 = vpop.f32.mrf.mxu3  ;;  %v4149_v37 = vadd.f32 %v3903_v12, %v17431_v63 }
 0x731   :  { %v3212_v60 = vpop.f32.mrf.mxu0 }
 0x732   :  { %v5231_v18 = vmul.f32 %v17428_v0, %v4391_v36  ;;  %v3213_v8 = vadd.f32 %v3212_v60, %v14352_v56  ;;  %v3533_v39 = vpop.f32.mrf.mxu1 }
 0x734   :  { %v5462_v41 = vsel %vm5240_vm0, %v5231_v18, 0.0  ;;  %v5597_v13 = vmul.f32 %v5231_v18, %v4391_v36  ;;  %v3534_v16 = vadd.f32 %v3533_v39, %v3213_v8  ;;  %v3905_v39 = vpop.permute.xlu1 %3904 }
 0x735   :  { %v5463_v62 = vadd.f32 %v5462_v41, %v5461_v43 }
 0x736   :  { %v5827_v27 = vsel %vm5240_vm0, %v5597_v13, 0.0  ;;  %v4268_v29 = vadd.f32 %v4148_v19, %v3534_v16  ;;  %v17432_v19 = vld [vmem:[#allocation212_spill] sm:$0xff] }
 0x737   :  { %v5828_v54 = vadd.f32 %v5827_v27, %v5826_v52  ;;  %v17433_v27 = vld [vmem:[#allocation243_spill] sm:$0xff] }
 0x738   :  { %v4392_v24 = vadd.f32 %v14363_v51, %v4268_v29  ;;  %v14415_v31 = vpop.f32.mrf.mxu3  ;;  %v4150_v29 = vadd.f32 %v3905_v39, %v17433_v27 }
 0x739   :  { %v3214_v11 = vpop.f32.mrf.mxu0 }
 0x73a   :  { %v5232_v56 = vmul.f32 %v17430_v34, %v4392_v24  ;;  %v3215_v21 = vadd.f32 %v3214_v11, %v14369_v57  ;;  %v3535_v22 = vpop.f32.mrf.mxu1 }
 0x73c   :  { %v5464_v36 = vsel %vm5240_vm0, %v5232_v56, 0.0  ;;  %v5598_v43 = vmul.f32 %v5232_v56, %v4392_v24  ;;  %v3536_v40 = vadd.f32 %v3535_v22, %v3215_v21  ;;  %v3907_v21 = vpop.permute.xlu0 %3906 }
 0x73d   :  { %v5465_v60 = vadd.f32 %v5464_v36, %v5463_v62 }
 0x73e   :  { %v5829_v52 = vsel %vm5240_vm0, %v5598_v43, 0.0  ;;  %v4269_v0 = vadd.f32 %v4149_v37, %v3536_v40  ;;  %v2587_v37 = vpop.f32.mrf.mxu2 }
 0x73f   :  { %v5830_v18 = vadd.f32 %v5829_v52, %v5828_v54 }
 0x740   :  { %v4393_v8 = vadd.f32 %v14363_v51, %v4269_v0  ;;  %v14423_v16 = vpop.f32.mrf.mxu3  ;;  %v17435_v0 = vld [vmem:[#allocation249_spill] sm:$0xff] }
 0x741   :  { %v3217_v58 = vpop.f32.mrf.mxu0  ;;  %v4151_v39 = vadd.f32 %v3907_v21, %v17435_v0  ;;  %v17437_v21 = vld [vmem:[#allocation111_spill] sm:$0xff] }
 0x742   :  { %v5233_v57 = vmul.f32 %v17432_v19, %v4393_v8  ;;  %v3218_v41 = vadd.f32 %v3217_v58, %v14377_v55  ;;  %v3538_v13 = vpop.f32.mrf.mxu1  ;;  %v17434_v55 = vld [vmem:[#allocation147_spill] sm:$0xff] }
 0x744   :  { %v5466_v24 = vsel %vm5240_vm0, %v5233_v57, 0.0  ;;  %v5599_v62 = vmul.f32 %v5233_v57, %v4393_v8  ;;  %v3539_v12 = vadd.f32 %v3538_v13, %v3218_v41  ;;  %v3909_v13 = vpop.permute.xlu2 %3908 }
 0x745   :  { %v5467_v11 = vadd.f32 %v5466_v24, %v5465_v60 }
 0x746   :  { %v5831_v54 = vsel %vm5240_vm0, %v5599_v62, 0.0  ;;  %v4270_v34 = vadd.f32 %v4150_v29, %v3539_v12  ;;  %v2588_v24 = vpop.f32.mrf.mxu2  ;;  %v17436_v62 = vld [vmem:[#allocation140_spill] sm:$0xff] }
 0x747   :  { %v5832_v56 = vadd.f32 %v5831_v54, %v5830_v18 }
 0x748   :  { %v4394_v22 = vadd.f32 %v14363_v51, %v4270_v34  ;;  %v2911_v52 = vpop.f32.mrf.mxu3 }
 0x749   :  { %v3219_v63 = vpop.f32.mrf.mxu0 }
 0x74a   :  { %v5234_v36 = vmul.f32 %v17434_v55, %v4394_v22  ;;  %v3220_v43 = vadd.f32 %v3219_v63, %v14385_v32  ;;  %v3540_v40 = vpop.f32.mrf.mxu1  ;;  %v4152_v63 = vadd.f32 %v3909_v13, %v17437_v21 }
 0x74c   :  { %v5468_v8 = vsel %vm5240_vm0, %v5234_v36, 0.0  ;;  %v5600_v60 = vmul.f32 %v5234_v36, %v4394_v22  ;;  %v3541_v58 = vadd.f32 %v3540_v40, %v3220_v43  ;;  %v3911_v36 = vpop.permute.xlu1 %3910 }
 0x74d   :  { %v5469_v19 = vadd.f32 %v5468_v8, %v5467_v11 }
 0x74e   :  { %v5833_v18 = vsel %vm5240_vm0, %v5600_v60, 0.0  ;;  %v4271_v57 = vadd.f32 %v4151_v39, %v3541_v58  ;;  %v17438_v39 = vld [vmem:[#allocation219_spill] sm:$0xff]  ;;  %v17439_v58 = vld [vmem:[#allocation276_spill] sm:$0xff] }
 0x74f   :  { %v5834_v41 = vadd.f32 %v5833_v18, %v5832_v56  ;;  %v4153_v18 = vadd.f32 %v3911_v36, %v17439_v58 }
 0x750   :  { %v4395_v27 = vadd.f32 %v14363_v51, %v4271_v57  ;;  %v2912_v34 = vpop.f32.mrf.mxu3 }
 0x751   :  { %v3222_v29 = vpop.f32.mrf.mxu0 }
 0x752   :  { %v5235_v32 = vmul.f32 %v17436_v62, %v4395_v27  ;;  %v3223_v12 = vadd.f32 %v3222_v29, %v14399_v30  ;;  %v3543_v54 = vpop.f32.mrf.mxu1  ;;  %v3915_v62 = vpop.permute.xlu2 %3914 }
 0x754   :  { %v5470_v22 = vsel %vm5240_vm0, %v5235_v32, 0.0  ;;  %v5601_v11 = vmul.f32 %v5235_v32, %v4395_v27  ;;  %v3544_v37 = vadd.f32 %v3543_v54, %v3223_v12  ;;  %v5108_v32 = vpop.permute.xlu1 %5107  ;;  %v3913_v54 = vpop.permute.xlu0 %3912 }
 0x755   :  { %v5471_v55 = vadd.f32 %v5470_v22, %v5469_v19  ;;  %v17440_v22 = vld [vmem:[#allocation130_spill] sm:$0xff] }
 0x756   :  { %v5835_v56 = vsel %vm5240_vm0, %v5601_v11, 0.0  ;;  %v4272_v43 = vadd.f32 %v4152_v63, %v3544_v37  ;;  %v4154_v11 = vadd.f32 %v3913_v54, %v17440_v22 }
 0x757   :  { %v5836_v40 = vadd.f32 %v5835_v56, %v5834_v41 }
 0x758   :  { %v4396_v52 = vadd.f32 %v14363_v51, %v4272_v43 }
 0x759   :  { %v3224_v0 = vpop.f32.mrf.mxu0 }
 0x75a   :  { %v5236_v8 = vmul.f32 %v17438_v39, %v4396_v52  ;;  %v3225_v30 = vadd.f32 %v3224_v0, %v14407_v9  ;;  %v3545_v60 = vpop.f32.mrf.mxu1 }
 0x75c   :  { %v5472_v57 = vsel %vm5240_vm0, %v5236_v8, 0.0  ;;  %v5602_v13 = vmul.f32 %v5236_v8, %v4396_v52  ;;  %v3546_v27 = vadd.f32 %v3545_v60, %v3225_v30  ;;  %v5113_v52 = vpop.permute.xlu2 %5112 }
 0x75d   :  { %v5473_v19 = vadd.f32 %v5472_v57, %v5471_v55 }
 0x75e   :  { %v5837_v29 = vsel %vm5240_vm0, %v5602_v13, 0.0  ;;  %v4273_v24 = vadd.f32 %v4153_v18, %v3546_v27 }
 0x75f   :  { %v5838_v41 = vadd.f32 %v5837_v29, %v5836_v40 }
 0x760   :  { %v4397_v12 = vadd.f32 %v14363_v51, %v4273_v24 }
 0x761   :  { %v3227_v34 = vpop.f32.mrf.mxu0 }
 0x762   :  { %v5237_v21 = vmul.f32 %v5108_v32, %v4397_v12  ;;  %v3228_v9 = vadd.f32 %v3227_v34, %v14415_v31  ;;  %v3548_v63 = vpop.f32.mrf.mxu1  ;;  %v17441_v31 = vld [vmem:[#allocation263_spill] sm:$0xff]  ;;  %v5118_v34 = vpop.permute.xlu0 %5117 }
 0x763   :  { %v4155_v58 = vadd.f32 %v3915_v62, %v17441_v31 }
 0x764   :  { %v3549_v37 = vadd.f32 %v3548_v63, %v3228_v9  ;;  %v5603_v36 = vmul.f32 %v5237_v21, %v4397_v12  ;;  %v5474_v55 = vsel %vm5240_vm0, %v5237_v21, 0.0 }
 0x765   :  { %v5475_v30 = vadd.f32 %v5474_v55, %v5473_v19 }
 0x766   :  { %v4274_v56 = vadd.f32 %v4154_v11, %v3549_v37  ;;  %v5839_v0 = vsel %vm5240_vm0, %v5603_v36, 0.0 }
 0x767   :  { %v5840_v27 = vadd.f32 %v5839_v0, %v5838_v41 }
 0x768   :  { %v4398_v43 = vadd.f32 %v14363_v51, %v4274_v56 }
 0x769   :  { %v3229_v40 = vpop.f32.mrf.mxu0 }
 0x76a   :  { %v5238_v39 = vmul.f32 %v5113_v52, %v4398_v43  ;;  %v3230_v8 = vadd.f32 %v3229_v40, %v14423_v16  ;;  %v3550_v60 = vpop.f32.mrf.mxu1 }
 0x76c   :  { %v5476_v18 = vsel %vm5240_vm0, %v5238_v39, 0.0  ;;  %v5604_v57 = vmul.f32 %v5238_v39, %v4398_v43  ;;  %v3551_v13 = vadd.f32 %v3550_v60, %v3230_v8 }
 0x76d   :  { %v5477_v29 = vadd.f32 %v5476_v18, %v5475_v30 }
 0x76e   :  { %v5841_v24 = vsel %vm5240_vm0, %v5604_v57, 0.0  ;;  %v4275_v32 = vadd.f32 %v4155_v58, %v3551_v13 }
 0x76f   :  { %v5842_v12 = vadd.f32 %v5841_v24, %v5840_v27 }
 0x770   :  { %v4399_v54 = vadd.f32 %v14363_v51, %v4275_v32 }
 0x771   :  { %v3232_v21 = vpop.f32.mrf.mxu0 }
 0x772   :  { %v5239_v9 = vmul.f32 %v5118_v34, %v4399_v54  ;;  %v8595_v34 = vld [vmem:[%s16215_s0 + $0x5f0] sm:$0xf]  ;;  %v9213_v21 = vld [vmem:[%s16215_s0 + $0x5f8] sm:$0xf0] }
 0x774   :  { %v5478_v16 = vsel %vm5240_vm0, %v5239_v9, 0.0  ;;  %v5605_v19 = vmul.f32 %v5239_v9, %v4399_v54  ;;  %v5866_v54 = vld [vmem:[%s16221_s4] sm:$0x1] }
 0x775   :  { %v5479_v63 = vadd.f32 %v5478_v16, %v5477_v29  ;;  %v5853_v29 = vld [vmem:[%s16220_s3] sm:$0x1] }
 0x776   :  { %v5843_v62 = vsel %vm5240_vm0, %v5605_v19, 0.0  ;;  %v8596_v19 = vor.u32 %v9213_v21, %v8595_v34  ;;  %v17456_v21 = vld [vmem:[#allocation61_spill] sm:$0xff] }
 0x777   :  { %v5480_v22 = vrot.slane %v5479_v63, 4  ;;  %v5844_v11 = vadd.f32 %v5843_v62, %v5842_v12  ;;  %v17442_v62 = vld [vmem:[#allocation60_spill] sm:$0xff] }
 0x778   :  { %2589 = vmatmul.bf16.gmra.mxu2 %v8596_v19  ;;  %3552 = vmatmul.bf16.gmra.mxu1 %v8596_v19  ;;  %v17457_v19 = vld [vmem:[#allocation201_spill] sm:$0xff] }
 0x779   :  { %v5481_v37 = vadd.f32 %v5480_v22, %v5479_v63  ;;  %v5845_v41 = vrot.slane %v5844_v11, 4  ;;  %v3233_v36 = vpop.f32.mrf.mxu0 }
 0x77b   :  { %v5482_v56 = vrot.slane %v5481_v37, 2  ;;  %v5846_v55 = vadd.f32 %v5845_v41, %v5844_v11  ;;  %v17443_v11 = vld [vmem:[#allocation172_spill] sm:$0xff] }
 0x77c   :  { %v17444_v41 = vld [vmem:[#allocation156_spill] sm:$0xff] }
 0x77d   :  { %v5483_v43 = vadd.f32 %v5482_v56, %v5481_v37  ;;  %v5847_v52 = vrot.slane %v5846_v55, 2  ;;  %v17445_v56 = vld [vmem:[#allocation51_spill] sm:$0xff] }
 0x77f   :  { %v5484_v40 = vrot.slane %v5483_v43, 1  ;;  %v5848_v51 = vadd.f32 %v5847_v52, %v5846_v55 }
 0x781   :  { %v5485_v0 = vadd.f32 %v5484_v40, %v5483_v43  ;;  %v5849_v39 = vrot.slane %v5848_v51, 1  ;;  %v17446_v43 = vld [vmem:[#allocation208_spill] sm:$0xff]  ;;  %v17447_v40 = vld [vmem:[#allocation182_spill] sm:$0xff] }
 0x783   :  { %v5850_v8 = vadd.f32 %v5849_v39, %v5848_v51  ;;  %v5851_v30 = vmul.f32 %v5485_v0, %v5485_v0 }
 0x785   :  { %v5852_v60 = vsub.f32 %v5850_v8, %v5851_v30  ;;  %v17449_v30 = vld [vmem:[#allocation67_spill] sm:$0xff] }
 0x787   :  { %v5854_v31 = vadd.f32 1e-05, %v5852_v60 }
 0x789   :  { %9312 = vrsqrt.f32 %v5854_v31  ;;  %vm5861_vm2 = vweird.f32 %v5854_v31 }
 0x78f   :  { %v9313_v58 = vpop.eup %9312 }
 0x790   :  { %v5856_v18 = vmul.f32 %v9313_v58, %v5854_v31  ;;  %vm5862_vm1 = vweird.f32 %v9313_v58  ;;  %v17450_v31 = vld [vmem:[#allocation215_spill] sm:$0xff] }
 0x791   :  { %vm5863_vm3 = vmor %vm5861_vm2, %vm5862_vm1 }
 0x792   :  { %v5857_v57 = vmul.f32 %v9313_v58, %v5856_v18  ;;  %v17451_v18 = vld [vmem:[#allocation160_spill] sm:$0xff] }
 0x794   :  { %v5858_v13 = vmul.f32 0.5, %v5857_v57 }
 0x796   :  { %v5859_v27 = vsub.f32 1.5, %v5858_v13  ;;  %v17452_v13 = vld [vmem:[#allocation165_spill] sm:$0xff] }
 0x798   :  { %v5860_v24 = vmul.f32 %v9313_v58, %v5859_v27 }
 0x79a   :  { %v5864_v32 = vsel %vm5863_vm3, %v9313_v58, %v5860_v24 }
 0x79b   :  { %v5865_v12 = vmul.f32 %v5864_v32, %v5853_v29  ;;  %v17453_v29 = vld [vmem:[#allocation54_spill] sm:$0xff] }
 0x79c   :  { %v17454_v32 = vld [vmem:[#allocation170_spill] sm:$0xff] }
 0x79d   :  { %v5867_v9 = vmul.f32 %v5865_v12, %v5485_v0  ;;  %v14471_v16 = vperm.slane %v5865_v12, 0  ;;  %v17448_v0 = vld [vmem:[#allocation218_spill] sm:$0xff] }
 0x79f   :  { %v5868_v63 = vsub.f32 %v5866_v54, %v5867_v9  ;;  %v14475_v22 = vmul.f32 %v14471_v16, %v17442_v62  ;;  %v14479_v37 = vmul.f32 %v14471_v16, %v17443_v11  ;;  %v14483_v36 = vmul.f32 %v14471_v16, %v17444_v41  ;;  %v17455_v54 = vld [vmem:[#allocation221_spill] sm:$0xff]  ;;  %v17458_v62 = vld [vmem:[#allocation58_spill] sm:$0xff]  ;;  %v17459_v41 = vld [vmem:[#allocation180_spill] sm:$0xff] }
 0x7a0   :  { %v14487_v55 = vmul.f32 %v14471_v16, %v17445_v56  ;;  %v14491_v52 = vmul.f32 %v14471_v16, %v17446_v43  ;;  %v14495_v51 = vmul.f32 %v14471_v16, %v17447_v40  ;;  %v14499_v39 = vmul.f32 %v14471_v16, %v17448_v0  ;;  %v17460_v43 = vld [vmem:[#allocation184_spill] sm:$0xff] }
 0x7a1   :  { %v14501_v8 = vperm.slane %v5868_v63, 0  ;;  %v14505_v60 = vmul.f32 %v14471_v16, %v17449_v30  ;;  %v14509_v58 = vmul.f32 %v14471_v16, %v17450_v31  ;;  %v14513_v57 = vmul.f32 %v14471_v16, %v17451_v18  ;;  %v17461_v0 = vld [vmem:[#allocation68_spill] sm:$0xff]  ;;  %v17462_v31 = vld [vmem:[#allocation229_spill] sm:$0xff] }
 0x7a2   :  { %v14517_v27 = vmul.f32 %v14471_v16, %v17452_v13  ;;  %v14521_v24 = vmul.f32 %v14471_v16, %v17453_v29  ;;  %v14525_v12 = vmul.f32 %v14471_v16, %v17454_v32  ;;  %v14529_v34 = vmul.f32 %v14471_v16, %v17455_v54  ;;  %v17463_v13 = vld [vmem:[#allocation189_spill] sm:$0xff] }
 0x7a3   :  { %v14533_v9 = vmul.f32 %v14471_v16, %v17456_v21  ;;  %v14537_v63 = vmul.f32 %v14471_v16, %v17457_v19  ;;  %v14541_v11 = vmul.f32 %v14471_v16, %v17458_v62  ;;  %v14545_v56 = vmul.f32 %v14471_v16, %v17459_v41  ;;  %v17465_v32 = vld [vmem:[#allocation225_spill] sm:$0xff]  ;;  %v17469_v62 = vld [vmem:[#allocation82_spill] sm:$0xff] }
 0x7a4   :  { %v14549_v40 = vmul.f32 %v14471_v16, %v17460_v43  ;;  %v14553_v30 = vmul.f32 %v14471_v16, %v17461_v0  ;;  %v14557_v18 = vmul.f32 %v14471_v16, %v17462_v31  ;;  %v14561_v29 = vmul.f32 %v14471_v16, %v17463_v13  ;;  %v17467_v21 = vld [vmem:[#allocation93_spill] sm:$0xff]  ;;  %v17471_v43 = vld [vmem:[#allocation235_spill] sm:$0xff] }
 0x7a5   :  { %v14565_v54 = vmul.f32 %v14471_v16, %v17465_v32  ;;  %v14569_v19 = vmul.f32 %v14471_v16, %v17467_v21  ;;  %v14573_v41 = vmul.f32 %v14471_v16, %v17469_v62  ;;  %v14577_v0 = vmul.f32 %v14471_v16, %v17471_v43  ;;  %v17473_v31 = vld [vmem:[#allocation245_spill] sm:$0xff] }
 0x7a6   :  { %17464 = vst [vmem:[#allocation77_spill] sm:$0xff] %v14561_v29  ;;  %v14581_v13 = vmul.f32 %v14471_v16, %v17473_v31  ;;  %v17475_v29 = vld [vmem:[#allocation109_spill] sm:$0xff] }
 0x7a7   :  { %17466 = vst [vmem:[#allocation259_spill] sm:$0xff] %v14565_v54  ;;  %v14585_v32 = vmul.f32 %v14471_v16, %v17475_v29  ;;  %v17477_v54 = vld [vmem:[#allocation230_spill] sm:$0xff] }
 0x7a8   :  { %17468 = vst [vmem:[#allocation119_spill] sm:$0xff] %v14569_v19  ;;  %v14589_v21 = vmul.f32 %v14471_v16, %v17477_v54  ;;  %v17478_v19 = vld [vmem:[#allocation95_spill] sm:$0xff] }
 0x7a9   :  { %17470 = vst [vmem:[#allocation136_spill] sm:$0xff] %v14573_v41  ;;  %v14593_v62 = vmul.f32 %v14471_v16, %v17478_v19  ;;  %v17479_v41 = vld [vmem:[#allocation258_spill] sm:$0xff]  ;;  %v14613_v19 = vmul.f32 %v14471_v16, %v13803_v7  ;;  %v14633_v7 = vmul.f32 %v14471_v16, %v13890_v59  ;;  %v14653_v59 = vmul.f32 %v14471_v16, %v14004_v46 }
 0x7aa   :  { %17472 = vst [vmem:[#allocation264_spill] sm:$0xff] %v14577_v0  ;;  %v14597_v43 = vmul.f32 %v14471_v16, %v17479_v41  ;;  %v17480_v0 = vld [vmem:[#allocation248_spill] sm:$0xff]  ;;  %v14617_v41 = vmul.f32 %v14471_v16, %v13811_v44  ;;  %v14637_v44 = vmul.f32 %v14471_v16, %v13920_v53  ;;  %v14657_v53 = vmul.f32 %v14471_v16, %v14009_v49 }
 0x7ab   :  { %17474 = vst [vmem:[#allocation270_spill] sm:$0xff] %v14581_v13  ;;  %v14601_v31 = vmul.f32 %v14471_v16, %v17480_v0  ;;  %v17481_v13 = vld [vmem:[#allocation253_spill] sm:$0xff]  ;;  %v14621_v0 = vmul.f32 %v14471_v16, %v13847_v3  ;;  %v14641_v3 = vmul.f32 %v14471_v16, %v13925_v14  ;;  %v14661_v14 = vmul.f32 %v14471_v16, %v14039_v42 }
 0x7ac   :  { %17476 = vst [vmem:[#allocation260_spill] sm:$0xff] %v14585_v32  ;;  %v14605_v29 = vmul.f32 %v14471_v16, %v17481_v13  ;;  %v17482_v32 = vld [vmem:[#allocation254_spill] sm:$0xff]  ;;  %v14625_v13 = vmul.f32 %v14471_v16, %v13852_v4  ;;  %v14645_v4 = vmul.f32 %v14471_v16, %v13960_v28  ;;  %v14665_v28 = vmul.f32 %v14471_v16, %v14047_v50 }
 0x7ad   :  { %v14609_v54 = vmul.f32 %v14471_v16, %v17482_v32  ;;  %v14629_v32 = vmul.f32 %v14471_v16, %v13882_v5  ;;  %v14649_v5 = vmul.f32 %v14471_v16, %v13968_v47  ;;  %v14669_v47 = vmul.f32 %v14471_v16, %v14077_v48 }
 0x7ae   :  { %v14673_v46 = vmul.f32 %v14471_v16, %v14082_v26  ;;  %v14677_v49 = vmul.f32 %v14471_v16, %v14112_v6  ;;  %v14681_v42 = vmul.f32 %v14471_v16, %v14120_v15  ;;  %v14685_v50 = vmul.f32 %v14471_v16, %v14150_v1 }
 0x7af   :  { %v14689_v48 = vmul.f32 %v14471_v16, %v14155_v25  ;;  %v14693_v26 = vmul.f32 %v14471_v16, %v14185_v17  ;;  %v14697_v6 = vmul.f32 %v14471_v16, %v14193_v45  ;;  %v14701_v15 = vmul.f32 %v14471_v16, %v14229_v20 }
 0x7b0   :  { %v14705_v1 = vmul.f32 %v14471_v16, %v14234_v23  ;;  %v14709_v25 = vmul.f32 %v14471_v16, %v14273_v61  ;;  %v14713_v17 = vmul.f32 %v14471_v16, %v14280_v33  ;;  %v14717_v45 = vmul.f32 %v14471_v16, %v14309_v2 }
 0x7b1   :  { %v14721_v20 = vmul.f32 %v14471_v16, %v14314_v38  ;;  %v14725_v23 = vmul.f32 %v14471_v16, %v14342_v10  ;;  %v14729_v61 = vmul.f32 %v14471_v16, %v14347_v35  ;;  %v14733_v33 = vadd.f32 %v14501_v8, %v14475_v22 }
 0x7b2   :  { %v14737_v2 = vadd.f32 %v14501_v8, %v14479_v37  ;;  %v14741_v38 = vadd.f32 %v14501_v8, %v14483_v36  ;;  %v14745_v10 = vadd.f32 %v14501_v8, %v14487_v55  ;;  %v14749_v35 = vadd.f32 %v14501_v8, %v14491_v52 }
 0x7b3   :  { %17483 = vst [vmem:[#allocation269_spill] sm:$0xff] %v14733_v33  ;;  %v14753_v16 = vadd.f32 %v14501_v8, %v14495_v51  ;;  %v14757_v22 = vadd.f32 %v14501_v8, %v14499_v39  ;;  %v14761_v37 = vadd.f32 %v14501_v8, %v14505_v60  ;;  %v14765_v36 = vadd.f32 %v14501_v8, %v14509_v58 }
 0x7b4   :  { %17484 = vst [vmem:[#allocation126_spill] sm:$0xff] %v14737_v2  ;;  %v14769_v55 = vadd.f32 %v14501_v8, %v14513_v57  ;;  %v14773_v52 = vadd.f32 %v14501_v8, %v14517_v27  ;;  %v14777_v51 = vadd.f32 %v14501_v8, %v14521_v24  ;;  %v14781_v39 = vadd.f32 %v14501_v8, %v14525_v12 }
 0x7b5   :  { %17485 = vst [vmem:[#allocation142_spill] sm:$0xff] %v14741_v38  ;;  %v14785_v60 = vadd.f32 %v14501_v8, %v14529_v34  ;;  %v14789_v58 = vadd.f32 %v14501_v8, %v14533_v9  ;;  %v14793_v57 = vadd.f32 %v14501_v8, %v14537_v63  ;;  %v14797_v27 = vadd.f32 %v14501_v8, %v14541_v11  ;;  %v17494_v63 = vld [vmem:[#allocation77_spill] sm:$0xff] }
 0x7b6   :  { %17486 = vst [vmem:[#allocation79_spill] sm:$0xff] %v14745_v10  ;;  %v14801_v24 = vadd.f32 %v14501_v8, %v14545_v56  ;;  %v14805_v12 = vadd.f32 %v14501_v8, %v14549_v40  ;;  %v14809_v34 = vadd.f32 %v14501_v8, %v14553_v30  ;;  %v14813_v9 = vadd.f32 %v14501_v8, %v14557_v18 }
 0x7b7   :  { %17487 = vst [vmem:[#allocation274_spill] sm:$0xff] %v14749_v35  ;;  %v14817_v11 = vadd.f32 %v14501_v8, %v17494_v63 }
 0x7b8   :  { %17488 = vst [vmem:[#allocation280_spill] sm:$0xff] %v14753_v16 }
 0x7b9   :  { %17489 = vst [vmem:[#allocation132_spill] sm:$0xff] %v14797_v27  ;;  %v17496_v27 = vld [vmem:[#allocation259_spill] sm:$0xff] }
 0x7ba   :  { %17490 = vst [vmem:[#allocation149_spill] sm:$0xff] %v14801_v24  ;;  %v14821_v56 = vadd.f32 %v14501_v8, %v17496_v27  ;;  %v17497_v24 = vld [vmem:[#allocation119_spill] sm:$0xff] }
 0x7bb   :  { %17491 = vst [vmem:[#allocation277_spill] sm:$0xff] %v14805_v12  ;;  %v14825_v40 = vadd.f32 %v14501_v8, %v17497_v24  ;;  %v17498_v12 = vld [vmem:[#allocation136_spill] sm:$0xff]  ;;  %v14845_v24 = vadd.f32 %v14501_v8, %v14589_v21  ;;  %v14865_v21 = vadd.f32 %v14501_v8, %v14609_v54  ;;  %v14885_v54 = vadd.f32 %v14501_v8, %v14629_v32 }
 0x7bc   :  { %17492 = vst [vmem:[#allocation267_spill] sm:$0xff] %v14809_v34  ;;  %v14829_v30 = vadd.f32 %v14501_v8, %v17498_v12  ;;  %v17499_v34 = vld [vmem:[#allocation264_spill] sm:$0xff]  ;;  %v14849_v12 = vadd.f32 %v14501_v8, %v14593_v62  ;;  %v14869_v62 = vadd.f32 %v14501_v8, %v14613_v19  ;;  %v14889_v19 = vadd.f32 %v14501_v8, %v14633_v7 }
 0x7bd   :  { %17493 = vst [vmem:[#allocation284_spill] sm:$0xff] %v14813_v9  ;;  %v14833_v18 = vadd.f32 %v14501_v8, %v17499_v34  ;;  %v17500_v9 = vld [vmem:[#allocation270_spill] sm:$0xff]  ;;  %v14853_v34 = vadd.f32 %v14501_v8, %v14597_v43  ;;  %v14873_v43 = vadd.f32 %v14501_v8, %v14617_v41  ;;  %v14893_v41 = vadd.f32 %v14501_v8, %v14637_v44 }
 0x7be   :  { %17495 = vst [vmem:[#allocation83_spill] sm:$0xff] %v14817_v11  ;;  %v14837_v63 = vadd.f32 %v14501_v8, %v17500_v9  ;;  %v17501_v11 = vld [vmem:[#allocation260_spill] sm:$0xff]  ;;  %v14857_v9 = vadd.f32 %v14501_v8, %v14601_v31  ;;  %v14877_v31 = vadd.f32 %v14501_v8, %v14621_v0  ;;  %v14897_v0 = vadd.f32 %v14501_v8, %v14641_v3 }
 0x7bf   :  { %v14841_v27 = vadd.f32 %v14501_v8, %v17501_v11  ;;  %v14861_v11 = vadd.f32 %v14501_v8, %v14605_v29  ;;  %v14881_v29 = vadd.f32 %v14501_v8, %v14625_v13  ;;  %v14901_v13 = vadd.f32 %v14501_v8, %v14645_v4 }
 0x7c0   :  { %v14905_v32 = vadd.f32 %v14501_v8, %v14649_v5  ;;  %v14909_v7 = vadd.f32 %v14501_v8, %v14653_v59  ;;  %v14913_v44 = vadd.f32 %v14501_v8, %v14657_v53  ;;  %v14917_v3 = vadd.f32 %v14501_v8, %v14661_v14 }
 0x7c1   :  { %v14921_v4 = vadd.f32 %v14501_v8, %v14665_v28  ;;  %v14925_v5 = vadd.f32 %v14501_v8, %v14669_v47  ;;  %v14929_v59 = vadd.f32 %v14501_v8, %v14673_v46  ;;  %v14933_v53 = vadd.f32 %v14501_v8, %v14677_v49  ;;  %v17509_v16 = vld [vmem:[#allocation149_spill] sm:$0xff] }
 0x7c2   :  { %v14937_v14 = vadd.f32 %v14501_v8, %v14681_v42  ;;  %v14941_v28 = vadd.f32 %v14501_v8, %v14685_v50  ;;  %v14945_v47 = vadd.f32 %v14501_v8, %v14689_v48  ;;  %v14949_v46 = vadd.f32 %v14501_v8, %v14693_v26  ;;  %v17510_v35 = vld [vmem:[#allocation277_spill] sm:$0xff] }
 0x7c3   :  { %v14953_v49 = vadd.f32 %v14501_v8, %v14697_v6  ;;  %v14957_v42 = vadd.f32 %v14501_v8, %v14701_v15  ;;  %v14961_v50 = vadd.f32 %v14501_v8, %v14705_v1  ;;  %v14965_v48 = vadd.f32 %v14501_v8, %v14709_v25  ;;  %v17511_v2 = vld [vmem:[#allocation267_spill] sm:$0xff] }
 0x7c4   :  { %v14969_v26 = vadd.f32 %v14501_v8, %v14713_v17  ;;  %v14973_v6 = vadd.f32 %v14501_v8, %v14717_v45  ;;  %v14977_v15 = vadd.f32 %v14501_v8, %v14721_v20  ;;  %v14981_v1 = vadd.f32 %v14501_v8, %v14725_v23  ;;  %v17512_v10 = vld [vmem:[#allocation284_spill] sm:$0xff] }
 0x7c5   :  { %17502 = vst [vmem:[#allocation138_spill] sm:$0xff] %v14965_v48  ;;  %v14985_v25 = vadd.f32 %v14501_v8, %v14729_v61  ;;  %v6010_v23 = vmax.f32 %v14761_v37, 0.0  ;;  %v6012_v8 = vmax.f32 %v14769_v55, 0.0  ;;  %v6013_v61 = vmax.f32 %v14773_v52, 0.0  ;;  %v17513_v33 = vld [vmem:[#allocation83_spill] sm:$0xff] }
 0x7c6   :  { %17503 = vst [vmem:[#allocation290_spill] sm:$0xff] %v14969_v26  ;;  %v6014_v17 = vmax.f32 %v14777_v51, 0.0  ;;  %v6015_v48 = vmax.f32 %v14781_v39, 0.0  ;;  %v6016_v45 = vmax.f32 %v14785_v60, 0.0  ;;  %v6018_v20 = vmax.f32 %v14793_v57, 0.0  ;;  %v17508_v26 = vld [vmem:[#allocation132_spill] sm:$0xff] }
 0x7c7   :  { %17504 = vst [vmem:[#allocation154_spill] sm:$0xff] %v14973_v6  ;;  %v6017_v6 = vmax.f32 %v14789_v58, 0.0  ;;  %v6020_v37 = vmax.f32 %v17509_v16, 0.0  ;;  %v6022_v55 = vmax.f32 %v17511_v2, 0.0  ;;  %v6023_v52 = vmax.f32 %v17512_v10, 0.0 }
 0x7c8   :  { %17505 = vst [vmem:[#allocation25_spill] sm:$0xff] %v14977_v15  ;;  %v6009_v15 = vmax.f32 %v14757_v22, 0.0  ;;  %v6019_v22 = vmax.f32 %v17508_v26, 0.0  ;;  %v6024_v51 = vmax.f32 %v17513_v33, 0.0  ;;  %v6025_v39 = vmax.f32 %v14821_v56, 0.0 }
 0x7c9   :  { %17506 = vst [vmem:[#allocation158_spill] sm:$0xff] %v14981_v1  ;;  %v6011_v1 = vmax.f32 %v14765_v36, 0.0  ;;  %v6021_v36 = vmax.f32 %v17510_v35, 0.0  ;;  %v6026_v60 = vmax.f32 %v14825_v40, 0.0  ;;  %v6027_v58 = vmax.f32 %v14829_v30, 0.0 }
 0x7ca   :  { %17507 = vst [vmem:[#allocation293_spill] sm:$0xff] %v14985_v25  ;;  %v6028_v57 = vmax.f32 %v14833_v18, 0.0  ;;  %v6029_v26 = vmax.f32 %v14837_v63, 0.0  ;;  %v6030_v16 = vmax.f32 %v14841_v27, 0.0  ;;  %v6031_v35 = vmax.f32 %v14845_v24, 0.0 }
 0x7cb   :  { %v6032_v2 = vmax.f32 %v14849_v12, 0.0  ;;  %v6033_v10 = vmax.f32 %v14853_v34, 0.0  ;;  %v6034_v33 = vmax.f32 %v14857_v9, 0.0  ;;  %v6035_v56 = vmax.f32 %v14861_v11, 0.0 }
 0x7cc   :  { %v6036_v40 = vmax.f32 %v14865_v21, 0.0  ;;  %v6037_v30 = vmax.f32 %v14869_v62, 0.0  ;;  %v6038_v18 = vmax.f32 %v14873_v43, 0.0  ;;  %v6039_v63 = vmax.f32 %v14877_v31, 0.0 }
 0x7cd   :  { %v6040_v27 = vmax.f32 %v14881_v29, 0.0  ;;  %v6041_v24 = vmax.f32 %v14885_v54, 0.0  ;;  %v6042_v12 = vmax.f32 %v14889_v19, 0.0  ;;  %v6043_v34 = vmax.f32 %v14893_v41, 0.0 }
 0x7ce   :  { %v6044_v9 = vmax.f32 %v14897_v0, 0.0  ;;  %v6045_v11 = vmax.f32 %v14901_v13, 0.0  ;;  %v6046_v21 = vmax.f32 %v14905_v32, 0.0  ;;  %v6047_v62 = vmax.f32 %v14909_v7, 0.0 }
 0x7cf   :  { %v6048_v43 = vmax.f32 %v14913_v44, 0.0  ;;  %v6049_v31 = vmax.f32 %v14917_v3, 0.0  ;;  %v6050_v29 = vmax.f32 %v14921_v4, 0.0  ;;  %v6051_v54 = vmax.f32 %v14925_v5, 0.0  ;;  %v17514_v5 = vld [vmem:[#allocation138_spill] sm:$0xff] }
 0x7d0   :  { %v6052_v19 = vmax.f32 %v14929_v59, 0.0  ;;  %v6053_v41 = vmax.f32 %v14933_v53, 0.0  ;;  %v6054_v0 = vmax.f32 %v14937_v14, 0.0  ;;  %v6055_v13 = vmax.f32 %v14941_v28, 0.0  ;;  %v17515_v59 = vld [vmem:[#allocation290_spill] sm:$0xff]  ;;  %v17517_v28 = vld [vmem:[#allocation25_spill] sm:$0xff] }
 0x7d1   :  { %v6056_v32 = vmax.f32 %v14945_v47, 0.0  ;;  %v6057_v7 = vmax.f32 %v14949_v46, 0.0  ;;  %v6058_v44 = vmax.f32 %v14953_v49, 0.0  ;;  %v6059_v3 = vmax.f32 %v14957_v42, 0.0  ;;  %v17516_v53 = vld [vmem:[#allocation154_spill] sm:$0xff]  ;;  %v17519_v42 = vld [vmem:[#allocation293_spill] sm:$0xff] }
 0x7d2   :  { %v6060_v4 = vmax.f32 %v14961_v50, 0.0  ;;  %v6061_v38 = vmax.f32 %v17514_v5, 0.0  ;;  %v6062_v25 = vmax.f32 %v17515_v59, 0.0  ;;  %v6063_v14 = vmax.f32 %v17516_v53, 0.0  ;;  %v17518_v46 = vld [vmem:[#allocation158_spill] sm:$0xff]  ;;  %v17522_v53 = vld [vmem:[#allocation269_spill] sm:$0xff] }
 0x7d3   :  { %v6064_v47 = vmax.f32 %v17517_v28, 0.0  ;;  %v6065_v49 = vmax.f32 %v17518_v46, 0.0  ;;  %v6066_v50 = vmax.f32 %v17519_v42, 0.0  ;;  %v17520_v5 = vld [vmem:[#allocation142_spill] sm:$0xff]  ;;  %v17523_v28 = vmax.f32 %v17522_v53, 0.0  ;;  %v17524_v42 = vld [vmem:[#allocation79_spill] sm:$0xff] }
 0x7d4   :  { %v17521_v59 = vmax.f32 %v17520_v5, 0.0  ;;  %v17525_v5 = vmax.f32 %v17524_v42, 0.0  ;;  %v17526_v53 = vld [vmem:[#allocation126_spill] sm:$0xff] }
 0x7d5   :  { %v17528_v42 = vld [vmem:[#allocation274_spill] sm:$0xff] }
 0x7d6   :  { %v6067_v46 = vmax.f32 %v17523_v28, %v17521_v59  ;;  %v17527_v28 = vmax.f32 %v17526_v53, 0.0  ;;  %v17529_v53 = vmax.f32 %v17528_v42, 0.0 }
 0x7d8   :  { %v6068_v59 = vmax.f32 %v17527_v28, %v17525_v5  ;;  %v6083_v5 = vmax.f32 %v17529_v53, %v6009_v15  ;;  %v17530_v28 = vld [vmem:[#allocation280_spill] sm:$0xff]  ;;  %v15065_v53 = vmax.f32 %v6011_v1, %v6013_v61  ;;  %v15075_v1 = vmax.f32 %v6020_v37, %v6022_v55 }
 0x7d9   :  { %v17531_v42 = vmax.f32 %v17530_v28, 0.0  ;;  %v15067_v28 = vmax.f32 %v6012_v8, %v6014_v17  ;;  %v15077_v61 = vmax.f32 %v6023_v52, %v6025_v39  ;;  %v15081_v8 = vmax.f32 %v6027_v58, %v6029_v26 }
 0x7da   :  { %17533 = vst [vmem:[#allocation26_spill] sm:$0xff] %v15065_v53  ;;  %v15079_v53 = vmax.f32 %v6024_v51, %v6026_v60  ;;  %v15083_v17 = vmax.f32 %v6028_v57, %v6030_v16  ;;  %v15097_v37 = vmax.f32 %v6043_v34, %v6045_v11  ;;  %v15101_v55 = vmax.f32 %v6047_v62, %v6049_v31 }
 0x7db   :  { %v15063_v15 = vmax.f32 %v17531_v42, %v6010_v23  ;;  %17534 = vst [vmem:[#allocation282_spill] sm:$0xff] %v15067_v28  ;;  %v15069_v23 = vmax.f32 %v6015_v48, %v6017_v6  ;;  %v15071_v42 = vmax.f32 %v6016_v45, %v6018_v20  ;;  %v15085_v28 = vmax.f32 %v6031_v35, %v6033_v10 }
 0x7dc   :  { %v15087_v6 = vmax.f32 %v6032_v2, %v6034_v33  ;;  %v15089_v48 = vmax.f32 %v6035_v56, %v6037_v30  ;;  %v15091_v45 = vmax.f32 %v6036_v40, %v6038_v18  ;;  %v15093_v20 = vmax.f32 %v6039_v63, %v6041_v24 }
 0x7dd   :  { %17532 = vst [vmem:[#allocation157_spill] sm:$0xff] %v15063_v15  ;;  %v15073_v15 = vmax.f32 %v6019_v22, %v6021_v36  ;;  %v15095_v22 = vmax.f32 %v6040_v27, %v6042_v12  ;;  %v15099_v36 = vmax.f32 %v6044_v9, %v6046_v21  ;;  %v15103_v52 = vmax.f32 %v6048_v43, %v6050_v29 }
 0x7de   :  { %v15105_v51 = vmax.f32 %v6051_v54, %v6053_v41  ;;  %v15107_v39 = vmax.f32 %v6052_v19, %v6054_v0  ;;  %v15109_v60 = vmax.f32 %v6055_v13, %v6057_v7  ;;  %v15111_v58 = vmax.f32 %v6056_v32, %v6058_v44 }
 0x7df   :  { %v15113_v57 = vmax.f32 %v6059_v3, %v6061_v38  ;;  %v15115_v26 = vmax.f32 %v6060_v4, %v6062_v25  ;;  %v15117_v16 = vmax.f32 %v6063_v14, %v6065_v49  ;;  %v15119_v35 = vmax.f32 %v6064_v47, %v6066_v50 }
 0x7e0   :  { %v6072_v2 = vrot.slane %v6067_v46, 1  ;;  %v6073_v10 = vrot.slane %v6068_v59, 1  ;;  %v6087_v33 = vrot.slane %v6083_v5, 1  ;;  %v6117_v25 = vrot.slane %v15069_v23, 1 }
 0x7e1   :  { %v17536_v30 = vld [vmem:[#allocation26_spill] sm:$0xff]  ;;  %v6118_v12 = vrot.slane %v15071_v42, 1  ;;  %v6132_v7 = vrot.slane %v15073_v15, 1  ;;  %v6133_v44 = vrot.slane %v15075_v1, 1  ;;  %v6147_v3 = vrot.slane %v15077_v61, 1 }
 0x7e2   :  { %v6102_v18 = vrot.slane %v17536_v30, 1  ;;  %v17537_v63 = vld [vmem:[#allocation282_spill] sm:$0xff]  ;;  %v6074_v24 = vsel %vm6071_vm4, %v6072_v2, %v6073_v10  ;;  %v6078_v38 = vsel %vm6071_vm4, %v6073_v10, %v6072_v2  ;;  %v6148_v4 = vrot.slane %v15079_v53, 1 }
 0x7e3   :  { %v6103_v27 = vrot.slane %v17537_v63, 1  ;;  %v6079_v34 = vmax.f32 %v6067_v46, %v6074_v24  ;;  %v6080_v9 = vmax.f32 %v6068_v59, %v6078_v38  ;;  %v6119_v41 = vsel %vm6071_vm4, %v6117_v25, %v6118_v12 }
 0x7e4   :  { %v17535_v56 = vld [vmem:[#allocation157_spill] sm:$0xff]  ;;  %v6123_v0 = vsel %vm6071_vm4, %v6118_v12, %v6117_v25  ;;  %v6124_v13 = vmax.f32 %v15069_v23, %v6119_v41  ;;  %v6162_v14 = vrot.slane %v15081_v8, 1  ;;  %v6163_v47 = vrot.slane %v15083_v17, 1 }
 0x7e5   :  { %v6088_v40 = vrot.slane %v17535_v56, 1  ;;  %v6104_v31 = vsel %vm6071_vm4, %v6102_v18, %v6103_v27  ;;  %v6108_v29 = vsel %vm6071_vm4, %v6103_v27, %v6102_v18  ;;  %6081 = vst.msk [vmem:[#allocation2] sm:$0xff] %vm5240_vm0, %v6079_v34  ;;  %v6125_v32 = vmax.f32 %v15071_v42, %v6123_v0 }
 0x7e6   :  { %v6109_v54 = vmax.f32 %v17536_v30, %v6104_v31  ;;  %v6110_v19 = vmax.f32 %v17537_v63, %v6108_v29  ;;  %6082 = vst.msk [vmem:[#allocation2 + $0x8] sm:$0xff] %vm5240_vm0, %v6080_v9  ;;  %v6134_v49 = vsel %vm6071_vm4, %v6132_v7, %v6133_v44  ;;  %v6138_v50 = vsel %vm6071_vm4, %v6133_v44, %v6132_v7 }
 0x7e7   :  { %v6089_v11 = vsel %vm6071_vm4, %v6087_v33, %v6088_v40  ;;  %v6093_v21 = vsel %vm6071_vm4, %v6088_v40, %v6087_v33  ;;  %v6177_v46 = vrot.slane %v15085_v28, 1  ;;  %v6178_v59 = vrot.slane %v15087_v6, 1  ;;  %6126 = vst.msk [vmem:[#allocation2 + $0x30] sm:$0xff] %vm5240_vm0, %v6124_v13 }
 0x7e8   :  { %v6094_v62 = vmax.f32 %v6083_v5, %v6089_v11  ;;  %v6095_v43 = vmax.f32 %v17535_v56, %v6093_v21  ;;  %6111 = vst.msk [vmem:[#allocation2 + $0x20] sm:$0xff] %vm5240_vm0, %v6109_v54  ;;  %v6139_v5 = vmax.f32 %v15073_v15, %v6134_v49  ;;  %v6140_v23 = vmax.f32 %v15075_v1, %v6138_v50 }
 0x7e9   :  { %v6149_v42 = vsel %vm6071_vm4, %v6147_v3, %v6148_v4  ;;  %v6153_v2 = vsel %vm6071_vm4, %v6148_v4, %v6147_v3  ;;  %6112 = vst.msk [vmem:[#allocation2 + $0x28] sm:$0xff] %vm5240_vm0, %v6110_v19  ;;  %v6164_v56 = vsel %vm6071_vm4, %v6162_v14, %v6163_v47  ;;  %v6168_v40 = vsel %vm6071_vm4, %v6163_v47, %v6162_v14  ;;  %v8871_v3 = vld [vmem:[%s16218_s6 + $0x30] sm:$0xf] }
 0x7ea   :  { %6096 = vst.msk [vmem:[#allocation2 + $0x10] sm:$0xff] %vm5240_vm0, %v6094_v62  ;;  %v6154_v10 = vmax.f32 %v15077_v61, %v6149_v42  ;;  %v6155_v33 = vmax.f32 %v15079_v53, %v6153_v2  ;;  %v6169_v15 = vmax.f32 %v15081_v8, %v6164_v56  ;;  %v6170_v1 = vmax.f32 %v15083_v17, %v6168_v40 }
 0x7eb   :  { %6097 = vst.msk [vmem:[#allocation2 + $0x18] sm:$0xff] %vm5240_vm0, %v6095_v43  ;;  %v6179_v30 = vsel %vm6071_vm4, %v6177_v46, %v6178_v59  ;;  %v6183_v18 = vsel %vm6071_vm4, %v6178_v59, %v6177_v46  ;;  %v6192_v63 = vrot.slane %v15089_v48, 1  ;;  %v6193_v27 = vrot.slane %v15091_v45, 1 }
 0x7ec   :  { %6127 = vst.msk [vmem:[#allocation2 + $0x38] sm:$0xff] %vm5240_vm0, %v6125_v32  ;;  %v6184_v61 = vmax.f32 %v15085_v28, %v6179_v30  ;;  %v6185_v53 = vmax.f32 %v15087_v6, %v6183_v18  ;;  %v6207_v8 = vrot.slane %v15093_v20, 1  ;;  %v6208_v17 = vrot.slane %v15095_v22, 1 }
 0x7ed   :  { %6141 = vst.msk [vmem:[#allocation2 + $0x40] sm:$0xff] %vm5240_vm0, %v6139_v5  ;;  %v6222_v24 = vrot.slane %v15097_v37, 1  ;;  %v6223_v38 = vrot.slane %v15099_v36, 1  ;;  %v6194_v28 = vsel %vm6071_vm4, %v6192_v63, %v6193_v27  ;;  %v6198_v6 = vsel %vm6071_vm4, %v6193_v27, %v6192_v63  ;;  %v15221_v50 = vld [vmem:[#allocation2] ss:$2 sm:$0xff] }
 0x7ee   :  { %6142 = vst.msk [vmem:[#allocation2 + $0x48] sm:$0xff] %vm5240_vm0, %v6140_v23  ;;  %v6237_v25 = vrot.slane %v15101_v55, 1  ;;  %v6238_v12 = vrot.slane %v15103_v52, 1  ;;  %v6199_v34 = vmax.f32 %v15089_v48, %v6194_v28  ;;  %v6200_v9 = vmax.f32 %v15091_v45, %v6198_v6  ;;  %v9267_v28 = vld [vmem:[%s16218_s6 + $0x24] sm:$0xf0] }
 0x7ef   :  { %6156 = vst.msk [vmem:[#allocation2 + $0x50] sm:$0xff] %vm5240_vm0, %v6154_v10  ;;  %v6209_v11 = vsel %vm6071_vm4, %v6207_v8, %v6208_v17  ;;  %v6213_v21 = vsel %vm6071_vm4, %v6208_v17, %v6207_v8  ;;  %v6224_v31 = vsel %vm6071_vm4, %v6222_v24, %v6223_v38  ;;  %v6228_v29 = vsel %vm6071_vm4, %v6223_v38, %v6222_v24  ;;  %v8863_v38 = vld [vmem:[%s16218_s6 + $0x20] sm:$0xf] }
 0x7f0   :  { %6157 = vst.msk [vmem:[#allocation2 + $0x58] sm:$0xff] %vm5240_vm0, %v6155_v33  ;;  %v6214_v62 = vmax.f32 %v15093_v20, %v6209_v11  ;;  %v6215_v43 = vmax.f32 %v15095_v22, %v6213_v21  ;;  %v6229_v48 = vmax.f32 %v15097_v37, %v6224_v31  ;;  %v6230_v45 = vmax.f32 %v15099_v36, %v6228_v29 }
 0x7f1   :  { %6171 = vst.msk [vmem:[#allocation2 + $0x60] sm:$0xff] %vm5240_vm0, %v6169_v15  ;;  %v6239_v54 = vsel %vm6071_vm4, %v6237_v25, %v6238_v12  ;;  %v6243_v19 = vsel %vm6071_vm4, %v6238_v12, %v6237_v25  ;;  %v6252_v41 = vrot.slane %v15105_v51, 1  ;;  %v6253_v0 = vrot.slane %v15107_v39, 1 }
 0x7f2   :  { %6172 = vst.msk [vmem:[#allocation2 + $0x68] sm:$0xff] %vm5240_vm0, %v6170_v1  ;;  %v6244_v20 = vmax.f32 %v15101_v55, %v6239_v54  ;;  %v6245_v22 = vmax.f32 %v15103_v52, %v6243_v19  ;;  %v6267_v37 = vrot.slane %v15109_v60, 1  ;;  %v6268_v36 = vrot.slane %v15111_v58, 1  ;;  %v6310_v46 = vld [vmem:[#allocation2 + $0x10] ss:$2 sm:$0xff] }
 0x7f3   :  { %6186 = vst.msk [vmem:[#allocation2 + $0x70] sm:$0xff] %vm5240_vm0, %v6184_v61  ;;  %v6282_v13 = vrot.slane %v15113_v57, 1  ;;  %v6283_v32 = vrot.slane %v15115_v26, 1  ;;  %v6254_v55 = vsel %vm6071_vm4, %v6252_v41, %v6253_v0  ;;  %v6258_v52 = vsel %vm6071_vm4, %v6253_v0, %v6252_v41  ;;  %v15244_v30 = vld [vmem:[#allocation2 + $0x30] ss:$2 sm:$0xff] }
 0x7f4   :  { %6187 = vst.msk [vmem:[#allocation2 + $0x78] sm:$0xff] %vm5240_vm0, %v6185_v53  ;;  %v6297_v7 = vrot.slane %v15117_v16, 1  ;;  %v6298_v44 = vrot.slane %v15119_v35, 1  ;;  %v6259_v4 = vmax.f32 %v15105_v51, %v6254_v55  ;;  %v6260_v14 = vmax.f32 %v15107_v39, %v6258_v52  ;;  %v15228_v51 = vld [vmem:[#allocation2 + $0x20] ss:$2 sm:$0xff] }
 0x7f5   :  { %6201 = vst.msk [vmem:[#allocation2 + $0x80] sm:$0xff] %vm5240_vm0, %v6199_v34  ;;  %v6269_v47 = vsel %vm6071_vm4, %v6267_v37, %v6268_v36  ;;  %v6273_v49 = vsel %vm6071_vm4, %v6268_v36, %v6267_v37  ;;  %v6284_v23 = vsel %vm6071_vm4, %v6282_v13, %v6283_v32  ;;  %v6288_v42 = vsel %vm6071_vm4, %v6283_v32, %v6282_v13  ;;  %v9269_v39 = vld [vmem:[%s16218_s6 + $0x34] sm:$0xf0]  ;;  %v15250_v18 = vld [vmem:[#allocation2 + $0x40] ss:$2 sm:$0xff] }
 0x7f6   :  { %6202 = vst.msk [vmem:[#allocation2 + $0x88] sm:$0xff] %vm5240_vm0, %v6200_v9  ;;  %v6274_v59 = vmax.f32 %v15109_v60, %v6269_v47  ;;  %v6275_v5 = vmax.f32 %v15111_v58, %v6273_v49  ;;  %v6289_v2 = vmax.f32 %v15113_v57, %v6284_v23  ;;  %v6290_v10 = vmax.f32 %v15115_v26, %v6288_v42 }
 0x7f7   :  { %6216 = vst.msk [vmem:[#allocation2 + $0x90] sm:$0xff] %vm5240_vm0, %v6214_v62  ;;  %v6299_v60 = vsel %vm6071_vm4, %v6297_v7, %v6298_v44  ;;  %v6303_v58 = vsel %vm6071_vm4, %v6298_v44, %v6297_v7  ;;  %v6355_v40 = vrot.slane %v15221_v50, 1  ;;  %v6356_v15 = vrot.slane %v6310_v46, 1 }
 0x7f8   :  { %6217 = vst.msk [vmem:[#allocation2 + $0x98] sm:$0xff] %vm5240_vm0, %v6215_v43  ;;  %v6304_v33 = vmax.f32 %v15117_v16, %v6299_v60  ;;  %v6305_v56 = vmax.f32 %v15119_v35, %v6303_v58  ;;  %v6358_v1 = vrot.slane %v15228_v51, 1  ;;  %v8872_v57 = vor.u32 %v9269_v39, %v8871_v3  ;;  %v15252_v16 = vld [vmem:[#allocation2 + $0x50] ss:$2 sm:$0xff] }
 0x7f9   :  { %6231 = vst.msk [vmem:[#allocation2 + $0xa0] sm:$0xff] %vm5240_vm0, %v6229_v48  ;;  %v6357_v26 = vsel %vm6071_vm4, %v6355_v40, %v6356_v15  ;;  %v15255_v35 = vpack.c.bf16 %v6310_v46, %v15221_v50  ;;  %v15261_v53 = vld [vmem:[#allocation2 + $0x60] ss:$2 sm:$0xff]  ;;  %v15271_v17 = vpack.c.bf16 %v15244_v30, %v15228_v51  ;;  %v15275_v24 = vpack.c.bf16 %v15252_v16, %v15250_v18 }
 0x7fa   :  { %6232 = vst.msk [vmem:[#allocation2 + $0xa8] sm:$0xff] %vm5240_vm0, %v6230_v45  ;;  %v6359_v61 = vsel %vm6071_vm4, %v6356_v15, %v6358_v1  ;;  %6714 = vmatpush.bf16.msrb.mxu2 %v8872_v57  ;;  %v8864_v25 = vor.u32 %v9267_v28, %v8863_v38  ;;  %v6405_v34 = vrot.slane %v15221_v50, 2  ;;  %v6406_v9 = vrot.slane %v6310_v46, 2 }
 0x7fb   :  { %6246 = vst.msk [vmem:[#allocation2 + $0xb0] sm:$0xff] %vm5240_vm0, %v6244_v20  ;;  %v15263_v63 = vld [vmem:[#allocation2 + $0x70] ss:$2 sm:$0xff]  ;;  %v6470_v27 = vpack.c.bf16 %v6359_v61, %v6357_v26  ;;  %v6408_v21 = vrot.slane %v15228_v51, 2  ;;  %v6410_v31 = vrot.slane %v15244_v30, 2  ;;  %v6412_v29 = vrot.slane %v15250_v18, 2 }
 0x7fc   :  { %6247 = vst.msk [vmem:[#allocation2 + $0xb8] sm:$0xff] %vm5240_vm0, %v6245_v22  ;;  %v15288_v6 = vpack.c.bf16 %v15263_v63, %v15261_v53  ;;  %v6407_v43 = vsel %vm6404_vm5, %v6405_v34, %v6406_v9  ;;  %v6414_v45 = vrot.slane %v15252_v16, 2  ;;  %v6416_v41 = vrot.slane %v15261_v53, 2 }
 0x7fd   :  { %6261 = vst.msk [vmem:[#allocation2 + $0xc0] sm:$0xff] %vm5240_vm0, %v6259_v4  ;;  %v15267_v8 = vld [vmem:[#allocation2 + $0x80] ss:$2 sm:$0xff]  ;;  %8829 = vmatmul.msk.bf16.vlgmr.msra.gmra.mxu2 %vm5240_vm0, %v6470_v27  ;;  %8837 = vmatmul.msk.bf16.vlgmr.msra.gmra.mxu3 %vm5240_vm0, %v6470_v27  ;;  %v6409_v48 = vsel %vm6404_vm5, %v6406_v9, %v6408_v21  ;;  %v6411_v20 = vsel %vm6404_vm5, %v6408_v21, %v6410_v31  ;;  %v6360_v0 = vrot.slane %v15244_v30, 1  ;;  %v6362_v13 = vrot.slane %v15250_v18, 1 }
 0x7fe   :  { %6262 = vst.msk [vmem:[#allocation2 + $0xc8] sm:$0xff] %vm5240_vm0, %v6260_v14  ;;  %6715 = vmatpush.bf16.msrb.mxu2 %v8864_v25  ;;  %v15312_v19 = vpack.c.bf16 %v6409_v48, %v6407_v43  ;;  %v6413_v22 = vsel %vm6404_vm5, %v6410_v31, %v6412_v29  ;;  %v6415_v55 = vsel %vm6404_vm5, %v6412_v29, %v6414_v45  ;;  %v6418_v7 = vrot.slane %v15263_v63, 2 }
 0x7ff   :  { %6276 = vst.msk [vmem:[#allocation2 + $0xd0] sm:$0xff] %vm5240_vm0, %v6274_v59  ;;  %v15291_v12 = vld [vmem:[#allocation2 + $0x90] ss:$2 sm:$0xff]  ;;  %v15323_v36 = vpack.c.bf16 %v6413_v22, %v6411_v20  ;;  %v6417_v52 = vsel %vm6404_vm5, %v6414_v45, %v6416_v41  ;;  %v6420_v3 = vrot.slane %v15267_v8, 2  ;;  %v6361_v59 = vsel %vm6071_vm4, %v6358_v1, %v6360_v0 }
 0x800   :  { %6277 = vst.msk [vmem:[#allocation2 + $0xd8] sm:$0xff] %vm5240_vm0, %v6275_v5  ;;  %v15297_v11 = vpack.c.bf16 %v15291_v12, %v15267_v8  ;;  %v15331_v44 = vpack.c.bf16 %v6417_v52, %v6415_v55  ;;  %v6419_v14 = vsel %vm6404_vm5, %v6416_v41, %v6418_v7  ;;  %v6422_v47 = vrot.slane %v15291_v12, 2  ;;  %v8855_v20 = vld [vmem:[%s16218_s6 + $0x10] sm:$0xf]  ;;  %v3553_v41 = vpop.f32.mrf.mxu1  ;;  %v2590_v55 = vpop.f32.mrf.mxu2 }
 0x801   :  { %6291 = vst.msk [vmem:[#allocation2 + $0xe0] sm:$0xff] %vm5240_vm0, %v6289_v2  ;;  %v15301_v62 = vld [vmem:[#allocation2 + $0xa0] ss:$2 sm:$0xff]  ;;  %v6421_v23 = vsel %vm6404_vm5, %v6418_v7, %v6420_v3  ;;  %v6363_v42 = vsel %vm6071_vm4, %v6360_v0, %v6362_v13  ;;  %v6364_v43 = vrot.slane %v15252_v16, 1  ;;  %v6366_v31 = vrot.slane %v15261_v53, 1 }
 0x802   :  { %6292 = vst.msk [vmem:[#allocation2 + $0xe8] sm:$0xff] %vm5240_vm0, %v6290_v10  ;;  %v6424_v49 = vrot.slane %v15301_v62, 2  ;;  %v15351_v2 = vpack.c.bf16 %v6421_v23, %v6419_v14  ;;  %v6423_v10 = vsel %vm6404_vm5, %v6420_v3, %v6422_v47  ;;  %v6471_v57 = vpack.c.bf16 %v6363_v42, %v6361_v59  ;;  %v9263_v59 = vld [vmem:[%s16218_s6 + $0x4] sm:$0xf0]  ;;  %v8919_v41 = vld [vmem:[%s16218_s6 + $0xa0] sm:$0xf] }
 0x803   :  { %6306 = vst.msk [vmem:[#allocation2 + $0xf0] sm:$0xff] %vm5240_vm0, %v6304_v33  ;;  %v15310_v54 = vld [vmem:[#allocation2 + $0xb0] ss:$2 sm:$0xff]  ;;  %v6365_v29 = vsel %vm6071_vm4, %v6362_v13, %v6364_v43  ;;  %v6367_v48 = vsel %vm6071_vm4, %v6364_v43, %v6366_v31  ;;  %v6368_v53 = vrot.slane %v15263_v63, 1  ;;  %v6370_v22 = vrot.slane %v15267_v8, 1 }
 0x804   :  { %6307 = vst.msk [vmem:[#allocation2 + $0xf8] sm:$0xff] %vm5240_vm0, %v6305_v56  ;;  %v15321_v37 = vpack.c.bf16 %v15310_v54, %v15301_v62  ;;  %v6426_v46 = vrot.slane %v15310_v54, 2  ;;  %v6425_v60 = vsel %vm6404_vm5, %v6422_v47, %v6424_v49  ;;  %v6472_v45 = vpack.c.bf16 %v6367_v48, %v6365_v29 }
 0x805   :  { %v15326_v32 = vld [vmem:[#allocation2 + $0xc0] ss:$2 sm:$0xff]  ;;  %v15355_v58 = vpack.c.bf16 %v6425_v60, %v6423_v10  ;;  %v6369_v0 = vsel %vm6071_vm4, %v6366_v31, %v6368_v53  ;;  %v6371_v13 = vsel %vm6071_vm4, %v6368_v53, %v6370_v22  ;;  %v6372_v14 = vrot.slane %v15291_v12, 1 }
 0x806   :  { %v6427_v51 = vsel %vm6404_vm5, %v6424_v49, %v6426_v46  ;;  %v6428_v56 = vrot.slane %v15326_v32, 2  ;;  %v6473_v52 = vpack.c.bf16 %v6371_v13, %v6369_v0  ;;  %v6374_v47 = vrot.slane %v15301_v62, 1  ;;  %v9283_v0 = vld [vmem:[%s16218_s6 + $0xa4] sm:$0xf0] }
 0x807   :  { %v15334_v4 = vld [vmem:[#allocation2 + $0xd0] ss:$2 sm:$0xff]  ;;  %v6373_v63 = vsel %vm6071_vm4, %v6370_v22, %v6372_v14  ;;  %v6376_v62 = vrot.slane %v15310_v54, 1  ;;  %v6378_v23 = vrot.slane %v15326_v32, 1  ;;  %v9266_v54 = vld [vmem:[%s16218_s6 + $0x24] sm:$0xf]  ;;  %v8920_v13 = vor.u32 %v9283_v0, %v8919_v41 }
 0x808   :  { %v15345_v5 = vpack.c.bf16 %v15334_v4, %v15326_v32  ;;  %v6430_v15 = vrot.slane %v15334_v4, 2  ;;  %v6429_v18 = vsel %vm6404_vm5, %v6426_v46, %v6428_v56  ;;  %v3554_v7 = vpop.f32.mrf.mxu1  ;;  %v2591_v3 = vpop.f32.mrf.mxu2  ;;  %v6375_v8 = vsel %vm6071_vm4, %v6372_v14, %v6374_v47  ;;  %v8847_v46 = vld [vmem:[%s16218_s6] sm:$0xf] }
 0x809   :  { %v15349_v39 = vld [vmem:[#allocation2 + $0xe0] ss:$2 sm:$0xff]  ;;  %v15373_v38 = vpack.c.bf16 %v6429_v18, %v6427_v51  ;;  %v6474_v49 = vpack.c.bf16 %v6375_v8, %v6373_v63  ;;  %v8848_v12 = vor.u32 %v9263_v59, %v8847_v46  ;;  %v6377_v42 = vsel %vm6071_vm4, %v6374_v47, %v6376_v62  ;;  %v9268_v51 = vld [vmem:[%s16218_s6 + $0x34] sm:$0xf]  ;;  %v8911_v63 = vld [vmem:[%s16218_s6 + $0x90] sm:$0xf] }
 0x80a   :  { %v6432_v1 = vrot.slane %v15349_v39, 2  ;;  %v6431_v61 = vsel %vm6404_vm5, %v6428_v56, %v6430_v15  ;;  %v6379_v10 = vsel %vm6071_vm4, %v6376_v62, %v6378_v23  ;;  %v8873_v56 = vld [vmem:[%s16218_s6 + $0x38] sm:$0xf0]  ;;  %v6380_v18 = vrot.slane %v15334_v4, 1  ;;  %v9281_v8 = vld [vmem:[%s16218_s6 + $0x94] sm:$0xf0] }
 0x80b   :  { %v15358_v33 = vld [vmem:[#allocation2 + $0xf0] ss:$2 sm:$0xff]  ;;  %v6475_v60 = vpack.c.bf16 %v6379_v10, %v6377_v42  ;;  %v8876_v32 = vor.u32 %v9268_v51, %v8873_v56  ;;  %v8903_v10 = vld [vmem:[%s16218_s6 + $0x80] sm:$0xf] }
 0x80c   :  { %v15365_v30 = vpack.c.bf16 %v15358_v33, %v15349_v39  ;;  %v6434_v26 = vrot.slane %v15358_v33, 2  ;;  %v6433_v27 = vsel %vm6404_vm5, %v6430_v15, %v6432_v1  ;;  %v8865_v15 = vld [vmem:[%s16218_s6 + $0x28] sm:$0xf0]  ;;  %v6381_v43 = vsel %vm6071_vm4, %v6378_v23, %v6380_v18  ;;  %v8929_v56 = vld [vmem:[%s16218_s6 + $0xb8] sm:$0xf0] }
 0x80d   :  { %8830 = vmatmul.msk.bf16.gmra.mxu2 %vm5240_vm0, %v6471_v57  ;;  %8838 = vmatmul.msk.bf16.gmra.mxu3 %vm5240_vm0, %v6471_v57  ;;  %v15375_v28 = vpack.c.bf16 %v6433_v27, %v6431_v61  ;;  %v9264_v57 = vld [vmem:[%s16218_s6 + $0x14] sm:$0xf]  ;;  %v6382_v61 = vrot.slane %v15349_v39, 1  ;;  %v6384_v4 = vrot.slane %v15358_v33, 1 }
 0x80e   :  { %v6435_v25 = vsel %vm6404_vm5, %v6432_v1, %v6434_v26  ;;  %v6453_v9 = vsel %vm6404_vm5, %v6434_v26, %v6405_v34  ;;  %v9265_v34 = vld [vmem:[%s16218_s6 + $0x14] sm:$0xf0]  ;;  %6762 = vmatpush.bf16.msrb.mxu3 %v8876_v32  ;;  %v8868_v1 = vor.u32 %v9266_v54, %v8865_v15  ;;  %v8857_v26 = vld [vmem:[%s16218_s6 + $0x18] sm:$0xf0] }
 0x80f   :  { %v15379_v21 = vpack.c.bf16 %v6453_v9, %v6435_v25  ;;  %v8856_v16 = vor.u32 %v9265_v34, %v8855_v20  ;;  %v8860_v27 = vor.u32 %v9264_v57, %v8857_v26  ;;  %v9262_v25 = vld [vmem:[%s16218_s6 + $0x4] sm:$0xf]  ;;  %v8849_v9 = vld [vmem:[%s16218_s6 + $0x8] sm:$0xf0]  ;;  %v6383_v31 = vsel %vm6071_vm4, %v6380_v18, %v6382_v61  ;;  %v8927_v20 = vld [vmem:[%s16218_s6 + $0xb0] sm:$0xf] }
 0x810   :  { %v8852_v29 = vor.u32 %v9262_v25, %v8849_v9  ;;  %v6476_v48 = vpack.c.bf16 %v6383_v31, %v6381_v43  ;;  %v6385_v39 = vsel %vm6071_vm4, %v6382_v61, %v6384_v4  ;;  %v9285_v34 = vld [vmem:[%s16218_s6 + $0xb4] sm:$0xf0]  ;;  %v9280_v26 = vld [vmem:[%s16218_s6 + $0x94] sm:$0xf]  ;;  %v8913_v18 = vld [vmem:[%s16218_s6 + $0x98] sm:$0xf0] }
 0x811   :  { %6716 = vmatpush.bf16.msrb.mxu2 %v8856_v16  ;;  %v8928_v16 = vor.u32 %v9285_v34, %v8927_v20  ;;  %v8916_v61 = vor.u32 %v9280_v26, %v8913_v18  ;;  %v9278_v9 = vld [vmem:[%s16218_s6 + $0x84] sm:$0xf]  ;;  %v8905_v43 = vld [vmem:[%s16218_s6 + $0x88] sm:$0xf0] }
 0x812   :  { %6763 = vmatpush.bf16.msrb.mxu3 %v8868_v1  ;;  %v9282_v1 = vld [vmem:[%s16218_s6 + $0xa4] sm:$0xf]  ;;  %v8908_v31 = vor.u32 %v9278_v9, %v8905_v43 }
 0x815   :  { %6717 = vmatpush.bf16.msrb.mxu2 %v8848_v12 }
 0x816   :  { %6764 = vmatpush.bf16.msrb.mxu3 %v8860_v27 }
 0x819   :  { %6890 = vmatpush.bf16.msra.mxu2 %v8928_v16 }
 0x81a   :  { %6765 = vmatpush.bf16.msrb.mxu3 %v8852_v29 }
 0x81d   :  { %8831 = vmatmul.msk.bf16.gmra.mxu2 %vm5240_vm0, %v6472_v45  ;;  %8839 = vmatmul.msk.bf16.gmra.mxu3 %vm5240_vm0, %v6472_v45  ;;  %v6403_v45 = vsel %vm6071_vm4, %v6384_v4, %v6355_v40 }
 0x81e   :  { %v6477_v53 = vpack.c.bf16 %v6403_v45, %v6385_v39  ;;  %6891 = vmatpush.bf16.msra.mxu2 %v8920_v13 }
 0x82d   :  { %8832 = vmatmul.msk.bf16.gmra.mxu2 %vm5240_vm0, %v6473_v52  ;;  %8840 = vmatmul.msk.bf16.gmra.mxu3 %vm5240_vm0, %v6473_v52 }
 0x83d   :  { %8833 = vmatmul.msk.bf16.gmra.mxu2 %vm5240_vm0, %v6474_v49  ;;  %8841 = vmatmul.msk.bf16.gmra.mxu3 %vm5240_vm0, %v6474_v49  ;;  %v8912_v49 = vor.u32 %v9281_v8, %v8911_v63 }
 0x83f   :  { %6892 = vmatpush.bf16.msra.mxu2 %v8912_v49 }
 0x84d   :  { %8834 = vmatmul.msk.bf16.gmra.mxu2 %vm5240_vm0, %v6475_v60  ;;  %8842 = vmatmul.msk.bf16.gmra.mxu3 %vm5240_vm0, %v6475_v60  ;;  %v9279_v60 = vld [vmem:[%s16218_s6 + $0x84] sm:$0xf0] }
 0x84e   :  { %v8904_v51 = vor.u32 %v9279_v60, %v8903_v10 }
 0x850   :  { %6893 = vmatpush.bf16.msra.mxu2 %v8904_v51 }
 0x85d   :  { %8835 = vmatmul.msk.bf16.gmra.mxu2 %vm5240_vm0, %v6476_v48  ;;  %8843 = vmatmul.msk.bf16.gmra.mxu3 %vm5240_vm0, %v6476_v48 }
 0x86d   :  { %8836 = vmatmul.msk.bf16.gmra.mxu2 %vm5240_vm0, %v6477_v53  ;;  %8844 = vmatmul.msk.bf16.gmra.mxu3 %vm5240_vm0, %v6477_v53 }
 0x87d   :  { %8877 = vmatmul.msk.bf16.vlgmr.msrb.gmra.mxu2 %vm5240_vm0, %v15255_v35  ;;  %8885 = vmatmul.msk.bf16.vlgmr.msrb.gmra.mxu3 %vm5240_vm0, %v15255_v35 }
 0x880   :  { %v15464_v50 = vpop.f32.mrf.mxu2  ;;  %v6608_v40 = vpop.f32.mrf.mxu3 }
 0x888   :  { %v15466_v33 = vpop.f32.mrf.mxu2  ;;  %v6609_v22 = vpop.f32.mrf.mxu3 }
 0x88d   :  { %8878 = vmatmul.msk.bf16.gmra.mxu2 %vm5240_vm0, %v15271_v17  ;;  %8886 = vmatmul.msk.bf16.gmra.mxu3 %vm5240_vm0, %v15271_v17 }
 0x890   :  { %v15478_v35 = vpop.f32.mrf.mxu2  ;;  %v15480_v55 = vpop.f32.mrf.mxu3 }
 0x898   :  { %v15482_v52 = vpop.f32.mrf.mxu2  ;;  %v15484_v7 = vpop.f32.mrf.mxu3 }
 0x89d   :  { %8879 = vmatmul.msk.bf16.gmra.mxu2 %vm5240_vm0, %v15275_v24  ;;  %8887 = vmatmul.msk.bf16.gmra.mxu3 %vm5240_vm0, %v15275_v24 }
 0x8a0   :  { %v15490_v3 = vpop.f32.mrf.mxu2  ;;  %v15492_v14 = vpop.f32.mrf.mxu3 }
 0x8a8   :  { %v15494_v47 = vpop.f32.mrf.mxu2  ;;  %v15496_v17 = vpop.f32.mrf.mxu3 }
 0x8ad   :  { %8880 = vmatmul.msk.bf16.gmra.mxu2 %vm5240_vm0, %v15288_v6  ;;  %8888 = vmatmul.msk.bf16.gmra.mxu3 %vm5240_vm0, %v15288_v6 }
 0x8b0   :  { %v15508_v24 = vpop.f32.mrf.mxu2  ;;  %v15510_v46 = vpop.f32.mrf.mxu3 }
 0x8b8   :  { %v15512_v59 = vpop.f32.mrf.mxu2  ;;  %v15514_v12 = vpop.f32.mrf.mxu3 }
 0x8bd   :  { %8881 = vmatmul.msk.bf16.gmra.mxu2 %vm5240_vm0, %v15297_v11  ;;  %8889 = vmatmul.msk.bf16.gmra.mxu3 %vm5240_vm0, %v15297_v11  ;;  %v9284_v11 = vld [vmem:[%s16218_s6 + $0xb4] sm:$0xf] }
 0x8be   :  { %v8932_v54 = vor.u32 %v9284_v11, %v8929_v56 }
 0x8c0   :  { %v15520_v62 = vpop.f32.mrf.mxu2  ;;  %v15522_v23 = vpop.f32.mrf.mxu3  ;;  %6938 = vmatpush.bf16.msra.mxu3 %v8932_v54 }
 0x8c8   :  { %v15524_v42 = vpop.f32.mrf.mxu2  ;;  %v15526_v6 = vpop.f32.mrf.mxu3 }
 0x8cd   :  { %8882 = vmatmul.msk.bf16.gmra.mxu2 %vm5240_vm0, %v15321_v37  ;;  %8890 = vmatmul.msk.bf16.gmra.mxu3 %vm5240_vm0, %v15321_v37  ;;  %v8921_v37 = vld [vmem:[%s16218_s6 + $0xa8] sm:$0xf0] }
 0x8ce   :  { %v8924_v57 = vor.u32 %v9282_v1, %v8921_v37 }
 0x8d0   :  { %v15544_v32 = vpop.f32.mrf.mxu2  ;;  %v15546_v15 = vpop.f32.mrf.mxu3  ;;  %6939 = vmatpush.bf16.msra.mxu3 %v8924_v57 }
 0x8d4   :  { %6940 = vmatpush.bf16.msra.mxu3 %v8916_v61 }
 0x8d8   :  { %v15560_v27 = vpop.f32.mrf.mxu2  ;;  %v15562_v25 = vpop.f32.mrf.mxu3  ;;  %6941 = vmatpush.bf16.msra.mxu3 %v8908_v31 }
 0x8dd   :  { %8883 = vmatmul.msk.bf16.gmra.mxu2 %vm5240_vm0, %v15345_v5  ;;  %8891 = vmatmul.msk.bf16.gmra.mxu3 %vm5240_vm0, %v15345_v5 }
 0x8e0   :  { %v15574_v29 = vpop.f32.mrf.mxu2  ;;  %v15576_v48 = vpop.f32.mrf.mxu3 }
 0x8e1   :  { %17538 = vst [vmem:[#allocation272_spill] sm:$0xff] %v15576_v48 }
 0x8e8   :  { %v15578_v4 = vpop.f32.mrf.mxu2  ;;  %v15580_v39 = vpop.f32.mrf.mxu3 }
 0x8ed   :  { %8884 = vmatmul.msk.bf16.gmra.mxu2 %vm5240_vm0, %v15365_v30  ;;  %8892 = vmatmul.msk.bf16.gmra.mxu3 %vm5240_vm0, %v15365_v30 }
 0x8f0   :  { %v15586_v45 = vpop.f32.mrf.mxu2  ;;  %v15588_v20 = vpop.f32.mrf.mxu3 }
 0x8f1   :  { %17539 = vst [vmem:[#allocation299_spill] sm:$0xff] %v15588_v20 }
 0x8f8   :  { %v6597_v34 = vpop.f32.mrf.mxu2  ;;  %v15590_v5 = vpop.f32.mrf.mxu3 }
 0x8f9   :  { %17540 = vst [vmem:[#allocation144_spill] sm:$0xff] %v15590_v5 }
 0x8fd   :  { %8933 = vmatmul.msk.bf16.vlgmr.msra.gmra.mxu2 %vm5240_vm0, %v15312_v19  ;;  %8941 = vmatmul.msk.bf16.vlgmr.msra.gmra.mxu3 %vm5240_vm0, %v15312_v19 }
 0x900   :  { %v6719_v16 = vpop.f32.mrf.mxu2  ;;  %v6767_v53 = vpop.f32.mrf.mxu3 }
 0x901   :  { %v6720_v31 = vadd.f32 %v6719_v16, %v15464_v50 }
 0x908   :  { %v6721_v40 = vpop.f32.mrf.mxu2  ;;  %v6768_v22 = vpop.f32.mrf.mxu3 }
 0x909   :  { %v6722_v5 = vadd.f32 %v6721_v40, %v15466_v33 }
 0x90d   :  { %8934 = vmatmul.msk.bf16.gmra.mxu2 %vm5240_vm0, %v15323_v36  ;;  %8942 = vmatmul.msk.bf16.gmra.mxu3 %vm5240_vm0, %v15323_v36 }
 0x910   :  { %v6724_v30 = vpop.f32.mrf.mxu2  ;;  %v6770_v41 = vpop.f32.mrf.mxu3 }
 0x918   :  { %v6726_v0 = vpop.f32.mrf.mxu2  ;;  %v6772_v13 = vpop.f32.mrf.mxu3 }
 0x919   :  { %v6727_v33 = vadd.f32 %v6726_v0, %v15482_v52 }
 0x91d   :  { %8935 = vmatmul.msk.bf16.gmra.mxu2 %vm5240_vm0, %v15331_v44  ;;  %8943 = vmatmul.msk.bf16.gmra.mxu3 %vm5240_vm0, %v15331_v44 }
 0x920   :  { %v6729_v19 = vpop.f32.mrf.mxu2  ;;  %v6775_v63 = vpop.f32.mrf.mxu3 }
 0x928   :  { %v15604_v8 = vpop.f32.mrf.mxu2  ;;  %v15606_v49 = vpop.f32.mrf.mxu3 }
 0x92d   :  { %8936 = vmatmul.msk.bf16.gmra.mxu2 %vm5240_vm0, %v15351_v2  ;;  %8944 = vmatmul.msk.bf16.gmra.mxu3 %vm5240_vm0, %v15351_v2 }
 0x930   :  { %v15612_v36 = vpop.f32.mrf.mxu2  ;;  %v15614_v10 = vpop.f32.mrf.mxu3 }
 0x938   :  { %v15616_v60 = vpop.f32.mrf.mxu2  ;;  %v15618_v51 = vpop.f32.mrf.mxu3 }
 0x93d   :  { %8937 = vmatmul.msk.bf16.gmra.mxu2 %vm5240_vm0, %v15355_v58  ;;  %8945 = vmatmul.msk.bf16.gmra.mxu3 %vm5240_vm0, %v15355_v58 }
 0x940   :  { %v15624_v44 = vpop.f32.mrf.mxu2  ;;  %v15626_v11 = vpop.f32.mrf.mxu3 }
 0x948   :  { %v15628_v56 = vpop.f32.mrf.mxu2  ;;  %v15630_v2 = vpop.f32.mrf.mxu3 }
 0x94d   :  { %8938 = vmatmul.msk.bf16.gmra.mxu2 %vm5240_vm0, %v15373_v38  ;;  %8946 = vmatmul.msk.bf16.gmra.mxu3 %vm5240_vm0, %v15373_v38 }
 0x950   :  { %v15636_v54 = vpop.f32.mrf.mxu2  ;;  %v15638_v1 = vpop.f32.mrf.mxu3 }
 0x958   :  { %v15640_v37 = vpop.f32.mrf.mxu2  ;;  %v15642_v58 = vpop.f32.mrf.mxu3 }
 0x95d   :  { %8939 = vmatmul.msk.bf16.gmra.mxu2 %vm5240_vm0, %v15375_v28  ;;  %8947 = vmatmul.msk.bf16.gmra.mxu3 %vm5240_vm0, %v15375_v28 }
 0x960   :  { %v15648_v57 = vpop.f32.mrf.mxu2  ;;  %v15650_v26 = vpop.f32.mrf.mxu3 }
 0x961   :  { %17541 = vst [vmem:[#allocation164_spill] sm:$0xff] %v15650_v26 }
 0x968   :  { %v15652_v18 = vpop.f32.mrf.mxu2  ;;  %v15654_v38 = vpop.f32.mrf.mxu3 }
 0x96d   :  { %8940 = vmatmul.msk.bf16.gmra.mxu2 %vm5240_vm0, %v15379_v21  ;;  %8948 = vmatmul.msk.bf16.gmra.mxu3 %vm5240_vm0, %v15379_v21  ;;  %v6725_v21 = vadd.f32 %v6724_v30, %v15478_v35  ;;  %v6776_v30 = vadd.f32 %v6775_v63, %v15492_v14  ;;  %v6737_v63 = vadd.f32 %v15616_v60, %v15512_v59 }
 0x96e   :  { %v6745_v60 = vadd.f32 %v15636_v54, %v15544_v32  ;;  %v6750_v32 = vadd.f32 %v15648_v57, %v15574_v29 }
 0x970   :  { %v15660_v61 = vpop.f32.mrf.mxu2  ;;  %v15662_v9 = vpop.f32.mrf.mxu3 }
 0x971   :  { %17542 = vst [vmem:[#allocation30_spill] sm:$0xff] %v15662_v9  ;;  %v6755_v29 = vadd.f32 %v15660_v61, %v15586_v45 }
 0x978   :  { %v6756_v43 = vpop.f32.mrf.mxu2  ;;  %v15664_v28 = vpop.f32.mrf.mxu3 }
 0x979   :  { %17543 = vst [vmem:[#allocation168_spill] sm:$0xff] %v15664_v28  ;;  %v6771_v43 = vadd.f32 %v6770_v41, %v15480_v55  ;;  %v6730_v55 = vadd.f32 %v6729_v19, %v15490_v3  ;;  %v6735_v3 = vadd.f32 %v15612_v36, %v15508_v24  ;;  %v6742_v36 = vadd.f32 %v15628_v56, %v15524_v42 }
 0x97a   :  { %v6747_v42 = vadd.f32 %v15640_v37, %v15560_v27  ;;  %v6752_v27 = vadd.f32 %v15652_v18, %v15578_v4  ;;  %v7125_v4 = vld [vmem:[%s16219_s10 + $0x68] sm:$0xff] }
 0x980   :  { %v6895_v34 = vpop.f32.mrf.mxu2  ;;  %v6943_v53 = vpop.f32.mrf.mxu3 }
 0x981   :  { %v15667_v22 = vadd.f32 %v6895_v34, %v6720_v31 }
 0x988   :  { %v6897_v20 = vpop.f32.mrf.mxu2  ;;  %v6944_v26 = vpop.f32.mrf.mxu3 }
 0x989   :  { %v15670_v48 = vadd.f32 %v6897_v20, %v6722_v5  ;;  %v6773_v20 = vadd.f32 %v6772_v13, %v15484_v7  ;;  %v6732_v7 = vadd.f32 %v15604_v8, %v15494_v47  ;;  %v6740_v8 = vadd.f32 %v15624_v44, %v15520_v62  ;;  %v15734_v44 = vpop.permute.xlu1 %7133 }
 0x98b   :  { %7024 = vrot.lane.b32.xlu1 %v15670_v48, %s9325_s19 }
 0x990   :  { %v6900_v28 = vpop.f32.mrf.mxu2  ;;  %v6946_v9 = vpop.f32.mrf.mxu3 }
 0x991   :  { %v15676_v50 = vadd.f32 %v6900_v28, %v6725_v21  ;;  %v15678_v16 = vadd.f32 %v6946_v9, %v6771_v43 }
 0x993   :  { %7026 = vrot.lane.b32.xlu2 %v15676_v50, %s9325_s19 }
 0x998   :  { %v6902_v5 = vpop.f32.mrf.mxu2  ;;  %v6948_v40 = vpop.f32.mrf.mxu3 }
 0x999   :  { %v15684_v26 = vadd.f32 %v6902_v5, %v6727_v33  ;;  %v15686_v35 = vadd.f32 %v6948_v40, %v6773_v20  ;;  %v15744_v33 = vpop.permute.xlu1 %7148  ;;  %v7123_v5 = vld [vmem:[%s16219_s10 + $0x58] sm:$0xff] }
 0x99b   :  { %7028 = vrot.lane.b32.xlu0 %v15684_v26, %s9325_s19 }
 0x9a0   :  { %v6905_v41 = vpop.f32.mrf.mxu2  ;;  %v6951_v9 = vpop.f32.mrf.mxu3 }
 0x9a1   :  { %v15692_v28 = vadd.f32 %v6905_v41, %v6730_v55  ;;  %v15694_v52 = vadd.f32 %v6951_v9, %v6776_v30  ;;  %v15757_v55 = vpop.permute.xlu1 %7163 }
 0x9a3   :  { %7030 = vrot.lane.b32.xlu1 %v15692_v28, %s9325_s19 }
 0x9a8   :  { %v6907_v0 = vpop.f32.mrf.mxu2  ;;  %v6953_v41 = vpop.f32.mrf.mxu3 }
 0x9a9   :  { %v15700_v13 = vadd.f32 %v6907_v0, %v6732_v7  ;;  %v15767_v30 = vpop.permute.xlu1 %7178  ;;  %v7124_v7 = vld [vmem:[%s16219_s10 + $0x60] sm:$0xff] }
 0x9ab   :  { %7032 = vrot.lane.b32.xlu2 %v15700_v13, %s9325_s19 }
 0x9b0   :  { %v6910_v14 = vpop.f32.mrf.mxu2  ;;  %v6956_v61 = vpop.f32.mrf.mxu3 }
 0x9b1   :  { %v15706_v19 = vadd.f32 %v6910_v14, %v6735_v3  ;;  %v7129_v14 = vpop.permute.xlu0 %7128 }
 0x9b3   :  { %7034 = vrot.lane.b32.xlu2 %v15706_v19, %s9325_s19 }
 0x9b8   :  { %v6912_v31 = vpop.f32.mrf.mxu2 }
 0x9b9   :  { %v15712_v47 = vadd.f32 %v6912_v31, %v6737_v63  ;;  %v7144_v63 = vpop.permute.xlu2 %7143  ;;  %v6958_v31 = vpop.f32.mrf.mxu3 }
 0x9bb   :  { %7036 = vrot.lane.b32.xlu1 %v15712_v47, %s9325_s19 }
 0x9c0   :  { %v6915_v34 = vpop.f32.mrf.mxu2 }
 0x9c1   :  { %v15718_v24 = vadd.f32 %v6915_v34, %v6740_v8  ;;  %v7139_v8 = vpop.permute.xlu0 %7138  ;;  %v15774_v34 = vpop.permute.xlu2 %7158 }
 0x9c3   :  { %7038 = vrot.lane.b32.xlu0 %v15718_v24, %s9325_s19 }
 0x9c8   :  { %v6917_v53 = vpop.f32.mrf.mxu2 }
 0x9c9   :  { %v15724_v59 = vadd.f32 %v6917_v53, %v6742_v36  ;;  %v6961_v36 = vpop.f32.mrf.mxu3  ;;  %v15776_v53 = vpop.permute.xlu0 %7153 }
 0x9cb   :  { %7040 = vrot.lane.b32.xlu2 %v15724_v59, %s9325_s19 }
 0x9d0   :  { %v6920_v21 = vpop.f32.mrf.mxu2 }
 0x9d1   :  { %v15730_v62 = vadd.f32 %v6920_v21, %v6745_v60  ;;  %v15778_v60 = vpop.permute.xlu2 %7173  ;;  %v6963_v21 = vpop.f32.mrf.mxu3 }
 0x9d3   :  { %7042 = vrot.lane.b32.xlu1 %v15730_v62, %s9325_s19 }
 0x9d8   :  { %v6922_v56 = vpop.f32.mrf.mxu2 }
 0x9d9   :  { %v15738_v43 = vadd.f32 %v6922_v56, %v6747_v42  ;;  %v15780_v42 = vpop.permute.xlu0 %7168 }
 0x9db   :  { %7044 = vrot.lane.b32.xlu0 %v15738_v43, %s9325_s19 }
 0x9e0   :  { %v6925_v54 = vpop.f32.mrf.mxu2 }
 0x9e1   :  { %v15746_v20 = vadd.f32 %v6925_v54, %v6750_v32 }
 0x9e3   :  { %7046 = vrot.lane.b32.xlu2 %v15746_v20, %s9325_s19 }
 0x9e8   :  { %v6927_v37 = vpop.f32.mrf.mxu2 }
 0x9e9   :  { %v15755_v40 = vadd.f32 %v6927_v37, %v6752_v27 }
 0x9eb   :  { %7183 = vperm.xlu2 %9304, %v7123_v5   ;;  %7048 = vrot.lane.b32.xlu1 %v15755_v40, %s9325_s19 }
 0x9ed   :  { %v7027_v56 = vpop.permute.xlu2 %7026 }
 0x9ee   :  { %v7067_v27 = vadd.f32 %v7027_v56, %v15670_v48  ;;  %v8957_v48 = vld [vmem:[%s16223_s11 + $0x78] sm:$0xff] }
 0x9ef   :  { %7517 = vmatpush.msrb.mxu3 %v8957_v48 }
 0x9f0   :  { %v6930_v57 = vpop.f32.mrf.mxu2 }
 0x9f1   :  { %v7007_v18 = vadd.f32 %v6930_v57, %v6755_v29  ;;  %v6778_v29 = vadd.f32 %v15606_v49, %v15496_v17 }
 0x9f3   :  { %7050 = vrot.lane.b32.xlu0 %v7007_v18, %s9325_s19  ;;  %7193 = vperm.xlu1 %9306, %v7125_v4   ;;  %v15795_v4 = vld [vmem:[%s16222_s7] ss:$0 sm:$0xff]  ;;  %v7081_v18 = vadd.f32 %v7067_v27, %v15686_v35  ;;  %v6781_v35 = vadd.f32 %v15614_v10, %v15510_v46  ;;  %v8956_v46 = vld [vmem:[%s16223_s11 + $0x70] sm:$0xff]  ;;  %v6783_v10 = vadd.f32 %v15618_v51, %v15514_v12 }
 0x9f4   :  { %7518 = vmatpush.msrb.mxu3 %v8956_v46 }
 0x9f5   :  { %v6992_v56 = vadd.f32 %v6956_v61, %v6781_v35  ;;  %v6994_v12 = vadd.f32 %v6958_v31, %v6783_v10 }
 0x9f8   :  { %v6932_v9 = vpop.f32.mrf.mxu2 }
 0x9f9   :  { %v6990_v9 = vadd.f32 %v6953_v41, %v6778_v29  ;;  %v6788_v29 = vadd.f32 %v15630_v2, %v15526_v6 }
 0x9fb   :  { %7188 = vperm.xlu0 %9305, %v7124_v7  }
 0x9fd   :  { %v7025_v0 = vpop.permute.xlu1 %7024 }
 0x9fe   :  { %v7066_v45 = vadd.f32 %v7025_v0, %v15667_v22  ;;  %v7468_v22 = vld [vmem:[%s16223_s11 + $0x38] sm:$0xff] }
 0x9ff   :  { %7480 = vmatpush.msrb.mxu2 %v7468_v22 }
 0xa00   :  { %v7080_v3 = vadd.f32 %v7066_v45, %v15678_v16  ;;  %v15785_v16 = vpop.f32.mrf.mxu3 }
 0xa02   :  { %v15805_v17 = vadd.f32 %v15795_v4, %v7080_v3 }
 0xa04   :  { %v7196_v22 = vmul.f32 %v7129_v14, %v15805_v17 }
 0xa05   :  { %v7033_v54 = vpop.permute.xlu2 %7032 }
 0xa06   :  { %v7070_v41 = vadd.f32 %v7033_v54, %v15692_v28  ;;  %v6786_v54 = vadd.f32 %v15626_v11, %v15522_v23 }
 0xa08   :  { %v7084_v27 = vadd.f32 %v7070_v41, %v6992_v56  ;;  %v6996_v51 = vadd.f32 %v6961_v36, %v6786_v54 }
 0xa0d   :  { %v7029_v32 = vpop.permute.xlu0 %7028  ;;  %v7035_v0 = vpop.permute.xlu2 %7034 }
 0xa0e   :  { %v7068_v5 = vadd.f32 %v7029_v32, %v15676_v50  ;;  %v15802_v50 = vpop.f32.mrf.mxu3  ;;  %v7467_v32 = vld [vmem:[%s16223_s11 + $0x30] sm:$0xff]  ;;  %v7071_v61 = vadd.f32 %v7035_v0, %v15700_v13 }
 0xa0f   :  { %7481 = vmatpush.msrb.mxu2 %v7467_v32 }
 0xa10   :  { %v7082_v7 = vadd.f32 %v7068_v5, %v15694_v52  ;;  %v7085_v23 = vadd.f32 %v7071_v61, %v6994_v12 }
 0xa12   :  { %v15814_v52 = vadd.f32 %v15795_v4, %v7082_v7  ;;  %v15856_v41 = vadd.f32 %v15795_v4, %v7085_v23 }
 0xa14   :  { %v7201_v61 = vmul.f32 %v15776_v53, %v15856_v41 }
 0xa15   :  { %v7031_v37 = vpop.permute.xlu1 %7030 }
 0xa16   :  { %v7069_v57 = vadd.f32 %v7031_v37, %v15684_v26  ;;  %v15808_v26 = vadd.f32 %v15795_v4, %v7081_v18  ;;  %v7198_v37 = vmul.f32 %v7139_v8, %v15814_v52  ;;  %v6998_v18 = vadd.f32 %v6963_v21, %v6788_v29  ;;  %v15841_v11 = vpop.f32.mrf.mxu3 }
 0xa17   :  { %v7210_v8 = vsel %vm5240_vm0, %v7196_v22, 0.0 }
 0xa18   :  { %v7083_v49 = vadd.f32 %v7069_v57, %v6990_v9  ;;  %v7197_v28 = vmul.f32 %v15734_v44, %v15808_v26  ;;  %v7243_v44 = vmul.f32 %v7196_v22, %v15805_v17  ;;  %v7245_v6 = vmul.f32 %v7198_v37, %v15814_v52 }
 0xa19   :  { %v7213_v21 = vsel %vm5240_vm0, %v7198_v37, 0.0 }
 0xa1a   :  { %v15818_v3 = vadd.f32 %v15795_v4, %v7083_v49  ;;  %v7244_v9 = vmul.f32 %v7197_v28, %v15808_v26  ;;  %v7257_v36 = vsel %vm5240_vm0, %v7243_v44, 0.0 }
 0xa1c   :  { %v7199_v13 = vmul.f32 %v7144_v63, %v15818_v3  ;;  %v6791_v63 = vadd.f32 %v15638_v1, %v15546_v15  ;;  %v7258_v49 = vsel %vm5240_vm0, %v7244_v9, 0.0  ;;  %v7260_v1 = vsel %vm5240_vm0, %v7245_v6, 0.0 }
 0xa1d   :  { %v7259_v32 = vadd.f32 %v7258_v49, %v7257_v36 }
 0xa1e   :  { %v7246_v7 = vmul.f32 %v7199_v13, %v15818_v3  ;;  %v7000_v22 = vadd.f32 %v15785_v16, %v6791_v63  ;;  %v6793_v16 = vadd.f32 %v15642_v58, %v15562_v25  ;;  %v6973_v44 = vpop.f32.mrf.mxu3  ;;  %v6798_v25 = vadd.f32 %v15654_v38, %v15580_v39  ;;  %v17545_v63 = vld [vmem:[#allocation164_spill] sm:$0xff] }
 0xa1f   :  { %v7248_v58 = vmul.f32 %v7201_v61, %v15856_v41 }
 0xa20   :  { %v7262_v10 = vsel %vm5240_vm0, %v7246_v7, 0.0  ;;  %v7006_v6 = vadd.f32 %v6973_v44, %v6798_v25 }
 0xa21   :  { %v7266_v36 = vsel %vm5240_vm0, %v7248_v58, 0.0 }
 0xa25   :  { %v7041_v2 = vpop.permute.xlu2 %7040 }
 0xa26   :  { %v7074_v0 = vadd.f32 %v7041_v2, %v15718_v24  ;;  %v7466_v24 = vld [vmem:[%s16223_s11 + $0x28] sm:$0xff] }
 0xa27   :  { %7482 = vmatpush.msrb.mxu2 %v7466_v24 }
 0xa28   :  { %v7088_v54 = vadd.f32 %v7074_v0, %v7000_v22 }
 0xa2d   :  { %v7037_v45 = vpop.permute.xlu1 %7036 }
 0xa2e   :  { %v7072_v5 = vadd.f32 %v7037_v45, %v15706_v19  ;;  %v15845_v19 = vadd.f32 %v15795_v4, %v7084_v27  ;;  %v7215_v45 = vsel %vm5240_vm0, %v7199_v13, 0.0 }
 0xa30   :  { %v7086_v31 = vadd.f32 %v7072_v5, %v6996_v51  ;;  %v7200_v15 = vmul.f32 %v15744_v33, %v15845_v19  ;;  %v7261_v33 = vadd.f32 %v7260_v1, %v7259_v32  ;;  %v7002_v51 = vadd.f32 %v15802_v50, %v6793_v16 }
 0xa32   :  { %v15864_v56 = vadd.f32 %v15795_v4, %v7086_v31  ;;  %v7247_v27 = vmul.f32 %v7200_v15, %v15845_v19  ;;  %v7263_v5 = vadd.f32 %v7262_v10, %v7261_v33  ;;  %v7217_v13 = vsel %vm5240_vm0, %v7200_v15, 0.0  ;;  %v17544_v31 = vld [vmem:[#allocation272_spill] sm:$0xff] }
 0xa34   :  { %v7202_v37 = vmul.f32 %v15774_v34, %v15864_v56  ;;  %v15887_v34 = vadd.f32 %v15795_v4, %v7088_v54  ;;  %v7264_v9 = vsel %vm5240_vm0, %v7247_v27, 0.0 }
 0xa35   :  { %v7039_v14 = vpop.permute.xlu0 %7038 }
 0xa36   :  { %v7073_v57 = vadd.f32 %v7039_v14, %v15712_v47  ;;  %v7211_v47 = vsel %vm5240_vm0, %v7197_v28, 0.0  ;;  %v7249_v50 = vmul.f32 %v7202_v37, %v15864_v56  ;;  %v7221_v2 = vsel %vm5240_vm0, %v7202_v37, 0.0 }
 0xa37   :  { %v7212_v35 = vadd.f32 %v7211_v47, %v7210_v8  ;;  %v6796_v47 = vadd.f32 %v17545_v63, %v17544_v31  ;;  %v17548_v31 = vld [vmem:[#allocation144_spill] sm:$0xff] }
 0xa38   :  { %v7087_v48 = vadd.f32 %v7073_v57, %v6998_v18  ;;  %v7268_v7 = vsel %vm5240_vm0, %v7249_v50, 0.0  ;;  %v17549_v63 = vld [vmem:[#allocation168_spill] sm:$0xff] }
 0xa39   :  { %v7214_v46 = vadd.f32 %v7213_v21, %v7212_v35  ;;  %v7204_v21 = vmul.f32 %v15780_v42, %v15887_v34 }
 0xa3a   :  { %v7105_v28 = vadd.f32 %v15795_v4, %v7087_v48 }
 0xa3b   :  { %v7216_v14 = vadd.f32 %v7215_v45, %v7214_v46  ;;  %v7004_v45 = vadd.f32 %v15841_v11, %v6796_v47  ;;  %v6803_v47 = vadd.f32 %v17549_v63, %v17548_v31  ;;  %v8965_v31 = vld [vmem:[%s16223_s11 + $0xb0] sm:$0xff] }
 0xa3c   :  { %v7203_v53 = vmul.f32 %v15757_v55, %v7105_v28  ;;  %v7265_v55 = vadd.f32 %v7264_v9, %v7263_v5  ;;  %v6976_v9 = vpop.f32.mrf.mxu3  ;;  %v8974_v63 = vld [vmem:[%s16223_s11 + $0xf0] sm:$0xff] }
 0xa3d   :  { %v7047_v29 = vpop.permute.xlu2 %7046  ;;  %v7218_v18 = vadd.f32 %v7217_v13, %v7216_v14  ;;  %v7225_v14 = vsel %vm5240_vm0, %v7204_v21, 0.0 }
 0xa3e   :  { %v7077_v23 = vadd.f32 %v7047_v29, %v15738_v43  ;;  %v7250_v39 = vmul.f32 %v7203_v53, %v7105_v28  ;;  %v7223_v48 = vsel %vm5240_vm0, %v7203_v53, 0.0  ;;  %v7267_v15 = vadd.f32 %v7266_v36, %v7265_v55 }
 0xa3f   :  { %v7251_v28 = vmul.f32 %v7204_v21, %v15887_v34 }
 0xa40   :  { %v7091_v49 = vadd.f32 %v7077_v23, %v7006_v6  ;;  %v7270_v22 = vsel %vm5240_vm0, %v7250_v39, 0.0  ;;  %v7269_v46 = vadd.f32 %v7268_v7, %v7267_v15 }
 0xa41   :  { %v7272_v37 = vsel %vm5240_vm0, %v7251_v28, 0.0 }
 0xa42   :  { %v15911_v24 = vadd.f32 %v15795_v4, %v7091_v49  ;;  %v7271_v11 = vadd.f32 %v7270_v22, %v7269_v46 }
 0xa44   :  { %v6978_v55 = vpop.f32.mrf.mxu3 }
 0xa45   :  { %v7043_v12 = vpop.permute.xlu1 %7042  ;;  %v7184_v10 = vpop.permute.xlu2 %7183  ;;  %v7009_v7 = vadd.f32 %v6978_v55, %v6803_v47  ;;  %v7461_v55 = vld [vmem:[%s16223_s11] sm:$0xff]  ;;  %v8964_v47 = vld [vmem:[%s16223_s11 + $0xa8] sm:$0xff] }
 0xa46   :  { %v7075_v57 = vadd.f32 %v7043_v12, %v15724_v59  ;;  %v7219_v59 = vsel %vm5240_vm0, %v7201_v61, 0.0  ;;  %v8955_v61 = vld [vmem:[%s16223_s11 + $0x68] sm:$0xff] }
 0xa47   :  { %v7220_v43 = vadd.f32 %v7219_v59, %v7218_v18  ;;  %7519 = vmatpush.msrb.mxu3 %v8955_v61  ;;  %v17546_v59 = vld [vmem:[#allocation299_spill] sm:$0xff] }
 0xa48   :  { %v7089_v8 = vadd.f32 %v7075_v57, %v7002_v51  ;;  %v7273_v51 = vadd.f32 %v7272_v37, %v7271_v11 }
 0xa49   :  { %v7222_v0 = vadd.f32 %v7221_v2, %v7220_v43  ;;  %v17547_v2 = vld [vmem:[#allocation30_spill] sm:$0xff] }
 0xa4a   :  { %v15895_v38 = vadd.f32 %v15795_v4, %v7089_v8  ;;  %v6801_v39 = vadd.f32 %v17547_v2, %v17546_v59  ;;  %v8950_v59 = vld [vmem:[%s16223_s11 + $0x40] sm:$0xff]  ;;  %v8966_v2 = vld [vmem:[%s16223_s11 + $0xb8] sm:$0xff] }
 0xa4b   :  { %v7224_v42 = vadd.f32 %v7223_v48, %v7222_v0 }
 0xa4c   :  { %v7205_v35 = vmul.f32 %v15778_v60, %v15895_v38  ;;  %v7008_v43 = vadd.f32 %v6976_v9, %v6801_v39  ;;  %v7463_v9 = vld [vmem:[%s16223_s11 + $0x10] sm:$0xff]  ;;  %v8975_v39 = vld [vmem:[%s16223_s11 + $0xf8] sm:$0xff] }
 0xa4d   :  { %v7045_v1 = vpop.permute.xlu0 %7044  ;;  %v7226_v27 = vadd.f32 %v7225_v14, %v7224_v42 }
 0xa4e   :  { %v7076_v32 = vadd.f32 %v7045_v1, %v15730_v62  ;;  %v7252_v33 = vmul.f32 %v7205_v35, %v15895_v38  ;;  %v7207_v62 = vmul.f32 %v7184_v10, %v15911_v24  ;;  %v7227_v16 = vsel %vm5240_vm0, %v7205_v35, 0.0 }
 0xa4f   :  { %v7228_v12 = vadd.f32 %v7227_v16, %v7226_v27 }
 0xa50   :  { %v7090_v60 = vadd.f32 %v7076_v32, %v7004_v45  ;;  %v7274_v5 = vsel %vm5240_vm0, %v7252_v33, 0.0  ;;  %v7254_v44 = vmul.f32 %v7207_v62, %v15911_v24  ;;  %v7231_v58 = vsel %vm5240_vm0, %v7207_v62, 0.0 }
 0xa51   :  { %v7275_v25 = vadd.f32 %v7274_v5, %v7273_v51 }
 0xa52   :  { %v15920_v54 = vadd.f32 %v15795_v4, %v7090_v60  ;;  %v7278_v8 = vsel %vm5240_vm0, %v7254_v44, 0.0 }
 0xa54   :  { %v7206_v29 = vmul.f32 %v15767_v30, %v15920_v54 }
 0xa56   :  { %v7253_v13 = vmul.f32 %v7206_v29, %v15920_v54  ;;  %v7229_v53 = vsel %vm5240_vm0, %v7206_v29, 0.0 }
 0xa57   :  { %v7230_v57 = vadd.f32 %v7229_v53, %v7228_v12  ;;  %v8954_v53 = vld [vmem:[%s16223_s11 + $0x60] sm:$0xff] }
 0xa58   :  { %v7276_v18 = vsel %vm5240_vm0, %v7253_v13, 0.0  ;;  %v7465_v13 = vld [vmem:[%s16223_s11 + $0x20] sm:$0xff]  ;;  %7520 = vmatpush.msrb.mxu3 %v8954_v53 }
 0xa59   :  { %v7232_v50 = vadd.f32 %v7231_v58, %v7230_v57  ;;  %v7277_v23 = vadd.f32 %v7276_v18, %v7275_v25  ;;  %v7464_v57 = vld [vmem:[%s16223_s11 + $0x18] sm:$0xff]  ;;  %7483 = vmatpush.msrb.mxu2 %v7465_v13 }
 0xa5a   :  { %v8953_v25 = vld [vmem:[%s16223_s11 + $0x58] sm:$0xff] }
 0xa5b   :  { %v7279_v30 = vadd.f32 %v7278_v8, %v7277_v23  ;;  %7484 = vmatpush.msrb.mxu2 %v7464_v57  ;;  %7521 = vmatpush.msrb.mxu3 %v8953_v25  ;;  %v7462_v8 = vld [vmem:[%s16223_s11 + $0x8] sm:$0xff] }
 0xa5d   :  { %v7049_v6 = vpop.permute.xlu1 %7048  ;;  %7485 = vmatpush.msrb.mxu2 %v7463_v9 }
 0xa5e   :  { %v7078_v36 = vadd.f32 %v7049_v6, %v15746_v20 }
 0xa5f   :  { %7486 = vmatpush.msrb.mxu2 %v7462_v8 }
 0xa60   :  { %v7092_v49 = vadd.f32 %v7078_v36, %v7008_v43  ;;  %v8973_v36 = vld [vmem:[%s16223_s11 + $0xe8] sm:$0xff]  ;;  %v8972_v43 = vld [vmem:[%s16223_s11 + $0xe0] sm:$0xff] }
 0xa61   :  { %7487 = vmatpush.msrb.mxu2 %v7461_v55 }
 0xa62   :  { %v15943_v1 = vadd.f32 %v15795_v4, %v7092_v49  ;;  %v8962_v49 = vld [vmem:[%s16223_s11 + $0x98] sm:$0xff] }
 0xa63   :  { %7554 = vmatpush.msra.mxu2 %v8966_v2 }
 0xa65   :  { %v7051_v21 = vpop.permute.xlu0 %7050  ;;  %v7194_v15 = vpop.permute.xlu1 %7193  ;;  %7555 = vmatpush.msra.mxu2 %v8965_v31 }
 0xa66   :  { %v7079_v48 = vadd.f32 %v7051_v21, %v15755_v40  ;;  %v8963_v21 = vld [vmem:[%s16223_s11 + $0xa0] sm:$0xff] }
 0xa67   :  { %7556 = vmatpush.msra.mxu2 %v8964_v47 }
 0xa68   :  { %v7093_v35 = vadd.f32 %v7079_v48, %v7009_v7 }
 0xa69   :  { %7557 = vmatpush.msra.mxu2 %v8963_v21 }
 0xa6a   :  { %v15940_v0 = vadd.f32 %v15795_v4, %v7093_v35  ;;  %v8971_v35 = vld [vmem:[%s16223_s11 + $0xd8] sm:$0xff] }
 0xa6b   :  { %7558 = vmatpush.msra.mxu2 %v8962_v49 }
 0xa6c   :  { %v7209_v45 = vmul.f32 %v7194_v15, %v15940_v0 }
 0xa6d   :  { %v7189_v22 = vpop.permute.xlu0 %7188 }
 0xa6e   :  { %v7208_v32 = vmul.f32 %v7189_v22, %v15943_v1  ;;  %v7256_v20 = vmul.f32 %v7209_v45, %v15940_v0  ;;  %v7235_v10 = vsel %vm5240_vm0, %v7209_v45, 0.0  ;;  %v8961_v45 = vld [vmem:[%s16223_s11 + $0x90] sm:$0xff] }
 0xa6f   :  { %v8970_v22 = vld [vmem:[%s16223_s11 + $0xd0] sm:$0xff]  ;;  %7559 = vmatpush.msra.mxu2 %v8961_v45 }
 0xa70   :  { %v7233_v46 = vsel %vm5240_vm0, %v7208_v32, 0.0  ;;  %v7255_v40 = vmul.f32 %v7208_v32, %v15943_v1  ;;  %v7282_v4 = vsel %vm5240_vm0, %v7256_v20, 0.0  ;;  %v8960_v20 = vld [vmem:[%s16223_s11 + $0x88] sm:$0xff] }
 0xa71   :  { %v7234_v42 = vadd.f32 %v7233_v46, %v7232_v50  ;;  %v8952_v50 = vld [vmem:[%s16223_s11 + $0x50] sm:$0xff]  ;;  %v8969_v46 = vld [vmem:[%s16223_s11 + $0xc8] sm:$0xff]  ;;  %7560 = vmatpush.msra.mxu2 %v8960_v20 }
 0xa72   :  { %v7280_v28 = vsel %vm5240_vm0, %v7255_v40, 0.0  ;;  %7522 = vmatpush.msrb.mxu3 %v8952_v50 }
 0xa73   :  { %v7236_v33 = vadd.f32 %v7235_v10, %v7234_v42  ;;  %v7281_v60 = vadd.f32 %v7280_v28, %v7279_v30  ;;  %v8951_v30 = vld [vmem:[%s16223_s11 + $0x48] sm:$0xff]  ;;  %v8959_v42 = vld [vmem:[%s16223_s11 + $0x80] sm:$0xff] }
 0xa74   :  { %7523 = vmatpush.msrb.mxu3 %v8951_v30  ;;  %v8968_v10 = vld [vmem:[%s16223_s11 + $0xc0] sm:$0xff]  ;;  %7561 = vmatpush.msra.mxu2 %v8959_v42 }
 0xa75   :  { %v7237_v61 = vrot.slane %v7236_v33, 4  ;;  %v7283_v11 = vadd.f32 %v7282_v4, %v7281_v60  ;;  %v7292_v28 = vld [vmem:[%s16225_s8] sm:$0x1] }
 0xa76   :  { %7524 = vmatpush.msrb.mxu3 %v8950_v59 }
 0xa77   :  { %v7238_v14 = vadd.f32 %v7237_v61, %v7236_v33  ;;  %v7284_v62 = vrot.slane %v7283_v11, 4  ;;  %v7305_v61 = vld [vmem:[%s16226_s9] sm:$0x1] }
 0xa78   :  { %7591 = vmatpush.msra.mxu3 %v8975_v39 }
 0xa79   :  { %v7239_v16 = vrot.slane %v7238_v14, 2  ;;  %v7285_v27 = vadd.f32 %v7284_v62, %v7283_v11 }
 0xa7a   :  { %7592 = vmatpush.msra.mxu3 %v8974_v63 }
 0xa7b   :  { %v7240_v37 = vadd.f32 %v7239_v16, %v7238_v14  ;;  %v7286_v5 = vrot.slane %v7285_v27, 2 }
 0xa7c   :  { %7593 = vmatpush.msra.mxu3 %v8973_v36 }
 0xa7d   :  { %v7241_v29 = vrot.slane %v7240_v37, 1  ;;  %v7287_v12 = vadd.f32 %v7286_v5, %v7285_v27 }
 0xa7e   :  { %7594 = vmatpush.msra.mxu3 %v8972_v43 }
 0xa7f   :  { %v15953_v51 = vadd.f32 %v7241_v29, %v7240_v37  ;;  %v7288_v44 = vrot.slane %v7287_v12, 1 }
 0xa80   :  { %7595 = vmatpush.msra.mxu3 %v8971_v35 }
 0xa81   :  { %v7289_v58 = vadd.f32 %v7288_v44, %v7287_v12  ;;  %v7290_v18 = vmul.f32 %v15953_v51, %v15953_v51 }
 0xa82   :  { %7596 = vmatpush.msra.mxu3 %v8970_v22 }
 0xa83   :  { %v7291_v23 = vsub.f32 %v7289_v58, %v7290_v18 }
 0xa84   :  { %7597 = vmatpush.msra.mxu3 %v8969_v46 }
 0xa85   :  { %v7293_v6 = vadd.f32 1e-05, %v7291_v23 }
 0xa86   :  { %7598 = vmatpush.msra.mxu3 %v8968_v10 }
 0xa87   :  { %9314 = vrsqrt.f32 %v7293_v6  ;;  %vm7300_vm7 = vweird.f32 %v7293_v6 }
 0xa8d   :  { %v9315_v7 = vpop.eup %9314 }
 0xa8e   :  { %v7295_v48 = vmul.f32 %v9315_v7, %v7293_v6  ;;  %vm7301_vm6 = vweird.f32 %v9315_v7 }
 0xa8f   :  { %vm7302_vm8 = vmor %vm7300_vm7, %vm7301_vm6 }
 0xa90   :  { %v7296_v15 = vmul.f32 %v9315_v7, %v7295_v48 }
 0xa92   :  { %v7297_v32 = vmul.f32 0.5, %v7296_v15 }
 0xa94   :  { %v7298_v40 = vsub.f32 1.5, %v7297_v32 }
 0xa96   :  { %v7299_v33 = vmul.f32 %v9315_v7, %v7298_v40 }
 0xa98   :  { %v7303_v60 = vsel %vm7302_vm8, %v9315_v7, %v7299_v33 }
 0xa99   :  { %v7304_v4 = vmul.f32 %v7303_v60, %v7292_v28 }
 0xa9b   :  { %v7306_v11 = vmul.f32 %v7304_v4, %v15953_v51  ;;  %v7309_v14 = vperm.slane %v7304_v4, 0 }
 0xa9d   :  { %v7307_v62 = vsub.f32 %v7305_v61, %v7306_v11  ;;  %v7311_v16 = vmul.f32 %v7309_v14, %v15805_v17  ;;  %v7312_v27 = vmul.f32 %v7309_v14, %v15808_v26  ;;  %v7313_v37 = vmul.f32 %v7309_v14, %v15814_v52 }
 0xa9e   :  { %v7319_v5 = vmul.f32 %v7309_v14, %v15887_v34  ;;  %v7320_v29 = vmul.f32 %v7309_v14, %v15895_v38  ;;  %v7321_v12 = vmul.f32 %v7309_v14, %v15920_v54  ;;  %v7314_v13 = vmul.f32 %v7309_v14, %v15818_v3 }
 0xa9f   :  { %v7326_v44 = vperm.slane %v7307_v62, 0  ;;  %v7315_v53 = vmul.f32 %v7309_v14, %v15845_v19  ;;  %v7322_v51 = vmul.f32 %v7309_v14, %v15911_v24  ;;  %v7323_v57 = vmul.f32 %v7309_v14, %v15943_v1 }
 0xaa0   :  { %v7316_v17 = vmul.f32 %v7309_v14, %v15856_v41  ;;  %v7317_v26 = vmul.f32 %v7309_v14, %v15864_v56  ;;  %v7324_v52 = vmul.f32 %v7309_v14, %v15940_v0 }
 0xaa1   :  { %v7328_v34 = vadd.f32 %v7326_v44, %v7311_v16  ;;  %v7329_v25 = vadd.f32 %v7326_v44, %v7312_v27  ;;  %v7330_v38 = vadd.f32 %v7326_v44, %v7313_v37  ;;  %v7336_v58 = vadd.f32 %v7326_v44, %v7319_v5 }
 0xaa2   :  { %v7337_v54 = vadd.f32 %v7326_v44, %v7320_v29  ;;  %v7338_v18 = vadd.f32 %v7326_v44, %v7321_v12  ;;  %v7331_v9 = vadd.f32 %v7326_v44, %v7314_v13  ;;  %v7332_v1 = vadd.f32 %v7326_v44, %v7315_v53 }
 0xaa3   :  { %v7342_v3 = vmax.f32 %v7328_v34, 0.0  ;;  %v7343_v50 = vmax.f32 %v7329_v25, 0.0  ;;  %v7344_v19 = vmax.f32 %v7330_v38, 0.0  ;;  %v7350_v23 = vmax.f32 %v7336_v58, 0.0 }
 0xaa4   :  { %v7351_v24 = vmax.f32 %v7337_v54, 0.0  ;;  %v7352_v8 = vmax.f32 %v7338_v18, 0.0  ;;  %v7339_v59 = vadd.f32 %v7326_v44, %v7322_v51  ;;  %v7340_v31 = vadd.f32 %v7326_v44, %v7323_v57 }
 0xaa5   :  { %v7370_v30 = vrot.slane %v7342_v3, 1  ;;  %v7371_v41 = vrot.slane %v7343_v50, 1  ;;  %v7373_v6 = vrot.slane %v7344_v19, 1  ;;  %v7385_v56 = vrot.slane %v7350_v23, 1 }
 0xaa6   :  { %v7387_v55 = vrot.slane %v7351_v24, 1  ;;  %v7389_v0 = vrot.slane %v7352_v8, 1  ;;  %v7345_v63 = vmax.f32 %v7331_v9, 0.0  ;;  %v7346_v49 = vmax.f32 %v7332_v1, 0.0  ;;  %v8983_v1 = vld [vmem:[%s16223_s11 + $0x130] sm:$0xff] }
 0xaa7   :  { %v7372_v2 = vsel %vm6071_vm4, %v7370_v30, %v7371_v41  ;;  %v7374_v39 = vsel %vm6071_vm4, %v7371_v41, %v7373_v6  ;;  %v7353_v35 = vmax.f32 %v7339_v59, 0.0  ;;  %v7354_v15 = vmax.f32 %v7340_v31, 0.0  ;;  %v8981_v59 = vld [vmem:[%s16223_s11 + $0x120] sm:$0xff] }
 0xaa8   :  { %v7388_v47 = vsel %vm6071_vm4, %v7385_v56, %v7387_v55  ;;  %v7390_v36 = vsel %vm6071_vm4, %v7387_v55, %v7389_v0  ;;  %v7413_v21 = vmax.f32 %v7342_v3, %v7372_v2  ;;  %v7414_v43 = vmax.f32 %v7343_v50, %v7374_v39  ;;  %v8991_v56 = vld [vmem:[%s16223_s11 + $0x168] sm:$0xff]  ;;  %v8990_v2 = vld [vmem:[%s16223_s11 + $0x160] sm:$0xff] }
 0xaa9   :  { %v7421_v7 = vmax.f32 %v7350_v23, %v7388_v47  ;;  %v7422_v48 = vmax.f32 %v7351_v24, %v7390_v36  ;;  %v7375_v45 = vrot.slane %v7345_v63, 1  ;;  %v7333_v20 = vadd.f32 %v7326_v44, %v7316_v17  ;;  %v8993_v23 = vld [vmem:[%s16223_s11 + $0x178] sm:$0xff] }
 0xaaa   :  { %v7427_v22 = vmax.f32 %v7413_v21, %v7414_v43  ;;  %v7377_v40 = vrot.slane %v7346_v49, 1  ;;  %v7391_v42 = vrot.slane %v7353_v35, 1  ;;  %v7393_v10 = vrot.slane %v7354_v15, 1  ;;  %v8980_v47 = vld [vmem:[%s16223_s11 + $0x118] sm:$0xff]  ;;  %v8979_v21 = vld [vmem:[%s16223_s11 + $0x110] sm:$0xff] }
 0xaab   :  { %v7435_v32 = vmax.f32 %v7421_v7, %v7422_v48  ;;  %v7376_v46 = vsel %vm6071_vm4, %v7373_v6, %v7375_v45  ;;  %v7334_v33 = vadd.f32 %v7326_v44, %v7317_v26  ;;  %v7341_v60 = vadd.f32 %v7326_v44, %v7324_v52  ;;  %v8982_v6 = vld [vmem:[%s16223_s11 + $0x128] sm:$0xff]  ;;  %v8989_v36 = vld [vmem:[%s16223_s11 + $0x158] sm:$0xff]  ;;  %v8988_v43 = vld [vmem:[%s16223_s11 + $0x150] sm:$0xff] }
 0xaac   :  { %7440 = vst.msk [vmem:[#allocation3] sm:$0xff] %vm5240_vm0, %v7427_v22  ;;  %v7415_v28 = vmax.f32 %v7344_v19, %v7376_v46  ;;  %v7347_v4 = vmax.f32 %v7333_v20, 0.0  ;;  %v7378_v61 = vsel %vm6071_vm4, %v7375_v45, %v7377_v40  ;;  %v7392_v11 = vsel %vm6071_vm4, %v7389_v0, %v7391_v42  ;;  %v8984_v19 = vld [vmem:[%s16223_s11 + $0x138] sm:$0xff]  ;;  %v8978_v7 = vld [vmem:[%s16223_s11 + $0x108] sm:$0xff] }
 0xaad   :  { %v7394_v14 = vsel %vm6071_vm4, %v7391_v42, %v7393_v10  ;;  %7448 = vst.msk [vmem:[#allocation3 + $0x40] sm:$0xff] %vm5240_vm0, %v7435_v32  ;;  %v7416_v62 = vmax.f32 %v7345_v63, %v7378_v61  ;;  %v7423_v16 = vmax.f32 %v7352_v8, %v7392_v11  ;;  %v7348_v37 = vmax.f32 %v7334_v33, 0.0  ;;  %v8987_v48 = vld [vmem:[%s16223_s11 + $0x148] sm:$0xff]  ;;  %v9002_v20 = vld [vmem:[%s16223_s11 + $0x1b8] sm:$0xff]  ;;  %v9008_v61 = vld [vmem:[%s16223_s11 + $0x1e0] sm:$0xff] }
 0xaae   :  { %v7424_v27 = vmax.f32 %v7353_v35, %v7394_v14  ;;  %v7355_v5 = vmax.f32 %v7341_v60, 0.0  ;;  %v7379_v29 = vrot.slane %v7347_v4, 1  ;;  %v8986_v35 = vld [vmem:[%s16223_s11 + $0x140] sm:$0xff]  ;;  %v9011_v46 = vld [vmem:[%s16223_s11 + $0x1f8] sm:$0xff]  ;;  %v9000_v33 = vld [vmem:[%s16223_s11 + $0x1a8] sm:$0xff] }
 0xaaf   :  { %v7429_v12 = vmax.f32 %v7415_v28, %v7416_v62  ;;  %v7381_v44 = vrot.slane %v7348_v37, 1  ;;  %v9010_v28 = vld [vmem:[%s16223_s11 + $0x1f0] sm:$0xff]  ;;  %v9009_v60 = vld [vmem:[%s16223_s11 + $0x1e8] sm:$0xff]  ;;  %v8998_v11 = vld [vmem:[%s16223_s11 + $0x198] sm:$0xff] }
 0xab0   :  { %v7437_v13 = vmax.f32 %v7423_v16, %v7424_v27  ;;  %v7380_v53 = vsel %vm6071_vm4, %v7377_v40, %v7379_v29  ;;  %v7395_v51 = vrot.slane %v7355_v5, 1  ;;  %v9007_v14 = vld [vmem:[%s16223_s11 + $0x1d8] sm:$0xff]  ;;  %v8997_v62 = vld [vmem:[%s16223_s11 + $0x190] sm:$0xff]  ;;  %v8996_v27 = vld [vmem:[%s16223_s11 + $0x188] sm:$0xff] }
 0xab1   :  { %7442 = vst.msk [vmem:[#allocation3 + $0x10] sm:$0xff] %vm5240_vm0, %v7429_v12  ;;  %v7417_v57 = vmax.f32 %v7346_v49, %v7380_v53  ;;  %v7382_v52 = vsel %vm6071_vm4, %v7379_v29, %v7381_v44  ;;  %v8977_v49 = vld [vmem:[%s16223_s11 + $0x100] sm:$0xff]  ;;  %v9006_v16 = vld [vmem:[%s16223_s11 + $0x1d0] sm:$0xff]  ;;  %v9005_v37 = vld [vmem:[%s16223_s11 + $0x1c8] sm:$0xff] }
 0xab2   :  { %v7396_v34 = vsel %vm6071_vm4, %v7393_v10, %v7395_v51  ;;  %v7412_v25 = vsel %vm6071_vm4, %v7395_v51, %v7370_v30  ;;  %v7418_v38 = vmax.f32 %v7347_v4, %v7382_v52  ;;  %7450 = vst.msk [vmem:[#allocation3 + $0x50] sm:$0xff] %vm5240_vm0, %v7437_v13  ;;  %v8992_v30 = vld [vmem:[%s16223_s11 + $0x170] sm:$0xff]  ;;  %v8999_v4 = vld [vmem:[%s16223_s11 + $0x1a0] sm:$0xff]  ;;  %v9018_v52 = vld [vmem:[%s16223_s11 + $0x228] sm:$0xff] }
 0xab3   :  { %v7458_v17 = vld [vmem:[#allocation3] ss:$64 sm:$0x1]  ;;  %v7494_v26 = vld [vmem:[#allocation3 + $0x2] ss:$64 sm:$0x1]  ;;  %v7425_v58 = vmax.f32 %v7354_v15, %v7396_v34  ;;  %v7426_v54 = vmax.f32 %v7355_v5, %v7412_v25 }
 0xab4   :  { %v7459_v18 = vld [vmem:[#allocation3] ss:$64 sm:$0x2]  ;;  %v7495_v9 = vld [vmem:[#allocation3 + $0x2] ss:$64 sm:$0x2]  ;;  %v7431_v24 = vmax.f32 %v7417_v57, %v7418_v38 }
 0xab5   :  { %v7460_v3 = vor.u32 %v7459_v18, %v7458_v17  ;;  %v7496_v50 = vor.u32 %v7495_v9, %v7494_v26  ;;  %v7439_v8 = vmax.f32 %v7425_v58, %v7426_v54  ;;  %v7531_v41 = vld [vmem:[#allocation3 + $0x4] ss:$64 sm:$0x1]  ;;  %v9001_v10 = vld [vmem:[%s16223_s11 + $0x1b0] sm:$0xff]  ;;  %v9020_v17 = vld [vmem:[%s16223_s11 + $0x238] sm:$0xff] }
 0xab6   :  { %7444 = vst.msk [vmem:[#allocation3 + $0x20] sm:$0xff] %vm5240_vm0, %v7431_v24  ;;  %v7532_v55 = vld [vmem:[#allocation3 + $0x4] ss:$64 sm:$0x2]  ;;  %v9019_v26 = vld [vmem:[%s16223_s11 + $0x230] sm:$0xff]  ;;  %v9016_v25 = vld [vmem:[%s16223_s11 + $0x218] sm:$0xff] }
 0xab7   :  { %8949 = vmatmul.msk.f32.vlgmr.msrb.gmra.mxu2 %vm5240_vm0, %v7460_v3  ;;  %8958 = vmatmul.msk.f32.vlgmr.msrb.gmra.mxu3 %vm5240_vm0, %v7496_v50  ;;  %v7533_v31 = vor.u32 %v7532_v55, %v7531_v41  ;;  %7452 = vst.msk [vmem:[#allocation3 + $0x60] sm:$0xff] %vm5240_vm0, %v7439_v8  ;;  %v8995_v53 = vld [vmem:[%s16223_s11 + $0x180] sm:$0xff]  ;;  %v9015_v38 = vld [vmem:[%s16223_s11 + $0x210] sm:$0xff]  ;;  %v9014_v58 = vld [vmem:[%s16223_s11 + $0x208] sm:$0xff]  ;;  %v20_v8 = vstv %s16228_s14 }
 0xab8   :  { %7628 = vmatpush.msrb.mxu2 %v8984_v19  ;;  %7665 = vmatpush.msrb.mxu3 %v8993_v23  ;;  %v7568_v0 = vld [vmem:[#allocation3 + $0x10] ss:$64 sm:$0x1]  ;;  %v7605_v15 = vld [vmem:[#allocation3 + $0x12] ss:$64 sm:$0x1] }
 0xab9   :  { %v7569_v39 = vld [vmem:[#allocation3 + $0x10] ss:$64 sm:$0x2]  ;;  %v7642_v45 = vld [vmem:[#allocation3 + $0x14] ss:$64 sm:$0x1] }
 0xaba   :  { %7629 = vmatpush.msrb.mxu2 %v8983_v1  ;;  %7666 = vmatpush.msrb.mxu3 %v8992_v30  ;;  %v7570_v63 = vor.u32 %v7569_v39, %v7568_v0  ;;  %v7606_v22 = vld [vmem:[#allocation3 + $0x12] ss:$64 sm:$0x2]  ;;  %v7643_v32 = vld [vmem:[#allocation3 + $0x14] ss:$64 sm:$0x2] }
 0xabb   :  { %v7607_v40 = vor.u32 %v7606_v22, %v7605_v15  ;;  %v7644_v42 = vor.u32 %v7643_v32, %v7642_v45  ;;  %v9004_v44 = vld [vmem:[%s16223_s11 + $0x1c0] sm:$0xff]  ;;  %21 = vst [vmem:[#allocation4] sm:$0x1] %v20_v8 }
 0xabc   :  { %7630 = vmatpush.msrb.mxu2 %v8982_v6  ;;  %7667 = vmatpush.msrb.mxu3 %v8991_v56  ;;  %v9017_v34 = vld [vmem:[%s16223_s11 + $0x220] sm:$0xff] }
 0xabd   :  { %v7679_v5 = vld [vmem:[#allocation3 + $0x20] ss:$64 sm:$0x1]  ;;  %v7716_v29 = vld [vmem:[#allocation3 + $0x22] ss:$64 sm:$0x1] }
 0xabe   :  { %7631 = vmatpush.msrb.mxu2 %v8981_v59  ;;  %7668 = vmatpush.msrb.mxu3 %v8990_v2  ;;  %v7680_v12 = vld [vmem:[#allocation3 + $0x20] ss:$64 sm:$0x2]  ;;  %v7717_v13 = vld [vmem:[#allocation3 + $0x22] ss:$64 sm:$0x2] }
 0xabf   :  { %8967 = vmatmul.msk.f32.vlgmr.msra.gmra.mxu2 %vm5240_vm0, %v7533_v31  ;;  %8976 = vmatmul.msk.f32.vlgmr.msra.gmra.mxu3 %vm5240_vm0, %v7570_v63  ;;  %v7681_v51 = vor.u32 %v7680_v12, %v7679_v5  ;;  %v7718_v57 = vor.u32 %v7717_v13, %v7716_v29  ;;  %v7753_v54 = vld [vmem:[#allocation3 + $0x24] ss:$64 sm:$0x1]  ;;  %v9309_v23 = vld [vmem:[%s16224_s12] ss:$0 sm:$0xff] }
 0xac0   :  { %7632 = vmatpush.msrb.mxu2 %v8980_v47  ;;  %7669 = vmatpush.msrb.mxu3 %v8989_v36  ;;  %v7754_v18 = vld [vmem:[#allocation3 + $0x24] ss:$64 sm:$0x2] }
 0xac1   :  { %v9013_v9 = vld [vmem:[%s16223_s11 + $0x200] sm:$0xff]  ;;  %v7755_v3 = vor.u32 %v7754_v18, %v7753_v54 }
 0xac2   :  { %7633 = vmatpush.msrb.mxu2 %v8979_v21  ;;  %7670 = vmatpush.msrb.mxu3 %v8988_v43  ;;  %v9310_v43 = vld [vmem:[%s16227_s13] ss:$0 sm:$0xff] }
 0xac4   :  { %7634 = vmatpush.msrb.mxu2 %v8978_v7  ;;  %7671 = vmatpush.msrb.mxu3 %v8987_v48 }
 0xac6   :  { %7635 = vmatpush.msrb.mxu2 %v8977_v49  ;;  %7672 = vmatpush.msrb.mxu3 %v8986_v35  ;;  %v9311_v35 = vld [vmem:[#allocation4] ss:$0 sm:$0xff] }
 0xac7   :  { %8985 = vmatmul.msk.f32.vlgmr.msrb.gmra.mxu2 %vm5240_vm0, %v7607_v40  ;;  %8994 = vmatmul.msk.f32.vlgmr.msrb.gmra.mxu3 %vm5240_vm0, %v7644_v42 }
 0xac8   :  { %7702 = vmatpush.msra.mxu2 %v9002_v20  ;;  %7739 = vmatpush.msra.mxu3 %v9011_v46 }
 0xaca   :  { %7703 = vmatpush.msra.mxu2 %v9001_v10  ;;  %7740 = vmatpush.msra.mxu3 %v9010_v28 }
 0xacc   :  { %7704 = vmatpush.msra.mxu2 %v9000_v33  ;;  %7741 = vmatpush.msra.mxu3 %v9009_v60 }
 0xace   :  { %7705 = vmatpush.msra.mxu2 %v8999_v4  ;;  %7742 = vmatpush.msra.mxu3 %v9008_v61 }
 0xad0   :  { %7706 = vmatpush.msra.mxu2 %v8998_v11  ;;  %7743 = vmatpush.msra.mxu3 %v9007_v14 }
 0xad2   :  { %7707 = vmatpush.msra.mxu2 %v8997_v62  ;;  %7744 = vmatpush.msra.mxu3 %v9006_v16 }
 0xad4   :  { %7708 = vmatpush.msra.mxu2 %v8996_v27  ;;  %7745 = vmatpush.msra.mxu3 %v9005_v37 }
 0xad6   :  { %7709 = vmatpush.msra.mxu2 %v8995_v53  ;;  %7746 = vmatpush.msra.mxu3 %v9004_v44 }
 0xad7   :  { %9003 = vmatmul.msk.f32.vlgmr.msra.gmra.mxu2 %vm5240_vm0, %v7681_v51  ;;  %9012 = vmatmul.msk.f32.vlgmr.msra.gmra.mxu3 %vm5240_vm0, %v7718_v57 }
 0xad8   :  { %7776 = vmatpush.msrb.mxu2 %v9020_v17 }
 0xada   :  { %7777 = vmatpush.msrb.mxu2 %v9019_v26 }
 0xadc   :  { %7778 = vmatpush.msrb.mxu2 %v9018_v52 }
 0xade   :  { %7779 = vmatpush.msrb.mxu2 %v9017_v34 }
 0xae0   :  { %7780 = vmatpush.msrb.mxu2 %v9016_v25 }
 0xae2   :  { %7781 = vmatpush.msrb.mxu2 %v9015_v38 }
 0xae4   :  { %7782 = vmatpush.msrb.mxu2 %v9014_v58 }
 0xae6   :  { %7783 = vmatpush.msrb.mxu2 %v9013_v9 }
 0xae7   :  { %9021 = vmatmul.msk.f32.vlgmr.msrb.gmra.mxu2 %vm5240_vm0, %v7755_v3 }
 0xb3a   :  { %v7489_v50 = vpop.f32.mrf.mxu2  ;;  %v7526_v19 = vpop.f32.mrf.mxu3 }
 0xb3b   :  { %v7492_v1 = vadd.f32 %v9309_v23, %v7489_v50 }
 0xb3d   :  { %v7529_v41 = vadd.f32 %v7526_v19, %v7492_v1 }
 0xb42   :  { %v7563_v24 = vpop.f32.mrf.mxu2  ;;  %v7600_v30 = vpop.f32.mrf.mxu3 }
 0xb43   :  { %v7566_v6 = vadd.f32 %v7563_v24, %v7529_v41 }
 0xb45   :  { %v7603_v55 = vadd.f32 %v7600_v30, %v7566_v6 }
 0xb4a   :  { %v7637_v56 = vpop.f32.mrf.mxu2  ;;  %v7674_v59 = vpop.f32.mrf.mxu3 }
 0xb4b   :  { %v7640_v0 = vadd.f32 %v7637_v56, %v7603_v55 }
 0xb4d   :  { %v7677_v39 = vadd.f32 %v7674_v59, %v7640_v0 }
 0xb5a   :  { %v7711_v2 = vpop.f32.mrf.mxu2  ;;  %v7748_v63 = vpop.f32.mrf.mxu3 }
 0xb5b   :  { %v7714_v31 = vadd.f32 %v7711_v2, %v7677_v39 }
 0xb5d   :  { %v7751_v47 = vadd.f32 %v7748_v63, %v7714_v31 }
 0xb6a   :  { %v7785_v36 = vpop.f32.mrf.mxu2 }
 0xb6b   :  { %v7788_v21 = vadd.f32 %v7785_v36, %v7751_v47 }
 0xb6d   :  { %v7789_v7 = vmax.f32 %v7788_v21, 0.0 }
 0xb6f   :  { %v7794_v48 = vmul.f32 %v9310_v43, %v7789_v7 }
 0xb71   :  { %v7796_v49 = vsel %vm7795_vm9, %v7794_v48, 0.0 }
 0xb72   :  { %7797 = vadd.xlane.f32.xlu2 %v7796_v49 }
 0xbe5   :  { %v7798_v15 = vpop.xlane.xlu2 %7797 }
 0xbe6   :  { %v7803_v45 = vadd.f32 %v9311_v35, %v7798_v15 }
 0xbe8   :  { %v7804_v22 = vsub.f32 0.0, %v7803_v45 }
 0xbea   :  { %v7805_v32 = vmul.f32 1.442695, %v7804_v22 }
 0xbec   :  { %9316 = vpow2.f32 %v7805_v32 }
 0xbf2   :  { %v9317_v20 = vpop.eup %9316 }
 0xbf3   :  { %v7807_v46 = vadd.f32 1.0, %v9317_v20 }
 0xbf5   :  { %9318 = vrcp.f32 %v7807_v46  ;;  %v7819_v28 = vand.u32 2147483648, %v7807_v46  ;;  %v7817_v60 = vand.u32 2147483647, %v7807_v46  ;;  %vm7813_vm11 = vweird.f32 %v7807_v46 }
 0xbf7   :  { %v7820_v61 = vor.u32 1.1754944e-38, %v7819_v28  ;;  %vm7818_vm14 = vcmp.eq.f32.partialorder %v7817_v60, 8.507059e+37 }
 0xbfb   :  { %v9319_v40 = vpop.eup %9318 }
 0xbfc   :  { %v7809_v42 = vmul.f32 %v9319_v40, %v7807_v46  ;;  %vm7814_vm10 = vweird.f32 %v9319_v40 }
 0xbfd   :  { %vm7815_vm13 = vmor %vm7813_vm11, %vm7814_vm10 }
 0xbfe   :  { %v7810_v10 = vsub.f32 1.0, %v7809_v42 }
 0xc00   :  { %v7811_v33 = vmul.f32 %v9319_v40, %v7810_v10 }
 0xc02   :  { %v7812_v4 = vadd.f32 %v9319_v40, %v7811_v33 }
 0xc04   :  { %v7816_v11 = vsel %vm7815_vm13, %v9319_v40, %v7812_v4 }
 0xc05   :  { %v7821_v14 = vsel %vm7818_vm14, %v7820_v61, %v7816_v11 }
 0xc06   :  { %7824 = vst.msk [vmem:[%s16229_s15] sm:$0x3] %vm7823_vm12, %v7821_v14 }

</bundles_post_ra>
